<compile_context>
chip_gen: v5e
topology: v5e:2x2
jax: 0.10.0
libtpu: 0.0.40
codegen_flags: <defaults>
</compile_context>

<pallas_src>
import functools

import jax
import jax.numpy as jnp
from jax.experimental import pallas as pl
from jax.experimental.pallas import tpu as pltpu

OUT_SCALE = 0.001  # SiamFC head output scale


# --------------------------- weight preprocessing ---------------------------

def _make_banded_weights(w, w_in):
    """Expand conv weights (Cout, Cin, kh, kw) into kh banded matmul matrices.

    For a channels-last "row" activation A of shape (H, W_in*Cin) with
    A[i, jv*Cin + c] = NHWC[i, jv, c], the valid stride-1 conv is
        out[i, j*Cout + o] = sum_u (A[i+u, :] @ T[u])[j*Cout + o]
    where T[u, jv*Cin + c, j*Cout + o] = w[o, c, u, jv - j] for 0 <= jv-j < kw,
    else 0.  Returned shape: (kh, W_in*Cin, Wo*Cout), Wo = W_in - kw + 1.
    """
    cout, cin, kh, kw = w.shape
    wo = w_in - kw + 1
    jv = jnp.arange(w_in)
    j = jnp.arange(wo)
    d = jv[:, None] - j[None, :]                       # (w_in, wo)
    valid = (d >= 0) & (d < kw)
    dc = jnp.clip(d, 0, kw - 1)
    wt = jnp.transpose(w, (2, 3, 1, 0))                # (kh, kw, cin, cout)
    g = wt[:, dc]                                      # (kh, w_in, wo, cin, cout)
    g = jnp.where(valid[None, :, :, None, None], g, 0.0)
    g = jnp.transpose(g, (0, 1, 3, 2, 4))              # (kh, w_in, cin, wo, cout)
    return g.reshape(kh, w_in * cin, wo * cout)


def _tiled_bias(b, wo):
    """bias (Cout,) -> (1, Wo*Cout) row matching the banded-matmul output layout."""
    return jnp.tile(b, wo).reshape(1, wo * b.shape[0])


def prepare_params(params, z_hw, x_hw, compute_dtype=jnp.float32):
    """One-time expansion of conv params into banded matmul weights + biases.

    Call once (outside the jitted forward); pass the result to net_forward.
    compute_dtype=jnp.bfloat16 is recommended on v6e/v7x (bf16-native MXU).
    """
    w1, b1 = params["w1"], params["b1"]
    w2, b2 = params["w2"], params["b2"]
    kh = w1.shape[2]
    hz0, wz0 = z_hw
    hx0, wx0 = x_hw
    wz1, wx1 = wz0 - kh + 1, wx0 - kh + 1
    wz2, wx2 = wz1 - kh + 1, wx1 - kh + 1
    cd = compute_dtype
    return {
        "t1z": _make_banded_weights(w1, wz0).astype(cd),
        "t1x": _make_banded_weights(w1, wx0).astype(cd),
        "t2z": _make_banded_weights(w2, wz1).astype(cd),
        "t2x": _make_banded_weights(w2, wx1).astype(cd),
        # biases stay fp32 (tiny, added after the fp32-accumulated dot)
        "b1z": _tiled_bias(b1, wz1).astype(jnp.float32),
        "b1x": _tiled_bias(b1, wx1).astype(jnp.float32),
        "b2z": _tiled_bias(b2, wz2).astype(jnp.float32),
        "b2x": _tiled_bias(b2, wx2).astype(jnp.float32),
    }


# ------------------------------- fused kernel -------------------------------

def _fused_net_kernel(z_ref, x_ref, t1z_ref, t1x_ref, t2z_ref, t2x_ref,
                      b1z_ref, b1x_ref, b2z_ref, b2x_ref, o_ref,
                      *, kh, c2, hz2, wz2, ho, wo):
    """conv1+ReLU -> conv2+ReLU (z and x paths) -> SiamFC x-corr head, in VMEM."""

    def conv_relu(a, t_ref, b_ref):
        h_out = a.shape[0] - kh + 1
        a = a.astype(t_ref.dtype)                      # bf16 path: cast once
        acc = jnp.dot(a[0:h_out, :], t_ref[0], preferred_element_type=jnp.float32)
        for u in range(1, kh):
            acc = acc + jnp.dot(a[u:u + h_out, :], t_ref[u],
                                preferred_element_type=jnp.float32)
        return jnp.maximum(acc + b_ref[...], 0.0)      # fp32 activations

    zf = conv_relu(conv_relu(z_ref[0], t1z_ref, b1z_ref), t2z_ref, b2z_ref)
    xf = conv_relu(conv_relu(x_ref[0], t1x_ref, b1x_ref), t2x_ref, b2x_ref)
    # zf: (hz2, wz2*c2) fp32, xf: (hx2, wx2*c2) fp32

    # Head: resp[i, j] = sum_{u,v,c} xf[i+u, (j+v)*c2 + c] * zf[u, v*c2 + c]
    # Restructured: j outer (one lane slice + one cross-lane reduction per j),
    # u inner accumulating (ho, kcols) products in vregs.  Loops are short
    # (wo=9, hz2=12) and Python-unrolled so the LLO scheduler sees everything;
    # only one (ho, kcols) accumulator is live at a time.
    kcols = wz2 * c2
    cols = []
    for j in range(wo):
        xs_j = xf[:, j * c2:j * c2 + kcols]            # one lane slice per j
        acc = xs_j[0:ho, :] * zf[0:1, :]
        for u in range(1, hz2):
            acc = acc + xs_j[u:u + ho, :] * zf[u:u + 1, :]
        cols.append(jnp.sum(acc, axis=-1, keepdims=True))   # one reduction per j
    resp = jnp.concatenate(cols, axis=1)               # (ho, wo)
    o_ref[0] = resp * OUT_SCALE


# -------------------------------- Net forward --------------------------------

def net_forward(prepared, z, x):
    """Net.forward(z, x): shared backbone on z and x, then SiamFC head.

    `prepared` is the output of prepare_params (expanded banded weights/biases).
    All static sizes are derived from array shapes so they stay Python ints
    under jit.
    """
    B, cin, hz0, wz0 = z.shape
    _, _, hx0, wx0 = x.shape
    kh = prepared["t1z"].shape[0]
    cd = prepared["t1z"].dtype

    hz1, wz1 = hz0 - kh + 1, wz0 - kh + 1
    hx1, wx1 = hx0 - kh + 1, wx0 - kh + 1
    hz2, wz2 = hz1 - kh + 1, wz1 - kh + 1
    hx2, wx2 = hx1 - kh + 1, wx1 - kh + 1
    ho, wo = hx2 - hz2 + 1, wx2 - wz2 + 1
    c2 = prepared["b2z"].shape[1] // wz2

    # Channels-last 2-D rows (B, H, W*C): one cheap transpose of the raw inputs;
    # everything downstream stays in this layout inside the kernel.
    def to_rows(t):
        b_, c_, h_, w_ = t.shape
        return jnp.transpose(t, (0, 2, 3, 1)).reshape(b_, h_, w_ * c_).astype(cd)

    z2d, x2d = to_rows(z), to_rows(x)

    def full_spec(arr):
        ndim = arr.ndim
        return pl.BlockSpec(arr.shape, lambda b: (0,) * ndim)

    kernel = functools.partial(_fused_net_kernel, kh=kh, c2=c2,
                               hz2=hz2, wz2=wz2, ho=ho, wo=wo)

    out = pl.pallas_call(
        kernel,
        grid=(B,),
        out_shape=jax.ShapeDtypeStruct((B, ho, wo), jnp.float32),
        in_specs=[
            pl.BlockSpec((1, hz0, wz0 * cin), lambda b: (b, 0, 0)),
            pl.BlockSpec((1, hx0, wx0 * cin), lambda b: (b, 0, 0)),
            full_spec(prepared["t1z"]), full_spec(prepared["t1x"]),
            full_spec(prepared["t2z"]), full_spec(prepared["t2x"]),
            full_spec(prepared["b1z"]), full_spec(prepared["b1x"]),
            full_spec(prepared["b2z"]), full_spec(prepared["b2x"]),
        ],
        out_specs=pl.BlockSpec((1, ho, wo), lambda b: (b, 0, 0)),
        compiler_params=pltpu.CompilerParams(
            dimension_semantics=("parallel",)),
    )(z2d, x2d,
      prepared["t1z"], prepared["t1x"], prepared["t2z"], prepared["t2x"],
      prepared["b1z"], prepared["b1x"], prepared["b2z"], prepared["b2x"])

    return out.reshape(B, 1, ho, wo)


# ------------------------------ pure-JAX reference ---------------------------

def _ref_forward(params, z, x):
    """Pure-JAX reference (lax.conv) for correctness check."""
    def bb(t):
        for w, bias in [(params["w1"], params["b1"]), (params["w2"], params["b2"])]:
            t = jax.lax.conv_general_dilated(
                t, w, (1, 1), "VALID",
                dimension_numbers=("NCHW", "OIHW", "NCHW"))
            t = jnp.maximum(t + bias[None, :, None, None], 0.0)
        return t

    zf, xf = bb(z), bb(x)
    outs = []
    for i in range(z.shape[0]):
        o = jax.lax.conv_general_dilated(
            xf[i:i + 1], zf[i:i + 1], (1, 1), "VALID",
            dimension_numbers=("NCHW", "OIHW", "NCHW"))
        outs.append(o)
    return jnp.concatenate(outs, axis=0) * OUT_SCALE


if __name__ == "__main__":
    key = jax.random.PRNGKey(0)
    kz, kx, k1, k2, k3, k4 = jax.random.split(key, 6)

    # Small shapes consistent with SiamFC: exemplar z smaller than search x.
    B = 2
    z = jax.random.normal(kz, (B, 3, 16, 16), dtype=jnp.float32)
    x = jax.random.normal(kx, (B, 3, 24, 24), dtype=jnp.float32)

    # Deterministic synthetic backbone parameters (2 conv layers, 3x3, valid, ReLU).
    params = {
        "w1": 0.1 * jax.random.normal(k1, (8, 3, 3, 3), dtype=jnp.float32),
        "b1": 0.1 * jax.random.normal(k2, (8,), dtype=jnp.float32),
        "w2": 0.1 * jax.random.normal(k3, (16, 8, 3, 3), dtype=jnp.float32),
        "b2": 0.1 * jax.random.normal(k4, (16,), dtype=jnp.float32),
    }

    ref = _ref_forward(params, z, x)

    # One-time weight expansion, hoisted out of the per-call forward path.
    prepared_f32 = prepare_params(params, z.shape[2:], x.shape[2:],
                                  compute_dtype=jnp.float32)
    fwd = jax.jit(net_forward)
    out = jax.block_until_ready(fwd(prepared_f32, z, x))

    assert out.shape == ref.shape == (B, 1, 9, 9), (out.shape, ref.shape)
    max_err = float(jnp.max(jnp.abs(out - ref)))
    assert jnp.allclose(out, ref, rtol=2e-4, atol=2e-5), max_err

    # bf16 compute path (recommended on v6e/v7x): looser tolerance by design.
    prepared_bf16 = prepare_params(params, z.shape[2:], x.shape[2:],
                                   compute_dtype=jnp.bfloat16)
    out_bf16 = jax.block_until_ready(fwd(prepared_bf16, z, x))
    assert out_bf16.shape == (B, 1, 9, 9)
    assert jnp.allclose(out_bf16, ref, rtol=5e-2, atol=2e-3), \
        float(jnp.max(jnp.abs(out_bf16 - ref)))

    print("KERNEL_OK")
</pallas_src>

<mosaic_0001>
module attributes {stable_mosaic.version = 11 : i64} {
  func.func @_fused_net_kernel(%arg0: i32, %arg1: memref<1x16x48xf32, #tpu.memory_space<vmem>>, %arg2: memref<1x24x72xf32, #tpu.memory_space<vmem>>, %arg3: memref<3x48x112xf32, #tpu.memory_space<vmem>>, %arg4: memref<3x72x176xf32, #tpu.memory_space<vmem>>, %arg5: memref<3x112x192xf32, #tpu.memory_space<vmem>>, %arg6: memref<3x176x320xf32, #tpu.memory_space<vmem>>, %arg7: memref<1x112xf32, #tpu.memory_space<vmem>>, %arg8: memref<1x176xf32, #tpu.memory_space<vmem>>, %arg9: memref<1x192xf32, #tpu.memory_space<vmem>>, %arg10: memref<1x320xf32, #tpu.memory_space<vmem>>, %arg11: memref<1x9x9xf32, #tpu.memory_space<vmem>>) attributes {dimension_semantics = [#tpu.dimension_semantics<parallel>], iteration_bounds = array<i64: 2>, scalar_prefetch = 0 : i64, scratch_operands = 0 : i64, tpu.core_type = #tpu.core_type<tc>, window_params = [{transform_indices = @transform_0, window_bounds = array<i64: 1, 16, 48>}, {transform_indices = @transform_1, window_bounds = array<i64: 1, 24, 72>}, {pipeline_mode = #tpu.pipeline_mode<synchronous>, transform_indices = @transform_2, window_bounds = array<i64: 3, 48, 112>}, {pipeline_mode = #tpu.pipeline_mode<synchronous>, transform_indices = @transform_3, window_bounds = array<i64: 3, 72, 176>}, {pipeline_mode = #tpu.pipeline_mode<synchronous>, transform_indices = @transform_4, window_bounds = array<i64: 3, 112, 192>}, {pipeline_mode = #tpu.pipeline_mode<synchronous>, transform_indices = @transform_5, window_bounds = array<i64: 3, 176, 320>}, {pipeline_mode = #tpu.pipeline_mode<synchronous>, transform_indices = @transform_6, window_bounds = array<i64: 1, 112>}, {pipeline_mode = #tpu.pipeline_mode<synchronous>, transform_indices = @transform_7, window_bounds = array<i64: 1, 176>}, {pipeline_mode = #tpu.pipeline_mode<synchronous>, transform_indices = @transform_8, window_bounds = array<i64: 1, 192>}, {pipeline_mode = #tpu.pipeline_mode<synchronous>, transform_indices = @transform_9, window_bounds = array<i64: 1, 320>}, {transform_indices = @transform_10, window_bounds = array<i64: 1, 9, 9>}]} {
    %c0 = arith.constant 0 : index
    %c0_0 = arith.constant 0 : index
    %c0_1 = arith.constant 0 : index
    %0 = vector.load %arg1[%c0, %c0_0, %c0_1] : memref<1x16x48xf32, #tpu.memory_space<vmem>>, vector<1x16x48xf32>
    %1 = vector.shape_cast %0 : vector<1x16x48xf32> to vector<16x48xf32>
    %2 = vector.extract_strided_slice %1 {offsets = [0, 0], sizes = [14, 48], strides = [1, 1]} : vector<16x48xf32> to vector<14x48xf32>
    %c0_2 = arith.constant 0 : index
    %c0_3 = arith.constant 0 : index
    %c0_4 = arith.constant 0 : index
    %3 = vector.load %arg3[%c0_2, %c0_3, %c0_4] : memref<3x48x112xf32, #tpu.memory_space<vmem>>, vector<1x48x112xf32>
    %4 = vector.shape_cast %3 : vector<1x48x112xf32> to vector<48x112xf32>
    %cst = arith.constant dense<0.000000e+00> : vector<14x112xf32>
    %5 = tpu.matmul %2, %4, %cst {dimension_numbers = #tpu.dot_dimension_numbers<[1], [0], [0], [1], [0, 0, 1, 1], [], []>} : vector<14x48xf32>, vector<48x112xf32>, vector<14x112xf32> -> vector<14x112xf32>
    %6 = vector.extract_strided_slice %1 {offsets = [1, 0], sizes = [14, 48], strides = [1, 1]} : vector<16x48xf32> to vector<14x48xf32>
    %c1 = arith.constant 1 : index
    %c0_5 = arith.constant 0 : index
    %c0_6 = arith.constant 0 : index
    %7 = vector.load %arg3[%c1, %c0_5, %c0_6] : memref<3x48x112xf32, #tpu.memory_space<vmem>>, vector<1x48x112xf32>
    %8 = vector.shape_cast %7 : vector<1x48x112xf32> to vector<48x112xf32>
    %cst_7 = arith.constant dense<0.000000e+00> : vector<14x112xf32>
    %9 = tpu.matmul %6, %8, %cst_7 {dimension_numbers = #tpu.dot_dimension_numbers<[1], [0], [0], [1], [0, 0, 1, 1], [], []>} : vector<14x48xf32>, vector<48x112xf32>, vector<14x112xf32> -> vector<14x112xf32>
    %10 = arith.addf %5, %9 : vector<14x112xf32>
    %11 = vector.extract_strided_slice %1 {offsets = [2, 0], sizes = [14, 48], strides = [1, 1]} : vector<16x48xf32> to vector<14x48xf32>
    %c2 = arith.constant 2 : index
    %c0_8 = arith.constant 0 : index
    %c0_9 = arith.constant 0 : index
    %12 = vector.load %arg3[%c2, %c0_8, %c0_9] : memref<3x48x112xf32, #tpu.memory_space<vmem>>, vector<1x48x112xf32>
    %13 = vector.shape_cast %12 : vector<1x48x112xf32> to vector<48x112xf32>
    %cst_10 = arith.constant dense<0.000000e+00> : vector<14x112xf32>
    %14 = tpu.matmul %11, %13, %cst_10 {dimension_numbers = #tpu.dot_dimension_numbers<[1], [0], [0], [1], [0, 0, 1, 1], [], []>} : vector<14x48xf32>, vector<48x112xf32>, vector<14x112xf32> -> vector<14x112xf32>
    %15 = arith.addf %10, %14 : vector<14x112xf32>
    %c0_11 = arith.constant 0 : index
    %c0_12 = arith.constant 0 : index
    %16 = vector.load %arg7[%c0_11, %c0_12] : memref<1x112xf32, #tpu.memory_space<vmem>>, vector<1x112xf32>
    %17 = vector.broadcast %16 : vector<1x112xf32> to vector<14x112xf32>
    %18 = arith.addf %15, %17 : vector<14x112xf32>
    %cst_13 = arith.constant 0.000000e+00 : f32
    %19 = vector.broadcast %cst_13 : f32 to vector<14x112xf32>
    %20 = arith.maximumf %18, %19 : vector<14x112xf32>
    %21 = vector.extract_strided_slice %20 {offsets = [0, 0], sizes = [12, 112], strides = [1, 1]} : vector<14x112xf32> to vector<12x112xf32>
    %c0_14 = arith.constant 0 : index
    %c0_15 = arith.constant 0 : index
    %c0_16 = arith.constant 0 : index
    %22 = vector.load %arg5[%c0_14, %c0_15, %c0_16] : memref<3x112x192xf32, #tpu.memory_space<vmem>>, vector<1x112x192xf32>
    %23 = vector.shape_cast %22 : vector<1x112x192xf32> to vector<112x192xf32>
    %cst_17 = arith.constant dense<0.000000e+00> : vector<12x192xf32>
    %24 = tpu.matmul %21, %23, %cst_17 {dimension_numbers = #tpu.dot_dimension_numbers<[1], [0], [0], [1], [0, 0, 1, 1], [], []>} : vector<12x112xf32>, vector<112x192xf32>, vector<12x192xf32> -> vector<12x192xf32>
    %25 = vector.extract_strided_slice %20 {offsets = [1, 0], sizes = [12, 112], strides = [1, 1]} : vector<14x112xf32> to vector<12x112xf32>
    %c1_18 = arith.constant 1 : index
    %c0_19 = arith.constant 0 : index
    %c0_20 = arith.constant 0 : index
    %26 = vector.load %arg5[%c1_18, %c0_19, %c0_20] : memref<3x112x192xf32, #tpu.memory_space<vmem>>, vector<1x112x192xf32>
    %27 = vector.shape_cast %26 : vector<1x112x192xf32> to vector<112x192xf32>
    %cst_21 = arith.constant dense<0.000000e+00> : vector<12x192xf32>
    %28 = tpu.matmul %25, %27, %cst_21 {dimension_numbers = #tpu.dot_dimension_numbers<[1], [0], [0], [1], [0, 0, 1, 1], [], []>} : vector<12x112xf32>, vector<112x192xf32>, vector<12x192xf32> -> vector<12x192xf32>
    %29 = arith.addf %24, %28 : vector<12x192xf32>
    %30 = vector.extract_strided_slice %20 {offsets = [2, 0], sizes = [12, 112], strides = [1, 1]} : vector<14x112xf32> to vector<12x112xf32>
    %c2_22 = arith.constant 2 : index
    %c0_23 = arith.constant 0 : index
    %c0_24 = arith.constant 0 : index
    %31 = vector.load %arg5[%c2_22, %c0_23, %c0_24] : memref<3x112x192xf32, #tpu.memory_space<vmem>>, vector<1x112x192xf32>
    %32 = vector.shape_cast %31 : vector<1x112x192xf32> to vector<112x192xf32>
    %cst_25 = arith.constant dense<0.000000e+00> : vector<12x192xf32>
    %33 = tpu.matmul %30, %32, %cst_25 {dimension_numbers = #tpu.dot_dimension_numbers<[1], [0], [0], [1], [0, 0, 1, 1], [], []>} : vector<12x112xf32>, vector<112x192xf32>, vector<12x192xf32> -> vector<12x192xf32>
    %34 = arith.addf %29, %33 : vector<12x192xf32>
    %c0_26 = arith.constant 0 : index
    %c0_27 = arith.constant 0 : index
    %35 = vector.load %arg9[%c0_26, %c0_27] : memref<1x192xf32, #tpu.memory_space<vmem>>, vector<1x192xf32>
    %36 = vector.broadcast %35 : vector<1x192xf32> to vector<12x192xf32>
    %37 = arith.addf %34, %36 : vector<12x192xf32>
    %cst_28 = arith.constant 0.000000e+00 : f32
    %38 = vector.broadcast %cst_28 : f32 to vector<12x192xf32>
    %39 = arith.maximumf %37, %38 : vector<12x192xf32>
    %c0_29 = arith.constant 0 : index
    %c0_30 = arith.constant 0 : index
    %c0_31 = arith.constant 0 : index
    %40 = vector.load %arg2[%c0_29, %c0_30, %c0_31] : memref<1x24x72xf32, #tpu.memory_space<vmem>>, vector<1x24x72xf32>
    %41 = vector.shape_cast %40 : vector<1x24x72xf32> to vector<24x72xf32>
    %42 = vector.extract_strided_slice %41 {offsets = [0, 0], sizes = [22, 72], strides = [1, 1]} : vector<24x72xf32> to vector<22x72xf32>
    %c0_32 = arith.constant 0 : index
    %c0_33 = arith.constant 0 : index
    %c0_34 = arith.constant 0 : index
    %43 = vector.load %arg4[%c0_32, %c0_33, %c0_34] : memref<3x72x176xf32, #tpu.memory_space<vmem>>, vector<1x72x176xf32>
    %44 = vector.shape_cast %43 : vector<1x72x176xf32> to vector<72x176xf32>
    %cst_35 = arith.constant dense<0.000000e+00> : vector<22x176xf32>
    %45 = tpu.matmul %42, %44, %cst_35 {dimension_numbers = #tpu.dot_dimension_numbers<[1], [0], [0], [1], [0, 0, 1, 1], [], []>} : vector<22x72xf32>, vector<72x176xf32>, vector<22x176xf32> -> vector<22x176xf32>
    %46 = vector.extract_strided_slice %41 {offsets = [1, 0], sizes = [22, 72], strides = [1, 1]} : vector<24x72xf32> to vector<22x72xf32>
    %c1_36 = arith.constant 1 : index
    %c0_37 = arith.constant 0 : index
    %c0_38 = arith.constant 0 : index
    %47 = vector.load %arg4[%c1_36, %c0_37, %c0_38] : memref<3x72x176xf32, #tpu.memory_space<vmem>>, vector<1x72x176xf32>
    %48 = vector.shape_cast %47 : vector<1x72x176xf32> to vector<72x176xf32>
    %cst_39 = arith.constant dense<0.000000e+00> : vector<22x176xf32>
    %49 = tpu.matmul %46, %48, %cst_39 {dimension_numbers = #tpu.dot_dimension_numbers<[1], [0], [0], [1], [0, 0, 1, 1], [], []>} : vector<22x72xf32>, vector<72x176xf32>, vector<22x176xf32> -> vector<22x176xf32>
    %50 = arith.addf %45, %49 : vector<22x176xf32>
    %51 = vector.extract_strided_slice %41 {offsets = [2, 0], sizes = [22, 72], strides = [1, 1]} : vector<24x72xf32> to vector<22x72xf32>
    %c2_40 = arith.constant 2 : index
    %c0_41 = arith.constant 0 : index
    %c0_42 = arith.constant 0 : index
    %52 = vector.load %arg4[%c2_40, %c0_41, %c0_42] : memref<3x72x176xf32, #tpu.memory_space<vmem>>, vector<1x72x176xf32>
    %53 = vector.shape_cast %52 : vector<1x72x176xf32> to vector<72x176xf32>
    %cst_43 = arith.constant dense<0.000000e+00> : vector<22x176xf32>
    %54 = tpu.matmul %51, %53, %cst_43 {dimension_numbers = #tpu.dot_dimension_numbers<[1], [0], [0], [1], [0, 0, 1, 1], [], []>} : vector<22x72xf32>, vector<72x176xf32>, vector<22x176xf32> -> vector<22x176xf32>
    %55 = arith.addf %50, %54 : vector<22x176xf32>
    %c0_44 = arith.constant 0 : index
    %c0_45 = arith.constant 0 : index
    %56 = vector.load %arg8[%c0_44, %c0_45] : memref<1x176xf32, #tpu.memory_space<vmem>>, vector<1x176xf32>
    %57 = vector.broadcast %56 : vector<1x176xf32> to vector<22x176xf32>
    %58 = arith.addf %55, %57 : vector<22x176xf32>
    %cst_46 = arith.constant 0.000000e+00 : f32
    %59 = vector.broadcast %cst_46 : f32 to vector<22x176xf32>
    %60 = arith.maximumf %58, %59 : vector<22x176xf32>
    %61 = vector.extract_strided_slice %60 {offsets = [0, 0], sizes = [20, 176], strides = [1, 1]} : vector<22x176xf32> to vector<20x176xf32>
    %c0_47 = arith.constant 0 : index
    %c0_48 = arith.constant 0 : index
    %c0_49 = arith.constant 0 : index
    %62 = vector.load %arg6[%c0_47, %c0_48, %c0_49] : memref<3x176x320xf32, #tpu.memory_space<vmem>>, vector<1x176x320xf32>
    %63 = vector.shape_cast %62 : vector<1x176x320xf32> to vector<176x320xf32>
    %cst_50 = arith.constant dense<0.000000e+00> : vector<20x320xf32>
    %64 = tpu.matmul %61, %63, %cst_50 {dimension_numbers = #tpu.dot_dimension_numbers<[1], [0], [0], [1], [0, 0, 1, 1], [], []>} : vector<20x176xf32>, vector<176x320xf32>, vector<20x320xf32> -> vector<20x320xf32>
    %65 = vector.extract_strided_slice %60 {offsets = [1, 0], sizes = [20, 176], strides = [1, 1]} : vector<22x176xf32> to vector<20x176xf32>
    %c1_51 = arith.constant 1 : index
    %c0_52 = arith.constant 0 : index
    %c0_53 = arith.constant 0 : index
    %66 = vector.load %arg6[%c1_51, %c0_52, %c0_53] : memref<3x176x320xf32, #tpu.memory_space<vmem>>, vector<1x176x320xf32>
    %67 = vector.shape_cast %66 : vector<1x176x320xf32> to vector<176x320xf32>
    %cst_54 = arith.constant dense<0.000000e+00> : vector<20x320xf32>
    %68 = tpu.matmul %65, %67, %cst_54 {dimension_numbers = #tpu.dot_dimension_numbers<[1], [0], [0], [1], [0, 0, 1, 1], [], []>} : vector<20x176xf32>, vector<176x320xf32>, vector<20x320xf32> -> vector<20x320xf32>
    %69 = arith.addf %64, %68 : vector<20x320xf32>
    %70 = vector.extract_strided_slice %60 {offsets = [2, 0], sizes = [20, 176], strides = [1, 1]} : vector<22x176xf32> to vector<20x176xf32>
    %c2_55 = arith.constant 2 : index
    %c0_56 = arith.constant 0 : index
    %c0_57 = arith.constant 0 : index
    %71 = vector.load %arg6[%c2_55, %c0_56, %c0_57] : memref<3x176x320xf32, #tpu.memory_space<vmem>>, vector<1x176x320xf32>
    %72 = vector.shape_cast %71 : vector<1x176x320xf32> to vector<176x320xf32>
    %cst_58 = arith.constant dense<0.000000e+00> : vector<20x320xf32>
    %73 = tpu.matmul %70, %72, %cst_58 {dimension_numbers = #tpu.dot_dimension_numbers<[1], [0], [0], [1], [0, 0, 1, 1], [], []>} : vector<20x176xf32>, vector<176x320xf32>, vector<20x320xf32> -> vector<20x320xf32>
    %74 = arith.addf %69, %73 : vector<20x320xf32>
    %c0_59 = arith.constant 0 : index
    %c0_60 = arith.constant 0 : index
    %75 = vector.load %arg10[%c0_59, %c0_60] : memref<1x320xf32, #tpu.memory_space<vmem>>, vector<1x320xf32>
    %76 = vector.broadcast %75 : vector<1x320xf32> to vector<20x320xf32>
    %77 = arith.addf %74, %76 : vector<20x320xf32>
    %cst_61 = arith.constant 0.000000e+00 : f32
    %78 = vector.broadcast %cst_61 : f32 to vector<20x320xf32>
    %79 = arith.maximumf %77, %78 : vector<20x320xf32>
    %80 = vector.extract_strided_slice %79 {offsets = [0, 0], sizes = [20, 192], strides = [1, 1]} : vector<20x320xf32> to vector<20x192xf32>
    %81 = vector.extract_strided_slice %80 {offsets = [0, 0], sizes = [9, 192], strides = [1, 1]} : vector<20x192xf32> to vector<9x192xf32>
    %82 = vector.extract_strided_slice %39 {offsets = [0, 0], sizes = [1, 192], strides = [1, 1]} : vector<12x192xf32> to vector<1x192xf32>
    %83 = vector.broadcast %82 : vector<1x192xf32> to vector<9x192xf32>
    %84 = arith.mulf %81, %83 : vector<9x192xf32>
    %85 = vector.extract_strided_slice %80 {offsets = [1, 0], sizes = [9, 192], strides = [1, 1]} : vector<20x192xf32> to vector<9x192xf32>
    %86 = vector.extract_strided_slice %39 {offsets = [1, 0], sizes = [1, 192], strides = [1, 1]} : vector<12x192xf32> to vector<1x192xf32>
    %87 = vector.broadcast %86 : vector<1x192xf32> to vector<9x192xf32>
    %88 = arith.mulf %85, %87 : vector<9x192xf32>
    %89 = arith.addf %84, %88 : vector<9x192xf32>
    %90 = vector.extract_strided_slice %80 {offsets = [2, 0], sizes = [9, 192], strides = [1, 1]} : vector<20x192xf32> to vector<9x192xf32>
    %91 = vector.extract_strided_slice %39 {offsets = [2, 0], sizes = [1, 192], strides = [1, 1]} : vector<12x192xf32> to vector<1x192xf32>
    %92 = vector.broadcast %91 : vector<1x192xf32> to vector<9x192xf32>
    %93 = arith.mulf %90, %92 : vector<9x192xf32>
    %94 = arith.addf %89, %93 : vector<9x192xf32>
    %95 = vector.extract_strided_slice %80 {offsets = [3, 0], sizes = [9, 192], strides = [1, 1]} : vector<20x192xf32> to vector<9x192xf32>
    %96 = vector.extract_strided_slice %39 {offsets = [3, 0], sizes = [1, 192], strides = [1, 1]} : vector<12x192xf32> to vector<1x192xf32>
    %97 = vector.broadcast %96 : vector<1x192xf32> to vector<9x192xf32>
    %98 = arith.mulf %95, %97 : vector<9x192xf32>
    %99 = arith.addf %94, %98 : vector<9x192xf32>
    %100 = vector.extract_strided_slice %80 {offsets = [4, 0], sizes = [9, 192], strides = [1, 1]} : vector<20x192xf32> to vector<9x192xf32>
    %101 = vector.extract_strided_slice %39 {offsets = [4, 0], sizes = [1, 192], strides = [1, 1]} : vector<12x192xf32> to vector<1x192xf32>
    %102 = vector.broadcast %101 : vector<1x192xf32> to vector<9x192xf32>
    %103 = arith.mulf %100, %102 : vector<9x192xf32>
    %104 = arith.addf %99, %103 : vector<9x192xf32>
    %105 = vector.extract_strided_slice %80 {offsets = [5, 0], sizes = [9, 192], strides = [1, 1]} : vector<20x192xf32> to vector<9x192xf32>
    %106 = vector.extract_strided_slice %39 {offsets = [5, 0], sizes = [1, 192], strides = [1, 1]} : vector<12x192xf32> to vector<1x192xf32>
    %107 = vector.broadcast %106 : vector<1x192xf32> to vector<9x192xf32>
    %108 = arith.mulf %105, %107 : vector<9x192xf32>
    %109 = arith.addf %104, %108 : vector<9x192xf32>
    %110 = vector.extract_strided_slice %80 {offsets = [6, 0], sizes = [9, 192], strides = [1, 1]} : vector<20x192xf32> to vector<9x192xf32>
    %111 = vector.extract_strided_slice %39 {offsets = [6, 0], sizes = [1, 192], strides = [1, 1]} : vector<12x192xf32> to vector<1x192xf32>
    %112 = vector.broadcast %111 : vector<1x192xf32> to vector<9x192xf32>
    %113 = arith.mulf %110, %112 : vector<9x192xf32>
    %114 = arith.addf %109, %113 : vector<9x192xf32>
    %115 = vector.extract_strided_slice %80 {offsets = [7, 0], sizes = [9, 192], strides = [1, 1]} : vector<20x192xf32> to vector<9x192xf32>
    %116 = vector.extract_strided_slice %39 {offsets = [7, 0], sizes = [1, 192], strides = [1, 1]} : vector<12x192xf32> to vector<1x192xf32>
    %117 = vector.broadcast %116 : vector<1x192xf32> to vector<9x192xf32>
    %118 = arith.mulf %115, %117 : vector<9x192xf32>
    %119 = arith.addf %114, %118 : vector<9x192xf32>
    %120 = vector.extract_strided_slice %80 {offsets = [8, 0], sizes = [9, 192], strides = [1, 1]} : vector<20x192xf32> to vector<9x192xf32>
    %121 = vector.extract_strided_slice %39 {offsets = [8, 0], sizes = [1, 192], strides = [1, 1]} : vector<12x192xf32> to vector<1x192xf32>
    %122 = vector.broadcast %121 : vector<1x192xf32> to vector<9x192xf32>
    %123 = arith.mulf %120, %122 : vector<9x192xf32>
    %124 = arith.addf %119, %123 : vector<9x192xf32>
    %125 = vector.extract_strided_slice %80 {offsets = [9, 0], sizes = [9, 192], strides = [1, 1]} : vector<20x192xf32> to vector<9x192xf32>
    %126 = vector.extract_strided_slice %39 {offsets = [9, 0], sizes = [1, 192], strides = [1, 1]} : vector<12x192xf32> to vector<1x192xf32>
    %127 = vector.broadcast %126 : vector<1x192xf32> to vector<9x192xf32>
    %128 = arith.mulf %125, %127 : vector<9x192xf32>
    %129 = arith.addf %124, %128 : vector<9x192xf32>
    %130 = vector.extract_strided_slice %80 {offsets = [10, 0], sizes = [9, 192], strides = [1, 1]} : vector<20x192xf32> to vector<9x192xf32>
    %131 = vector.extract_strided_slice %39 {offsets = [10, 0], sizes = [1, 192], strides = [1, 1]} : vector<12x192xf32> to vector<1x192xf32>
    %132 = vector.broadcast %131 : vector<1x192xf32> to vector<9x192xf32>
    %133 = arith.mulf %130, %132 : vector<9x192xf32>
    %134 = arith.addf %129, %133 : vector<9x192xf32>
    %135 = vector.extract_strided_slice %80 {offsets = [11, 0], sizes = [9, 192], strides = [1, 1]} : vector<20x192xf32> to vector<9x192xf32>
    %136 = vector.extract_strided_slice %39 {offsets = [11, 0], sizes = [1, 192], strides = [1, 1]} : vector<12x192xf32> to vector<1x192xf32>
    %137 = vector.broadcast %136 : vector<1x192xf32> to vector<9x192xf32>
    %138 = arith.mulf %135, %137 : vector<9x192xf32>
    %139 = arith.addf %134, %138 : vector<9x192xf32>
    %cst_62 = arith.constant dense<0.000000e+00> : vector<9xf32>
    %140 = vector.multi_reduction <add>, %139, %cst_62 [1] : vector<9x192xf32> to vector<9xf32>
    %141 = vector.shape_cast %140 : vector<9xf32> to vector<9x1xf32>
    %142 = vector.extract_strided_slice %79 {offsets = [0, 16], sizes = [20, 192], strides = [1, 1]} : vector<20x320xf32> to vector<20x192xf32>
    %143 = vector.extract_strided_slice %142 {offsets = [0, 0], sizes = [9, 192], strides = [1, 1]} : vector<20x192xf32> to vector<9x192xf32>
    %144 = vector.extract_strided_slice %39 {offsets = [0, 0], sizes = [1, 192], strides = [1, 1]} : vector<12x192xf32> to vector<1x192xf32>
    %145 = vector.broadcast %144 : vector<1x192xf32> to vector<9x192xf32>
    %146 = arith.mulf %143, %145 : vector<9x192xf32>
    %147 = vector.extract_strided_slice %142 {offsets = [1, 0], sizes = [9, 192], strides = [1, 1]} : vector<20x192xf32> to vector<9x192xf32>
    %148 = vector.extract_strided_slice %39 {offsets = [1, 0], sizes = [1, 192], strides = [1, 1]} : vector<12x192xf32> to vector<1x192xf32>
    %149 = vector.broadcast %148 : vector<1x192xf32> to vector<9x192xf32>
    %150 = arith.mulf %147, %149 : vector<9x192xf32>
    %151 = arith.addf %146, %150 : vector<9x192xf32>
    %152 = vector.extract_strided_slice %142 {offsets = [2, 0], sizes = [9, 192], strides = [1, 1]} : vector<20x192xf32> to vector<9x192xf32>
    %153 = vector.extract_strided_slice %39 {offsets = [2, 0], sizes = [1, 192], strides = [1, 1]} : vector<12x192xf32> to vector<1x192xf32>
    %154 = vector.broadcast %153 : vector<1x192xf32> to vector<9x192xf32>
    %155 = arith.mulf %152, %154 : vector<9x192xf32>
    %156 = arith.addf %151, %155 : vector<9x192xf32>
    %157 = vector.extract_strided_slice %142 {offsets = [3, 0], sizes = [9, 192], strides = [1, 1]} : vector<20x192xf32> to vector<9x192xf32>
    %158 = vector.extract_strided_slice %39 {offsets = [3, 0], sizes = [1, 192], strides = [1, 1]} : vector<12x192xf32> to vector<1x192xf32>
    %159 = vector.broadcast %158 : vector<1x192xf32> to vector<9x192xf32>
    %160 = arith.mulf %157, %159 : vector<9x192xf32>
    %161 = arith.addf %156, %160 : vector<9x192xf32>
    %162 = vector.extract_strided_slice %142 {offsets = [4, 0], sizes = [9, 192], strides = [1, 1]} : vector<20x192xf32> to vector<9x192xf32>
    %163 = vector.extract_strided_slice %39 {offsets = [4, 0], sizes = [1, 192], strides = [1, 1]} : vector<12x192xf32> to vector<1x192xf32>
    %164 = vector.broadcast %163 : vector<1x192xf32> to vector<9x192xf32>
    %165 = arith.mulf %162, %164 : vector<9x192xf32>
    %166 = arith.addf %161, %165 : vector<9x192xf32>
    %167 = vector.extract_strided_slice %142 {offsets = [5, 0], sizes = [9, 192], strides = [1, 1]} : vector<20x192xf32> to vector<9x192xf32>
    %168 = vector.extract_strided_slice %39 {offsets = [5, 0], sizes = [1, 192], strides = [1, 1]} : vector<12x192xf32> to vector<1x192xf32>
    %169 = vector.broadcast %168 : vector<1x192xf32> to vector<9x192xf32>
    %170 = arith.mulf %167, %169 : vector<9x192xf32>
    %171 = arith.addf %166, %170 : vector<9x192xf32>
    %172 = vector.extract_strided_slice %142 {offsets = [6, 0], sizes = [9, 192], strides = [1, 1]} : vector<20x192xf32> to vector<9x192xf32>
    %173 = vector.extract_strided_slice %39 {offsets = [6, 0], sizes = [1, 192], strides = [1, 1]} : vector<12x192xf32> to vector<1x192xf32>
    %174 = vector.broadcast %173 : vector<1x192xf32> to vector<9x192xf32>
    %175 = arith.mulf %172, %174 : vector<9x192xf32>
    %176 = arith.addf %171, %175 : vector<9x192xf32>
    %177 = vector.extract_strided_slice %142 {offsets = [7, 0], sizes = [9, 192], strides = [1, 1]} : vector<20x192xf32> to vector<9x192xf32>
    %178 = vector.extract_strided_slice %39 {offsets = [7, 0], sizes = [1, 192], strides = [1, 1]} : vector<12x192xf32> to vector<1x192xf32>
    %179 = vector.broadcast %178 : vector<1x192xf32> to vector<9x192xf32>
    %180 = arith.mulf %177, %179 : vector<9x192xf32>
    %181 = arith.addf %176, %180 : vector<9x192xf32>
    %182 = vector.extract_strided_slice %142 {offsets = [8, 0], sizes = [9, 192], strides = [1, 1]} : vector<20x192xf32> to vector<9x192xf32>
    %183 = vector.extract_strided_slice %39 {offsets = [8, 0], sizes = [1, 192], strides = [1, 1]} : vector<12x192xf32> to vector<1x192xf32>
    %184 = vector.broadcast %183 : vector<1x192xf32> to vector<9x192xf32>
    %185 = arith.mulf %182, %184 : vector<9x192xf32>
    %186 = arith.addf %181, %185 : vector<9x192xf32>
    %187 = vector.extract_strided_slice %142 {offsets = [9, 0], sizes = [9, 192], strides = [1, 1]} : vector<20x192xf32> to vector<9x192xf32>
    %188 = vector.extract_strided_slice %39 {offsets = [9, 0], sizes = [1, 192], strides = [1, 1]} : vector<12x192xf32> to vector<1x192xf32>
    %189 = vector.broadcast %188 : vector<1x192xf32> to vector<9x192xf32>
    %190 = arith.mulf %187, %189 : vector<9x192xf32>
    %191 = arith.addf %186, %190 : vector<9x192xf32>
    %192 = vector.extract_strided_slice %142 {offsets = [10, 0], sizes = [9, 192], strides = [1, 1]} : vector<20x192xf32> to vector<9x192xf32>
    %193 = vector.extract_strided_slice %39 {offsets = [10, 0], sizes = [1, 192], strides = [1, 1]} : vector<12x192xf32> to vector<1x192xf32>
    %194 = vector.broadcast %193 : vector<1x192xf32> to vector<9x192xf32>
    %195 = arith.mulf %192, %194 : vector<9x192xf32>
    %196 = arith.addf %191, %195 : vector<9x192xf32>
    %197 = vector.extract_strided_slice %142 {offsets = [11, 0], sizes = [9, 192], strides = [1, 1]} : vector<20x192xf32> to vector<9x192xf32>
    %198 = vector.extract_strided_slice %39 {offsets = [11, 0], sizes = [1, 192], strides = [1, 1]} : vector<12x192xf32> to vector<1x192xf32>
    %199 = vector.broadcast %198 : vector<1x192xf32> to vector<9x192xf32>
    %200 = arith.mulf %197, %199 : vector<9x192xf32>
    %201 = arith.addf %196, %200 : vector<9x192xf32>
    %cst_63 = arith.constant dense<0.000000e+00> : vector<9xf32>
    %202 = vector.multi_reduction <add>, %201, %cst_63 [1] : vector<9x192xf32> to vector<9xf32>
    %203 = vector.shape_cast %202 : vector<9xf32> to vector<9x1xf32>
    %204 = vector.extract_strided_slice %79 {offsets = [0, 32], sizes = [20, 192], strides = [1, 1]} : vector<20x320xf32> to vector<20x192xf32>
    %205 = vector.extract_strided_slice %204 {offsets = [0, 0], sizes = [9, 192], strides = [1, 1]} : vector<20x192xf32> to vector<9x192xf32>
    %206 = vector.extract_strided_slice %39 {offsets = [0, 0], sizes = [1, 192], strides = [1, 1]} : vector<12x192xf32> to vector<1x192xf32>
    %207 = vector.broadcast %206 : vector<1x192xf32> to vector<9x192xf32>
    %208 = arith.mulf %205, %207 : vector<9x192xf32>
    %209 = vector.extract_strided_slice %204 {offsets = [1, 0], sizes = [9, 192], strides = [1, 1]} : vector<20x192xf32> to vector<9x192xf32>
    %210 = vector.extract_strided_slice %39 {offsets = [1, 0], sizes = [1, 192], strides = [1, 1]} : vector<12x192xf32> to vector<1x192xf32>
    %211 = vector.broadcast %210 : vector<1x192xf32> to vector<9x192xf32>
    %212 = arith.mulf %209, %211 : vector<9x192xf32>
    %213 = arith.addf %208, %212 : vector<9x192xf32>
    %214 = vector.extract_strided_slice %204 {offsets = [2, 0], sizes = [9, 192], strides = [1, 1]} : vector<20x192xf32> to vector<9x192xf32>
    %215 = vector.extract_strided_slice %39 {offsets = [2, 0], sizes = [1, 192], strides = [1, 1]} : vector<12x192xf32> to vector<1x192xf32>
    %216 = vector.broadcast %215 : vector<1x192xf32> to vector<9x192xf32>
    %217 = arith.mulf %214, %216 : vector<9x192xf32>
    %218 = arith.addf %213, %217 : vector<9x192xf32>
    %219 = vector.extract_strided_slice %204 {offsets = [3, 0], sizes = [9, 192], strides = [1, 1]} : vector<20x192xf32> to vector<9x192xf32>
    %220 = vector.extract_strided_slice %39 {offsets = [3, 0], sizes = [1, 192], strides = [1, 1]} : vector<12x192xf32> to vector<1x192xf32>
    %221 = vector.broadcast %220 : vector<1x192xf32> to vector<9x192xf32>
    %222 = arith.mulf %219, %221 : vector<9x192xf32>
    %223 = arith.addf %218, %222 : vector<9x192xf32>
    %224 = vector.extract_strided_slice %204 {offsets = [4, 0], sizes = [9, 192], strides = [1, 1]} : vector<20x192xf32> to vector<9x192xf32>
    %225 = vector.extract_strided_slice %39 {offsets = [4, 0], sizes = [1, 192], strides = [1, 1]} : vector<12x192xf32> to vector<1x192xf32>
    %226 = vector.broadcast %225 : vector<1x192xf32> to vector<9x192xf32>
    %227 = arith.mulf %224, %226 : vector<9x192xf32>
    %228 = arith.addf %223, %227 : vector<9x192xf32>
    %229 = vector.extract_strided_slice %204 {offsets = [5, 0], sizes = [9, 192], strides = [1, 1]} : vector<20x192xf32> to vector<9x192xf32>
    %230 = vector.extract_strided_slice %39 {offsets = [5, 0], sizes = [1, 192], strides = [1, 1]} : vector<12x192xf32> to vector<1x192xf32>
    %231 = vector.broadcast %230 : vector<1x192xf32> to vector<9x192xf32>
    %232 = arith.mulf %229, %231 : vector<9x192xf32>
    %233 = arith.addf %228, %232 : vector<9x192xf32>
    %234 = vector.extract_strided_slice %204 {offsets = [6, 0], sizes = [9, 192], strides = [1, 1]} : vector<20x192xf32> to vector<9x192xf32>
    %235 = vector.extract_strided_slice %39 {offsets = [6, 0], sizes = [1, 192], strides = [1, 1]} : vector<12x192xf32> to vector<1x192xf32>
    %236 = vector.broadcast %235 : vector<1x192xf32> to vector<9x192xf32>
    %237 = arith.mulf %234, %236 : vector<9x192xf32>
    %238 = arith.addf %233, %237 : vector<9x192xf32>
    %239 = vector.extract_strided_slice %204 {offsets = [7, 0], sizes = [9, 192], strides = [1, 1]} : vector<20x192xf32> to vector<9x192xf32>
    %240 = vector.extract_strided_slice %39 {offsets = [7, 0], sizes = [1, 192], strides = [1, 1]} : vector<12x192xf32> to vector<1x192xf32>
    %241 = vector.broadcast %240 : vector<1x192xf32> to vector<9x192xf32>
    %242 = arith.mulf %239, %241 : vector<9x192xf32>
    %243 = arith.addf %238, %242 : vector<9x192xf32>
    %244 = vector.extract_strided_slice %204 {offsets = [8, 0], sizes = [9, 192], strides = [1, 1]} : vector<20x192xf32> to vector<9x192xf32>
    %245 = vector.extract_strided_slice %39 {offsets = [8, 0], sizes = [1, 192], strides = [1, 1]} : vector<12x192xf32> to vector<1x192xf32>
    %246 = vector.broadcast %245 : vector<1x192xf32> to vector<9x192xf32>
    %247 = arith.mulf %244, %246 : vector<9x192xf32>
    %248 = arith.addf %243, %247 : vector<9x192xf32>
    %249 = vector.extract_strided_slice %204 {offsets = [9, 0], sizes = [9, 192], strides = [1, 1]} : vector<20x192xf32> to vector<9x192xf32>
    %250 = vector.extract_strided_slice %39 {offsets = [9, 0], sizes = [1, 192], strides = [1, 1]} : vector<12x192xf32> to vector<1x192xf32>
    %251 = vector.broadcast %250 : vector<1x192xf32> to vector<9x192xf32>
    %252 = arith.mulf %249, %251 : vector<9x192xf32>
    %253 = arith.addf %248, %252 : vector<9x192xf32>
    %254 = vector.extract_strided_slice %204 {offsets = [10, 0], sizes = [9, 192], strides = [1, 1]} : vector<20x192xf32> to vector<9x192xf32>
    %255 = vector.extract_strided_slice %39 {offsets = [10, 0], sizes = [1, 192], strides = [1, 1]} : vector<12x192xf32> to vector<1x192xf32>
    %256 = vector.broadcast %255 : vector<1x192xf32> to vector<9x192xf32>
    %257 = arith.mulf %254, %256 : vector<9x192xf32>
    %258 = arith.addf %253, %257 : vector<9x192xf32>
    %259 = vector.extract_strided_slice %204 {offsets = [11, 0], sizes = [9, 192], strides = [1, 1]} : vector<20x192xf32> to vector<9x192xf32>
    %260 = vector.extract_strided_slice %39 {offsets = [11, 0], sizes = [1, 192], strides = [1, 1]} : vector<12x192xf32> to vector<1x192xf32>
    %261 = vector.broadcast %260 : vector<1x192xf32> to vector<9x192xf32>
    %262 = arith.mulf %259, %261 : vector<9x192xf32>
    %263 = arith.addf %258, %262 : vector<9x192xf32>
    %cst_64 = arith.constant dense<0.000000e+00> : vector<9xf32>
    %264 = vector.multi_reduction <add>, %263, %cst_64 [1] : vector<9x192xf32> to vector<9xf32>
    %265 = vector.shape_cast %264 : vector<9xf32> to vector<9x1xf32>
    %266 = vector.extract_strided_slice %79 {offsets = [0, 48], sizes = [20, 192], strides = [1, 1]} : vector<20x320xf32> to vector<20x192xf32>
    %267 = vector.extract_strided_slice %266 {offsets = [0, 0], sizes = [9, 192], strides = [1, 1]} : vector<20x192xf32> to vector<9x192xf32>
    %268 = vector.extract_strided_slice %39 {offsets = [0, 0], sizes = [1, 192], strides = [1, 1]} : vector<12x192xf32> to vector<1x192xf32>
    %269 = vector.broadcast %268 : vector<1x192xf32> to vector<9x192xf32>
    %270 = arith.mulf %267, %269 : vector<9x192xf32>
    %271 = vector.extract_strided_slice %266 {offsets = [1, 0], sizes = [9, 192], strides = [1, 1]} : vector<20x192xf32> to vector<9x192xf32>
    %272 = vector.extract_strided_slice %39 {offsets = [1, 0], sizes = [1, 192], strides = [1, 1]} : vector<12x192xf32> to vector<1x192xf32>
    %273 = vector.broadcast %272 : vector<1x192xf32> to vector<9x192xf32>
    %274 = arith.mulf %271, %273 : vector<9x192xf32>
    %275 = arith.addf %270, %274 : vector<9x192xf32>
    %276 = vector.extract_strided_slice %266 {offsets = [2, 0], sizes = [9, 192], strides = [1, 1]} : vector<20x192xf32> to vector<9x192xf32>
    %277 = vector.extract_strided_slice %39 {offsets = [2, 0], sizes = [1, 192], strides = [1, 1]} : vector<12x192xf32> to vector<1x192xf32>
    %278 = vector.broadcast %277 : vector<1x192xf32> to vector<9x192xf32>
    %279 = arith.mulf %276, %278 : vector<9x192xf32>
    %280 = arith.addf %275, %279 : vector<9x192xf32>
    %281 = vector.extract_strided_slice %266 {offsets = [3, 0], sizes = [9, 192], strides = [1, 1]} : vector<20x192xf32> to vector<9x192xf32>
    %282 = vector.extract_strided_slice %39 {offsets = [3, 0], sizes = [1, 192], strides = [1, 1]} : vector<12x192xf32> to vector<1x192xf32>
    %283 = vector.broadcast %282 : vector<1x192xf32> to vector<9x192xf32>
    %284 = arith.mulf %281, %283 : vector<9x192xf32>
    %285 = arith.addf %280, %284 : vector<9x192xf32>
    %286 = vector.extract_strided_slice %266 {offsets = [4, 0], sizes = [9, 192], strides = [1, 1]} : vector<20x192xf32> to vector<9x192xf32>
    %287 = vector.extract_strided_slice %39 {offsets = [4, 0], sizes = [1, 192], strides = [1, 1]} : vector<12x192xf32> to vector<1x192xf32>
    %288 = vector.broadcast %287 : vector<1x192xf32> to vector<9x192xf32>
    %289 = arith.mulf %286, %288 : vector<9x192xf32>
    %290 = arith.addf %285, %289 : vector<9x192xf32>
    %291 = vector.extract_strided_slice %266 {offsets = [5, 0], sizes = [9, 192], strides = [1, 1]} : vector<20x192xf32> to vector<9x192xf32>
    %292 = vector.extract_strided_slice %39 {offsets = [5, 0], sizes = [1, 192], strides = [1, 1]} : vector<12x192xf32> to vector<1x192xf32>
    %293 = vector.broadcast %292 : vector<1x192xf32> to vector<9x192xf32>
    %294 = arith.mulf %291, %293 : vector<9x192xf32>
    %295 = arith.addf %290, %294 : vector<9x192xf32>
    %296 = vector.extract_strided_slice %266 {offsets = [6, 0], sizes = [9, 192], strides = [1, 1]} : vector<20x192xf32> to vector<9x192xf32>
    %297 = vector.extract_strided_slice %39 {offsets = [6, 0], sizes = [1, 192], strides = [1, 1]} : vector<12x192xf32> to vector<1x192xf32>
    %298 = vector.broadcast %297 : vector<1x192xf32> to vector<9x192xf32>
    %299 = arith.mulf %296, %298 : vector<9x192xf32>
    %300 = arith.addf %295, %299 : vector<9x192xf32>
    %301 = vector.extract_strided_slice %266 {offsets = [7, 0], sizes = [9, 192], strides = [1, 1]} : vector<20x192xf32> to vector<9x192xf32>
    %302 = vector.extract_strided_slice %39 {offsets = [7, 0], sizes = [1, 192], strides = [1, 1]} : vector<12x192xf32> to vector<1x192xf32>
    %303 = vector.broadcast %302 : vector<1x192xf32> to vector<9x192xf32>
    %304 = arith.mulf %301, %303 : vector<9x192xf32>
    %305 = arith.addf %300, %304 : vector<9x192xf32>
    %306 = vector.extract_strided_slice %266 {offsets = [8, 0], sizes = [9, 192], strides = [1, 1]} : vector<20x192xf32> to vector<9x192xf32>
    %307 = vector.extract_strided_slice %39 {offsets = [8, 0], sizes = [1, 192], strides = [1, 1]} : vector<12x192xf32> to vector<1x192xf32>
    %308 = vector.broadcast %307 : vector<1x192xf32> to vector<9x192xf32>
    %309 = arith.mulf %306, %308 : vector<9x192xf32>
    %310 = arith.addf %305, %309 : vector<9x192xf32>
    %311 = vector.extract_strided_slice %266 {offsets = [9, 0], sizes = [9, 192], strides = [1, 1]} : vector<20x192xf32> to vector<9x192xf32>
    %312 = vector.extract_strided_slice %39 {offsets = [9, 0], sizes = [1, 192], strides = [1, 1]} : vector<12x192xf32> to vector<1x192xf32>
    %313 = vector.broadcast %312 : vector<1x192xf32> to vector<9x192xf32>
    %314 = arith.mulf %311, %313 : vector<9x192xf32>
    %315 = arith.addf %310, %314 : vector<9x192xf32>
    %316 = vector.extract_strided_slice %266 {offsets = [10, 0], sizes = [9, 192], strides = [1, 1]} : vector<20x192xf32> to vector<9x192xf32>
    %317 = vector.extract_strided_slice %39 {offsets = [10, 0], sizes = [1, 192], strides = [1, 1]} : vector<12x192xf32> to vector<1x192xf32>
    %318 = vector.broadcast %317 : vector<1x192xf32> to vector<9x192xf32>
    %319 = arith.mulf %316, %318 : vector<9x192xf32>
    %320 = arith.addf %315, %319 : vector<9x192xf32>
    %321 = vector.extract_strided_slice %266 {offsets = [11, 0], sizes = [9, 192], strides = [1, 1]} : vector<20x192xf32> to vector<9x192xf32>
    %322 = vector.extract_strided_slice %39 {offsets = [11, 0], sizes = [1, 192], strides = [1, 1]} : vector<12x192xf32> to vector<1x192xf32>
    %323 = vector.broadcast %322 : vector<1x192xf32> to vector<9x192xf32>
    %324 = arith.mulf %321, %323 : vector<9x192xf32>
    %325 = arith.addf %320, %324 : vector<9x192xf32>
    %cst_65 = arith.constant dense<0.000000e+00> : vector<9xf32>
    %326 = vector.multi_reduction <add>, %325, %cst_65 [1] : vector<9x192xf32> to vector<9xf32>
    %327 = vector.shape_cast %326 : vector<9xf32> to vector<9x1xf32>
    %328 = vector.extract_strided_slice %79 {offsets = [0, 64], sizes = [20, 192], strides = [1, 1]} : vector<20x320xf32> to vector<20x192xf32>
    %329 = vector.extract_strided_slice %328 {offsets = [0, 0], sizes = [9, 192], strides = [1, 1]} : vector<20x192xf32> to vector<9x192xf32>
    %330 = vector.extract_strided_slice %39 {offsets = [0, 0], sizes = [1, 192], strides = [1, 1]} : vector<12x192xf32> to vector<1x192xf32>
    %331 = vector.broadcast %330 : vector<1x192xf32> to vector<9x192xf32>
    %332 = arith.mulf %329, %331 : vector<9x192xf32>
    %333 = vector.extract_strided_slice %328 {offsets = [1, 0], sizes = [9, 192], strides = [1, 1]} : vector<20x192xf32> to vector<9x192xf32>
    %334 = vector.extract_strided_slice %39 {offsets = [1, 0], sizes = [1, 192], strides = [1, 1]} : vector<12x192xf32> to vector<1x192xf32>
    %335 = vector.broadcast %334 : vector<1x192xf32> to vector<9x192xf32>
    %336 = arith.mulf %333, %335 : vector<9x192xf32>
    %337 = arith.addf %332, %336 : vector<9x192xf32>
    %338 = vector.extract_strided_slice %328 {offsets = [2, 0], sizes = [9, 192], strides = [1, 1]} : vector<20x192xf32> to vector<9x192xf32>
    %339 = vector.extract_strided_slice %39 {offsets = [2, 0], sizes = [1, 192], strides = [1, 1]} : vector<12x192xf32> to vector<1x192xf32>
    %340 = vector.broadcast %339 : vector<1x192xf32> to vector<9x192xf32>
    %341 = arith.mulf %338, %340 : vector<9x192xf32>
    %342 = arith.addf %337, %341 : vector<9x192xf32>
    %343 = vector.extract_strided_slice %328 {offsets = [3, 0], sizes = [9, 192], strides = [1, 1]} : vector<20x192xf32> to vector<9x192xf32>
    %344 = vector.extract_strided_slice %39 {offsets = [3, 0], sizes = [1, 192], strides = [1, 1]} : vector<12x192xf32> to vector<1x192xf32>
    %345 = vector.broadcast %344 : vector<1x192xf32> to vector<9x192xf32>
    %346 = arith.mulf %343, %345 : vector<9x192xf32>
    %347 = arith.addf %342, %346 : vector<9x192xf32>
    %348 = vector.extract_strided_slice %328 {offsets = [4, 0], sizes = [9, 192], strides = [1, 1]} : vector<20x192xf32> to vector<9x192xf32>
    %349 = vector.extract_strided_slice %39 {offsets = [4, 0], sizes = [1, 192], strides = [1, 1]} : vector<12x192xf32> to vector<1x192xf32>
    %350 = vector.broadcast %349 : vector<1x192xf32> to vector<9x192xf32>
    %351 = arith.mulf %348, %350 : vector<9x192xf32>
    %352 = arith.addf %347, %351 : vector<9x192xf32>
    %353 = vector.extract_strided_slice %328 {offsets = [5, 0], sizes = [9, 192], strides = [1, 1]} : vector<20x192xf32> to vector<9x192xf32>
    %354 = vector.extract_strided_slice %39 {offsets = [5, 0], sizes = [1, 192], strides = [1, 1]} : vector<12x192xf32> to vector<1x192xf32>
    %355 = vector.broadcast %354 : vector<1x192xf32> to vector<9x192xf32>
    %356 = arith.mulf %353, %355 : vector<9x192xf32>
    %357 = arith.addf %352, %356 : vector<9x192xf32>
    %358 = vector.extract_strided_slice %328 {offsets = [6, 0], sizes = [9, 192], strides = [1, 1]} : vector<20x192xf32> to vector<9x192xf32>
    %359 = vector.extract_strided_slice %39 {offsets = [6, 0], sizes = [1, 192], strides = [1, 1]} : vector<12x192xf32> to vector<1x192xf32>
    %360 = vector.broadcast %359 : vector<1x192xf32> to vector<9x192xf32>
    %361 = arith.mulf %358, %360 : vector<9x192xf32>
    %362 = arith.addf %357, %361 : vector<9x192xf32>
    %363 = vector.extract_strided_slice %328 {offsets = [7, 0], sizes = [9, 192], strides = [1, 1]} : vector<20x192xf32> to vector<9x192xf32>
    %364 = vector.extract_strided_slice %39 {offsets = [7, 0], sizes = [1, 192], strides = [1, 1]} : vector<12x192xf32> to vector<1x192xf32>
    %365 = vector.broadcast %364 : vector<1x192xf32> to vector<9x192xf32>
    %366 = arith.mulf %363, %365 : vector<9x192xf32>
    %367 = arith.addf %362, %366 : vector<9x192xf32>
    %368 = vector.extract_strided_slice %328 {offsets = [8, 0], sizes = [9, 192], strides = [1, 1]} : vector<20x192xf32> to vector<9x192xf32>
    %369 = vector.extract_strided_slice %39 {offsets = [8, 0], sizes = [1, 192], strides = [1, 1]} : vector<12x192xf32> to vector<1x192xf32>
    %370 = vector.broadcast %369 : vector<1x192xf32> to vector<9x192xf32>
    %371 = arith.mulf %368, %370 : vector<9x192xf32>
    %372 = arith.addf %367, %371 : vector<9x192xf32>
    %373 = vector.extract_strided_slice %328 {offsets = [9, 0], sizes = [9, 192], strides = [1, 1]} : vector<20x192xf32> to vector<9x192xf32>
    %374 = vector.extract_strided_slice %39 {offsets = [9, 0], sizes = [1, 192], strides = [1, 1]} : vector<12x192xf32> to vector<1x192xf32>
    %375 = vector.broadcast %374 : vector<1x192xf32> to vector<9x192xf32>
    %376 = arith.mulf %373, %375 : vector<9x192xf32>
    %377 = arith.addf %372, %376 : vector<9x192xf32>
    %378 = vector.extract_strided_slice %328 {offsets = [10, 0], sizes = [9, 192], strides = [1, 1]} : vector<20x192xf32> to vector<9x192xf32>
    %379 = vector.extract_strided_slice %39 {offsets = [10, 0], sizes = [1, 192], strides = [1, 1]} : vector<12x192xf32> to vector<1x192xf32>
    %380 = vector.broadcast %379 : vector<1x192xf32> to vector<9x192xf32>
    %381 = arith.mulf %378, %380 : vector<9x192xf32>
    %382 = arith.addf %377, %381 : vector<9x192xf32>
    %383 = vector.extract_strided_slice %328 {offsets = [11, 0], sizes = [9, 192], strides = [1, 1]} : vector<20x192xf32> to vector<9x192xf32>
    %384 = vector.extract_strided_slice %39 {offsets = [11, 0], sizes = [1, 192], strides = [1, 1]} : vector<12x192xf32> to vector<1x192xf32>
    %385 = vector.broadcast %384 : vector<1x192xf32> to vector<9x192xf32>
    %386 = arith.mulf %383, %385 : vector<9x192xf32>
    %387 = arith.addf %382, %386 : vector<9x192xf32>
    %cst_66 = arith.constant dense<0.000000e+00> : vector<9xf32>
    %388 = vector.multi_reduction <add>, %387, %cst_66 [1] : vector<9x192xf32> to vector<9xf32>
    %389 = vector.shape_cast %388 : vector<9xf32> to vector<9x1xf32>
    %390 = vector.extract_strided_slice %79 {offsets = [0, 80], sizes = [20, 192], strides = [1, 1]} : vector<20x320xf32> to vector<20x192xf32>
    %391 = vector.extract_strided_slice %390 {offsets = [0, 0], sizes = [9, 192], strides = [1, 1]} : vector<20x192xf32> to vector<9x192xf32>
    %392 = vector.extract_strided_slice %39 {offsets = [0, 0], sizes = [1, 192], strides = [1, 1]} : vector<12x192xf32> to vector<1x192xf32>
    %393 = vector.broadcast %392 : vector<1x192xf32> to vector<9x192xf32>
    %394 = arith.mulf %391, %393 : vector<9x192xf32>
    %395 = vector.extract_strided_slice %390 {offsets = [1, 0], sizes = [9, 192], strides = [1, 1]} : vector<20x192xf32> to vector<9x192xf32>
    %396 = vector.extract_strided_slice %39 {offsets = [1, 0], sizes = [1, 192], strides = [1, 1]} : vector<12x192xf32> to vector<1x192xf32>
    %397 = vector.broadcast %396 : vector<1x192xf32> to vector<9x192xf32>
    %398 = arith.mulf %395, %397 : vector<9x192xf32>
    %399 = arith.addf %394, %398 : vector<9x192xf32>
    %400 = vector.extract_strided_slice %390 {offsets = [2, 0], sizes = [9, 192], strides = [1, 1]} : vector<20x192xf32> to vector<9x192xf32>
    %401 = vector.extract_strided_slice %39 {offsets = [2, 0], sizes = [1, 192], strides = [1, 1]} : vector<12x192xf32> to vector<1x192xf32>
    %402 = vector.broadcast %401 : vector<1x192xf32> to vector<9x192xf32>
    %403 = arith.mulf %400, %402 : vector<9x192xf32>
    %404 = arith.addf %399, %403 : vector<9x192xf32>
    %405 = vector.extract_strided_slice %390 {offsets = [3, 0], sizes = [9, 192], strides = [1, 1]} : vector<20x192xf32> to vector<9x192xf32>
    %406 = vector.extract_strided_slice %39 {offsets = [3, 0], sizes = [1, 192], strides = [1, 1]} : vector<12x192xf32> to vector<1x192xf32>
    %407 = vector.broadcast %406 : vector<1x192xf32> to vector<9x192xf32>
    %408 = arith.mulf %405, %407 : vector<9x192xf32>
    %409 = arith.addf %404, %408 : vector<9x192xf32>
    %410 = vector.extract_strided_slice %390 {offsets = [4, 0], sizes = [9, 192], strides = [1, 1]} : vector<20x192xf32> to vector<9x192xf32>
    %411 = vector.extract_strided_slice %39 {offsets = [4, 0], sizes = [1, 192], strides = [1, 1]} : vector<12x192xf32> to vector<1x192xf32>
    %412 = vector.broadcast %411 : vector<1x192xf32> to vector<9x192xf32>
    %413 = arith.mulf %410, %412 : vector<9x192xf32>
    %414 = arith.addf %409, %413 : vector<9x192xf32>
    %415 = vector.extract_strided_slice %390 {offsets = [5, 0], sizes = [9, 192], strides = [1, 1]} : vector<20x192xf32> to vector<9x192xf32>
    %416 = vector.extract_strided_slice %39 {offsets = [5, 0], sizes = [1, 192], strides = [1, 1]} : vector<12x192xf32> to vector<1x192xf32>
    %417 = vector.broadcast %416 : vector<1x192xf32> to vector<9x192xf32>
    %418 = arith.mulf %415, %417 : vector<9x192xf32>
    %419 = arith.addf %414, %418 : vector<9x192xf32>
    %420 = vector.extract_strided_slice %390 {offsets = [6, 0], sizes = [9, 192], strides = [1, 1]} : vector<20x192xf32> to vector<9x192xf32>
    %421 = vector.extract_strided_slice %39 {offsets = [6, 0], sizes = [1, 192], strides = [1, 1]} : vector<12x192xf32> to vector<1x192xf32>
    %422 = vector.broadcast %421 : vector<1x192xf32> to vector<9x192xf32>
    %423 = arith.mulf %420, %422 : vector<9x192xf32>
    %424 = arith.addf %419, %423 : vector<9x192xf32>
    %425 = vector.extract_strided_slice %390 {offsets = [7, 0], sizes = [9, 192], strides = [1, 1]} : vector<20x192xf32> to vector<9x192xf32>
    %426 = vector.extract_strided_slice %39 {offsets = [7, 0], sizes = [1, 192], strides = [1, 1]} : vector<12x192xf32> to vector<1x192xf32>
    %427 = vector.broadcast %426 : vector<1x192xf32> to vector<9x192xf32>
    %428 = arith.mulf %425, %427 : vector<9x192xf32>
    %429 = arith.addf %424, %428 : vector<9x192xf32>
    %430 = vector.extract_strided_slice %390 {offsets = [8, 0], sizes = [9, 192], strides = [1, 1]} : vector<20x192xf32> to vector<9x192xf32>
    %431 = vector.extract_strided_slice %39 {offsets = [8, 0], sizes = [1, 192], strides = [1, 1]} : vector<12x192xf32> to vector<1x192xf32>
    %432 = vector.broadcast %431 : vector<1x192xf32> to vector<9x192xf32>
    %433 = arith.mulf %430, %432 : vector<9x192xf32>
    %434 = arith.addf %429, %433 : vector<9x192xf32>
    %435 = vector.extract_strided_slice %390 {offsets = [9, 0], sizes = [9, 192], strides = [1, 1]} : vector<20x192xf32> to vector<9x192xf32>
    %436 = vector.extract_strided_slice %39 {offsets = [9, 0], sizes = [1, 192], strides = [1, 1]} : vector<12x192xf32> to vector<1x192xf32>
    %437 = vector.broadcast %436 : vector<1x192xf32> to vector<9x192xf32>
    %438 = arith.mulf %435, %437 : vector<9x192xf32>
    %439 = arith.addf %434, %438 : vector<9x192xf32>
    %440 = vector.extract_strided_slice %390 {offsets = [10, 0], sizes = [9, 192], strides = [1, 1]} : vector<20x192xf32> to vector<9x192xf32>
    %441 = vector.extract_strided_slice %39 {offsets = [10, 0], sizes = [1, 192], strides = [1, 1]} : vector<12x192xf32> to vector<1x192xf32>
    %442 = vector.broadcast %441 : vector<1x192xf32> to vector<9x192xf32>
    %443 = arith.mulf %440, %442 : vector<9x192xf32>
    %444 = arith.addf %439, %443 : vector<9x192xf32>
    %445 = vector.extract_strided_slice %390 {offsets = [11, 0], sizes = [9, 192], strides = [1, 1]} : vector<20x192xf32> to vector<9x192xf32>
    %446 = vector.extract_strided_slice %39 {offsets = [11, 0], sizes = [1, 192], strides = [1, 1]} : vector<12x192xf32> to vector<1x192xf32>
    %447 = vector.broadcast %446 : vector<1x192xf32> to vector<9x192xf32>
    %448 = arith.mulf %445, %447 : vector<9x192xf32>
    %449 = arith.addf %444, %448 : vector<9x192xf32>
    %cst_67 = arith.constant dense<0.000000e+00> : vector<9xf32>
    %450 = vector.multi_reduction <add>, %449, %cst_67 [1] : vector<9x192xf32> to vector<9xf32>
    %451 = vector.shape_cast %450 : vector<9xf32> to vector<9x1xf32>
    %452 = vector.extract_strided_slice %79 {offsets = [0, 96], sizes = [20, 192], strides = [1, 1]} : vector<20x320xf32> to vector<20x192xf32>
    %453 = vector.extract_strided_slice %452 {offsets = [0, 0], sizes = [9, 192], strides = [1, 1]} : vector<20x192xf32> to vector<9x192xf32>
    %454 = vector.extract_strided_slice %39 {offsets = [0, 0], sizes = [1, 192], strides = [1, 1]} : vector<12x192xf32> to vector<1x192xf32>
    %455 = vector.broadcast %454 : vector<1x192xf32> to vector<9x192xf32>
    %456 = arith.mulf %453, %455 : vector<9x192xf32>
    %457 = vector.extract_strided_slice %452 {offsets = [1, 0], sizes = [9, 192], strides = [1, 1]} : vector<20x192xf32> to vector<9x192xf32>
    %458 = vector.extract_strided_slice %39 {offsets = [1, 0], sizes = [1, 192], strides = [1, 1]} : vector<12x192xf32> to vector<1x192xf32>
    %459 = vector.broadcast %458 : vector<1x192xf32> to vector<9x192xf32>
    %460 = arith.mulf %457, %459 : vector<9x192xf32>
    %461 = arith.addf %456, %460 : vector<9x192xf32>
    %462 = vector.extract_strided_slice %452 {offsets = [2, 0], sizes = [9, 192], strides = [1, 1]} : vector<20x192xf32> to vector<9x192xf32>
    %463 = vector.extract_strided_slice %39 {offsets = [2, 0], sizes = [1, 192], strides = [1, 1]} : vector<12x192xf32> to vector<1x192xf32>
    %464 = vector.broadcast %463 : vector<1x192xf32> to vector<9x192xf32>
    %465 = arith.mulf %462, %464 : vector<9x192xf32>
    %466 = arith.addf %461, %465 : vector<9x192xf32>
    %467 = vector.extract_strided_slice %452 {offsets = [3, 0], sizes = [9, 192], strides = [1, 1]} : vector<20x192xf32> to vector<9x192xf32>
    %468 = vector.extract_strided_slice %39 {offsets = [3, 0], sizes = [1, 192], strides = [1, 1]} : vector<12x192xf32> to vector<1x192xf32>
    %469 = vector.broadcast %468 : vector<1x192xf32> to vector<9x192xf32>
    %470 = arith.mulf %467, %469 : vector<9x192xf32>
    %471 = arith.addf %466, %470 : vector<9x192xf32>
    %472 = vector.extract_strided_slice %452 {offsets = [4, 0], sizes = [9, 192], strides = [1, 1]} : vector<20x192xf32> to vector<9x192xf32>
    %473 = vector.extract_strided_slice %39 {offsets = [4, 0], sizes = [1, 192], strides = [1, 1]} : vector<12x192xf32> to vector<1x192xf32>
    %474 = vector.broadcast %473 : vector<1x192xf32> to vector<9x192xf32>
    %475 = arith.mulf %472, %474 : vector<9x192xf32>
    %476 = arith.addf %471, %475 : vector<9x192xf32>
    %477 = vector.extract_strided_slice %452 {offsets = [5, 0], sizes = [9, 192], strides = [1, 1]} : vector<20x192xf32> to vector<9x192xf32>
    %478 = vector.extract_strided_slice %39 {offsets = [5, 0], sizes = [1, 192], strides = [1, 1]} : vector<12x192xf32> to vector<1x192xf32>
    %479 = vector.broadcast %478 : vector<1x192xf32> to vector<9x192xf32>
    %480 = arith.mulf %477, %479 : vector<9x192xf32>
    %481 = arith.addf %476, %480 : vector<9x192xf32>
    %482 = vector.extract_strided_slice %452 {offsets = [6, 0], sizes = [9, 192], strides = [1, 1]} : vector<20x192xf32> to vector<9x192xf32>
    %483 = vector.extract_strided_slice %39 {offsets = [6, 0], sizes = [1, 192], strides = [1, 1]} : vector<12x192xf32> to vector<1x192xf32>
    %484 = vector.broadcast %483 : vector<1x192xf32> to vector<9x192xf32>
    %485 = arith.mulf %482, %484 : vector<9x192xf32>
    %486 = arith.addf %481, %485 : vector<9x192xf32>
    %487 = vector.extract_strided_slice %452 {offsets = [7, 0], sizes = [9, 192], strides = [1, 1]} : vector<20x192xf32> to vector<9x192xf32>
    %488 = vector.extract_strided_slice %39 {offsets = [7, 0], sizes = [1, 192], strides = [1, 1]} : vector<12x192xf32> to vector<1x192xf32>
    %489 = vector.broadcast %488 : vector<1x192xf32> to vector<9x192xf32>
    %490 = arith.mulf %487, %489 : vector<9x192xf32>
    %491 = arith.addf %486, %490 : vector<9x192xf32>
    %492 = vector.extract_strided_slice %452 {offsets = [8, 0], sizes = [9, 192], strides = [1, 1]} : vector<20x192xf32> to vector<9x192xf32>
    %493 = vector.extract_strided_slice %39 {offsets = [8, 0], sizes = [1, 192], strides = [1, 1]} : vector<12x192xf32> to vector<1x192xf32>
    %494 = vector.broadcast %493 : vector<1x192xf32> to vector<9x192xf32>
    %495 = arith.mulf %492, %494 : vector<9x192xf32>
    %496 = arith.addf %491, %495 : vector<9x192xf32>
    %497 = vector.extract_strided_slice %452 {offsets = [9, 0], sizes = [9, 192], strides = [1, 1]} : vector<20x192xf32> to vector<9x192xf32>
    %498 = vector.extract_strided_slice %39 {offsets = [9, 0], sizes = [1, 192], strides = [1, 1]} : vector<12x192xf32> to vector<1x192xf32>
    %499 = vector.broadcast %498 : vector<1x192xf32> to vector<9x192xf32>
    %500 = arith.mulf %497, %499 : vector<9x192xf32>
    %501 = arith.addf %496, %500 : vector<9x192xf32>
    %502 = vector.extract_strided_slice %452 {offsets = [10, 0], sizes = [9, 192], strides = [1, 1]} : vector<20x192xf32> to vector<9x192xf32>
    %503 = vector.extract_strided_slice %39 {offsets = [10, 0], sizes = [1, 192], strides = [1, 1]} : vector<12x192xf32> to vector<1x192xf32>
    %504 = vector.broadcast %503 : vector<1x192xf32> to vector<9x192xf32>
    %505 = arith.mulf %502, %504 : vector<9x192xf32>
    %506 = arith.addf %501, %505 : vector<9x192xf32>
    %507 = vector.extract_strided_slice %452 {offsets = [11, 0], sizes = [9, 192], strides = [1, 1]} : vector<20x192xf32> to vector<9x192xf32>
    %508 = vector.extract_strided_slice %39 {offsets = [11, 0], sizes = [1, 192], strides = [1, 1]} : vector<12x192xf32> to vector<1x192xf32>
    %509 = vector.broadcast %508 : vector<1x192xf32> to vector<9x192xf32>
    %510 = arith.mulf %507, %509 : vector<9x192xf32>
    %511 = arith.addf %506, %510 : vector<9x192xf32>
    %cst_68 = arith.constant dense<0.000000e+00> : vector<9xf32>
    %512 = vector.multi_reduction <add>, %511, %cst_68 [1] : vector<9x192xf32> to vector<9xf32>
    %513 = vector.shape_cast %512 : vector<9xf32> to vector<9x1xf32>
    %514 = vector.extract_strided_slice %79 {offsets = [0, 112], sizes = [20, 192], strides = [1, 1]} : vector<20x320xf32> to vector<20x192xf32>
    %515 = vector.extract_strided_slice %514 {offsets = [0, 0], sizes = [9, 192], strides = [1, 1]} : vector<20x192xf32> to vector<9x192xf32>
    %516 = vector.extract_strided_slice %39 {offsets = [0, 0], sizes = [1, 192], strides = [1, 1]} : vector<12x192xf32> to vector<1x192xf32>
    %517 = vector.broadcast %516 : vector<1x192xf32> to vector<9x192xf32>
    %518 = arith.mulf %515, %517 : vector<9x192xf32>
    %519 = vector.extract_strided_slice %514 {offsets = [1, 0], sizes = [9, 192], strides = [1, 1]} : vector<20x192xf32> to vector<9x192xf32>
    %520 = vector.extract_strided_slice %39 {offsets = [1, 0], sizes = [1, 192], strides = [1, 1]} : vector<12x192xf32> to vector<1x192xf32>
    %521 = vector.broadcast %520 : vector<1x192xf32> to vector<9x192xf32>
    %522 = arith.mulf %519, %521 : vector<9x192xf32>
    %523 = arith.addf %518, %522 : vector<9x192xf32>
    %524 = vector.extract_strided_slice %514 {offsets = [2, 0], sizes = [9, 192], strides = [1, 1]} : vector<20x192xf32> to vector<9x192xf32>
    %525 = vector.extract_strided_slice %39 {offsets = [2, 0], sizes = [1, 192], strides = [1, 1]} : vector<12x192xf32> to vector<1x192xf32>
    %526 = vector.broadcast %525 : vector<1x192xf32> to vector<9x192xf32>
    %527 = arith.mulf %524, %526 : vector<9x192xf32>
    %528 = arith.addf %523, %527 : vector<9x192xf32>
    %529 = vector.extract_strided_slice %514 {offsets = [3, 0], sizes = [9, 192], strides = [1, 1]} : vector<20x192xf32> to vector<9x192xf32>
    %530 = vector.extract_strided_slice %39 {offsets = [3, 0], sizes = [1, 192], strides = [1, 1]} : vector<12x192xf32> to vector<1x192xf32>
    %531 = vector.broadcast %530 : vector<1x192xf32> to vector<9x192xf32>
    %532 = arith.mulf %529, %531 : vector<9x192xf32>
    %533 = arith.addf %528, %532 : vector<9x192xf32>
    %534 = vector.extract_strided_slice %514 {offsets = [4, 0], sizes = [9, 192], strides = [1, 1]} : vector<20x192xf32> to vector<9x192xf32>
    %535 = vector.extract_strided_slice %39 {offsets = [4, 0], sizes = [1, 192], strides = [1, 1]} : vector<12x192xf32> to vector<1x192xf32>
    %536 = vector.broadcast %535 : vector<1x192xf32> to vector<9x192xf32>
    %537 = arith.mulf %534, %536 : vector<9x192xf32>
    %538 = arith.addf %533, %537 : vector<9x192xf32>
    %539 = vector.extract_strided_slice %514 {offsets = [5, 0], sizes = [9, 192], strides = [1, 1]} : vector<20x192xf32> to vector<9x192xf32>
    %540 = vector.extract_strided_slice %39 {offsets = [5, 0], sizes = [1, 192], strides = [1, 1]} : vector<12x192xf32> to vector<1x192xf32>
    %541 = vector.broadcast %540 : vector<1x192xf32> to vector<9x192xf32>
    %542 = arith.mulf %539, %541 : vector<9x192xf32>
    %543 = arith.addf %538, %542 : vector<9x192xf32>
    %544 = vector.extract_strided_slice %514 {offsets = [6, 0], sizes = [9, 192], strides = [1, 1]} : vector<20x192xf32> to vector<9x192xf32>
    %545 = vector.extract_strided_slice %39 {offsets = [6, 0], sizes = [1, 192], strides = [1, 1]} : vector<12x192xf32> to vector<1x192xf32>
    %546 = vector.broadcast %545 : vector<1x192xf32> to vector<9x192xf32>
    %547 = arith.mulf %544, %546 : vector<9x192xf32>
    %548 = arith.addf %543, %547 : vector<9x192xf32>
    %549 = vector.extract_strided_slice %514 {offsets = [7, 0], sizes = [9, 192], strides = [1, 1]} : vector<20x192xf32> to vector<9x192xf32>
    %550 = vector.extract_strided_slice %39 {offsets = [7, 0], sizes = [1, 192], strides = [1, 1]} : vector<12x192xf32> to vector<1x192xf32>
    %551 = vector.broadcast %550 : vector<1x192xf32> to vector<9x192xf32>
    %552 = arith.mulf %549, %551 : vector<9x192xf32>
    %553 = arith.addf %548, %552 : vector<9x192xf32>
    %554 = vector.extract_strided_slice %514 {offsets = [8, 0], sizes = [9, 192], strides = [1, 1]} : vector<20x192xf32> to vector<9x192xf32>
    %555 = vector.extract_strided_slice %39 {offsets = [8, 0], sizes = [1, 192], strides = [1, 1]} : vector<12x192xf32> to vector<1x192xf32>
    %556 = vector.broadcast %555 : vector<1x192xf32> to vector<9x192xf32>
    %557 = arith.mulf %554, %556 : vector<9x192xf32>
    %558 = arith.addf %553, %557 : vector<9x192xf32>
    %559 = vector.extract_strided_slice %514 {offsets = [9, 0], sizes = [9, 192], strides = [1, 1]} : vector<20x192xf32> to vector<9x192xf32>
    %560 = vector.extract_strided_slice %39 {offsets = [9, 0], sizes = [1, 192], strides = [1, 1]} : vector<12x192xf32> to vector<1x192xf32>
    %561 = vector.broadcast %560 : vector<1x192xf32> to vector<9x192xf32>
    %562 = arith.mulf %559, %561 : vector<9x192xf32>
    %563 = arith.addf %558, %562 : vector<9x192xf32>
    %564 = vector.extract_strided_slice %514 {offsets = [10, 0], sizes = [9, 192], strides = [1, 1]} : vector<20x192xf32> to vector<9x192xf32>
    %565 = vector.extract_strided_slice %39 {offsets = [10, 0], sizes = [1, 192], strides = [1, 1]} : vector<12x192xf32> to vector<1x192xf32>
    %566 = vector.broadcast %565 : vector<1x192xf32> to vector<9x192xf32>
    %567 = arith.mulf %564, %566 : vector<9x192xf32>
    %568 = arith.addf %563, %567 : vector<9x192xf32>
    %569 = vector.extract_strided_slice %514 {offsets = [11, 0], sizes = [9, 192], strides = [1, 1]} : vector<20x192xf32> to vector<9x192xf32>
    %570 = vector.extract_strided_slice %39 {offsets = [11, 0], sizes = [1, 192], strides = [1, 1]} : vector<12x192xf32> to vector<1x192xf32>
    %571 = vector.broadcast %570 : vector<1x192xf32> to vector<9x192xf32>
    %572 = arith.mulf %569, %571 : vector<9x192xf32>
    %573 = arith.addf %568, %572 : vector<9x192xf32>
    %cst_69 = arith.constant dense<0.000000e+00> : vector<9xf32>
    %574 = vector.multi_reduction <add>, %573, %cst_69 [1] : vector<9x192xf32> to vector<9xf32>
    %575 = vector.shape_cast %574 : vector<9xf32> to vector<9x1xf32>
    %576 = vector.extract_strided_slice %79 {offsets = [0, 128], sizes = [20, 192], strides = [1, 1]} : vector<20x320xf32> to vector<20x192xf32>
    %577 = vector.extract_strided_slice %576 {offsets = [0, 0], sizes = [9, 192], strides = [1, 1]} : vector<20x192xf32> to vector<9x192xf32>
    %578 = vector.extract_strided_slice %39 {offsets = [0, 0], sizes = [1, 192], strides = [1, 1]} : vector<12x192xf32> to vector<1x192xf32>
    %579 = vector.broadcast %578 : vector<1x192xf32> to vector<9x192xf32>
    %580 = arith.mulf %577, %579 : vector<9x192xf32>
    %581 = vector.extract_strided_slice %576 {offsets = [1, 0], sizes = [9, 192], strides = [1, 1]} : vector<20x192xf32> to vector<9x192xf32>
    %582 = vector.extract_strided_slice %39 {offsets = [1, 0], sizes = [1, 192], strides = [1, 1]} : vector<12x192xf32> to vector<1x192xf32>
    %583 = vector.broadcast %582 : vector<1x192xf32> to vector<9x192xf32>
    %584 = arith.mulf %581, %583 : vector<9x192xf32>
    %585 = arith.addf %580, %584 : vector<9x192xf32>
    %586 = vector.extract_strided_slice %576 {offsets = [2, 0], sizes = [9, 192], strides = [1, 1]} : vector<20x192xf32> to vector<9x192xf32>
    %587 = vector.extract_strided_slice %39 {offsets = [2, 0], sizes = [1, 192], strides = [1, 1]} : vector<12x192xf32> to vector<1x192xf32>
    %588 = vector.broadcast %587 : vector<1x192xf32> to vector<9x192xf32>
    %589 = arith.mulf %586, %588 : vector<9x192xf32>
    %590 = arith.addf %585, %589 : vector<9x192xf32>
    %591 = vector.extract_strided_slice %576 {offsets = [3, 0], sizes = [9, 192], strides = [1, 1]} : vector<20x192xf32> to vector<9x192xf32>
    %592 = vector.extract_strided_slice %39 {offsets = [3, 0], sizes = [1, 192], strides = [1, 1]} : vector<12x192xf32> to vector<1x192xf32>
    %593 = vector.broadcast %592 : vector<1x192xf32> to vector<9x192xf32>
    %594 = arith.mulf %591, %593 : vector<9x192xf32>
    %595 = arith.addf %590, %594 : vector<9x192xf32>
    %596 = vector.extract_strided_slice %576 {offsets = [4, 0], sizes = [9, 192], strides = [1, 1]} : vector<20x192xf32> to vector<9x192xf32>
    %597 = vector.extract_strided_slice %39 {offsets = [4, 0], sizes = [1, 192], strides = [1, 1]} : vector<12x192xf32> to vector<1x192xf32>
    %598 = vector.broadcast %597 : vector<1x192xf32> to vector<9x192xf32>
    %599 = arith.mulf %596, %598 : vector<9x192xf32>
    %600 = arith.addf %595, %599 : vector<9x192xf32>
    %601 = vector.extract_strided_slice %576 {offsets = [5, 0], sizes = [9, 192], strides = [1, 1]} : vector<20x192xf32> to vector<9x192xf32>
    %602 = vector.extract_strided_slice %39 {offsets = [5, 0], sizes = [1, 192], strides = [1, 1]} : vector<12x192xf32> to vector<1x192xf32>
    %603 = vector.broadcast %602 : vector<1x192xf32> to vector<9x192xf32>
    %604 = arith.mulf %601, %603 : vector<9x192xf32>
    %605 = arith.addf %600, %604 : vector<9x192xf32>
    %606 = vector.extract_strided_slice %576 {offsets = [6, 0], sizes = [9, 192], strides = [1, 1]} : vector<20x192xf32> to vector<9x192xf32>
    %607 = vector.extract_strided_slice %39 {offsets = [6, 0], sizes = [1, 192], strides = [1, 1]} : vector<12x192xf32> to vector<1x192xf32>
    %608 = vector.broadcast %607 : vector<1x192xf32> to vector<9x192xf32>
    %609 = arith.mulf %606, %608 : vector<9x192xf32>
    %610 = arith.addf %605, %609 : vector<9x192xf32>
    %611 = vector.extract_strided_slice %576 {offsets = [7, 0], sizes = [9, 192], strides = [1, 1]} : vector<20x192xf32> to vector<9x192xf32>
    %612 = vector.extract_strided_slice %39 {offsets = [7, 0], sizes = [1, 192], strides = [1, 1]} : vector<12x192xf32> to vector<1x192xf32>
    %613 = vector.broadcast %612 : vector<1x192xf32> to vector<9x192xf32>
    %614 = arith.mulf %611, %613 : vector<9x192xf32>
    %615 = arith.addf %610, %614 : vector<9x192xf32>
    %616 = vector.extract_strided_slice %576 {offsets = [8, 0], sizes = [9, 192], strides = [1, 1]} : vector<20x192xf32> to vector<9x192xf32>
    %617 = vector.extract_strided_slice %39 {offsets = [8, 0], sizes = [1, 192], strides = [1, 1]} : vector<12x192xf32> to vector<1x192xf32>
    %618 = vector.broadcast %617 : vector<1x192xf32> to vector<9x192xf32>
    %619 = arith.mulf %616, %618 : vector<9x192xf32>
    %620 = arith.addf %615, %619 : vector<9x192xf32>
    %621 = vector.extract_strided_slice %576 {offsets = [9, 0], sizes = [9, 192], strides = [1, 1]} : vector<20x192xf32> to vector<9x192xf32>
    %622 = vector.extract_strided_slice %39 {offsets = [9, 0], sizes = [1, 192], strides = [1, 1]} : vector<12x192xf32> to vector<1x192xf32>
    %623 = vector.broadcast %622 : vector<1x192xf32> to vector<9x192xf32>
    %624 = arith.mulf %621, %623 : vector<9x192xf32>
    %625 = arith.addf %620, %624 : vector<9x192xf32>
    %626 = vector.extract_strided_slice %576 {offsets = [10, 0], sizes = [9, 192], strides = [1, 1]} : vector<20x192xf32> to vector<9x192xf32>
    %627 = vector.extract_strided_slice %39 {offsets = [10, 0], sizes = [1, 192], strides = [1, 1]} : vector<12x192xf32> to vector<1x192xf32>
    %628 = vector.broadcast %627 : vector<1x192xf32> to vector<9x192xf32>
    %629 = arith.mulf %626, %628 : vector<9x192xf32>
    %630 = arith.addf %625, %629 : vector<9x192xf32>
    %631 = vector.extract_strided_slice %576 {offsets = [11, 0], sizes = [9, 192], strides = [1, 1]} : vector<20x192xf32> to vector<9x192xf32>
    %632 = vector.extract_strided_slice %39 {offsets = [11, 0], sizes = [1, 192], strides = [1, 1]} : vector<12x192xf32> to vector<1x192xf32>
    %633 = vector.broadcast %632 : vector<1x192xf32> to vector<9x192xf32>
    %634 = arith.mulf %631, %633 : vector<9x192xf32>
    %635 = arith.addf %630, %634 : vector<9x192xf32>
    %cst_70 = arith.constant dense<0.000000e+00> : vector<9xf32>
    %636 = vector.multi_reduction <add>, %635, %cst_70 [1] : vector<9x192xf32> to vector<9xf32>
    %637 = vector.shape_cast %636 : vector<9xf32> to vector<9x1xf32>
    %638 = tpu.concatenate %141, %203, %265, %327, %389, %451, %513, %575, %637 in 1 : vector<9x1xf32>, vector<9x1xf32>, vector<9x1xf32>, vector<9x1xf32>, vector<9x1xf32>, vector<9x1xf32>, vector<9x1xf32>, vector<9x1xf32>, vector<9x1xf32> -> vector<9x9xf32>
    %cst_71 = arith.constant 1.000000e-03 : f32
    %639 = vector.broadcast %cst_71 : f32 to vector<9x9xf32>
    %640 = arith.mulf %638, %639 : vector<9x9xf32>
    %c0_72 = arith.constant 0 : index
    %c0_73 = arith.constant 0 : index
    %c0_74 = arith.constant 0 : index
    %641 = vector.load %arg11[%c0_72, %c0_73, %c0_74] : memref<1x9x9xf32, #tpu.memory_space<vmem>>, vector<1x9x9xf32>
    %642 = vector.shape_cast %641 : vector<1x9x9xf32> to vector<9x9xf32>
    %643 = vector.shape_cast %640 : vector<9x9xf32> to vector<1x9x9xf32>
    tpu.vector_store %arg11[%c0_72, %c0_73, %c0_74], %643 {strides = array<i32>} : memref<1x9x9xf32, #tpu.memory_space<vmem>>, vector<1x9x9xf32>,
    return
  }
  func.func @transform_0(%arg0: i32) -> (i32, i32, i32) {
    %c0_i32 = arith.constant 0 : i32
    %c0_i32_0 = arith.constant 0 : i32
    %c0_i32_1 = arith.constant 0 : i32
    return %arg0, %c0_i32, %c0_i32_0 : i32, i32, i32
  }
  func.func @transform_1(%arg0: i32) -> (i32, i32, i32) {
    %c0_i32 = arith.constant 0 : i32
    %c0_i32_0 = arith.constant 0 : i32
    %c0_i32_1 = arith.constant 0 : i32
    return %arg0, %c0_i32, %c0_i32_0 : i32, i32, i32
  }
  func.func @transform_2(%arg0: i32) -> (i32, i32, i32) {
    %c0_i32 = arith.constant 0 : i32
    %c0_i32_0 = arith.constant 0 : i32
    %c0_i32_1 = arith.constant 0 : i32
    %c0_i32_2 = arith.constant 0 : i32
    return %c0_i32, %c0_i32_0, %c0_i32_1 : i32, i32, i32
  }
  func.func @transform_3(%arg0: i32) -> (i32, i32, i32) {
    %c0_i32 = arith.constant 0 : i32
    %c0_i32_0 = arith.constant 0 : i32
    %c0_i32_1 = arith.constant 0 : i32
    %c0_i32_2 = arith.constant 0 : i32
    return %c0_i32, %c0_i32_0, %c0_i32_1 : i32, i32, i32
  }
  func.func @transform_4(%arg0: i32) -> (i32, i32, i32) {
    %c0_i32 = arith.constant 0 : i32
    %c0_i32_0 = arith.constant 0 : i32
    %c0_i32_1 = arith.constant 0 : i32
    %c0_i32_2 = arith.constant 0 : i32
    return %c0_i32, %c0_i32_0, %c0_i32_1 : i32, i32, i32
  }
  func.func @transform_5(%arg0: i32) -> (i32, i32, i32) {
    %c0_i32 = arith.constant 0 : i32
    %c0_i32_0 = arith.constant 0 : i32
    %c0_i32_1 = arith.constant 0 : i32
    %c0_i32_2 = arith.constant 0 : i32
    return %c0_i32, %c0_i32_0, %c0_i32_1 : i32, i32, i32
  }
  func.func @transform_6(%arg0: i32) -> (i32, i32) {
    %c0_i32 = arith.constant 0 : i32
    %c0_i32_0 = arith.constant 0 : i32
    %c0_i32_1 = arith.constant 0 : i32
    return %c0_i32, %c0_i32_0 : i32, i32
  }
  func.func @transform_7(%arg0: i32) -> (i32, i32) {
    %c0_i32 = arith.constant 0 : i32
    %c0_i32_0 = arith.constant 0 : i32
    %c0_i32_1 = arith.constant 0 : i32
    return %c0_i32, %c0_i32_0 : i32, i32
  }
  func.func @transform_8(%arg0: i32) -> (i32, i32) {
    %c0_i32 = arith.constant 0 : i32
    %c0_i32_0 = arith.constant 0 : i32
    %c0_i32_1 = arith.constant 0 : i32
    return %c0_i32, %c0_i32_0 : i32, i32
  }
  func.func @transform_9(%arg0: i32) -> (i32, i32) {
    %c0_i32 = arith.constant 0 : i32
    %c0_i32_0 = arith.constant 0 : i32
    %c0_i32_1 = arith.constant 0 : i32
    return %c0_i32, %c0_i32_0 : i32, i32
  }
  func.func @transform_10(%arg0: i32) -> (i32, i32, i32) {
    %c0_i32 = arith.constant 0 : i32
    %c0_i32_0 = arith.constant 0 : i32
    %c0_i32_1 = arith.constant 0 : i32
    return %arg0, %c0_i32, %c0_i32_0 : i32, i32, i32
  }
}

</mosaic_0001>

<bundles_post_ra>
// kernel: net_forward.1
= control target key start
LH: loop header
LB: loop body
LE: loop exit
PB: predicated region body
PF: predicated region fallthrough
CT: control target
= control target key end

     0   :  { %15 = vsyncpa [#allocation3], 0  ;;  %s5603_s13 = smov 0   ;;  %s10478_s0 = inlined_call_operand.vmem [shape: f32[2,16,48], index: 0, kind: input, shape index: {}]   ;;  %s10479_s1 = inlined_call_operand.vmem [shape: f32[2,24,72], index: 1, kind: input, shape index: {}]   ;;  %s10480_s2 = inlined_call_operand.vmem [shape: f32[3,48,112], index: 2, kind: input, shape index: {}]   ;;  %s10481_s3 = inlined_call_operand.vmem [shape: f32[3,72,176], index: 3, kind: input, shape index: {}]   ;;  %s10482_s4 = inlined_call_operand.vmem [shape: f32[3,112,192], index: 4, kind: input, shape index: {}]   ;;  %s10483_s5 = inlined_call_operand.hbm [shape: f32[3,176,320], index: 5, kind: input, shape index: {}]   ;;  %s10484_s6 = inlined_call_operand.vmem [shape: f32[1,112], index: 6, kind: input, shape index: {}]   ;;  %s10485_s7 = inlined_call_operand.vmem [shape: f32[1,176], index: 7, kind: input, shape index: {}]   ;;  %s10486_s8 = inlined_call_operand.vmem [shape: f32[1,192], index: 8, kind: input, shape index: {}]   ;;  %s10487_s9 = inlined_call_operand.vmem [shape: f32[1,320], index: 9, kind: input, shape index: {}]   ;;  %s10488_s10 = inlined_call_operand.vmem [shape: f32[2,9,9], index: 10, kind: output, shape index: {}]  }
   0x1 LB: > { %s292_s16 = sshll.u32 %s10483_s5, 4  ;;  %s5267_s17 = sadd.s32 4294967295, %s5536_s13   ;;  %s5536_s13 = sphi %s5603_s13, %s21_s13   ;;  %s293_s16 = int_to_ptr.hbm [resolvable:$true] %s292_s16 }
   0x2   : > { %p5269_p0 = scmp.ge.s32.totalorder %s5536_s13, 1  ;;  %p272_p1 = scmp.lt.s32.totalorder %s5536_s13, 3 }
   0x3   : > { %p5475_p2 = scmp.eq.s32.totalorder %s5267_s17, 0  ;;  %s5538_s18 = smov [#allocation2]  }
   0x4   : > { %p273_p3 = pnand %p5269_p0, %p272_p1  ;;  %s294_s19 = sshll.u32 %s5538_s18, 4  ;;  %s295_s19 = int_to_ptr.vmem [resolvable:$true] %s294_s19 }
   0x5   : > { %s5539_s20 = smov 384   ;;  %s5540_s21 = smov 24  }
   0x6   : > { %p5471_p4 = pneg %p273_p3  ;;  %338 = sbr.rel (%p273_p3) target bundleno = 1351 (0x547), region = 60 }
   0x8   : > { %p5472_p5 = pnand %p5475_p2, %p5471_p4 }
   0xa   : > { %5474 = dma.hbm_to_vmem [thread:$0]  (!%p5472_p5), %s293_s16, 25344, %s295_s19, [#allocation3], %s5539_s20, %s5539_s20, %s5540_s21  }
   0xb   : > { %5531 = dma.done.wait (%p5475_p2), [#allocation3], 25344  }
   0xc   : > { %5533 = vsyncadd (%p5475_p2), [#allocation3], 4294941952  ;;  %p382_p6 = scmp.lt.s32.totalorder %s5267_s17, 1  ;;  %v404_v0 = vld [vmem:[%s10480_s2 + $0x28] sm:$0xff]  ;;  %v403_v1 = vld [vmem:[%s10480_s2 + $0x20] sm:$0xff]  ;;  %vm414_vm0 = vcmask 1046528  }
   0xd   : > { %460 = vmatpush.msra.mxu2 %v404_v0  ;;  %v5284_v2 = vld [vmem:[%s10480_s2 + $0x58] sm:$0xff]  ;;  %v5283_v3 = vld [vmem:[%s10480_s2 + $0x50] sm:$0xff]  ;;  %v5282_v5 = vld [vmem:[%s10480_s2 + $0x48] sm:$0xff]  ;;  %vm418_vm1 = vcmask 392192   ;;  %vm480_vm2 = vcmask 1045504   ;;  %vm583_vm3 = vcmask 916480  }
   0xe   : > { %s11733_s17 = smov (!%p382_p6, %s5267_s17), 1  ;;  %v402_v4 = vld [vmem:[%s10480_s2 + $0x18] sm:$0xff]  ;;  %433 = vmatpush.msra.mxu0 %v5284_v2  ;;  %v401_v7 = vld [vmem:[%s10480_s2 + $0x10] sm:$0xff]  ;;  %v5281_v9 = vld [vmem:[%s10480_s2 + $0x40] sm:$0xff]  ;;  %vm832_vm4 = vcmask 588800   ;;  %s5541_s25 = smov 16  }
   0xf   : > { %s5448_s22 = sshll.u32 %s11733_s17, 4  ;;  %461 = vmatpush.msra.mxu2 %v403_v1  ;;  %v400_v10 = vld [vmem:[%s10480_s2 + $0x8] sm:$0xff]  ;;  %v5280_v13 = vld [vmem:[%s10480_s2 + $0x38] sm:$0xff]  ;;  %v5323_v14 = vld [vmem:[%s10482_s4 + $0x1b0] sm:$0xff]  ;;  %s5466_s30 = smul.u32 24, %s11733_s17  ;;  %vm2086_vm5 = vcmask 130048  }
  0x10   : > { %s386_s16 = scalar_lea.vmem %s10478_s0, %s5448_s22  ;;  %434 = vmatpush.msra.mxu0 %v5283_v3  ;;  %v399_v15 = vld [vmem:[%s10480_s2] sm:$0xff]  ;;  %590 = vmatpush.msra.mxu3 %v5323_v14  ;;  %v547_v16 = vld [vmem:[%s10482_s4 + $0xd0] sm:$0xff]  ;;  %v5294_v20 = vld [vmem:[%s10480_s2 + $0x88] sm:$0xff]  ;;  %s5542_s28 = smov 32   ;;  %vm2069_vm6 = vcmask 523264   ;;  %vm1872_vm7 = vcmask 1044480  }
  0x11   : > { %v5640_v6 = vld [vmem:[%s386_s16 + $0x8] sm:$0xff]  ;;  %462 = vmatpush.msra.mxu2 %v402_v4  ;;  %v397_v8 = vld [vmem:[%s386_s16] sm:$0xff]  ;;  %v5279_v17 = vld [vmem:[%s10480_s2 + $0x30] sm:$0xff]  ;;  %640 = vmatpush.msra.mxu1 %v547_v16  ;;  %s6020_s24 = scalar_lea.vmem %s10479_s1, %s5466_s30  ;;  %s5544_s29 = smov 64   ;;  %vm2452_vm8 = vcmask 261120   ;;  %vm1897_vm9 = vcmask 1043456  }
  0x12   : > { %435 = vmatpush.msra.mxu0 %v5282_v5  ;;  %v415_v11 = vrot.slane %v397_v8, 1  ;;  %v416_v12 = vrot.slane %v5640_v6, 1  ;;  %v5321_v18 = vld [vmem:[%s10482_s4 + $0x1a0] sm:$0xff]  ;;  %v5324_v22 = vld [vmem:[%s10482_s4 + $0x1b8] sm:$0xff]  ;;  %v5319_v23 = vld [vmem:[%s10482_s4 + $0x190] sm:$0xff]  ;;  %v481_v31 = vrot.slane %v397_v8, 2  ;;  %s396_s19 = scalar_lea.vmem %s10488_s10, %s5448_s22 }
  0x13   : > { %463 = vmatpush.msra.mxu2 %v401_v7  ;;  %v545_v19 = vld [vmem:[%s10482_s4 + $0xc0] sm:$0xff]  ;;  %591 = vmatpush.msra.mxu3 %v5321_v18  ;;  %v5322_v25 = vld [vmem:[%s10482_s4 + $0x1a8] sm:$0xff]  ;;  %v5292_v26 = vld [vmem:[%s10480_s2 + $0x78] sm:$0xff]  ;;  %v482_v32 = vrot.slane %v5640_v6, 2  ;;  %s5545_s11 = smov 80   ;;  %s5546_s14 = smov 96  }
  0x14   : > { %436 = vmatpush.msra.mxu0 %v5281_v9  ;;  %v417_v21 = vsel %vm414_vm0, %v415_v11, %v416_v12  ;;  %641 = vmatpush.msra.mxu1 %v545_v19  ;;  %v5293_v24 = vld [vmem:[%s10480_s2 + $0x80] sm:$0xff]  ;;  %v5320_v27 = vld [vmem:[%s10482_s4 + $0x198] sm:$0xff]  ;;  %v5291_v28 = vld [vmem:[%s10480_s2 + $0x70] sm:$0xff]  ;;  %vm1922_vm10 = vcmask 1042432   ;;  %vm1947_vm11 = vcmask 1041408   ;;  %s5547_s15 = smov 112  }
  0x15   : > { %464 = vmatpush.msra.mxu2 %v400_v10  ;;  %592 = vmatpush.msra.mxu3 %v5319_v23  ;;  %v5290_v29 = vld [vmem:[%s10480_s2 + $0x68] sm:$0xff]  ;;  %v5289_v30 = vld [vmem:[%s10480_s2 + $0x60] sm:$0xff]  ;;  %v548_v33 = vld [vmem:[%s10482_s4 + $0xd8] sm:$0xff]  ;;  %v483_v35 = vsel %vm480_vm2, %v481_v31, %v482_v32  ;;  %vm1972_vm12 = vcmask 1040384   ;;  %vm3121_vm13 = vcmask 654336   ;;  %vm2777_vm14 = vcmask 785408  }
  0x16   : > { %437 = vmatpush.msra.mxu0 %v5280_v13  ;;  %v546_v34 = vld [vmem:[%s10482_s4 + $0xc8] sm:$0xff]  ;;  %v543_v36 = vld [vmem:[%s10482_s4 + $0xb0] sm:$0xff]  ;;  %v544_v37 = vld [vmem:[%s10482_s4 + $0xb8] sm:$0xff]  ;;  %vm2075_vm15 = vcmask 516096  }
  0x17   : > { %465 = vmatpush.msra.mxu2 %v399_v15  ;;  %642 = vmatpush.msra.mxu1 %v543_v36  ;;  %v5317_v38 = vld [vmem:[%s10482_s4 + $0x180] sm:$0xff]  ;;  %v5318_v39 = vld [vmem:[%s10482_s4 + $0x188] sm:$0xff]  ;;  %v5315_v42 = vld [vmem:[%s10482_s4 + $0x170] sm:$0xff] }
  0x18   : > { %5287 = vmatmul.msk.f32.vlgmr.msra.gmra.mxu2 %vm418_vm1, %v397_v8  ;;  %438 = vmatpush.msra.mxu0 %v5279_v17  ;;  %v541_v40 = vld [vmem:[%s10482_s4 + $0xa0] sm:$0xff]  ;;  %v542_v41 = vld [vmem:[%s10482_s4 + $0xa8] sm:$0xff]  ;;  %v5316_v43 = vld [vmem:[%s10482_s4 + $0x178] sm:$0xff] }
  0x19   : > { %498 = vmatpush.msrb.mxu2 %v5294_v20  ;;  %5285 = vmatmul.msk.f32.vlgmr.msra.gmra.mxu0 %vm418_vm1, %v417_v21  ;;  %v539_v44 = vld [vmem:[%s10482_s4 + $0x90] sm:$0xff]  ;;  %v540_v45 = vld [vmem:[%s10482_s4 + $0x98] sm:$0xff]  ;;  %v5313_v46 = vld [vmem:[%s10482_s4 + $0x160] sm:$0xff] }
  0x1a   : > { %613 = vmatpush.msrb.mxu0 %v5324_v22  ;;  %593 = vmatpush.msra.mxu3 %v5317_v38  ;;  %v5314_v47 = vld [vmem:[%s10482_s4 + $0x168] sm:$0xff]  ;;  %v537_v48 = vld [vmem:[%s10482_s4 + $0x80] sm:$0xff]  ;;  %v5311_v50 = vld [vmem:[%s10482_s4 + $0x150] sm:$0xff] }
  0x1b   : > { %499 = vmatpush.msrb.mxu2 %v5293_v24  ;;  %643 = vmatpush.msra.mxu1 %v541_v40  ;;  %v538_v49 = vld [vmem:[%s10482_s4 + $0x88] sm:$0xff]  ;;  %v5312_v51 = vld [vmem:[%s10482_s4 + $0x158] sm:$0xff]  ;;  %v535_v52 = vld [vmem:[%s10482_s4 + $0x70] sm:$0xff] }
  0x1c   : > { %614 = vmatpush.msrb.mxu0 %v5322_v25  ;;  %594 = vmatpush.msra.mxu3 %v5315_v42  ;;  %v536_v53 = vld [vmem:[%s10482_s4 + $0x78] sm:$0xff]  ;;  %v5309_v54 = vld [vmem:[%s10482_s4 + $0x140] sm:$0xff]  ;;  %v5310_v55 = vld [vmem:[%s10482_s4 + $0x148] sm:$0xff] }
  0x1d   : > { %500 = vmatpush.msrb.mxu2 %v5292_v26  ;;  %644 = vmatpush.msra.mxu1 %v539_v44  ;;  %v533_v56 = vld [vmem:[%s10482_s4 + $0x60] sm:$0xff]  ;;  %v534_v57 = vld [vmem:[%s10482_s4 + $0x68] sm:$0xff]  ;;  %v5307_v58 = vld [vmem:[%s10482_s4 + $0x130] sm:$0xff] }
  0x1e   : > { %615 = vmatpush.msrb.mxu0 %v5320_v27  ;;  %595 = vmatpush.msra.mxu3 %v5313_v46  ;;  %v5308_v59 = vld [vmem:[%s10482_s4 + $0x138] sm:$0xff]  ;;  %v531_v60 = vld [vmem:[%s10482_s4 + $0x50] sm:$0xff]  ;;  %v5305_v62 = vld [vmem:[%s10482_s4 + $0x120] sm:$0xff] }
  0x1f   : > { %501 = vmatpush.msrb.mxu2 %v5291_v28  ;;  %645 = vmatpush.msra.mxu1 %v537_v48  ;;  %v532_v61 = vld [vmem:[%s10482_s4 + $0x58] sm:$0xff]  ;;  %v5306_v63 = vld [vmem:[%s10482_s4 + $0x128] sm:$0xff]  ;;  %v529_v0 = vld [vmem:[%s10482_s4 + $0x40] sm:$0xff] }
  0x20   : > { %5288 = vmatmul.msk.f32.gmra.mxu2 %vm418_vm1, %v5640_v6  ;;  %616 = vmatpush.msrb.mxu0 %v5318_v39  ;;  %v530_v1 = vld [vmem:[%s10482_s4 + $0x48] sm:$0xff]  ;;  %v5303_v2 = vld [vmem:[%s10482_s4 + $0x110] sm:$0xff]  ;;  %v5304_v3 = vld [vmem:[%s10482_s4 + $0x118] sm:$0xff] }
  0x21   : > { %502 = vmatpush.msrb.mxu2 %v5290_v29  ;;  %5286 = vmatmul.msk.f32.gmra.mxu0 %vm418_vm1, %v416_v12  ;;  %v527_v4 = vld [vmem:[%s10482_s4 + $0x30] sm:$0xff]  ;;  %v528_v5 = vld [vmem:[%s10482_s4 + $0x38] sm:$0xff]  ;;  %v5301_v6 = vld [vmem:[%s10482_s4 + $0x100] sm:$0xff] }
  0x22   : > { %617 = vmatpush.msrb.mxu0 %v5316_v43  ;;  %596 = vmatpush.msra.mxu3 %v5311_v50  ;;  %v5302_v7 = vld [vmem:[%s10482_s4 + $0x108] sm:$0xff]  ;;  %v525_v8 = vld [vmem:[%s10482_s4 + $0x20] sm:$0xff]  ;;  %v5299_v10 = vld [vmem:[%s10482_s4 + $0xf0] sm:$0xff] }
  0x23   : > { %503 = vmatpush.msrb.mxu2 %v5289_v30  ;;  %646 = vmatpush.msra.mxu1 %v535_v52  ;;  %v526_v9 = vld [vmem:[%s10482_s4 + $0x28] sm:$0xff]  ;;  %v5300_v11 = vld [vmem:[%s10482_s4 + $0xf8] sm:$0xff]  ;;  %v523_v12 = vld [vmem:[%s10482_s4 + $0x10] sm:$0xff] }
  0x24   : > { %618 = vmatpush.msrb.mxu0 %v5314_v47  ;;  %597 = vmatpush.msra.mxu3 %v5309_v54  ;;  %v524_v13 = vld [vmem:[%s10482_s4 + $0x18] sm:$0xff]  ;;  %v5297_v14 = vld [vmem:[%s10482_s4 + $0xe0] sm:$0xff]  ;;  %v5298_v15 = vld [vmem:[%s10482_s4 + $0xe8] sm:$0xff] }
  0x25   : > { %663 = vmatpush.msra.mxu2 %v548_v33  ;;  %647 = vmatpush.msra.mxu1 %v533_v56  ;;  %v521_v16 = vld [vmem:[%s10482_s4] sm:$0xff]  ;;  %v522_v17 = vld [vmem:[%s10482_s4 + $0x8] sm:$0xff]  ;;  %v5359_v18 = vld [vmem:[%s10482_s4 + $0x290] sm:$0xff] }
  0x26   : > { %619 = vmatpush.msrb.mxu0 %v5312_v51  ;;  %598 = vmatpush.msra.mxu3 %v5307_v58  ;;  %v5360_v19 = vld [vmem:[%s10482_s4 + $0x298] sm:$0xff]  ;;  %v5381_v20 = vld [vmem:[%s10481_s3 + $0x110] sm:$0xff]  ;;  %v5357_v21 = vld [vmem:[%s10482_s4 + $0x280] sm:$0xff] }
  0x27   : > { %664 = vmatpush.msra.mxu2 %v546_v34  ;;  %648 = vmatpush.msra.mxu1 %v531_v60  ;;  %v5358_v22 = vld [vmem:[%s10482_s4 + $0x288] sm:$0xff]  ;;  %v5379_v23 = vld [vmem:[%s10481_s3 + $0x100] sm:$0xff]  ;;  %v5355_v24 = vld [vmem:[%s10482_s4 + $0x270] sm:$0xff] }
  0x28   : > { %5295 = vmatmul.msk.f32.vlgmr.msrb.gmra.mxu2 %vm418_vm1, %v483_v35  ;;  %620 = vmatpush.msrb.mxu0 %v5310_v55  ;;  %v5356_v25 = vld [vmem:[%s10482_s4 + $0x278] sm:$0xff]  ;;  %v5377_v26 = vld [vmem:[%s10481_s3 + $0xf0] sm:$0xff]  ;;  %v5353_v28 = vld [vmem:[%s10482_s4 + $0x260] sm:$0xff] }
  0x29   : > { %665 = vmatpush.msra.mxu2 %v544_v37  ;;  %599 = vmatpush.msra.mxu3 %v5305_v62  ;;  %v5382_v27 = vld [vmem:[%s10481_s3 + $0x118] sm:$0xff]  ;;  %v5354_v29 = vld [vmem:[%s10482_s4 + $0x268] sm:$0xff]  ;;  %v5375_v30 = vld [vmem:[%s10481_s3 + $0xe0] sm:$0xff] }
  0x2a   : > { %621 = vmatpush.msrb.mxu0 %v5308_v59  ;;  %649 = vmatpush.msra.mxu1 %v529_v0  ;;  %v5380_v31 = vld [vmem:[%s10481_s3 + $0x108] sm:$0xff]  ;;  %v5352_v33 = vld [vmem:[%s10482_s4 + $0x258] sm:$0xff]  ;;  %v5373_v34 = vld [vmem:[%s10481_s3 + $0xd0] sm:$0xff] }
  0x2b   : > { %666 = vmatpush.msra.mxu2 %v542_v41  ;;  %600 = vmatpush.msra.mxu3 %v5303_v2  ;;  %v5378_v35 = vld [vmem:[%s10481_s3 + $0xf8] sm:$0xff]  ;;  %v5349_v36 = vld [vmem:[%s10482_s4 + $0x240] sm:$0xff]  ;;  %v5350_v37 = vld [vmem:[%s10482_s4 + $0x248] sm:$0xff] }
  0x2c   : > { %622 = vmatpush.msrb.mxu0 %v5306_v63  ;;  %650 = vmatpush.msra.mxu1 %v527_v4  ;;  %v5371_v38 = vld [vmem:[%s10481_s3 + $0xc0] sm:$0xff]  ;;  %v5376_v40 = vld [vmem:[%s10481_s3 + $0xe8] sm:$0xff]  ;;  %v5347_v41 = vld [vmem:[%s10482_s4 + $0x230] sm:$0xff] }
  0x2d   : > { %667 = vmatpush.msra.mxu2 %v540_v45  ;;  %601 = vmatpush.msra.mxu3 %v5301_v6  ;;  %v5348_v42 = vld [vmem:[%s10482_s4 + $0x238] sm:$0xff]  ;;  %v5369_v43 = vld [vmem:[%s10481_s3 + $0xb0] sm:$0xff]  ;;  %v5345_v45 = vld [vmem:[%s10482_s4 + $0x220] sm:$0xff] }
  0x2e   : > { %623 = vmatpush.msrb.mxu0 %v5304_v3  ;;  %651 = vmatpush.msra.mxu1 %v525_v8  ;;  %v5374_v44 = vld [vmem:[%s10481_s3 + $0xd8] sm:$0xff]  ;;  %v5346_v46 = vld [vmem:[%s10482_s4 + $0x228] sm:$0xff]  ;;  %v5367_v47 = vld [vmem:[%s10481_s3 + $0xa0] sm:$0xff] }
  0x2f   : > { %668 = vmatpush.msra.mxu2 %v538_v49  ;;  %602 = vmatpush.msra.mxu3 %v5299_v10  ;;  %v5372_v48 = vld [vmem:[%s10481_s3 + $0xc8] sm:$0xff]  ;;  %v5343_v49 = vld [vmem:[%s10482_s4 + $0x210] sm:$0xff]  ;;  %v5344_v50 = vld [vmem:[%s10482_s4 + $0x218] sm:$0xff] }
  0x30   : > { %5296 = vmatmul.msk.f32.gmra.mxu2 %vm418_vm1, %v482_v32  ;;  %624 = vmatpush.msrb.mxu0 %v5302_v7  ;;  %v5351_v32 = vld [vmem:[%s10482_s4 + $0x250] sm:$0xff]  ;;  %v5370_v52 = vld [vmem:[%s10481_s3 + $0xb8] sm:$0xff]  ;;  %v5342_v54 = vld [vmem:[%s10482_s4 + $0x208] sm:$0xff] }
  0x31   : > { %669 = vmatpush.msra.mxu2 %v536_v53  ;;  %652 = vmatpush.msra.mxu1 %v523_v12  ;;  %v5365_v51 = vld [vmem:[%s10481_s3 + $0x90] sm:$0xff]  ;;  %v5341_v53 = vld [vmem:[%s10482_s4 + $0x200] sm:$0xff]  ;;  %v5368_v55 = vld [vmem:[%s10481_s3 + $0xa8] sm:$0xff] }
  0x32   : > { %625 = vmatpush.msrb.mxu0 %v5300_v11  ;;  %603 = vmatpush.msra.mxu3 %v5297_v14  ;;  %v5340_v58 = vld [vmem:[%s10482_s4 + $0x1f8] sm:$0xff]  ;;  %v5338_v62 = vld [vmem:[%s10482_s4 + $0x1e8] sm:$0xff]  ;;  %v5335_v63 = vld [vmem:[%s10482_s4 + $0x1d0] sm:$0xff] }
  0x33   : > { %670 = vmatpush.msra.mxu2 %v534_v57  ;;  %653 = vmatpush.msra.mxu1 %v521_v16  ;;  %v5339_v57 = vld [vmem:[%s10482_s4 + $0x1f0] sm:$0xff]  ;;  %v5366_v60 = vld [vmem:[%s10481_s3 + $0x98] sm:$0xff]  ;;  %v5334_v2 = vld [vmem:[%s10482_s4 + $0x1c8] sm:$0xff] }
  0x34   : > { %626 = vmatpush.msrb.mxu0 %v5298_v15  ;;  %722 = vmatpush.msrb.mxu3 %v5359_v18  ;;  %v5336_v0 = vld [vmem:[%s10482_s4 + $0x1d8] sm:$0xff]  ;;  %v5495_v4 = vld [vmem:[%s10484_s6] ss:$0 sm:$0xff]  ;;  %v804_v10 = vld [vmem:[%s10481_s3 + $0x88] sm:$0xff] }
  0x35   : > { %671 = vmatpush.msra.mxu2 %v532_v61  ;;  %846 = vmatpush.msrb.mxu1 %v5381_v20  ;;  %v5337_v61 = vld [vmem:[%s10482_s4 + $0x1e0] sm:$0xff]  ;;  %v5409_v14 = vld [vmem:[%s10481_s3 + $0x190] sm:$0xff]  ;;  %v798_v20 = vld [vmem:[%s10481_s3 + $0x58] sm:$0xff] }
  0x36   : > { %745 = vmatpush.msra.mxu0 %v5360_v19  ;;  %723 = vmatpush.msrb.mxu3 %v5357_v21  ;;  %v5411_v11 = vld [vmem:[%s10481_s3 + $0x1a0] sm:$0xff]  ;;  %v5405_v21 = vld [vmem:[%s10481_s3 + $0x170] sm:$0xff] }
  0x37   : > { %672 = vmatpush.msra.mxu2 %v530_v1  ;;  %847 = vmatpush.msrb.mxu1 %v5379_v23  ;;  %v5333_v1 = vld [vmem:[%s10482_s4 + $0x1c0] sm:$0xff]  ;;  %v6038_v23 = vld [vmem:[%s6020_s24 + $0x8] sm:$0xff] }
  0x38   : > { %746 = vmatpush.msra.mxu0 %v5358_v22  ;;  %724 = vmatpush.msrb.mxu3 %v5355_v24  ;;  %v5407_v18 = vld [vmem:[%s10481_s3 + $0x180] sm:$0xff] }
  0x39   : > { %673 = vmatpush.msra.mxu2 %v528_v5  ;;  %848 = vmatpush.msrb.mxu1 %v5377_v26  ;;  %v6035_v22 = vld [vmem:[%s6020_s24] sm:$0xff] }
  0x3a   : > { %747 = vmatpush.msra.mxu0 %v5356_v25  ;;  %725 = vmatpush.msrb.mxu3 %v5353_v28  ;;  %v796_v25 = vld [vmem:[%s10481_s3 + $0x48] sm:$0xff]  ;;  %v5403_v26 = vld [vmem:[%s10481_s3 + $0x160] sm:$0xff] }
  0x3b   : > { %674 = vmatpush.msra.mxu2 %v526_v9  ;;  %849 = vmatpush.msrb.mxu1 %v5375_v30  ;;  %v828_v30 = vrot.slane %v6038_v23, 1 }
  0x3c   : > { %748 = vmatpush.msra.mxu0 %v5354_v29  ;;  %726 = vmatpush.msrb.mxu3 %v5351_v32  ;;  %v827_v29 = vrot.slane %v6035_v22, 1  ;;  %v5412_v32 = vld [vmem:[%s10481_s3 + $0x1a8] sm:$0xff] }
  0x3d   : > { %675 = vmatpush.msra.mxu2 %v524_v13  ;;  %850 = vmatpush.msrb.mxu1 %v5373_v34  ;;  %v802_v13 = vld [vmem:[%s10481_s3 + $0x78] sm:$0xff] }
  0x3e   : > { %749 = vmatpush.msra.mxu0 %v5352_v33  ;;  %727 = vmatpush.msrb.mxu3 %v5349_v36  ;;  %v794_v34 = vld [vmem:[%s10481_s3 + $0x38] sm:$0xff]  ;;  %v801_v36 = vld [vmem:[%s10481_s3 + $0x70] sm:$0xff] }
  0x3f   : > { %676 = vmatpush.msra.mxu2 %v522_v17  ;;  %851 = vmatpush.msrb.mxu1 %v5371_v38  ;;  %v800_v17 = vld [vmem:[%s10481_s3 + $0x68] sm:$0xff] }
  0x40   : > { %750 = vmatpush.msra.mxu0 %v5350_v37  ;;  %728 = vmatpush.msrb.mxu3 %v5347_v41  ;;  %v5410_v37 = vld [vmem:[%s10481_s3 + $0x198] sm:$0xff]  ;;  %v792_v38 = vld [vmem:[%s10481_s3 + $0x28] sm:$0xff]  ;;  %v6080_v41 = vld [vmem:[%s6020_s24 + $0x10] sm:$0xff]  ;;  %s5543_s24 = smov 48  }
  0x41   : > { %872 = vmatpush.msrb.mxu2 %v5382_v27  ;;  %852 = vmatpush.msrb.mxu1 %v5369_v43  ;;  %v5408_v43 = vld [vmem:[%s10481_s3 + $0x188] sm:$0xff] }
  0x42   : > { %751 = vmatpush.msra.mxu0 %v5348_v42  ;;  %729 = vmatpush.msrb.mxu3 %v5345_v45  ;;  %v799_v42 = vld [vmem:[%s10481_s3 + $0x60] sm:$0xff]  ;;  %v5397_v45 = vld [vmem:[%s10481_s3 + $0x130] sm:$0xff] }
  0x43   : > { %873 = vmatpush.msrb.mxu2 %v5380_v31  ;;  %853 = vmatpush.msrb.mxu1 %v5367_v47  ;;  %v803_v31 = vld [vmem:[%s10481_s3 + $0x80] sm:$0xff]  ;;  %v797_v47 = vld [vmem:[%s10481_s3 + $0x50] sm:$0xff] }
  0x44   : > { %752 = vmatpush.msra.mxu0 %v5346_v46  ;;  %730 = vmatpush.msrb.mxu3 %v5343_v49  ;;  %v830_v46 = vrot.slane %v6080_v41, 1  ;;  %v788_v49 = vld [vmem:[%s10481_s3 + $0x8] sm:$0xff] }
  0x45   : > { %874 = vmatpush.msrb.mxu2 %v5378_v35  ;;  %854 = vmatpush.msrb.mxu1 %v5365_v51  ;;  %v5401_v35 = vld [vmem:[%s10481_s3 + $0x150] sm:$0xff]  ;;  %v795_v51 = vld [vmem:[%s10481_s3 + $0x40] sm:$0xff] }
  0x46   : > { %753 = vmatpush.msra.mxu0 %v5344_v50  ;;  %731 = vmatpush.msrb.mxu3 %v5341_v53  ;;  %v5395_v50 = vld [vmem:[%s10481_s3 + $0x120] sm:$0xff]  ;;  %v831_v53 = vsel %vm414_vm0, %v828_v30, %v830_v46 }
  0x47   : > { %875 = vmatpush.msrb.mxu2 %v5376_v40  ;;  %v829_v40 = vsel %vm414_vm0, %v827_v29, %v828_v30  ;;  %v1152_v30 = vld [vmem:[#allocation2 + $0x300] sm:$0xff] }
  0x48   : > { %754 = vmatpush.msra.mxu0 %v5342_v54  ;;  %732 = vmatpush.msrb.mxu3 %v5339_v57 }
  0x49   : > { %876 = vmatpush.msrb.mxu2 %v5374_v44  ;;  %v790_v44 = vld [vmem:[%s10481_s3 + $0x18] sm:$0xff] }
  0x4a   : > { %755 = vmatpush.msra.mxu0 %v5340_v58  ;;  %733 = vmatpush.msrb.mxu3 %v5337_v61  ;;  %v791_v58 = vld [vmem:[%s10481_s3 + $0x20] sm:$0xff]  ;;  %v789_v61 = vld [vmem:[%s10481_s3 + $0x10] sm:$0xff] }
  0x4b   : > { %877 = vmatpush.msrb.mxu2 %v5372_v48  ;;  %v5406_v48 = vld [vmem:[%s10481_s3 + $0x178] sm:$0xff] }
  0x4c   : > { %756 = vmatpush.msra.mxu0 %v5338_v62  ;;  %734 = vmatpush.msrb.mxu3 %v5335_v63  ;;  %v5398_v62 = vld [vmem:[%s10481_s3 + $0x138] sm:$0xff]  ;;  %v787_v63 = vld [vmem:[%s10481_s3] sm:$0xff] }
  0x4d   : > { %878 = vmatpush.msrb.mxu2 %v5370_v52  ;;  %v5404_v52 = vld [vmem:[%s10481_s3 + $0x168] sm:$0xff] }
  0x4e   : > { %757 = vmatpush.msra.mxu0 %v5336_v0  ;;  %735 = vmatpush.msrb.mxu3 %v5333_v1  ;;  %v5396_v0 = vld [vmem:[%s10481_s3 + $0x128] sm:$0xff]  ;;  %v968_v1 = vrot.slane %v6035_v22, 2 }
  0x4f   : > { %879 = vmatpush.msrb.mxu2 %v5368_v55  ;;  %v793_v55 = vld [vmem:[%s10481_s3 + $0x30] sm:$0xff] }
  0x50   : > { %758 = vmatpush.msra.mxu0 %v5334_v2  ;;  %v969_v2 = vrot.slane %v6038_v23, 2 }
  0x51   : > { %880 = vmatpush.msrb.mxu2 %v5366_v60 }
  0x96   : > { %v440_v59 = vpop.f32.mrf.mxu0 }
  0x9b   : > { %v467_v39 = vpop.f32.mrf.mxu2 }
  0x9c   : > { %v468_v3 = vadd.f32 %v467_v39, %v440_v59  ;;  %v5399_v39 = vld [vmem:[%s10481_s3 + $0x140] sm:$0xff]  ;;  %v5400_v59 = vld [vmem:[%s10481_s3 + $0x148] sm:$0xff] }
  0x9e   : > { %v443_v8 = vpop.f32.mrf.mxu0 }
  0xa3   : > { %v470_v56 = vpop.f32.mrf.mxu2 }
  0xa4   : > { %v471_v12 = vadd.f32 %v470_v56, %v443_v8  ;;  %v5402_v56 = vld [vmem:[%s10481_s3 + $0x158] sm:$0xff] }
  0xab   : > { %v505_v5 = vpop.f32.mrf.mxu2 }
  0xac   : > { %v511_v6 = vadd.f32 %v505_v5, %v468_v3  ;;  %v970_v3 = vsel %vm480_vm2, %v968_v1, %v969_v2  ;;  %v1091_v1 = vld [vmem:[#allocation2 + $0x120] sm:$0xff] }
  0xae   : > { %v517_v7 = vadd.f32 %v5495_v4, %v511_v6 }
  0xb0   : > { %v5999_v9 = vmax.f32 %v517_v7, 0.0 }
  0xb2   : > { %5329 = vmatmul.msk.f32.vlgmr.msra.gmra.mxu1 %vm583_vm3, %v5999_v9  ;;  %5331 = vmatmul.msk.f32.vlgmr.msra.gmra.mxu2 %vm583_vm3, %v5999_v9  ;;  %v580_v27 = vrot.slane %v5999_v9, 1  ;;  %v713_v57 = vrot.slane %v5999_v9, 2  ;;  %v1167_v9 = vld [vmem:[#allocation2 + $0x378] sm:$0xff] }
  0xb3   : > { %v508_v15 = vpop.f32.mrf.mxu2  ;;  %930 = vmatpush.msra.mxu1 %v804_v10  ;;  %986 = vmatpush.msra.mxu2 %v5411_v11  ;;  %v1168_v10 = vld [vmem:[#allocation2 + $0x380] sm:$0xff] }
  0xb4   : > { %v512_v16 = vadd.f32 %v508_v15, %v471_v12  ;;  %v1164_v11 = vld [vmem:[#allocation2 + $0x360] sm:$0xff]  ;;  %v1165_v12 = vld [vmem:[#allocation2 + $0x368] sm:$0xff]  ;;  %v1162_v15 = vld [vmem:[#allocation2 + $0x350] sm:$0xff] }
  0xb5   : > { %931 = vmatpush.msra.mxu1 %v802_v13  ;;  %987 = vmatpush.msra.mxu2 %v5409_v14  ;;  %v1161_v14 = vld [vmem:[#allocation2 + $0x348] sm:$0xff] }
  0xb6   : > { %v518_v19 = vadd.f32 %v5495_v4, %v512_v16  ;;  %v971_v4 = vrot.slane %v6080_v41, 2  ;;  %v1186_v16 = vld [vmem:[#allocation2 + $0x410] sm:$0xff] }
  0xb7   : > { %932 = vmatpush.msra.mxu1 %v800_v17  ;;  %988 = vmatpush.msra.mxu2 %v5407_v18  ;;  %v1185_v17 = vld [vmem:[#allocation2 + $0x408] sm:$0xff] }
  0xb8   : > { %v520_v24 = vmax.f32 %v518_v19, 0.0  ;;  %v972_v5 = vsel %vm480_vm2, %v969_v2, %v971_v4  ;;  %v1159_v19 = vld [vmem:[#allocation2 + $0x338] sm:$0xff] }
  0xb9   : > { %933 = vmatpush.msra.mxu1 %v798_v20  ;;  %989 = vmatpush.msra.mxu2 %v5405_v21  ;;  %v1183_v20 = vld [vmem:[#allocation2 + $0x3f8] sm:$0xff]  ;;  %v1158_v21 = vld [vmem:[#allocation2 + $0x330] sm:$0xff] }
  0xba   : > { %5330 = vmatmul.msk.f32.gmra.mxu1 %vm583_vm3, %v520_v24  ;;  %5332 = vmatmul.msk.f32.gmra.mxu2 %vm583_vm3, %v520_v24  ;;  %v581_v28 = vrot.slane %v520_v24, 1  ;;  %v714_v54 = vrot.slane %v520_v24, 2  ;;  %v1155_v24 = vld [vmem:[#allocation2 + $0x318] sm:$0xff] }
  0xbb   : > { %934 = vmatpush.msra.mxu1 %v796_v25  ;;  %990 = vmatpush.msra.mxu2 %v5403_v26  ;;  %v1156_v25 = vld [vmem:[#allocation2 + $0x320] sm:$0xff] }
  0xbc   : > { %v582_v33 = vsel %vm414_vm0, %v580_v27, %v581_v28  ;;  %v715_v60 = vsel %vm480_vm2, %v713_v57, %v714_v54  ;;  %v1180_v26 = vld [vmem:[#allocation2 + $0x3e0] sm:$0xff] }
  0xbd   : > { %5325 = vmatmul.msk.f32.vlgmr.msra.gmra.mxu3 %vm583_vm3, %v582_v33  ;;  %5327 = vmatmul.msk.f32.vlgmr.msrb.gmra.mxu0 %vm583_vm3, %v582_v33 }
  0xbe   : > { %904 = vmatpush.msra.mxu3 %v803_v31  ;;  %1012 = vmatpush.msrb.mxu0 %v5412_v32  ;;  %v1153_v31 = vld [vmem:[#allocation2 + $0x308] sm:$0xff] }
  0xbf   : > { %935 = vmatpush.msra.mxu1 %v794_v34  ;;  %991 = vmatpush.msra.mxu2 %v5401_v35  ;;  %v1177_v32 = vld [vmem:[#allocation2 + $0x3c8] sm:$0xff]  ;;  %v1176_v34 = vld [vmem:[#allocation2 + $0x3c0] sm:$0xff] }
  0xc0   : > { %905 = vmatpush.msra.mxu3 %v801_v36  ;;  %1013 = vmatpush.msrb.mxu0 %v5410_v37  ;;  %v1149_v35 = vld [vmem:[#allocation2 + $0x2e8] sm:$0xff]  ;;  %v1150_v37 = vld [vmem:[#allocation2 + $0x2f0] sm:$0xff] }
  0xc1   : > { %936 = vmatpush.msra.mxu1 %v792_v38  ;;  %992 = vmatpush.msra.mxu2 %v5399_v39  ;;  %v1174_v38 = vld [vmem:[#allocation2 + $0x3b0] sm:$0xff]  ;;  %v1173_v39 = vld [vmem:[#allocation2 + $0x3a8] sm:$0xff] }
  0xc2   : > { %5383 = vmatmul.msk.f32.vlgmr.msrb.gmra.mxu1 %vm832_vm4, %v829_v40  ;;  %5386 = vmatmul.msk.f32.vlgmr.msrb.gmra.mxu2 %vm832_vm4, %v829_v40 }
  0xc3   : > { %906 = vmatpush.msra.mxu3 %v799_v42  ;;  %1014 = vmatpush.msrb.mxu0 %v5408_v43  ;;  %v1171_v42 = vld [vmem:[#allocation2 + $0x398] sm:$0xff]  ;;  %v1146_v43 = vld [vmem:[#allocation2 + $0x2d0] sm:$0xff] }
  0xc4   : > { %937 = vmatpush.msra.mxu1 %v790_v44  ;;  %993 = vmatpush.msra.mxu2 %v5397_v45  ;;  %v6192_v44 = vld [vmem:[%s10486_s8] sm:$0x3]  ;;  %v1170_v45 = vld [vmem:[#allocation2 + $0x390] sm:$0xff] }
  0xc5   : > { %5326 = vmatmul.msk.f32.gmra.mxu3 %vm583_vm3, %v581_v28  ;;  %5328 = vmatmul.msk.f32.gmra.mxu0 %vm583_vm3, %v581_v28  ;;  %v1179_v28 = vld [vmem:[#allocation2 + $0x3d8] sm:$0xff]  ;;  %v773_v57 = vperm.slane %v6192_v44, 1 }
  0xc6   : > { %907 = vmatpush.msra.mxu3 %v797_v47  ;;  %1015 = vmatpush.msrb.mxu0 %v5406_v48  ;;  %v1143_v48 = vld [vmem:[#allocation2 + $0x2b8] sm:$0xff] }
  0xc7   : > { %938 = vmatpush.msra.mxu1 %v788_v49  ;;  %994 = vmatpush.msra.mxu2 %v5395_v50  ;;  %v1144_v49 = vld [vmem:[#allocation2 + $0x2c0] sm:$0xff]  ;;  %v1169_v50 = vld [vmem:[#allocation2 + $0x388] sm:$0xff] }
  0xc8   : > { %908 = vmatpush.msra.mxu3 %v795_v51  ;;  %1016 = vmatpush.msrb.mxu0 %v5404_v52  ;;  %v1097_v52 = vld [vmem:[#allocation2 + $0x150] sm:$0xff] }
  0xc9   : > { %1265 = vmatpush.msrb.mxu2 %v1168_v10  ;;  %1249 = vmatpush.msrb.mxu1 %v1185_v17  ;;  %v1131_v10 = vld [vmem:[#allocation2 + $0x258] sm:$0xff] }
  0xca   : > { %5384 = vmatmul.msk.f32.gmra.mxu1 %vm832_vm4, %v831_v53  ;;  %5387 = vmatmul.msk.f32.gmra.mxu2 %vm832_vm4, %v831_v53  ;;  %v1140_v53 = vld [vmem:[#allocation2 + $0x2a0] sm:$0xff] }
  0xcb   : > { %909 = vmatpush.msra.mxu3 %v793_v55  ;;  %1017 = vmatpush.msrb.mxu0 %v5402_v56 }
  0xcc   : > { %1266 = vmatpush.msrb.mxu2 %v1165_v12  ;;  %v1157_v12 = vld [vmem:[#allocation2 + $0x328] sm:$0xff] }
  0xcd   : > { %5361 = vmatmul.msk.f32.vlgmr.msrb.gmra.mxu3 %vm583_vm3, %v715_v60  ;;  %5363 = vmatmul.msk.f32.vlgmr.msra.gmra.mxu0 %vm583_vm3, %v715_v60  ;;  %v1137_v60 = vld [vmem:[#allocation2 + $0x288] sm:$0xff] }
  0xce   : > { %910 = vmatpush.msra.mxu3 %v791_v58  ;;  %1018 = vmatpush.msrb.mxu0 %v5400_v59  ;;  %v1166_v58 = vld [vmem:[#allocation2 + $0x370] sm:$0xff]  ;;  %v1094_v59 = vld [vmem:[#allocation2 + $0x138] sm:$0xff] }
  0xcf   : > { %1267 = vmatpush.msrb.mxu2 %v1162_v15  ;;  %v1128_v15 = vld [vmem:[#allocation2 + $0x240] sm:$0xff] }
  0xd0   : > { %911 = vmatpush.msra.mxu3 %v789_v61  ;;  %1019 = vmatpush.msrb.mxu0 %v5398_v62  ;;  %v1138_v62 = vld [vmem:[#allocation2 + $0x290] sm:$0xff] }
  0xd1   : > { %1268 = vmatpush.msrb.mxu2 %v1159_v19  ;;  %v1129_v19 = vld [vmem:[#allocation2 + $0x248] sm:$0xff] }
  0xd2   : > { %5385 = vmatmul.msk.f32.gmra.mxu1 %vm832_vm4, %v830_v46  ;;  %5388 = vmatmul.msk.f32.gmra.mxu2 %vm832_vm4, %v830_v46  ;;  %v1100_v46 = vld [vmem:[#allocation2 + $0x168] sm:$0xff] }
  0xd3   : > { %912 = vmatpush.msra.mxu3 %v787_v63  ;;  %1020 = vmatpush.msrb.mxu0 %v5396_v0  ;;  %v1163_v63 = vld [vmem:[#allocation2 + $0x358] sm:$0xff] }
  0xd4   : > { %1269 = vmatpush.msrb.mxu2 %v1156_v25 }
  0xd5   : > { %5362 = vmatmul.msk.f32.gmra.mxu3 %vm583_vm3, %v714_v54  ;;  %5364 = vmatmul.msk.f32.gmra.mxu0 %vm583_vm3, %v714_v54  ;;  %v1141_v54 = vld [vmem:[#allocation2 + $0x2a8] sm:$0xff] }
  0xd6   : > { %1213 = vmatpush.msrb.mxu3 %v1167_v9  ;;  %1301 = vmatpush.msra.mxu0 %v1186_v16 }
  0xd7   : > { %1270 = vmatpush.msrb.mxu2 %v1153_v31  ;;  %v1079_v31 = vld [vmem:[#allocation2 + $0xc0] sm:$0xff] }
  0xd8   : > { %1214 = vmatpush.msrb.mxu3 %v1164_v11  ;;  %1302 = vmatpush.msra.mxu0 %v1183_v20  ;;  %v1132_v11 = vld [vmem:[#allocation2 + $0x260] sm:$0xff] }
  0xd9   : > { %1271 = vmatpush.msrb.mxu2 %v1150_v37  ;;  %v1076_v37 = vld [vmem:[#allocation2 + $0xa8] sm:$0xff] }
  0xda   : > { %5392 = vmatmul.msk.f32.vlgmr.msra.gmra.mxu1 %vm832_vm4, %v6035_v22  ;;  %5413 = vmatmul.msk.f32.vlgmr.msra.gmra.mxu2 %vm832_vm4, %v970_v3 }
  0xdb   : > { %1215 = vmatpush.msrb.mxu3 %v1161_v14  ;;  %1303 = vmatpush.msra.mxu0 %v1180_v26  ;;  %v1085_v14 = vld [vmem:[#allocation2 + $0xf0] sm:$0xff] }
  0xdd   : > { %5389 = vmatmul.msk.f32.vlgmr.msra.gmra.mxu3 %vm832_vm4, %v6035_v22  ;;  %5416 = vmatmul.msk.f32.vlgmr.msrb.gmra.mxu0 %vm832_vm4, %v970_v3  ;;  %v1182_v22 = vld [vmem:[#allocation2 + $0x3f0] sm:$0xff] }
  0xde   : > { %1216 = vmatpush.msrb.mxu3 %v1158_v21  ;;  %1250 = vmatpush.msrb.mxu1 %v1182_v22  ;;  %v1154_v22 = vld [vmem:[#allocation2 + $0x310] sm:$0xff] }
  0xdf   : > { %1304 = vmatpush.msra.mxu0 %v1177_v32 }
  0xe0   : > { %1217 = vmatpush.msrb.mxu3 %v1155_v24  ;;  %1251 = vmatpush.msrb.mxu1 %v1179_v28  ;;  %v1082_v24 = vld [vmem:[#allocation2 + $0xd8] sm:$0xff]  ;;  %v1126_v28 = vld [vmem:[#allocation2 + $0x230] sm:$0xff] }
  0xe1   : > { %1305 = vmatpush.msra.mxu0 %v1174_v38 }
  0xe2   : > { %5393 = vmatmul.msk.f32.gmra.mxu1 %vm832_vm4, %v6038_v23  ;;  %5414 = vmatmul.msk.f32.gmra.mxu2 %vm832_vm4, %v972_v5 }
  0xe3   : > { %1218 = vmatpush.msrb.mxu3 %v1152_v30  ;;  %1252 = vmatpush.msrb.mxu1 %v1176_v34  ;;  %v1151_v30 = vld [vmem:[#allocation2 + $0x2f8] sm:$0xff] }
  0xe4   : > { %1306 = vmatpush.msra.mxu0 %v1171_v42  ;;  %v1123_v34 = vld [vmem:[#allocation2 + $0x218] sm:$0xff]  ;;  %v1037_v42 = vld [vmem:[%s10485_s7] sm:$0x3] }
  0xe5   : > { %5390 = vmatmul.msk.f32.gmra.mxu3 %vm832_vm4, %v6038_v23  ;;  %5417 = vmatmul.msk.f32.gmra.mxu0 %vm832_vm4, %v972_v5  ;;  %v1160_v5 = vld [vmem:[#allocation2 + $0x340] sm:$0xff] }
  0xe6   : > { %1219 = vmatpush.msrb.mxu3 %v1149_v35  ;;  %1253 = vmatpush.msrb.mxu1 %v1173_v39  ;;  %v1122_v35 = vld [vmem:[#allocation2 + $0x210] sm:$0xff] }
  0xe7   : > { %1375 = vmatpush.msrb.mxu0 %v1100_v46 }
  0xe8   : > { %1220 = vmatpush.msrb.mxu3 %v1146_v43  ;;  %1254 = vmatpush.msrb.mxu1 %v1170_v45  ;;  %v1187_v43 = vld [vmem:[#allocation2 + $0x418] sm:$0xff] }
  0xe9   : > { %1376 = vmatpush.msrb.mxu0 %v1097_v52  ;;  %v1142_v52 = vld [vmem:[#allocation2 + $0x2b0] sm:$0xff] }
  0xea   : > { %5394 = vmatmul.msk.f32.gmra.mxu1 %vm832_vm4, %v6080_v41  ;;  %5415 = vmatmul.msk.f32.gmra.mxu2 %vm832_vm4, %v971_v4 }
  0xeb   : > { %1221 = vmatpush.msrb.mxu3 %v1143_v48  ;;  %1317 = vmatpush.msra.mxu1 %v1169_v50  ;;  %v1145_v48 = vld [vmem:[#allocation2 + $0x2c8] sm:$0xff] }
  0xec   : > { %1377 = vmatpush.msrb.mxu0 %v1094_v59 }
  0xed   : > { %5391 = vmatmul.msk.f32.gmra.mxu3 %vm832_vm4, %v6080_v41  ;;  %5418 = vmatmul.msk.f32.gmra.mxu0 %vm832_vm4, %v971_v4  ;;  %v1147_v41 = vld [vmem:[#allocation2 + $0x2d8] sm:$0xff]  ;;  %vm5170_vm4 = vcmask 39936  }
  0xee   : > { %1272 = vmatpush.msrb.mxu2 %v1147_v41  ;;  %1222 = vmatpush.msrb.mxu3 %v1140_v53  ;;  %v1135_v4 = vld [vmem:[#allocation2 + $0x278] sm:$0xff] }
  0xef   : > { %1318 = vmatpush.msra.mxu1 %v1166_v58  ;;  %1378 = vmatpush.msrb.mxu0 %v1091_v1  ;;  %v1139_v58 = vld [vmem:[#allocation2 + $0x298] sm:$0xff]  ;;  %v1181_v1 = vld [vmem:[#allocation2 + $0x3e8] sm:$0xff] }
  0xf0   : > { %1273 = vmatpush.msrb.mxu2 %v1144_v49  ;;  %1223 = vmatpush.msrb.mxu3 %v1137_v60  ;;  %v1118_v49 = vld [vmem:[#allocation2 + $0x1f8] sm:$0xff]  ;;  %v1067_v60 = vld [vmem:[#allocation2 + $0x60] sm:$0xff] }
  0xf1   : > { %1319 = vmatpush.msra.mxu1 %v1163_v63 }
  0xf2   : > { %1274 = vmatpush.msrb.mxu2 %v1141_v54 }
  0xf3   : > { %1320 = vmatpush.msra.mxu1 %v1160_v5  ;;  %v1112_v5 = vld [vmem:[#allocation2 + $0x1c8] sm:$0xff] }
  0xf4   : > { %1275 = vmatpush.msrb.mxu2 %v1138_v62  ;;  %v1115_v62 = vld [vmem:[#allocation2 + $0x1e0] sm:$0xff] }
  0xf5   : > { %1321 = vmatpush.msra.mxu1 %v1157_v12  ;;  %v1133_v12 = vld [vmem:[#allocation2 + $0x268] sm:$0xff] }
  0xf6   : > { %1276 = vmatpush.msrb.mxu2 %v1135_v4 }
  0xf7   : > { %1322 = vmatpush.msra.mxu1 %v1154_v22  ;;  %v1175_v22 = vld [vmem:[#allocation2 + $0x3b8] sm:$0xff] }
  0xf8   : > { %1277 = vmatpush.msrb.mxu2 %v1132_v11 }
  0xf9   : > { %1323 = vmatpush.msra.mxu1 %v1151_v30  ;;  %v1172_v30 = vld [vmem:[#allocation2 + $0x3a0] sm:$0xff] }
  0xfa   : > { %1278 = vmatpush.msrb.mxu2 %v1129_v19  ;;  %v1109_v19 = vld [vmem:[#allocation2 + $0x1b0] sm:$0xff] }
  0xfc   : > { %1279 = vmatpush.msrb.mxu2 %v1126_v28  ;;  %v1127_v28 = vld [vmem:[#allocation2 + $0x238] sm:$0xff] }
  0xfe   : > { %1280 = vmatpush.msrb.mxu2 %v1123_v34 }
 0x100   : > { %1411 = vmatpush.msra.mxu2 %v1118_v49 }
 0x102   : > { %1412 = vmatpush.msra.mxu2 %v1115_v62 }
 0x104   : > { %1413 = vmatpush.msra.mxu2 %v1112_v5 }
 0x106   : > { %1414 = vmatpush.msra.mxu2 %v1109_v19  ;;  %v1108_v19 = vld [vmem:[#allocation2 + $0x1a8] sm:$0xff] }
 0x12f   : > { %v655_v6 = vpop.f32.mrf.mxu1 }
 0x135   : > { %v6175_v7 = vpop.f32.mrf.mxu2 }
 0x137   : > { %v6177_v8 = vpop.f32.mrf.mxu1 }
 0x13a   : > { %v6179_v13 = vpop.f32.mrf.mxu0 }
 0x13b   : > { %v679_v55 = vadd.f32 %v6175_v7, %v6179_v13  ;;  %v1088_v7 = vld [vmem:[#allocation2 + $0x108] sm:$0xff] }
 0x13c   : > { %1379 = vmatpush.msrb.mxu0 %v1088_v7  ;;  %v1064_v7 = vld [vmem:[#allocation2 + $0x48] sm:$0xff] }
 0x13d   : > { %v681_v18 = vpop.f32.mrf.mxu2 }
 0x13e   : > { %1380 = vmatpush.msrb.mxu0 %v1085_v14 }
 0x13f   : > { %v6181_v23 = vpop.f32.mrf.mxu1 }
 0x140   : > { %v605_v27 = vpop.f32.mrf.mxu3  ;;  %1381 = vmatpush.msrb.mxu0 %v1082_v24 }
 0x141   : > { %v6183_v29 = vadd.f32 %v655_v6, %v605_v27  ;;  %v1134_v6 = vld [vmem:[#allocation2 + $0x270] sm:$0xff]  ;;  %v1125_v27 = vld [vmem:[#allocation2 + $0x228] sm:$0xff] }
 0x142   : > { %v631_v33 = vpop.f32.mrf.mxu0  ;;  %1224 = vmatpush.msrb.mxu3 %v1134_v6  ;;  %1382 = vmatpush.msrb.mxu0 %v1079_v31 }
 0x143   : > { %v6185_v36 = vadd.f32 %v681_v18, %v631_v33  ;;  %v772_v18 = vperm.slane %v6192_v44, 0 }
 0x144   : > { %1225 = vmatpush.msrb.mxu3 %v1131_v10  ;;  %1383 = vmatpush.msrb.mxu0 %v1076_v37  ;;  %v1055_v37 = vld [vmem:[#allocation2] sm:$0xff] }
 0x145   : > { %v6187_v40 = vpop.f32.mrf.mxu2 }
 0x146   : > { %1226 = vmatpush.msrb.mxu3 %v1128_v15  ;;  %v6272_v15 = vperm.slane %v1037_v42, 0 }
 0x147   : > { %v6194_v47 = vpop.f32.mrf.mxu1 }
 0x148   : > { %v608_v51 = vpop.f32.mrf.mxu3  ;;  %1227 = vmatpush.msrb.mxu3 %v1125_v27 }
 0x149   : > { %v6199_v56 = vadd.f32 %v6177_v8, %v608_v51  ;;  %v1073_v51 = vld [vmem:[#allocation2 + $0x90] sm:$0xff] }
 0x14a   : > { %v760_v61 = vpop.f32.mrf.mxu0  ;;  %1228 = vmatpush.msrb.mxu3 %v1122_v35  ;;  %1384 = vmatpush.msrb.mxu0 %v1073_v51 }
 0x14b   : > { %v767_v0 = vadd.f32 %v760_v61, %v679_v55  ;;  %v1070_v55 = vld [vmem:[#allocation2 + $0x78] sm:$0xff]  ;;  %v1184_v61 = vld [vmem:[#allocation2 + $0x400] sm:$0xff] }
 0x14c   : > { %1353 = vmatpush.msra.mxu3 %v1187_v43  ;;  %1385 = vmatpush.msrb.mxu0 %v1070_v55 }
 0x14d   : > { %v777_v2 = vadd.f32 %v773_v57, %v767_v0  ;;  %v6204_v3 = vpop.f32.mrf.mxu2  ;;  %v1136_v0 = vld [vmem:[#allocation2 + $0x280] sm:$0xff] }
 0x14e   : > { %1354 = vmatpush.msra.mxu3 %v1184_v61  ;;  %1386 = vmatpush.msrb.mxu0 %v1067_v60 }
 0x14f   : > { %v6206_v8 = vmax.f32 %v777_v2, 0.0  ;;  %v6208_v9 = vpop.f32.mrf.mxu1 }
 0x150   : > { %v737_v13 = vpop.f32.mrf.mxu3  ;;  %1355 = vmatpush.msra.mxu3 %v1181_v1  ;;  %1387 = vmatpush.msrb.mxu0 %v1064_v7 }
 0x151   : > { %v6211_v16 = vperm.slane %v6206_v8, 0  ;;  %v6214_v17 = vperm.slane %v6206_v8, 1  ;;  %v6218_v20 = vperm.slane %v6206_v8, 5  ;;  %v766_v25 = vadd.f32 %v737_v13, %v6183_v29  ;;  %v1178_v13 = vld [vmem:[#allocation2 + $0x3d0] sm:$0xff] }
 0x152   : > { %v763_v21 = vpop.f32.mrf.mxu0  ;;  %v6243_v45 = vperm.slane %v6206_v8, 2  ;;  %v6246_v46 = vperm.slane %v6206_v8, 6  ;;  %v6264_v44 = vperm.slane %v6206_v8, 3  ;;  %v6268_v10 = vperm.slane %v6206_v8, 4  ;;  %1356 = vmatpush.msra.mxu3 %v1178_v13 }
 0x153   : > { %10806 = vst [vmem:[#allocation5_spill] sm:$0xff] %v6211_v16  ;;  %v769_v26 = vadd.f32 %v763_v21, %v6185_v36  ;;  %2098 = vrot.lane.b32.xlu2 %v6214_v17, %s5541_s25  ;;  %2084 = vrot.lane.b32.xlu1 %v6211_v16, %s5541_s25  ;;  %v6230_v29 = vadd.f32 %v772_v18, %v766_v25  ;;  %v1148_v36 = vld [vmem:[#allocation2 + $0x2e0] sm:$0xff]  ;;  %v1130_v21 = vld [vmem:[#allocation2 + $0x250] sm:$0xff]  ;;  %v1058_v25 = vld [vmem:[#allocation2 + $0x18] sm:$0xff] }
 0x154   : > { %10807 = vst [vmem:[#allocation6_spill] sm:$0xff] %v6214_v17  ;;  %2222 = vrot.lane.b32.xlu0 %v6218_v20, %s5541_s25  ;;  %1324 = vmatpush.msra.mxu1 %v1148_v36 }
 0x155   : > { %10808 = vst [vmem:[#allocation7_spill] sm:$0xff] %v6218_v20  ;;  %v6234_v32 = vadd.f32 %v773_v57, %v769_v26  ;;  %v6236_v33 = vpop.f32.mrf.mxu2  ;;  %v1106_v26 = vld [vmem:[#allocation2 + $0x198] sm:$0xff]  ;;  %1357 = vmatpush.msra.mxu3 %v1175_v22  ;;  %v1095_v22 = vld [vmem:[#allocation2 + $0x140] sm:$0xff] }
 0x156   : > { %10809 = vst [vmem:[#allocation8_spill] sm:$0xff] %v6243_v45  ;;  %1325 = vmatpush.msra.mxu1 %v1145_v48  ;;  %1415 = vmatpush.msra.mxu2 %v1106_v26  ;;  %v6289_v48 = vperm.slane %v6206_v8, 7  ;;  %v1119_v8 = vld [vmem:[#allocation2 + $0x200] sm:$0xff]  ;;  %v1096_v26 = vld [vmem:[#allocation2 + $0x148] sm:$0xff] }
 0x157   : > { %v940_v38 = vpop.f32.mrf.mxu1  ;;  %10810 = vst [vmem:[#allocation9_spill] sm:$0xff] %v6246_v46  ;;  %1358 = vmatpush.msra.mxu3 %v1172_v30  ;;  %v1093_v30 = vld [vmem:[#allocation2 + $0x130] sm:$0xff] }
 0x158   : > { %v740_v39 = vpop.f32.mrf.mxu3  ;;  %v941_v41 = vadd.f32 %v940_v38, %v6187_v40  ;;  %v6248_v40 = vperm.slane %v1037_v42, 1  ;;  %1326 = vmatpush.msra.mxu1 %v1142_v52  ;;  %10811 = vst [vmem:[#allocation10_spill] sm:$0xff] %v6264_v44  ;;  %v1103_v38 = vld [vmem:[#allocation2 + $0x180] sm:$0xff] }
 0x159   : > { %v768_v53 = vadd.f32 %v740_v39, %v6199_v56  ;;  %10812 = vst [vmem:[#allocation11_spill] sm:$0xff] %v6268_v10  ;;  %1416 = vmatpush.msra.mxu2 %v1103_v38  ;;  %v1578_v38 = vld [vmem:[#allocation2 + $0x590] sm:$0xff] }
 0x15a   : > { %v1022_v50 = vpop.f32.mrf.mxu0  ;;  %1327 = vmatpush.msra.mxu1 %v1139_v58  ;;  %10813 = vst [vmem:[#allocation12_spill] sm:$0xff] %v6289_v48  ;;  %v1116_v58 = vld [vmem:[#allocation2 + $0x1e8] sm:$0xff] }
 0x15b   : > { %2253 = vrot.lane.b32.xlu2 %v6246_v46, %s5541_s25  ;;  %2129 = vrot.lane.b32.xlu1 %v6243_v45, %s5541_s25  ;;  %v1032_v54 = vadd.f32 %v1022_v50, %v941_v41  ;;  %v6259_v59 = vadd.f32 %v772_v18, %v768_v53  ;;  %v1124_v50 = vld [vmem:[#allocation2 + $0x220] sm:$0xff] }
 0x15c   : > { %2578 = vrot.lane.b32.xlu0 %v6218_v20, %s5542_s28  ;;  %1328 = vmatpush.msra.mxu1 %v1136_v0 }
 0x15d   : > { %v996_v57 = vpop.f32.mrf.mxu2  ;;  %v1044_v56 = vadd.f32 %v6248_v40, %v1032_v54 }
 0x15e   : > { %1329 = vmatpush.msra.mxu1 %v1133_v12  ;;  %v1111_v12 = vld [vmem:[#allocation2 + $0x1c0] sm:$0xff] }
 0x15f   : > { %v943_v63 = vpop.f32.mrf.mxu1 }
 0x160   : > { %v914_v2 = vpop.f32.mrf.mxu3  ;;  %v944_v4 = vadd.f32 %v943_v63, %v6204_v3  ;;  %v6270_v3 = vmax.f32 %v1044_v56, 0.0  ;;  %1330 = vmatpush.msra.mxu1 %v1130_v21  ;;  %v1114_v56 = vld [vmem:[#allocation2 + $0x1d8] sm:$0xff]  ;;  %v1113_v63 = vld [vmem:[#allocation2 + $0x1d0] sm:$0xff] }
 0x161   : > { %v915_v6 = vadd.f32 %v914_v2, %v6181_v23  ;;  %v1061_v23 = vld [vmem:[#allocation2 + $0x30] sm:$0xff] }
 0x162   : > { %v1025_v11 = vpop.f32.mrf.mxu0  ;;  %1388 = vmatpush.msrb.mxu0 %v1061_v23  ;;  %v1197_v36 = vrot.slane %v6270_v3, 1  ;;  %1331 = vmatpush.msra.mxu1 %v1127_v28  ;;  %v1099_v23 = vld [vmem:[#allocation2 + $0x160] sm:$0xff]  ;;  %v1105_v28 = vld [vmem:[#allocation2 + $0x190] sm:$0xff] }
 0x163   : > { %v1031_v14 = vadd.f32 %v996_v57, %v915_v6  ;;  %v1034_v18 = vadd.f32 %v1025_v11, %v944_v4  ;;  %2491 = vrot.lane.b32.xlu2 %v6243_v45, %s5542_s28  ;;  %2160 = vrot.lane.b32.xlu1 %v6264_v44, %s5541_s25  ;;  %v1117_v57 = vld [vmem:[#allocation2 + $0x1f0] sm:$0xff]  ;;  %v1102_v11 = vld [vmem:[#allocation2 + $0x178] sm:$0xff] }
 0x164   : > { %2893 = vrot.lane.b32.xlu0 %v6268_v10, %s5543_s24  ;;  %1389 = vmatpush.msrb.mxu0 %v1058_v25 }
 0x165   : > { %v1046_v24 = vadd.f32 %v6248_v40, %v1034_v18  ;;  %v999_v27 = vpop.f32.mrf.mxu2  ;;  %v1043_v31 = vadd.f32 %v6272_v15, %v1031_v14  ;;  %1332 = vmatpush.msra.mxu1 %v1124_v50  ;;  %v1098_v14 = vld [vmem:[#allocation2 + $0x158] sm:$0xff]  ;;  %v1080_v50 = vld [vmem:[#allocation2 + $0xc8] sm:$0xff] }
 0x166   : > { %1390 = vmatpush.msrb.mxu0 %v1055_v37  ;;  %v1110_v18 = vld [vmem:[#allocation2 + $0x1b8] sm:$0xff] }
 0x167   : > { %v6282_v34 = vmax.f32 %v1046_v24, 0.0  ;;  %v946_v35 = vpop.f32.mrf.mxu1  ;;  %v6291_v51 = vmax.f32 %v1043_v31, 0.0  ;;  %v1107_v24 = vld [vmem:[#allocation2 + $0x1a0] sm:$0xff]  ;;  %v1104_v31 = vld [vmem:[#allocation2 + $0x188] sm:$0xff]  ;;  %v1086_v37 = vld [vmem:[#allocation2 + $0xf8] sm:$0xff] }
 0x168   : > { %v917_v39 = vpop.f32.mrf.mxu3  ;;  %v947_v41 = vadd.f32 %v946_v35, %v6236_v33  ;;  %v1120_v33 = vld [vmem:[#allocation2 + $0x208] sm:$0xff]  ;;  %v1089_v35 = vld [vmem:[#allocation2 + $0x110] sm:$0xff] }
 0x169   : > { %v918_v42 = vadd.f32 %v917_v39, %v6194_v47  ;;  %v1198_v43 = vrot.slane %v6282_v34, 1  ;;  %v1194_v62 = vrot.slane %v6291_v51, 1  ;;  %v1087_v39 = vld [vmem:[#allocation2 + $0x100] sm:$0xff] }
 0x16a   : > { %v1028_v49 = vpop.f32.mrf.mxu0 }
 0x16b   : > { %v1033_v52 = vadd.f32 %v999_v27, %v918_v42  ;;  %v1036_v53 = vadd.f32 %v1028_v49, %v947_v41  ;;  %2607 = vrot.lane.b32.xlu2 %v6246_v46, %s5542_s28  ;;  %2191 = vrot.lane.b32.xlu1 %v6268_v10, %s5541_s25  ;;  %v6298_v47 = vsel %vm414_vm0, %v1197_v36, %v1198_v43  ;;  %v1092_v27 = vld [vmem:[#allocation2 + $0x128] sm:$0xff]  ;;  %v1090_v36 = vld [vmem:[#allocation2 + $0x118] sm:$0xff]  ;;  %v1083_v41 = vld [vmem:[#allocation2 + $0xe0] sm:$0xff] }
 0x16c   : > { %2980 = vrot.lane.b32.xlu0 %v6289_v48, %s5543_s24  ;;  %5419 = vmatmul.msk.f32.vlgmr.msrb.gmra.mxu1 %vm418_vm1, %v6298_v47  ;;  %v1577_v42 = vld [vmem:[#allocation2 + $0x588] sm:$0xff] }
 0x16d   : > { %v1045_v54 = vadd.f32 %v6272_v15, %v1033_v52  ;;  %v1048_v55 = vadd.f32 %v6248_v40, %v1036_v53  ;;  %5422 = vmatmul.msk.f32.vlgmr.msra.gmra.mxu0 %vm418_vm1, %v6298_v47  ;;  %1463 = vmatpush.msrb.mxu1 %v1119_v8  ;;  %v1002_v1 = vpop.f32.mrf.mxu2  ;;  %v1084_v49 = vld [vmem:[#allocation2 + $0xe8] sm:$0xff]  ;;  %v1574_v52 = vld [vmem:[#allocation2 + $0x570] sm:$0xff] }
 0x16e   : > { %1515 = vmatpush.msra.mxu0 %v1120_v33  ;;  %v1081_v53 = vld [vmem:[#allocation2 + $0xd0] sm:$0xff]  ;;  %v1572_v33 = vld [vmem:[#allocation2 + $0x560] sm:$0xff] }
 0x16f   : > { %v6308_v60 = vmax.f32 %v1045_v54, 0.0  ;;  %v6310_v61 = vmax.f32 %v1048_v55, 0.0  ;;  %1464 = vmatpush.msrb.mxu1 %v1116_v58  ;;  %v1077_v8 = vld [vmem:[#allocation2 + $0xb0] sm:$0xff]  ;;  %v6369_v54 = vmax.f32 %v6230_v29, 0.0  ;;  %v1078_v55 = vld [vmem:[#allocation2 + $0xb8] sm:$0xff]  ;;  %v1569_v58 = vld [vmem:[#allocation2 + $0x548] sm:$0xff] }
 0x170   : > { %v920_v0 = vpop.f32.mrf.mxu3  ;;  %1516 = vmatpush.msra.mxu0 %v1117_v57  ;;  %v1571_v57 = vld [vmem:[#allocation2 + $0x558] sm:$0xff] }
 0x171   : > { %v921_v40 = vadd.f32 %v920_v0, %v6208_v9  ;;  %v1195_v2 = vrot.slane %v6308_v60, 1  ;;  %v6316_v4 = vrot.slane %v6310_v61, 1  ;;  %1465 = vmatpush.msrb.mxu1 %v1113_v63  ;;  %v1101_v9 = vld [vmem:[#allocation2 + $0x170] sm:$0xff]  ;;  %v6375_v29 = vperm.slane %v6369_v54, 1  ;;  %v1071_v63 = vld [vmem:[#allocation2 + $0x80] sm:$0xff] }
 0x172   : > { %1517 = vmatpush.msra.mxu0 %v1114_v56  ;;  %v1075_v56 = vld [vmem:[#allocation2 + $0xa0] sm:$0xff]  ;;  %v1566_v0 = vld [vmem:[#allocation2 + $0x530] sm:$0xff] }
 0x173   : > { %v1035_v5 = vadd.f32 %v1002_v1, %v921_v40  ;;  %2835 = vrot.lane.b32.xlu2 %v6243_v45, %s5543_s24  ;;  %2284 = vrot.lane.b32.xlu1 %v6289_v48, %s5541_s25  ;;  %v1196_v6 = vsel %vm414_vm0, %v1194_v62, %v1195_v2  ;;  %v6325_v7 = vsel %vm414_vm0, %v1198_v43, %v6316_v4  ;;  %v1575_v43 = vld [vmem:[#allocation2 + $0x578] sm:$0xff]  ;;  %v1072_v1 = vld [vmem:[#allocation2 + $0x88] sm:$0xff] }
 0x174   : > { %3139 = vrot.lane.b32.xlu0 %v6211_v16, %s5544_s29  ;;  %1229 = vmatmul.f32.vlgmr.msrb.gmra.mxu3 %v1196_v6  ;;  %v1074_v62 = vld [vmem:[#allocation2 + $0x98] sm:$0xff]  ;;  %10814 = vst [vmem:[#allocation13_spill] sm:$0xff] %v6375_v29  ;;  %v1068_v40 = vld [vmem:[#allocation2 + $0x68] sm:$0xff] }
 0x175   : > { %v1047_v13 = vadd.f32 %v6272_v15, %v1035_v5  ;;  %5420 = vmatmul.msk.f32.gmra.mxu1 %vm418_vm1, %v6325_v7  ;;  %1281 = vmatmul.f32.vlgmr.msrb.gmra.mxu2 %v1196_v6  ;;  %v1563_v5 = vld [vmem:[#allocation2 + $0x518] sm:$0xff] }
 0x176   : > { %5423 = vmatmul.msk.f32.gmra.mxu0 %vm418_vm1, %v6325_v7  ;;  %1427 = vmatpush.msrb.mxu3 %v1101_v9  ;;  %v1065_v9 = vld [vmem:[#allocation2 + $0x50] sm:$0xff] }
 0x177   : > { %v6334_v21 = vmax.f32 %v1047_v13, 0.0  ;;  %1479 = vmatpush.msrb.mxu2 %v1102_v11  ;;  %1518 = vmatpush.msra.mxu0 %v1111_v12  ;;  %v1562_v11 = vld [vmem:[#allocation2 + $0x510] sm:$0xff]  ;;  %v1599_v12 = vrot.slane %v6308_v60, 2  ;;  %v1560_v13 = vld [vmem:[#allocation2 + $0x500] sm:$0xff] }
 0x178   : > { %1428 = vmatpush.msrb.mxu3 %v1098_v14  ;;  %1466 = vmatpush.msrb.mxu1 %v1110_v18  ;;  %v6397_v18 = vperm.slane %v6369_v54, 3 }
 0x179   : > { %v6337_v15 = vrot.slane %v6334_v21, 1  ;;  %1480 = vmatpush.msrb.mxu2 %v1099_v23  ;;  %1519 = vmatpush.msra.mxu0 %v1108_v19  ;;  %v1557_v23 = vld [vmem:[#allocation2 + $0x4e8] sm:$0xff]  ;;  %v1066_v19 = vld [vmem:[#allocation2 + $0x58] sm:$0xff] }
 0x17a   : > { %1429 = vmatpush.msrb.mxu3 %v1095_v22  ;;  %1467 = vmatpush.msrb.mxu1 %v1107_v24  ;;  %10815 = vst [vmem:[#allocation14_spill] sm:$0xff] %v6397_v18  ;;  %v1062_v22 = vld [vmem:[#allocation2 + $0x38] sm:$0xff] }
 0x17b   : > { %2922 = vrot.lane.b32.xlu2 %v6218_v20, %s5543_s24  ;;  %2450 = vrot.lane.b32.xlu1 %v6211_v16, %s5542_s28  ;;  %v1201_v25 = vsel %vm414_vm0, %v1195_v2, %v6337_v15  ;;  %v1565_v2 = vld [vmem:[#allocation2 + $0x528] sm:$0xff]  ;;  %v1559_v24 = vld [vmem:[#allocation2 + $0x4f8] sm:$0xff] }
 0x17c   : > { %3150 = vrot.lane.b32.xlu0 %v6214_v17, %s5544_s29  ;;  %1232 = vmatmul.f32.gmra.mxu3 %v1201_v25 }
 0x17d   : > { %5421 = vmatmul.msk.f32.gmra.mxu1 %vm418_vm1, %v6316_v4  ;;  %1284 = vmatmul.f32.gmra.mxu2 %v1201_v25 }
 0x17e   : > { %5424 = vmatmul.msk.f32.gmra.mxu0 %vm418_vm1, %v6316_v4  ;;  %1481 = vmatpush.msrb.mxu2 %v1096_v26  ;;  %v1059_v26 = vld [vmem:[#allocation2 + $0x20] sm:$0xff] }
 0x17f   : > { %1430 = vmatpush.msrb.mxu3 %v1092_v27  ;;  %1520 = vmatpush.msra.mxu0 %v1105_v28  ;;  %v1556_v27 = vld [vmem:[#allocation2 + $0x4e0] sm:$0xff]  ;;  %v1551_v28 = vld [vmem:[#allocation2 + $0x4b8] sm:$0xff] }
 0x180   : > { %1482 = vmatpush.msrb.mxu2 %v1093_v30  ;;  %1468 = vmatpush.msrb.mxu1 %v1104_v31  ;;  %v1601_v30 = vrot.slane %v6270_v3, 2  ;;  %v1602_v31 = vrot.slane %v6282_v34, 2 }
 0x181   : > { %1431 = vmatpush.msrb.mxu3 %v1089_v35  ;;  %v1548_v35 = vld [vmem:[#allocation2 + $0x4a0] sm:$0xff] }
 0x182   : > { %1483 = vmatpush.msrb.mxu2 %v1090_v36  ;;  %v6416_v36 = vperm.slane %v6369_v54, 4 }
 0x183   : > { %3266 = vrot.lane.b32.xlu2 %v6218_v20, %s5544_s29  ;;  %2462 = vrot.lane.b32.xlu1 %v6214_v17, %s5542_s28 }
 0x184   : > { %3208 = vrot.lane.b32.xlu0 %v6264_v44, %s5544_s29  ;;  %1235 = vmatmul.f32.gmra.mxu3 %v6337_v15  ;;  %10816 = vst [vmem:[#allocation15_spill] sm:$0xff] %v6416_v36 }
 0x185   : > { %1287 = vmatmul.f32.gmra.mxu2 %v6337_v15  ;;  %1333 = vmatmul.f32.vlgmr.msra.gmra.mxu1 %v1196_v6  ;;  %v1069_v6 = vld [vmem:[#allocation2 + $0x70] sm:$0xff] }
 0x186   : > { %1391 = vmatmul.f32.vlgmr.msrb.gmra.mxu0 %v6291_v51  ;;  %1432 = vmatpush.msrb.mxu3 %v1086_v37  ;;  %v1056_v37 = vld [vmem:[#allocation2 + $0x8] sm:$0xff] }
 0x187   : > { %1669 = vmatpush.msrb.mxu0 %v1578_v38  ;;  %1484 = vmatpush.msrb.mxu2 %v1087_v39  ;;  %v1057_v38 = vld [vmem:[#allocation2 + $0x10] sm:$0xff]  ;;  %v6419_v39 = vsel %vm480_vm2, %v1601_v30, %v1602_v31  ;;  %v6480_v30 = vperm.slane %v6369_v54, 7 }
 0x188   : > { %1433 = vmatpush.msrb.mxu3 %v1083_v41  ;;  %1617 = vmatpush.msra.mxu1 %v1577_v42  ;;  %v1553_v41 = vld [vmem:[#allocation2 + $0x4c8] sm:$0xff]  ;;  %v1595_v42 = vld [vmem:[#allocation2 + $0x618] sm:$0xff] }
 0x189   : > { %1670 = vmatpush.msrb.mxu0 %v1575_v43  ;;  %1485 = vmatpush.msrb.mxu2 %v1084_v49  ;;  %v1596_v43 = vld [vmem:[#allocation2 + $0x620] sm:$0xff]  ;;  %v1542_v49 = vld [vmem:[#allocation2 + $0x470] sm:$0xff]  ;;  %10821 = vst [vmem:[#allocation20_spill] sm:$0xff] %v6480_v30 }
 0x18a   : > { %1434 = vmatpush.msrb.mxu3 %v1080_v50  ;;  %1618 = vmatpush.msra.mxu1 %v1574_v52  ;;  %v1550_v50 = vld [vmem:[#allocation2 + $0x4b0] sm:$0xff]  ;;  %v1539_v52 = vld [vmem:[#allocation2 + $0x458] sm:$0xff] }
 0x18b   : > { %3537 = vrot.lane.b32.xlu2 %v6243_v45, %s5545_s11  ;;  %2520 = vrot.lane.b32.xlu1 %v6264_v44, %s5542_s28 }
 0x18c   : > { %3237 = vrot.lane.b32.xlu0 %v6268_v10, %s5544_s29  ;;  %5425 = vmatmul.msk.f32.vlgmr.msra.gmra.mxu3 %vm418_vm1, %v6298_v47  ;;  %v1568_v47 = vld [vmem:[#allocation2 + $0x540] sm:$0xff] }
 0x18d   : > { %1336 = vmatmul.f32.gmra.mxu1 %v1201_v25  ;;  %5428 = vmatmul.msk.f32.vlgmr.msra.gmra.mxu2 %vm418_vm1, %v6270_v3  ;;  %v1063_v25 = vld [vmem:[#allocation2 + $0x40] sm:$0xff] }
 0x18e   : > { %1394 = vmatmul.f32.gmra.mxu0 %v6308_v60  ;;  %1486 = vmatpush.msrb.mxu2 %v1081_v53  ;;  %v1547_v53 = vld [vmem:[#allocation2 + $0x498] sm:$0xff] }
 0x18f   : > { %1671 = vmatpush.msrb.mxu0 %v1572_v33  ;;  %1435 = vmatpush.msrb.mxu3 %v1077_v8  ;;  %v6434_v33 = vrot.slane %v6310_v61, 2  ;;  %v1592_v8 = vld [vmem:[#allocation2 + $0x600] sm:$0xff] }
 0x190   : > { %1487 = vmatpush.msrb.mxu2 %v1078_v55  ;;  %1619 = vmatpush.msra.mxu1 %v1571_v57  ;;  %v6437_v55 = vperm.slane %v6369_v54, 5 }
 0x191   : > { %1672 = vmatpush.msrb.mxu0 %v1569_v58  ;;  %1436 = vmatpush.msrb.mxu3 %v1074_v62  ;;  %v6445_v57 = vsel %vm480_vm2, %v1602_v31, %v6434_v33  ;;  %v1533_v62 = vld [vmem:[#allocation2 + $0x428] sm:$0xff] }
 0x192   : > { %1488 = vmatpush.msrb.mxu2 %v1075_v56  ;;  %1620 = vmatpush.msra.mxu1 %v1568_v47  ;;  %10817 = vst [vmem:[#allocation16_spill] sm:$0xff] %v6437_v55  ;;  %v1541_v56 = vld [vmem:[#allocation2 + $0x468] sm:$0xff]  ;;  %v1579_v47 = vld [vmem:[#allocation2 + $0x598] sm:$0xff] }
 0x193   : > { %2549 = vrot.lane.b32.xlu1 %v6268_v10, %s5542_s28  ;;  %2096 = vrot.lane.b32.xlu2 %v6375_v29, %s5541_s25 }
 0x194   : > { %3324 = vrot.lane.b32.xlu0 %v6289_v48, %s5544_s29  ;;  %5426 = vmatmul.msk.f32.gmra.mxu3 %vm418_vm1, %v6325_v7  ;;  %v1598_v7 = vrot.slane %v6291_v51, 2 }
 0x195   : > { %1339 = vmatmul.f32.gmra.mxu1 %v6337_v15  ;;  %5429 = vmatmul.msk.f32.gmra.mxu2 %vm418_vm1, %v6282_v34  ;;  %v1554_v15 = vld [vmem:[#allocation2 + $0x4d0] sm:$0xff] }
 0x196   : > { %1397 = vmatmul.f32.gmra.mxu0 %v6334_v21  ;;  %1437 = vmatpush.msrb.mxu3 %v1071_v63  ;;  %v6394_v14 = vsel %vm480_vm2, %v1598_v7, %v1599_v12  ;;  %v1589_v63 = vld [vmem:[#allocation2 + $0x5e8] sm:$0xff]  ;;  %v1570_v7 = vld [vmem:[#allocation2 + $0x550] sm:$0xff] }
 0x197   : > { %1673 = vmatpush.msrb.mxu0 %v1566_v0  ;;  %1489 = vmatpush.msrb.mxu2 %v1072_v1  ;;  %v1538_v0 = vld [vmem:[#allocation2 + $0x450] sm:$0xff]  ;;  %v1576_v1 = vld [vmem:[#allocation2 + $0x580] sm:$0xff] }
 0x198   : > { %1438 = vmatpush.msrb.mxu3 %v1068_v40  ;;  %1621 = vmatpush.msra.mxu1 %v1565_v2  ;;  %v1586_v40 = vld [vmem:[#allocation2 + $0x5d0] sm:$0xff]  ;;  %v1535_v2 = vld [vmem:[#allocation2 + $0x438] sm:$0xff] }
 0x199   : > { %1674 = vmatpush.msrb.mxu0 %v1563_v5  ;;  %1490 = vmatpush.msrb.mxu2 %v1069_v6  ;;  %v1573_v5 = vld [vmem:[#allocation2 + $0x568] sm:$0xff]  ;;  %v1583_v6 = vld [vmem:[#allocation2 + $0x5b8] sm:$0xff] }
 0x19a   : > { %1439 = vmatpush.msrb.mxu3 %v1065_v9  ;;  %1622 = vmatpush.msra.mxu1 %v1562_v11  ;;  %v1532_v9 = vld [vmem:[#allocation2 + $0x420] sm:$0xff] }
 0x19b   : > { %1675 = vmatpush.msrb.mxu0 %v1560_v13  ;;  %2636 = vrot.lane.b32.xlu1 %v6289_v48, %s5542_s28  ;;  %v1580_v13 = vld [vmem:[#allocation2 + $0x5a0] sm:$0xff] }
 0x19c   : > { %3482 = vrot.lane.b32.xlu0 %v6211_v16, %s5545_s11  ;;  %2158 = vrot.lane.b32.xlu2 %v6397_v18, %s5541_s25 }
 0x19d   : > { %5427 = vmatmul.msk.f32.gmra.mxu3 %vm418_vm1, %v6316_v4  ;;  %5430 = vmatmul.msk.f32.gmra.mxu2 %vm418_vm1, %v6310_v61  ;;  %v1060_v4 = vld [vmem:[#allocation2 + $0x28] sm:$0xff] }
 0x19e   : > { %5431 = vmatmul.msk.f32.vlgmr.msrb.gmra.mxu1 %vm418_vm1, %v6270_v3  ;;  %5434 = vmatmul.msk.f32.vlgmr.msra.gmra.mxu0 %vm418_vm1, %v6270_v3  ;;  %v1545_v3 = vld [vmem:[#allocation2 + $0x488] sm:$0xff] }
 0x19f   : > { %1676 = vmatpush.msrb.mxu0 %v1557_v23  ;;  %1491 = vmatpush.msrb.mxu2 %v1066_v19  ;;  %v1590_v23 = vld [vmem:[#allocation2 + $0x5f0] sm:$0xff]  ;;  %v1567_v19 = vld [vmem:[#allocation2 + $0x538] sm:$0xff] }
 0x1a0   : > { %1440 = vmatpush.msrb.mxu3 %v1062_v22  ;;  %1623 = vmatpush.msra.mxu1 %v1559_v24  ;;  %v1587_v22 = vld [vmem:[#allocation2 + $0x5d8] sm:$0xff]  ;;  %v1564_v24 = vld [vmem:[#allocation2 + $0x520] sm:$0xff] }
 0x1a1   : > { %1677 = vmatpush.msrb.mxu0 %v1554_v15  ;;  %1492 = vmatpush.msrb.mxu2 %v1063_v25  ;;  %v1584_v15 = vld [vmem:[#allocation2 + $0x5c0] sm:$0xff]  ;;  %v6470_v25 = vrot.slane %v6334_v21, 2 }
 0x1a2   : > { %1441 = vmatpush.msrb.mxu3 %v1059_v26  ;;  %1624 = vmatpush.msra.mxu1 %v1556_v27  ;;  %v6475_v27 = vperm.slane %v6369_v54, 2 }
 0x1a3   : > { %1678 = vmatpush.msrb.mxu0 %v1551_v28  ;;  %1493 = vmatpush.msrb.mxu2 %v1060_v4  ;;  %v1561_v28 = vld [vmem:[#allocation2 + $0x508] sm:$0xff]  ;;  %v6488_v31 = vsel %vm480_vm2, %v1599_v12, %v6470_v25 }
 0x1a4   : > { %3496 = vrot.lane.b32.xlu0 %v6214_v17, %s5545_s11  ;;  %2795 = vrot.lane.b32.xlu1 %v6211_v16, %s5543_s24  ;;  %10820 = vst [vmem:[#allocation19_spill] sm:$0xff] %v6475_v27  ;;  %v1581_v4 = vld [vmem:[#allocation2 + $0x5a8] sm:$0xff] }
 0x1a5   : > { %1679 = vmatpush.msrb.mxu0 %v1548_v35  ;;  %2189 = vrot.lane.b32.xlu2 %v6416_v36, %s5541_s25  ;;  %v1555_v35 = vld [vmem:[#allocation2 + $0x4d8] sm:$0xff] }
 0x1a6   : > { %1442 = vmatpush.msrb.mxu3 %v1056_v37  ;;  %1494 = vmatpush.msrb.mxu2 %v1057_v38  ;;  %v1597_v37 = vld [vmem:[#allocation2 + $0x628] sm:$0xff] }
 0x1a7   : > { %1443 = vmatmul.f32.vlgmr.msrb.gmra.mxu3 %v6291_v51  ;;  %5432 = vmatmul.msk.f32.gmra.mxu1 %vm418_vm1, %v6282_v34 }
 0x1a8   : > { %1495 = vmatmul.f32.vlgmr.msrb.gmra.mxu2 %v6291_v51  ;;  %5435 = vmatmul.msk.f32.gmra.mxu0 %vm418_vm1, %v6282_v34  ;;  %v1536_v51 = vld [vmem:[#allocation2 + $0x440] sm:$0xff] }
 0x1a9   : > { %1680 = vmatpush.msrb.mxu0 %v1545_v3  ;;  %1625 = vmatpush.msra.mxu1 %v1553_v41  ;;  %v1544_v34 = vld [vmem:[#allocation2 + $0x480] sm:$0xff]  ;;  %v1594_v3 = vld [vmem:[#allocation2 + $0x610] sm:$0xff] }
 0x1aa   : > { %1653 = vmatpush.msra.mxu3 %v1595_v42  ;;  %1705 = vmatpush.msra.mxu2 %v1596_v43  ;;  %v1549_v42 = vld [vmem:[#allocation2 + $0x4a8] sm:$0xff]  ;;  %v1591_v43 = vld [vmem:[#allocation2 + $0x5f8] sm:$0xff] }
 0x1ab   : > { %1681 = vmatpush.msrb.mxu0 %v1542_v49  ;;  %1626 = vmatpush.msra.mxu1 %v1550_v50  ;;  %v1546_v49 = vld [vmem:[#allocation2 + $0x490] sm:$0xff]  ;;  %v1543_v50 = vld [vmem:[#allocation2 + $0x478] sm:$0xff] }
 0x1ac   : > { %3578 = vrot.lane.b32.xlu0 %v6264_v44, %s5545_s11  ;;  %2806 = vrot.lane.b32.xlu1 %v6214_v17, %s5543_s24  ;;  %v6658_v17 = vmax.f32 %v6259_v59, 0.0 }
 0x1ad   : > { %1682 = vmatpush.msrb.mxu0 %v1539_v52  ;;  %1627 = vmatpush.msra.mxu1 %v1547_v53  ;;  %v6447_v58 = vpop.permute.xlu2 %2098  ;;  %v1588_v52 = vld [vmem:[#allocation2 + $0x5e0] sm:$0xff] }
 0x1ae   : > { %2220 = vrot.lane.b32.xlu2 %v6437_v55, %s5541_s25  ;;  %1654 = vmatpush.msra.mxu3 %v1592_v8 }
 0x1af   : > { %1683 = vmatpush.msrb.mxu0 %v1536_v51  ;;  %1628 = vmatpush.msra.mxu1 %v1544_v34  ;;  %v1540_v51 = vld [vmem:[#allocation2 + $0x460] sm:$0xff] }
 0x1b0   : > { %1446 = vmatmul.f32.gmra.mxu3 %v6308_v60  ;;  %5433 = vmatmul.msk.f32.gmra.mxu1 %vm418_vm1, %v6310_v61 }
 0x1b1   : > { %1498 = vmatmul.f32.gmra.mxu2 %v6308_v60  ;;  %5436 = vmatmul.msk.f32.gmra.mxu0 %vm418_vm1, %v6310_v61  ;;  %v1593_v61 = vld [vmem:[#allocation2 + $0x608] sm:$0xff]  ;;  %v1552_v60 = vld [vmem:[#allocation2 + $0x4c0] sm:$0xff] }
 0x1b2   : > { %1684 = vmatpush.msrb.mxu0 %v1533_v62  ;;  %1629 = vmatpush.msra.mxu1 %v1541_v56  ;;  %v1585_v62 = vld [vmem:[#allocation2 + $0x5c8] sm:$0xff] }
 0x1b3   : > { %1655 = vmatpush.msra.mxu3 %v1589_v63  ;;  %1706 = vmatpush.msra.mxu2 %v1593_v61  ;;  %v1537_v56 = vld [vmem:[#allocation2 + $0x448] sm:$0xff]  ;;  %v1534_v63 = vld [vmem:[#allocation2 + $0x430] sm:$0xff] }
 0x1b4   : > { %1721 = vmatpush.msra.mxu0 %v1579_v47  ;;  %1630 = vmatpush.msra.mxu1 %v1538_v0 }
 0x1b5   : > { %3619 = vrot.lane.b32.xlu0 %v6268_v10, %s5545_s11  ;;  %1656 = vmatpush.msra.mxu3 %v1586_v40  ;;  %v6459_v11 = vpop.permute.xlu2 %2253  ;;  %v6533_v40 = vperm.slane %v6369_v54, 0  ;;  %v6686_v10 = vperm.slane %v6658_v17, 3 }
 0x1b6   : > { %1722 = vmatpush.msra.mxu0 %v1576_v1  ;;  %10818 = vst [vmem:[#allocation17_spill] sm:$0xff] %v6459_v11  ;;  %1631 = vmatpush.msra.mxu1 %v1535_v2 }
 0x1b7   : > { %2864 = vrot.lane.b32.xlu1 %v6264_v44, %s5543_s24  ;;  %1657 = vmatpush.msra.mxu3 %v1583_v6  ;;  %10825 = vst [vmem:[#allocation24_spill] sm:$0xff] %v6533_v40 }
 0x1b8   : > { %1723 = vmatpush.msra.mxu0 %v1573_v5  ;;  %2576 = vrot.lane.b32.xlu2 %v6437_v55, %s5542_s28  ;;  %10843 = vst [vmem:[#allocation42_spill] sm:$0xff] %v6686_v10 }
 0x1b9   : > { %1632 = vmatpush.msra.mxu1 %v1532_v9  ;;  %1449 = vmatmul.f32.gmra.mxu3 %v6334_v21 }
 0x1ba   : > { %1724 = vmatpush.msra.mxu0 %v1570_v7  ;;  %1501 = vmatmul.f32.gmra.mxu2 %v6334_v21  ;;  %v1558_v21 = vld [vmem:[#allocation2 + $0x4f0] sm:$0xff] }
 0x1bb   : > { %1633 = vmatmul.f32.vlgmr.msra.gmra.mxu1 %v6394_v14  ;;  %1658 = vmatpush.msra.mxu3 %v1580_v13 }
 0x1bc   : > { %1685 = vmatmul.f32.vlgmr.msrb.gmra.mxu0 %v6394_v14  ;;  %1707 = vmatpush.msra.mxu2 %v1590_v23 }
 0x1bd   : > { %5450 = vmatpush.msrb.mxu3 %v1579_v47  ;;  %1725 = vmatpush.msra.mxu0 %v1567_v19  ;;  %v6472_v26 = vpop.permute.xlu2 %2491  ;;  %v1582_v47 = vld [vmem:[#allocation2 + $0x5b0] sm:$0xff] }
 0x1be   : > { %10819 = vst [vmem:[#allocation18_spill] sm:$0xff] %v6472_v26  ;;  %1708 = vmatpush.msra.mxu2 %v1587_v22  ;;  %2127 = vrot.lane.b32.xlu0 %v6475_v27, %s5541_s25 }
 0x1bf   : > { %2951 = vrot.lane.b32.xlu1 %v6246_v46, %s5543_s24  ;;  %5451 = vmatpush.msrb.mxu3 %v1576_v1 }
 0x1c0   : > { %1726 = vmatpush.msra.mxu0 %v1564_v24  ;;  %1709 = vmatpush.msra.mxu2 %v1584_v15 }
 0x1c1   : > { %5452 = vmatpush.msrb.mxu3 %v1573_v5  ;;  %2978 = vrot.lane.b32.xlu2 %v6480_v30, %s5543_s24 }
 0x1c2   : > { %1727 = vmatpush.msra.mxu0 %v1561_v28  ;;  %1710 = vmatpush.msra.mxu2 %v1581_v4 }
 0x1c3   : > { %5453 = vmatpush.msrb.mxu3 %v1570_v7  ;;  %1636 = vmatmul.f32.gmra.mxu1 %v6488_v31 }
 0x1c4   : > { %1728 = vmatpush.msra.mxu0 %v1558_v21  ;;  %5437 = vmatmul.msk.f32.vlgmr.msra.gmra.mxu3 %vm418_vm1, %v6419_v39 }
 0x1c5   : > { %1688 = vmatmul.f32.gmra.mxu0 %v6488_v31  ;;  %5440 = vmatmul.msk.f32.vlgmr.msra.gmra.mxu2 %vm418_vm1, %v6419_v39  ;;  %v6498_v12 = vpop.permute.xlu2 %2607  ;;  %v6500_v38 = vpop.permute.xlu1 %2084 }
 0x1c6   : > { %10822 = vst [vmem:[#allocation21_spill] sm:$0xff] %v6498_v12  ;;  %5454 = vmatpush.msrb.mxu3 %v1567_v19  ;;  %1729 = vmatpush.msra.mxu0 %v1555_v35  ;;  %v6502_v41 = vpop.permute.xlu0 %2222 }
 0x1c7   : > { %1757 = vmatpush.msrb.mxu1 %v1597_v37  ;;  %3179 = vrot.lane.b32.xlu1 %v6243_v45, %s5544_s29 }
 0x1c8   : > { %5455 = vmatpush.msrb.mxu3 %v1564_v24  ;;  %1730 = vmatpush.msra.mxu0 %v1552_v60 }
 0x1c9   : > { %2282 = vrot.lane.b32.xlu0 %v6480_v30, %s5541_s25  ;;  %1758 = vmatpush.msrb.mxu1 %v1594_v3 }
 0x1ca   : > { %5456 = vmatpush.msrb.mxu3 %v1561_v28  ;;  %1731 = vmatpush.msra.mxu0 %v1549_v42 }
 0x1cb   : > { %3206 = vrot.lane.b32.xlu2 %v6397_v18, %s5544_s29  ;;  %1759 = vmatpush.msrb.mxu1 %v1591_v43 }
 0x1cc   : > { %5457 = vmatpush.msrb.mxu3 %v1558_v21  ;;  %1732 = vmatpush.msra.mxu0 %v1546_v49 }
 0x1cd   : > { %1639 = vmatmul.f32.gmra.mxu1 %v6470_v25  ;;  %5438 = vmatmul.msk.f32.gmra.mxu3 %vm418_vm1, %v6445_v57  ;;  %v6513_v53 = vpop.permute.xlu2 %2835  ;;  %v6515_v8 = vpop.permute.xlu1 %2129 }
 0x1ce   : > { %10823 = vst [vmem:[#allocation22_spill] sm:$0xff] %v6513_v53  ;;  %1691 = vmatmul.f32.gmra.mxu0 %v6470_v25  ;;  %5441 = vmatmul.msk.f32.gmra.mxu2 %vm418_vm1, %v6445_v57  ;;  %v6520_v34 = vpop.permute.xlu0 %2578 }
 0x1cf   : > { %5458 = vmatpush.msrb.mxu3 %v1555_v35  ;;  %1733 = vmatpush.msra.mxu0 %v1543_v50 }
 0x1d0   : > { %1760 = vmatpush.msrb.mxu1 %v1588_v52  ;;  %3295 = vrot.lane.b32.xlu1 %v6246_v46, %s5544_s29 }
 0x1d1   : > { %5459 = vmatpush.msrb.mxu3 %v1552_v60  ;;  %1734 = vmatpush.msra.mxu0 %v1540_v51 }
 0x1d2   : > { %1761 = vmatpush.msrb.mxu1 %v1585_v62  ;;  %2518 = vrot.lane.b32.xlu0 %v6397_v18, %s5542_s28 }
 0x1d3   : > { %5460 = vmatpush.msrb.mxu3 %v1549_v42  ;;  %1735 = vmatpush.msra.mxu0 %v1537_v56 }
 0x1d4   : > { %3322 = vrot.lane.b32.xlu2 %v6480_v30, %s5544_s29  ;;  %1762 = vmatpush.msrb.mxu1 %v1582_v47 }
 0x1d5   : > { %5461 = vmatpush.msrb.mxu3 %v1546_v49  ;;  %1736 = vmatpush.msra.mxu0 %v1534_v63  ;;  %v6528_v0 = vpop.permute.xlu2 %2922  ;;  %v6530_v1 = vpop.permute.xlu1 %2160 }
 0x1d6   : > { %10824 = vst [vmem:[#allocation23_spill] sm:$0xff] %v6528_v0  ;;  %5439 = vmatmul.msk.f32.gmra.mxu3 %vm418_vm1, %v6434_v33  ;;  %5442 = vmatmul.msk.f32.gmra.mxu2 %vm418_vm1, %v6434_v33  ;;  %v6539_v2 = vpop.permute.xlu0 %2893 }
 0x1d7   : > { %10826 = vst [vmem:[#allocation25_spill] sm:$0xff] %v6539_v2  ;;  %1737 = vmatmul.f32.vlgmr.msra.gmra.mxu0 %v6394_v14  ;;  %5443 = vmatmul.msk.f32.vlgmr.msrb.gmra.mxu1 %vm418_vm1, %v6419_v39  ;;  %v6555_v14 = vperm.slane %v6369_v54, 6  ;;  %v6558_v39 = vmax.f32 %v6234_v32, 0.0 }
 0x1d8   : > { %5462 = vmatpush.msrb.mxu3 %v1543_v50  ;;  %2082 = vrot.lane.b32.xlu1 %v6533_v40, %s5541_s25 }
 0x1d9   : > { %10828 = vst [vmem:[#allocation27_spill] sm:$0xff] %v6555_v14  ;;  %v6568_v61 = vperm.slane %v6558_v39, 1  ;;  %v6615_v60 = vperm.slane %v6558_v39, 3 }
 0x1da   : > { %5463 = vmatpush.msrb.mxu3 %v1540_v51  ;;  %2634 = vrot.lane.b32.xlu0 %v6480_v30, %s5542_s28 }
 0x1db   : > { %10829 = vst [vmem:[#allocation28_spill] sm:$0xff] %v6568_v61 }
 0x1dc   : > { %5464 = vmatpush.msrb.mxu3 %v1537_v56  ;;  %3658 = vrot.lane.b32.xlu2 %v6437_v55, %s5545_s11  ;;  %10836 = vst [vmem:[#allocation35_spill] sm:$0xff] %v6615_v60 }
 0x1dd   : > { %v6550_v5 = vpop.permute.xlu2 %3266  ;;  %v6552_v6 = vpop.permute.xlu1 %2191 }
 0x1de   : > { %10827 = vst [vmem:[#allocation26_spill] sm:$0xff] %v6550_v5  ;;  %5465 = vmatpush.msrb.mxu3 %v1534_v63  ;;  %v6560_v9 = vpop.permute.xlu0 %2980  ;;  %v6667_v5 = vperm.slane %v6658_v17, 0 }
 0x1df   : > { %1740 = vmatmul.f32.vlgmr.msrb.gmra.mxu3 %v6488_v31  ;;  %5444 = vmatmul.msk.f32.gmra.mxu1 %vm418_vm1, %v6445_v57 }
 0x1e0   : > { %2251 = vrot.lane.b32.xlu1 %v6555_v14, %s5541_s25  ;;  %10840 = vst [vmem:[#allocation39_spill] sm:$0xff] %v6667_v5 }
 0x1e2   : > { %2862 = vrot.lane.b32.xlu0 %v6397_v18, %s5543_s24 }
 0x1e4   : > { %2332 = vrot.lane.b32.xlu2 %v6568_v61, %s5541_s25 }
 0x1e5   : > { %v6574_v32 = vpop.permute.xlu2 %3537  ;;  %v6576_v54 = vpop.permute.xlu1 %2284 }
 0x1e6   : > { %10830 = vst [vmem:[#allocation29_spill] sm:$0xff] %v6574_v32  ;;  %v6578_v7 = vpop.permute.xlu0 %3139 }
 0x1e7   : > { %10831 = vst [vmem:[#allocation30_spill] sm:$0xff] %v6578_v7  ;;  %1743 = vmatmul.f32.gmra.mxu3 %v6470_v25  ;;  %5445 = vmatmul.msk.f32.gmra.mxu1 %vm418_vm1, %v6434_v33  ;;  %v6598_v33 = vperm.slane %v6558_v39, 0 }
 0x1e8   : > { %2448 = vrot.lane.b32.xlu1 %v6533_v40, %s5542_s28 }
 0x1e9   : > { %v1256_v57 = vpop.f32.mrf.mxu1  ;;  %10834 = vst [vmem:[#allocation33_spill] sm:$0xff] %v6598_v33 }
 0x1ea   : > { %2949 = vrot.lane.b32.xlu0 %v6555_v14, %s5543_s24  ;;  %v1308_v13 = vpop.f32.mrf.mxu0 }
 0x1ec   : > { %2680 = vrot.lane.b32.xlu2 %v6568_v61, %s5542_s28 }
 0x1ed   : > { %v6589_v23 = vpop.permute.xlu1 %2450  ;;  %v6591_v19 = vpop.permute.xlu2 %2096 }
 0x1ee   : > { %10832 = vst [vmem:[#allocation31_spill] sm:$0xff] %v6589_v23  ;;  %v6593_v22 = vpop.permute.xlu0 %3150 }
 0x1ef   : > { %10833 = vst [vmem:[#allocation32_spill] sm:$0xff] %v6593_v22 }
 0x1f0   : > { %2460 = vrot.lane.b32.xlu1 %v6375_v29, %s5542_s28 }
 0x1f2   : > { %3137 = vrot.lane.b32.xlu0 %v6533_v40, %s5544_s29  ;;  %v1259_v24 = vpop.f32.mrf.mxu1 }
 0x1f3   : > { %v1311_v15 = vpop.f32.mrf.mxu0 }
 0x1f4   : > { %3009 = vrot.lane.b32.xlu2 %v6598_v33, %s5543_s24 }
 0x1f5   : > { %v6604_v25 = vpop.permute.xlu1 %2462 }
 0x1f6   : > { %10835 = vst [vmem:[#allocation34_spill] sm:$0xff] %v6604_v25  ;;  %v6606_v28 = vpop.permute.xlu0 %3208  ;;  %v6608_v4 = vpop.permute.xlu2 %2158 }
 0x1f7   : > { %v1230_v21 = vpop.f32.mrf.mxu3 }
 0x1f8   : > { %2489 = vrot.lane.b32.xlu1 %v6475_v27, %s5542_s28  ;;  %v1257_v31 = vadd.f32 %v1256_v57, %v1230_v21  ;;  %v1282_v35 = vpop.f32.mrf.mxu2 }
 0x1f9   : > { %v6612_v37 = vadd.f32 %v1308_v13, %v1282_v35 }
 0x1fa   : > { %3148 = vrot.lane.b32.xlu0 %v6375_v29, %s5544_s29  ;;  %v1262_v3 = vpop.f32.mrf.mxu1 }
 0x1fb   : > { %v1314_v42 = vpop.f32.mrf.mxu0 }
 0x1fc   : > { %3082 = vrot.lane.b32.xlu2 %v6615_v60, %s5543_s24 }
 0x1fd   : > { %v6621_v43 = vpop.permute.xlu1 %2520 }
 0x1fe   : > { %v6623_v49 = vpop.permute.xlu0 %3237 }
 0x1ff   : > { %10837 = vst [vmem:[#allocation36_spill] sm:$0xff] %v6623_v49  ;;  %v6625_v50 = vpop.permute.xlu2 %2189  ;;  %v1233_v52 = vpop.f32.mrf.mxu3 }
 0x200   : > { %2547 = vrot.lane.b32.xlu1 %v6416_v36, %s5542_s28  ;;  %v6629_v51 = vadd.f32 %v1259_v24, %v1233_v52  ;;  %v1285_v62 = vpop.f32.mrf.mxu2 }
 0x201   : > { %v6631_v56 = vadd.f32 %v1311_v15, %v1285_v62 }
 0x202   : > { %3177 = vrot.lane.b32.xlu0 %v6475_v27, %s5544_s29  ;;  %v1334_v47 = vpop.f32.mrf.mxu1 }
 0x203   : > { %v1392_v63 = vpop.f32.mrf.mxu0 }
 0x204   : > { %3353 = vrot.lane.b32.xlu2 %v6598_v33, %s5544_s29  ;;  %v1393_v57 = vadd.f32 %v1392_v63, %v1257_v31 }
 0x205   : > { %v6637_v13 = vpop.permute.xlu1 %2549 }
 0x206   : > { %10838 = vst [vmem:[#allocation37_spill] sm:$0xff] %v6637_v13  ;;  %v6639_v21 = vpop.permute.xlu0 %3324 }
 0x207   : > { %v1236_v35 = vpop.f32.mrf.mxu3 }
 0x208   : > { %2605 = vrot.lane.b32.xlu1 %v6555_v14, %s5542_s28  ;;  %v6643_v24 = vpop.permute.xlu2 %2220  ;;  %v6645_v15 = vadd.f32 %v1262_v3, %v1236_v35  ;;  %v1288_v52 = vpop.f32.mrf.mxu2 }
 0x209   : > { %v6647_v62 = vadd.f32 %v1314_v42, %v1288_v52 }
 0x20a   : > { %3235 = vrot.lane.b32.xlu0 %v6416_v36, %s5544_s29  ;;  %v1337_v44 = vpop.f32.mrf.mxu1 }
 0x20b   : > { %v6651_v31 = vpop.f32.mrf.mxu0 }
 0x20c   : > { %3426 = vrot.lane.b32.xlu2 %v6615_v60, %s5544_s29 }
 0x20d   : > { %v6655_v63 = vpop.permute.xlu1 %2636 }
 0x20e   : > { %v6660_v12 = vpop.permute.xlu0 %3482 }
 0x20f   : > { %10839 = vst [vmem:[#allocation38_spill] sm:$0xff] %v6660_v12  ;;  %v1360_v3 = vpop.f32.mrf.mxu3 }
 0x210   : > { %2793 = vrot.lane.b32.xlu1 %v6533_v40, %s5543_s24  ;;  %v1361_v42 = vadd.f32 %v1360_v3, %v1334_v47  ;;  %v1418_v35 = vpop.f32.mrf.mxu2 }
 0x211   : > { %v6664_v52 = vadd.f32 %v1418_v35, %v1393_v57 }
 0x212   : > { %3293 = vrot.lane.b32.xlu0 %v6555_v14, %s5544_s29  ;;  %v6671_v0 = vpop.permute.xlu2 %2576  ;;  %v1340_v59 = vpop.f32.mrf.mxu1 }
 0x213   : > { %v6673_v2 = vpop.f32.mrf.mxu0 }
 0x214   : > { %2313 = vrot.lane.b32.xlu2 %v6667_v5, %s5541_s25 }
 0x216   : > { %v6677_v53 = vpop.permute.xlu0 %3496  ;;  %v6679_v47 = vpop.permute.xlu1 %2795 }
 0x217   : > { %10841 = vst [vmem:[#allocation40_spill] sm:$0xff] %v6677_v53  ;;  %v1363_v57 = vpop.f32.mrf.mxu3 }
 0x218   : > { %10842 = vst [vmem:[#allocation41_spill] sm:$0xff] %v6679_v47  ;;  %2804 = vrot.lane.b32.xlu1 %v6375_v29, %s5543_s24  ;;  %v1364_v3 = vadd.f32 %v1363_v57, %v1337_v44  ;;  %v6683_v35 = vpop.f32.mrf.mxu2 }
 0x21a   : > { %3480 = vrot.lane.b32.xlu0 %v6533_v40, %s5545_s11 }
 0x21b   : > { %v6692_v32 = vpop.permute.xlu2 %2978  ;;  %v1470_v53 = vpop.f32.mrf.mxu1 }
 0x21c   : > { %2392 = vrot.lane.b32.xlu2 %v6686_v10, %s5541_s25  ;;  %v1522_v47 = vpop.f32.mrf.mxu0 }
 0x21e   : > { %v6694_v12 = vpop.permute.xlu0 %3578  ;;  %v6696_v45 = vpop.permute.xlu1 %2806 }
 0x21f   : > { %10844 = vst [vmem:[#allocation43_spill] sm:$0xff] %v6694_v12 }
 0x220   : > { %10845 = vst [vmem:[#allocation44_spill] sm:$0xff] %v6696_v45  ;;  %2833 = vrot.lane.b32.xlu1 %v6475_v27, %s5543_s24  ;;  %v1366_v44 = vpop.f32.mrf.mxu3  ;;  %v6700_v49 = vpop.f32.mrf.mxu2 }
 0x221   : > { %v1367_v57 = vadd.f32 %v1366_v44, %v1340_v59 }
 0x222   : > { %3494 = vrot.lane.b32.xlu0 %v6375_v29, %s5545_s11 }
 0x224   : > { %2663 = vrot.lane.b32.xlu2 %v6667_v5, %s5542_s28  ;;  %v1473_v16 = vpop.f32.mrf.mxu1 }
 0x225   : > { %v6706_v40 = vpop.permute.xlu2 %3206  ;;  %v1525_v13 = vpop.f32.mrf.mxu0 }
 0x227   : > { %v6710_v12 = vpop.permute.xlu0 %3619 }
 0x228   : > { %2891 = vrot.lane.b32.xlu1 %v6416_v36, %s5543_s24  ;;  %10846 = vst [vmem:[#allocation45_spill] sm:$0xff] %v6710_v12 }
 0x229   : > { %v6712_v45 = vpop.permute.xlu1 %2864 }
 0x22a   : > { %10847 = vst [vmem:[#allocation46_spill] sm:$0xff] %v6712_v45  ;;  %3535 = vrot.lane.b32.xlu0 %v6475_v27, %s5545_s11  ;;  %v1444_v59 = vpop.f32.mrf.mxu3  ;;  %v6728_v27 = vperm.slane %v6658_v17, 2 }
 0x22b   : > { %v1445_v44 = vadd.f32 %v1444_v59, %v6612_v37  ;;  %v1496_v29 = vpop.f32.mrf.mxu2 }
 0x22c   : > { %2736 = vrot.lane.b32.xlu2 %v6686_v10, %s5542_s28  ;;  %v1497_v48 = vadd.f32 %v1496_v29, %v1361_v42  ;;  %10849 = vst [vmem:[#allocation48_spill] sm:$0xff] %v6728_v27 }
 0x22d   : > { %v1471_v26 = vadd.f32 %v1470_v53, %v1445_v44  ;;  %v1476_v7 = vpop.f32.mrf.mxu1 }
 0x22e   : > { %v6719_v11 = vadd.f32 %v1522_v47, %v1497_v48  ;;  %v6721_v14 = vpop.permute.xlu2 %3322  ;;  %v1528_v37 = vpop.f32.mrf.mxu0 }
 0x230   : > { %2920 = vrot.lane.b32.xlu1 %v6437_v55, %s5543_s24  ;;  %v6732_v59 = vpop.permute.xlu0 %2127 }
 0x231   : > { %v6725_v12 = vpop.permute.xlu1 %2951 }
 0x232   : > { %10848 = vst [vmem:[#allocation47_spill] sm:$0xff] %v6725_v12  ;;  %3617 = vrot.lane.b32.xlu0 %v6416_v36, %s5545_s11 }
 0x233   : > { %v1447_v29 = vpop.f32.mrf.mxu3 }
 0x234   : > { %3051 = vrot.lane.b32.xlu2 %v6728_v27, %s5543_s24  ;;  %v1448_v48 = vadd.f32 %v1447_v29, %v6631_v56  ;;  %v1499_v53 = vpop.f32.mrf.mxu2 }
 0x235   : > { %v1500_v42 = vadd.f32 %v1499_v53, %v1364_v3 }
 0x236   : > { %v6737_v47 = vadd.f32 %v1473_v16, %v1448_v48  ;;  %v6743_v12 = vpop.permute.xlu2 %3658 }
 0x237   : > { %v6739_v44 = vadd.f32 %v1525_v13, %v1500_v42  ;;  %10851 = vst [vmem:[#allocation50_spill] sm:$0xff] %v6743_v12 }
 0x238   : > { %3264 = vrot.lane.b32.xlu1 %v6437_v55, %s5544_s29  ;;  %v1634_v22 = vpop.f32.mrf.mxu1 }
 0x239   : > { %10850 = vst [vmem:[#allocation49_spill] sm:$0xff] %v6739_v44  ;;  %v6745_v36 = vpop.permute.xlu1 %3179  ;;  %v1686_v56 = vpop.f32.mrf.mxu0 }
 0x23a   : > { %10852 = vst [vmem:[#allocation51_spill] sm:$0xff] %v6745_v36  ;;  %2315 = vrot.lane.b32.xlu0 %v6598_v33, %s5541_s25 }
 0x23b   : > { %v6749_v45 = vpop.permute.xlu0 %2282 }
 0x23c   : > { %3395 = vrot.lane.b32.xlu2 %v6728_v27, %s5544_s29  ;;  %v1450_v16 = vpop.f32.mrf.mxu3 }
 0x23d   : > { %v1502_v13 = vpop.f32.mrf.mxu2  ;;  %v1451_v3 = vadd.f32 %v1450_v16, %v6647_v62  ;;  %v6774_v62 = vperm.slane %v6558_v39, 2 }
 0x23e   : > { %v1503_v29 = vadd.f32 %v1502_v13, %v1367_v57  ;;  %v6762_v42 = vpop.permute.xlu2 %2332 }
 0x23f   : > { %v6754_v48 = vadd.f32 %v1476_v7, %v1451_v3  ;;  %10855 = vst [vmem:[#allocation54_spill] sm:$0xff] %v6762_v42  ;;  %v1782_v7 = vld [vmem:[%s10487_s9] sm:$0x7] }
 0x240   : > { %v6756_v53 = vadd.f32 %v1528_v37, %v1503_v29  ;;  %3576 = vrot.lane.b32.xlu1 %v6397_v18, %s5545_s11  ;;  %10857 = vst [vmem:[#allocation56_spill] sm:$0xff] %v6774_v62  ;;  %v1637_v57 = vpop.f32.mrf.mxu1  ;;  %v6776_v3 = vperm.slane %v1782_v7, 0  ;;  %v6780_v42 = vperm.slane %v1782_v7, 1 }
 0x241   : > { %10853 = vst [vmem:[#allocation52_spill] sm:$0xff] %v6754_v48 }
 0x242   : > { %10854 = vst [vmem:[#allocation53_spill] sm:$0xff] %v6756_v53  ;;  %2394 = vrot.lane.b32.xlu0 %v6615_v60, %s5541_s25  ;;  %v6764_v55 = vpop.permute.xlu1 %3295  ;;  %v1689_v37 = vpop.f32.mrf.mxu0 }
 0x243   : > { %10856 = vst [vmem:[#allocation55_spill] sm:$0xff] %v6764_v55 }
 0x244   : > { %3701 = vrot.lane.b32.xlu2 %v6246_v46, %s5545_s11  ;;  %v6768_v36 = vpop.permute.xlu0 %2518  ;;  %10858 = vst [vmem:[#allocation57_spill] sm:$0xff] %v6776_v3 }
 0x245   : > { %10859 = vst [vmem:[#allocation58_spill] sm:$0xff] %v6780_v42 }
 0x247   : > { %v1660_v16 = vpop.f32.mrf.mxu3 }
 0x248   : > { %v1661_v13 = vadd.f32 %v1660_v16, %v1634_v22  ;;  %v1712_v29 = vpop.f32.mrf.mxu2  ;;  %2363 = vrot.lane.b32.xlu1 %v6774_v62, %s5541_s25  ;;  %v6790_v16 = vpop.permute.xlu2 %2680 }
 0x249   : > { %v1713_v46 = vadd.f32 %v1712_v29, %v1686_v56  ;;  %10860 = vst [vmem:[#allocation59_spill] sm:$0xff] %v6790_v16 }
 0x24a   : > { %v1773_v55 = vadd.f32 %v1661_v13, %v6664_v52  ;;  %2665 = vrot.lane.b32.xlu0 %v6598_v33, %s5542_s28  ;;  %v6793_v56 = vpop.permute.xlu1 %2082  ;;  %v6795_v29 = vpop.f32.mrf.mxu1 }
 0x24b   : > { %v1774_v39 = vadd.f32 %v1713_v46, %v1471_v26  ;;  %10861 = vst [vmem:[#allocation60_spill] sm:$0xff] %v6793_v56  ;;  %v6797_v52 = vpop.f32.mrf.mxu0 }
 0x24c   : > { %v1790_v48 = vadd.f32 %v6776_v3, %v1773_v55  ;;  %3781 = vrot.lane.b32.xlu2 %v6667_v5, %s5545_s11  ;;  %v6788_v22 = vpop.permute.xlu0 %2634  ;;  %10862 = vst [vmem:[#allocation61_spill] sm:$0xff] %v6795_v29  ;;  %v1396_v55 = vadd.f32 %v6651_v31, %v6629_v51  ;;  %v6820_v31 = vperm.slane %v1782_v7, 2  ;;  %v6846_v7 = vperm.slane %v6658_v17, 1 }
 0x24d   : > { %v1791_v53 = vadd.f32 %v6780_v42, %v1774_v39  ;;  %10863 = vst [vmem:[#allocation62_spill] sm:$0xff] %v6797_v52 }
 0x24e   : > { %v1422_v52 = vadd.f32 %v6683_v35, %v1396_v55  ;;  %10870 = vst [vmem:[#allocation69_spill] sm:$0xff] %v6846_v7 }
 0x250   : > { %2709 = vrot.lane.b32.xlu1 %v6774_v62, %s5542_s28  ;;  %v6809_v26 = vpop.permute.xlu2 %3009  ;;  %v1663_v39 = vpop.f32.mrf.mxu3 }
 0x251   : > { %10865 = vst [vmem:[#allocation64_spill] sm:$0xff] %v6809_v26  ;;  %v1715_v16 = vpop.f32.mrf.mxu2 }
 0x252   : > { %2738 = vrot.lane.b32.xlu0 %v6615_v60, %s5542_s28  ;;  %v6811_v13 = vpop.permute.xlu1 %2251  ;;  %v1716_v23 = vadd.f32 %v1715_v16, %v1689_v37 }
 0x253   : > { %10866 = vst [vmem:[#allocation65_spill] sm:$0xff] %v6811_v13 }
 0x254   : > { %3803 = vrot.lane.b32.xlu2 %v6568_v61, %s5545_s11  ;;  %v6805_v46 = vpop.permute.xlu0 %2862  ;;  %v1738_v29 = vpop.f32.mrf.mxu0  ;;  %v1777_v13 = vadd.f32 %v1716_v23, %v6737_v47  ;;  %v6843_v47 = vmax.f32 %v1790_v48, 0.0 }
 0x255   : > { %10864 = vst [vmem:[#allocation63_spill] sm:$0xff] %v6805_v46  ;;  %v1764_v60 = vpop.f32.mrf.mxu1  ;;  %v1664_v46 = vadd.f32 %v1663_v39, %v1637_v57 }
 0x256   : > { %v1765_v51 = vadd.f32 %v1764_v60, %v1738_v29  ;;  %v1794_v23 = vadd.f32 %v6780_v42, %v1777_v13  ;;  %v2103_v48 = vmul.f32 %v6591_v19, %v6843_v47  ;;  %v6860_v29 = vmax.f32 %v1791_v53, 0.0 }
 0x257   : > { %v1776_v26 = vadd.f32 %v1664_v46, %v1422_v52  ;;  %v2100_v52 = vsel %vm2086_vm5, %v6591_v19, %v6447_v58  ;;  %v2162_v46 = vsel %vm2086_vm5, %v6608_v4, %v6530_v1  ;;  %v3210_v53 = vsel %vm2069_vm6, %v6706_v40, %v6606_v28 }
 0x258   : > { %3024 = vrot.lane.b32.xlu1 %v6568_v61, %s5543_s24  ;;  %v1775_v44 = vadd.f32 %v1765_v51, %v6719_v11  ;;  %v6834_v60 = vpop.permute.xlu2 %3082  ;;  %10873 = vst [vmem:[#allocation72_spill] sm:$0xff] %v6860_v29  ;;  %v2111_v51 = vrot.slane %v2103_v48, 1 }
 0x259   : > { %v1793_v55 = vadd.f32 %v6776_v3, %v1776_v26  ;;  %10869 = vst [vmem:[#allocation68_spill] sm:$0xff] %v6834_v60  ;;  %v2131_v26 = vsel %vm2086_vm5, %v6732_v59, %v6515_v8  ;;  %v2104_v8 = vmul.f32 %v2100_v52, %v6860_v29  ;;  %v2166_v60 = vmul.f32 %v2162_v46, %v6860_v29 }
 0x25a   : > { %3053 = vrot.lane.b32.xlu0 %v6774_v62, %s5543_s24  ;;  %v6827_v25 = vpop.permute.xlu1 %2448  ;;  %v6832_v57 = vadd.f32 %v6820_v31, %v1775_v44  ;;  %v6848_v44 = vmax.f32 %v1794_v23, 0.0  ;;  %v6904_v23 = vpop.f32.mrf.mxu3  ;;  %v2135_v39 = vmul.f32 %v2131_v26, %v6860_v29 }
 0x25b   : > { %v6839_v11 = vmax.f32 %v1793_v55, 0.0  ;;  %v6899_v55 = vsel %vm2086_vm5, %v6793_v56, %v6500_v38  ;;  %10880 = vst [vmem:[#allocation79_spill] sm:$0xff] %v6904_v23  ;;  %v2134_v38 = vmul.f32 %v6732_v59, %v6843_v47 }
 0x25c   : > { %4055 = vrot.lane.b32.xlu2 %v6397_v18, %s5546_s14  ;;  %v6824_v35 = vpop.permute.xlu0 %2949  ;;  %10868 = vst [vmem:[#allocation67_spill] sm:$0xff] %v6832_v57  ;;  %v6879_v13 = vmul.f32 %v2100_v52, %v6848_v44  ;;  %v6888_v1 = vmul.f32 %v2131_v26, %v6848_v44  ;;  %v6891_v28 = vmul.f32 %v2162_v46, %v6848_v44  ;;  %v2145_v57 = vrot.slane %v2135_v39, 2 }
 0x25d   : > { %10867 = vst [vmem:[#allocation66_spill] sm:$0xff] %v6824_v35  ;;  %v6852_v37 = vmul.f32 %v6591_v19, %v6839_v11  ;;  %v2522_v19 = vsel %vm2452_vm8, %v6768_v36, %v6621_v43  ;;  %v6913_v48 = vmul.f32 %v3210_v53, %v6848_v44  ;;  %v3214_v18 = vmul.f32 %v3210_v53, %v6860_v29 }
 0x25e   : > { %10874 = vst [vmem:[#allocation73_spill] sm:$0xff] %v6879_v13  ;;  %v6902_v43 = vmul.f32 %v2522_v19, %v6848_v44  ;;  %v2526_v52 = vmul.f32 %v2522_v19, %v6860_v29  ;;  %v6922_v26 = vmul.f32 %v6608_v4, %v6839_v11  ;;  %v2114_v53 = vrot.slane %v2104_v8, 1 }
 0x25f   : > { %10871 = vst [vmem:[#allocation70_spill] sm:$0xff] %v6852_v37  ;;  %v10884_v46 = vrot.slane %v6852_v37, 1  ;;  %v2090_v19 = vmul.f32 %v6793_v56, %v6843_v47  ;;  %v2176_v37 = vrot.slane %v2166_v60, 3  ;;  %v3224_v35 = vrot.slane %v3214_v18, 3 }
 0x260   : > { %3368 = vrot.lane.b32.xlu1 %v6568_v61, %s5544_s29  ;;  %v6881_v58 = vpop.permute.xlu2 %3353  ;;  %10876 = vst [vmem:[#allocation75_spill] sm:$0xff] %v6888_v1  ;;  %v2142_v39 = vrot.slane %v2134_v38, 2  ;;  %v10887_v42 = vrot.slane %v6891_v28, 3  ;;  %v2091_v18 = vmul.f32 %v6899_v55, %v6860_v29 }
 0x261   : > { %10875 = vst [vmem:[#allocation74_spill] sm:$0xff] %v6881_v58  ;;  %v6910_v58 = vmul.f32 %v6732_v59, %v6839_v11  ;;  %v2113_v61 = vsel %vm414_vm0, %v2111_v51, %v10884_v46  ;;  %v2165_v59 = vmul.f32 %v6608_v4, %v6843_v47  ;;  %v10885_v4 = vrot.slane %v6879_v13, 1 }
 0x262   : > { %3397 = vrot.lane.b32.xlu0 %v6774_v62, %s5544_s29  ;;  %v6862_v17 = vpop.permute.xlu1 %2460  ;;  %10877 = vst [vmem:[#allocation76_spill] sm:$0xff] %v6891_v28  ;;  %v2536_v62 = vrot.slane %v2526_v52, 3  ;;  %v2121_v56 = vadd.f32 %v2113_v61, %v2090_v19  ;;  %v10886_v51 = vrot.slane %v6888_v1, 2  ;;  %v10888_v61 = vrot.slane %v6902_v43, 3 }
 0x263   : > { %10878 = vst [vmem:[#allocation77_spill] sm:$0xff] %v6899_v55  ;;  %v2116_v8 = vsel %vm414_vm0, %v2114_v53, %v10885_v4  ;;  %v10890_v52 = vrot.slane %v6913_v48, 3  ;;  %v10892_v19 = vrot.slane %v6910_v58, 2  ;;  %v10907_v55 = vld [vmem:[#allocation34_spill] sm:$0xff] }
 0x264   : > { %3883 = vrot.lane.b32.xlu2 %v6686_v10, %s5545_s11  ;;  %v6854_v16 = vpop.permute.xlu0 %3137  ;;  %10879 = vst [vmem:[#allocation78_spill] sm:$0xff] %v6902_v43  ;;  %v2147_v46 = vsel %vm480_vm2, %v2145_v57, %v10886_v51  ;;  %v6961_v38 = vsel %vm1872_vm7, %v2536_v62, %v10888_v61  ;;  %v2122_v4 = vadd.f32 %v2116_v8, %v2091_v18  ;;  %v1741_v43 = vpop.f32.mrf.mxu3 }
 0x265   : > { %10872 = vst [vmem:[#allocation71_spill] sm:$0xff] %v6854_v16  ;;  %v6966_v53 = vsel %vm1872_vm7, %v3224_v35, %v10890_v52  ;;  %v2144_v51 = vsel %vm480_vm2, %v2142_v39, %v10892_v19  ;;  %v1767_v62 = vpop.f32.mrf.mxu1  ;;  %v6978_v61 = vsel %vm2086_vm5, %v6625_v50, %v6552_v6  ;;  %v10893_v35 = vrot.slane %v6922_v26, 3 }
 0x266   : > { %10881 = vst [vmem:[#allocation80_spill] sm:$0xff] %v6910_v58  ;;  %v2152_v60 = vadd.f32 %v2144_v51, %v2121_v56  ;;  %v2153_v56 = vadd.f32 %v2147_v46, %v2122_v4  ;;  %v7011_v39 = vmul.f32 %v6643_v24, %v6843_v47  ;;  %v7037_v18 = vsel %vm2086_vm5, %v6749_v45, %v6576_v54 }
 0x267   : > { %10882 = vst [vmem:[#allocation81_spill] sm:$0xff] %v6913_v48  ;;  %v7057_v54 = vmul.f32 %v6743_v12, %v6843_v47  ;;  %v7061_v19 = vmul.f32 %v6978_v61, %v6860_v29  ;;  %v7066_v51 = vsel %vm2452_vm8, %v6788_v22, %v6655_v63  ;;  %v1768_v1 = vadd.f32 %v1767_v62, %v1741_v43  ;;  %v10909_v62 = vld [vmem:[#allocation49_spill] sm:$0xff] }
 0x268   : > { %2330 = vrot.lane.b32.xlu1 %v6846_v7, %s5541_s25  ;;  %10883 = vst [vmem:[#allocation82_spill] sm:$0xff] %v6922_v26  ;;  %v6968_v57 = vpop.permute.xlu2 %3426  ;;  %v7118_v43 = vmul.f32 %v7066_v51, %v6860_v29 }
 0x269   : > { %10889 = vst [vmem:[#allocation83_spill] sm:$0xff] %v6961_v38 }
 0x26a   : > { %2361 = vrot.lane.b32.xlu0 %v6728_v27, %s5541_s25  ;;  %v6945_v23 = vpop.permute.xlu1 %2489  ;;  %10891 = vst [vmem:[#allocation84_spill] sm:$0xff] %v6968_v57  ;;  %v7078_v57 = vmul.f32 %v7037_v18, %v6860_v29 }
 0x26b   : > { %10898 = vst [vmem:[#allocation89_spill] sm:$0xff] %v7057_v54 }
 0x26c   : > { %4139 = vrot.lane.b32.xlu2 %v6218_v20, %s5546_s14  ;;  %v6938_v3 = vpop.permute.xlu0 %3148  ;;  %v2178_v20 = vsel %vm1872_vm7, %v2176_v37, %v10887_v42  ;;  %v1399_v42 = vadd.f32 %v6673_v2, %v6645_v15  ;;  %v2173_v37 = vrot.slane %v2165_v59, 3  ;;  %v6988_v2 = vsel %vm2086_vm5, %v6643_v24, %v6502_v41  ;;  %10899 = vst [vmem:[#allocation90_spill] sm:$0xff] %v7061_v19  ;;  %v1744_v58 = vpop.f32.mrf.mxu3 }
 0x26d   : > { %v6993_v15 = vsel %vm2452_vm8, %v6671_v0, %v6520_v34  ;;  %v7000_v59 = vsel %vm418_vm1, %v6692_v32, %v6560_v9  ;;  %v7007_v41 = vmul.f32 %v6625_v50, %v6843_v47  ;;  %v7017_v34 = vmul.f32 %v6749_v45, %v6843_v47  ;;  %10901 = vst [vmem:[#allocation92_spill] sm:$0xff] %v7078_v57  ;;  %v1770_v13 = vpop.f32.mrf.mxu1 }
 0x26e   : > { %v2175_v52 = vsel %vm1872_vm7, %v2173_v37, %v10893_v35  ;;  %v7003_v8 = vadd.f32 %v6700_v49, %v1399_v42  ;;  %v7021_v9 = vmul.f32 %v6768_v36, %v6843_v47  ;;  %v7025_v49 = vmul.f32 %v6671_v0, %v6843_v47  ;;  %10908 = vst [vmem:[#allocation34_spill] sm:$0xff] %v7118_v43  ;;  %v10910_v35 = vld [vmem:[#allocation31_spill] sm:$0xff] }
 0x26f   : > { %v6995_v6 = vadd.f32 %v2175_v52, %v2152_v60  ;;  %v7027_v46 = vadd.f32 %v2178_v20, %v2153_v56  ;;  %v7032_v60 = vsel %vm2069_vm6, %v6721_v14, %v6639_v21  ;;  %v7041_v42 = vmul.f32 %v6692_v32, %v6843_v47 }
 0x270   : > { %2678 = vrot.lane.b32.xlu1 %v6846_v7, %s5542_s28  ;;  %10895 = vst [vmem:[#allocation86_spill] sm:$0xff] %v7032_v60  ;;  %v7045_v37 = vmul.f32 %v6706_v40, %v6843_v47  ;;  %v7053_v21 = vmul.f32 %v6721_v14, %v6843_v47  ;;  %v7073_v52 = vmul.f32 %v6988_v2, %v6860_v29 }
 0x271   : > { %10894 = vst [vmem:[#allocation85_spill] sm:$0xff] %v7027_v46  ;;  %v7084_v63 = vmul.f32 %v6993_v15, %v6860_v29  ;;  %v7087_v46 = vpop.permute.xlu2 %2313  ;;  %v7091_v28 = vmul.f32 %v7000_v59, %v6860_v29  ;;  %v7097_v48 = vmul.f32 %v7032_v60, %v6860_v29  ;;  %v2464_v60 = vsel %vm2452_vm8, %v6862_v17, %v10907_v55 }
 0x272   : > { %2707 = vrot.lane.b32.xlu0 %v6728_v27, %s5542_s28  ;;  %10896 = vst [vmem:[#allocation87_spill] sm:$0xff] %v7041_v42  ;;  %v7068_v4 = vpop.permute.xlu1 %2547  ;;  %v7108_v42 = vmul.f32 %v6788_v22, %v6843_v47  ;;  %v1778_v56 = vadd.f32 %v1768_v1, %v10909_v62  ;;  %v2468_v26 = vmul.f32 %v2464_v60, %v6860_v29 }
 0x273   : > { %10897 = vst [vmem:[#allocation88_spill] sm:$0xff] %v7053_v21  ;;  %v7126_v21 = vsel %vm2452_vm8, %v6827_v25, %v10910_v35  ;;  %v7129_v55 = vmul.f32 %v2464_v60, %v6848_v44  ;;  %v1771_v57 = vadd.f32 %v1770_v13, %v1744_v58  ;;  %v10916_v13 = vld [vmem:[#allocation63_spill] sm:$0xff] }
 0x274   : > { %4219 = vrot.lane.b32.xlu2 %v6480_v30, %s5546_s14  ;;  %v7047_v20 = vpop.permute.xlu0 %3177  ;;  %10900 = vst [vmem:[#allocation91_spill] sm:$0xff] %v7073_v52  ;;  %v7137_v62 = vadd.f32 %v6820_v31, %v1778_v56  ;;  %v2457_v56 = vmul.f32 %v7126_v21, %v6860_v29 }
 0x275   : > { %10902 = vst [vmem:[#allocation93_spill] sm:$0xff] %v7084_v63  ;;  %v10915_v63 = vld [vmem:[#allocation46_spill] sm:$0xff]  ;;  %v10558_v52 = vrot.slane %v7129_v55, 1 }
 0x276   : > { %10903 = vst [vmem:[#allocation94_spill] sm:$0xff] %v7087_v46  ;;  %v2478_v46 = vrot.slane %v2468_v26, 1  ;;  %v7146_v58 = vsel %vm418_vm1, %v10916_v13, %v10915_v63  ;;  %v7153_v26 = vmul.f32 %v6625_v50, %v6839_v11 }
 0x277   : > { %10904 = vst [vmem:[#allocation95_spill] sm:$0xff] %v7091_v28  ;;  %v10914_v28 = vld [vmem:[#allocation32_spill] sm:$0xff]  ;;  %v7177_v1 = vmul.f32 %v7146_v58, %v6860_v29 }
 0x278   : > { %3007 = vrot.lane.b32.xlu1 %v6667_v5, %s5543_s24  ;;  %10905 = vst [vmem:[#allocation96_spill] sm:$0xff] %v7097_v48  ;;  %v3152_v35 = vsel %vm2069_vm6, %v6938_v3, %v10914_v28  ;;  %v7157_v28 = vmul.f32 %v10916_v13, %v6843_v47  ;;  %v2480_v63 = vsel %vm414_vm0, %v2478_v46, %v10558_v52  ;;  %v10922_v48 = vld [vmem:[#allocation65_spill] sm:$0xff] }
 0x279   : > { %10906 = vst [vmem:[#allocation97_spill] sm:$0xff] %v7108_v42  ;;  %v7171_v50 = vmul.f32 %v3152_v35, %v6848_v44  ;;  %v7181_v43 = vmul.f32 %v10922_v48, %v6843_v47  ;;  %v7187_v46 = vmul.f32 %v6862_v17, %v6839_v11 }
 0x27a   : > { %3022 = vrot.lane.b32.xlu0 %v6846_v7, %s5543_s24  ;;  %10911 = vst [vmem:[#allocation49_spill] sm:$0xff] %v7126_v21  ;;  %v7161_v60 = vpop.permute.xlu1 %2605  ;;  %v10928_v21 = vld [vmem:[#allocation27_spill] sm:$0xff] }
 0x27b   : > { %10912 = vst [vmem:[#allocation31_spill] sm:$0xff] %v7129_v55  ;;  %v7200_v55 = vmul.f32 %v6938_v3, %v6839_v11  ;;  %v2266_v54 = vrot.slane %v7181_v43, 6 }
 0x27c   : > { %4262 = vrot.lane.b32.xlu2 %v6598_v33, %s5546_s14  ;;  %v7131_v38 = vpop.permute.xlu0 %3235  ;;  %10913 = vst [vmem:[#allocation98_spill] sm:$0xff] %v7137_v62  ;;  %v7224_v62 = vmul.f32 %v10922_v48, %v6839_v11 }
 0x27d   : > { %10917 = vst [vmem:[#allocation32_spill] sm:$0xff] %v7146_v58 }
 0x27e   : > { %10919 = vst [vmem:[#allocation46_spill] sm:$0xff] %v7161_v60 }
 0x27f   : > { %10921 = vst [vmem:[#allocation99_spill] sm:$0xff] %v7171_v50 }
 0x280   : > { %3080 = vrot.lane.b32.xlu1 %v6686_v10, %s5543_s24  ;;  %10923 = vst [vmem:[#allocation65_spill] sm:$0xff] %v7187_v46 }
 0x281   : > { %10927 = vst [vmem:[#allocation101_spill] sm:$0xff] %v7200_v55 }
 0x282   : > { %3366 = vrot.lane.b32.xlu0 %v6846_v7, %s5544_s29  ;;  %v7250_v43 = vpop.permute.xlu1 %2793 }
 0x283   : > { %10936 = vst [vmem:[#allocation104_spill] sm:$0xff] %v7250_v43 }
 0x284   : > { %4321 = vrot.lane.b32.xlu2 %v6728_v27, %s5546_s14  ;;  %v10918_v27 = vld [vmem:[#allocation53_spill] sm:$0xff] }
 0x285   : > { %v1781_v19 = vadd.f32 %v1771_v57, %v10918_v27  ;;  %v3156_v57 = vmul.f32 %v3152_v35, %v6860_v29  ;;  %v10925_v35 = vld [vmem:[#allocation30_spill] sm:$0xff] }
 0x286   : > { %v7194_v52 = vsel %vm2069_vm6, %v6854_v16, %v10925_v35 }
 0x287   : > { %v7167_v27 = vadd.f32 %v6820_v31, %v1781_v19  ;;  %v2467_v31 = vmul.f32 %v6862_v17, %v6843_v47  ;;  %v7189_v19 = vpop.permute.xlu2 %2392  ;;  %10926 = vst [vmem:[#allocation30_spill] sm:$0xff] %v7194_v52  ;;  %v7206_v17 = vmul.f32 %v6643_v24, %v6839_v11  ;;  %v3166_v24 = vrot.slane %v3156_v57, 1 }
 0x288   : > { %3351 = vrot.lane.b32.xlu1 %v6667_v5, %s5544_s29  ;;  %10924 = vst [vmem:[#allocation100_spill] sm:$0xff] %v7189_v19  ;;  %v3155_v5 = vmul.f32 %v6938_v3, %v6843_v47  ;;  %v7210_v19 = vmul.f32 %v6749_v45, %v6839_v11  ;;  %v10932_v45 = vld [vmem:[#allocation35_spill] sm:$0xff]  ;;  %v10937_v57 = vrot.slane %v7153_v26, 4 }
 0x289   : > { %10920 = vst [vmem:[#allocation53_spill] sm:$0xff] %v7167_v27  ;;  %v2486_v27 = vadd.f32 %v2480_v63, %v2457_v56  ;;  %v7214_v56 = vmul.f32 %v6768_v36, %v6839_v11  ;;  %v10931_v63 = vld [vmem:[#allocation17_spill] sm:$0xff]  ;;  %v3145_v36 = vmul.f32 %v7194_v52, %v6860_v29  ;;  %v2475_v58 = vrot.slane %v2467_v31, 1 }
 0x28a   : > { %3699 = vrot.lane.b32.xlu0 %v10928_v21, %s5545_s11  ;;  %10929 = vst [vmem:[#allocation102_spill] sm:$0xff] %v7210_v19  ;;  %v7219_v3 = vsel %vm2086_vm5, %v10922_v48, %v10931_v63  ;;  %v10569_v21 = vrot.slane %v7171_v50, 1  ;;  %v10933_v63 = vld [vmem:[#allocation18_spill] sm:$0xff]  ;;  %v3163_v48 = vrot.slane %v3155_v5, 1  ;;  %v7244_v31 = vmul.f32 %v6706_v40, %v6839_v11  ;;  %v10943_v50 = vld [vmem:[#allocation12_spill] sm:$0xff] }
 0x28b   : > { %10930 = vst [vmem:[#allocation103_spill] sm:$0xff] %v7214_v56  ;;  %v2493_v35 = vsel %vm2452_vm8, %v6945_v23, %v10933_v63  ;;  %v2496_v40 = vmul.f32 %v6945_v23, %v6843_v47  ;;  %v7269_v5 = vmul.f32 %v6945_v23, %v6839_v11 }
 0x28c   : > { %4364 = vrot.lane.b32.xlu2 %v10932_v45, %s5546_s14  ;;  %v3168_v42 = vsel %vm414_vm0, %v3166_v24, %v10569_v21  ;;  %v7240_v45 = vpop.permute.xlu0 %3293  ;;  %10935 = vst [vmem:[#allocation18_spill] sm:$0xff] %v7244_v31  ;;  %v10938_v24 = vrot.slane %v7007_v41, 4  ;;  %v7272_v41 = vmul.f32 %v2493_v35, %v6848_v44 }
 0x28d   : > { %10934 = vst [vmem:[#allocation17_spill] sm:$0xff] %v7240_v45  ;;  %v7248_v63 = vadd.f32 %v3168_v42, %v3145_v36  ;;  %v2497_v45 = vmul.f32 %v2493_v35, %v6860_v29  ;;  %v10939_v36 = vrot.slane %v7187_v46, 1  ;;  %v10948_v35 = vrot.slane %v7214_v56, 3 }
 0x28e   : > { %v2206_v21 = vsel %vm1897_vm9, %v10938_v24, %v10937_v57  ;;  %10940 = vst [vmem:[#allocation105_spill] sm:$0xff] %v7269_v5  ;;  %v2456_v57 = vmul.f32 %v6827_v25, %v6843_v47  ;;  %v10942_v24 = vrot.slane %v7200_v55, 1  ;;  %v10950_v55 = vrot.slane %v7269_v5, 2 }
 0x28f   : > { %v2477_v52 = vsel %vm414_vm0, %v2475_v58, %v10939_v36  ;;  %10941 = vst [vmem:[#allocation106_spill] sm:$0xff] %v7272_v41  ;;  %v2507_v42 = vrot.slane %v2497_v45, 2  ;;  %v3144_v58 = vmul.f32 %v6854_v16, %v6843_v47  ;;  %v2214_v36 = vadd.f32 %v2206_v21, %v6995_v6  ;;  %v7286_v46 = vpop.permute.xlu2 %2663  ;;  %v10947_v16 = vld [vmem:[#allocation19_spill] sm:$0xff] }
 0x290   : > { %3424 = vrot.lane.b32.xlu1 %v6686_v10, %s5544_s29  ;;  %v3165_v13 = vsel %vm414_vm0, %v3163_v48, %v10942_v24  ;;  %v2504_v10 = vrot.slane %v2496_v40, 2  ;;  %10944 = vst [vmem:[#allocation107_spill] sm:$0xff] %v7286_v46  ;;  %v10945_v48 = vrot.slane %v7206_v17, 5  ;;  %v10946_v45 = vrot.slane %v7011_v39, 5 }
 0x291   : > { %v2485_v24 = vadd.f32 %v2477_v52, %v2456_v57  ;;  %v10949_v6 = vrot.slane %v7021_v9, 3  ;;  %v3173_v23 = vadd.f32 %v3165_v13, %v3144_v58  ;;  %v10951_v39 = vrot.slane %v7272_v41, 2  ;;  %v10954_v13 = vld [vmem:[#allocation51_spill] sm:$0xff] }
 0x292   : > { %3742 = vrot.lane.b32.xlu0 %v10943_v50, %s5545_s11  ;;  %v2237_v40 = vsel %vm1922_vm10, %v10946_v45, %v10945_v48  ;;  %v2506_v46 = vsel %vm480_vm2, %v2504_v10, %v10950_v55  ;;  %v10953_v9 = vrot.slane %v7224_v62, 6  ;;  %v3181_v58 = vsel %vm2069_vm6, %v7047_v20, %v10954_v13 }
 0x293   : > { %v2535_v21 = vsel %vm1872_vm7, %v10949_v6, %v10948_v35  ;;  %v2509_v52 = vsel %vm480_vm2, %v2507_v42, %v10951_v39  ;;  %v2514_v57 = vadd.f32 %v2506_v46, %v2485_v24  ;;  %v2245_v45 = vadd.f32 %v2237_v40, %v2214_v36  ;;  %v10957_v40 = vld [vmem:[#allocation7_spill] sm:$0xff] }
 0x294   : > { %4493 = vrot.lane.b32.xlu2 %v10947_v16, %s5547_s15  ;;  %v7307_v48 = vadd.f32 %v2509_v52, %v2486_v27  ;;  %v7309_v16 = vpop.permute.xlu0 %3480  ;;  %v2268_v35 = vsel %vm1947_vm11, %v2266_v54, %v10953_v9  ;;  %v3184_v10 = vmul.f32 %v7047_v20, %v6843_v47  ;;  %v7321_v55 = vmul.f32 %v7047_v20, %v6839_v11  ;;  %v7323_v27 = vpop.permute.xlu1 %2804  ;;  %v10960_v9 = vld [vmem:[#allocation37_spill] sm:$0xff] }
 0x295   : > { %v2276_v46 = vadd.f32 %v2268_v35, %v2245_v45  ;;  %v3185_v42 = vmul.f32 %v3181_v58, %v6860_v29  ;;  %v7327_v36 = vmul.f32 %v3181_v58, %v6848_v44  ;;  %v2543_v54 = vadd.f32 %v2535_v21, %v2514_v57  ;;  %v10963_v58 = vld [vmem:[#allocation79_spill] sm:$0xff] }
 0x296   : > { %10952 = vst [vmem:[#allocation108_spill] sm:$0xff] %v7307_v48  ;;  %v10958_v24 = vrot.slane %v7210_v19, 7  ;;  %v10959_v6 = vrot.slane %v7017_v34, 7  ;;  %v3192_v20 = vrot.slane %v3184_v10, 2  ;;  %v10578_v52 = vrot.slane %v7321_v55, 2  ;;  %v10962_v34 = vld [vmem:[#allocation61_spill] sm:$0xff] }
 0x297   : > { %10955 = vst [vmem:[#allocation51_spill] sm:$0xff] %v7321_v55  ;;  %v2551_v45 = vsel %vm2452_vm8, %v7068_v4, %v10960_v9  ;;  %v3195_v13 = vrot.slane %v3185_v42, 2  ;;  %v2554_v57 = vmul.f32 %v7068_v4, %v6843_v47  ;;  %v1667_v10 = vadd.f32 %v10963_v58, %v10962_v34 }
 0x298   : > { %10956 = vst [vmem:[#allocation109_spill] sm:$0xff] %v7327_v36  ;;  %3660 = vrot.lane.b32.xlu1 %v10957_v40, %s5545_s11  ;;  %v2299_v39 = vsel %vm1972_vm12, %v10959_v6, %v10958_v24  ;;  %v3194_v24 = vsel %vm480_vm2, %v3192_v20, %v10578_v52  ;;  %v2555_v6 = vmul.f32 %v2551_v45, %v6860_v29  ;;  %v10965_v42 = vrot.slane %v7244_v31, 3  ;;  %v10968_v52 = vld [vmem:[#allocation5_spill] sm:$0xff] }
 0x299   : > { %v7340_v35 = vadd.f32 %v2299_v39, %v2276_v46  ;;  %v7355_v46 = vmul.f32 %v7068_v4, %v6839_v11  ;;  %v10966_v39 = vrot.slane %v7045_v37, 3  ;;  %v7364_v21 = vmul.f32 %v7219_v3, %v6860_v29  ;;  %v1718_v4 = vpop.f32.mrf.mxu2 }
 0x29a   : > { %3801 = vrot.lane.b32.xlu0 %v6846_v7, %s5545_s11  ;;  %v10967_v34 = vrot.slane %v7327_v36, 2  ;;  %v3202_v58 = vadd.f32 %v3194_v24, %v3173_v23  ;;  %v7373_v31 = vmul.f32 %v2551_v45, %v6848_v44  ;;  %v2562_v37 = vrot.slane %v2554_v57, 4  ;;  %v10974_v36 = vld [vmem:[#allocation66_spill] sm:$0xff] }
 0x29b   : > { %10961 = vst [vmem:[#allocation37_spill] sm:$0xff] %v7340_v35  ;;  %v3223_v9 = vsel %vm1872_vm7, %v10966_v39, %v10965_v42  ;;  %v10583_v42 = vrot.slane %v7355_v46, 4  ;;  %v7376_v39 = vpop.permute.xlu2 %2736  ;;  %v1779_v48 = vadd.f32 %v1667_v10, %v7003_v8 }
 0x29c   : > { %10964 = vst [vmem:[#allocation61_spill] sm:$0xff] %v7355_v46  ;;  %v3197_v20 = vsel %vm480_vm2, %v3195_v13, %v10967_v34  ;;  %4440 = vrot.lane.b32.xlu2 %v10968_v52, %s5547_s15  ;;  %v2565_v13 = vrot.slane %v2555_v6, 4  ;;  %v3231_v23 = vadd.f32 %v3223_v9, %v3202_v58  ;;  %v7380_v24 = vpop.permute.xlu0 %3494  ;;  %v7384_v34 = vmul.f32 %v6671_v0, %v6839_v11  ;;  %v10972_v6 = vld [vmem:[#allocation62_spill] sm:$0xff]  ;;  %v10973_v58 = vld [vmem:[#allocation47_spill] sm:$0xff] }
 0x29d   : > { %v3203_v19 = vadd.f32 %v3197_v20, %v7248_v63  ;;  %10969 = vst [vmem:[#allocation79_spill] sm:$0xff] %v7373_v31  ;;  %v2564_v63 = vsel %vm1897_vm9, %v2562_v37, %v10583_v42  ;;  %v10584_v45 = vrot.slane %v7373_v31, 4  ;;  %v7391_v20 = vpop.permute.xlu1 %2833  ;;  %v7395_v9 = vadd.f32 %v1718_v4, %v10972_v6  ;;  %v10975_v37 = vld [vmem:[#allocation67_spill] sm:$0xff] }
 0x29e   : > { %10970 = vst [vmem:[#allocation110_spill] sm:$0xff] %v7376_v39  ;;  %v7400_v0 = vsel %vm418_vm1, %v10974_v36, %v10973_v58  ;;  %v2572_v39 = vadd.f32 %v2564_v63, %v2543_v54  ;;  %v7405_v42 = vmax.f32 %v10975_v37, 0.0  ;;  %v3242_v54 = vmul.f32 %v7131_v38, %v6843_v47  ;;  %v10981_v58 = vld [vmem:[#allocation56_spill] sm:$0xff]  ;;  %v10986_v37 = vld [vmem:[#allocation57_spill] sm:$0xff] }
 0x29f   : > { %10971 = vst [vmem:[#allocation111_spill] sm:$0xff] %v7384_v34  ;;  %v3232_v57 = vadd.f32 %v6966_v53, %v3203_v19  ;;  %v7411_v8 = vsel %vm1897_vm9, %v2565_v13, %v10584_v45  ;;  %v10978_v19 = vld [vmem:[#allocation36_spill] sm:$0xff]  ;;  %v7421_v63 = vmul.f32 %v7131_v38, %v6839_v11  ;;  %v7430_v13 = vmul.f32 %v6788_v22, %v6839_v11 }
 0x2a0   : > { %3740 = vrot.lane.b32.xlu1 %v6480_v30, %s5545_s11  ;;  %10976 = vst [vmem:[#allocation62_spill] sm:$0xff] %v7405_v42  ;;  %v3239_v10 = vsel %vm2069_vm6, %v7131_v38, %v10978_v19  ;;  %v2612_v19 = vmul.f32 %v7161_v60, %v6843_v47  ;;  %v7437_v45 = vmul.f32 %v7161_v60, %v6839_v11  ;;  %v3250_v38 = vrot.slane %v3242_v54, 4  ;;  %v10985_v22 = vld [vmem:[#allocation60_spill] sm:$0xff]  ;;  %v11054_v60 = vld [vmem:[#allocation27_spill] sm:$0xff] }
 0x2a1   : > { %10977 = vst [vmem:[#allocation47_spill] sm:$0xff] %v7411_v8  ;;  %v3243_v4 = vmul.f32 %v3239_v10, %v6860_v29  ;;  %v7424_v6 = vmul.f32 %v3239_v10, %v6848_v44  ;;  %v10592_v10 = vrot.slane %v7421_v63, 4  ;;  %v10984_v8 = vld [vmem:[#allocation15_spill] sm:$0xff]  ;;  %v2092_v46 = vmul.f32 %v10985_v22, %v6839_v11 }
 0x2a2   : > { %10979 = vst [vmem:[#allocation66_spill] sm:$0xff] %v7421_v63  ;;  %3844 = vrot.lane.b32.xlu0 %v10981_v58, %s5545_s11  ;;  %v7446_v35 = vadd.f32 %v10986_v37, %v1779_v48  ;;  %v2620_v55 = vrot.slane %v2612_v19, 6  ;;  %v7451_v54 = vmul.f32 %v6743_v12, %v6839_v11  ;;  %v10595_v19 = vrot.slane %v7430_v13, 7 }
 0x2a3   : > { %10980 = vst [vmem:[#allocation67_spill] sm:$0xff] %v7424_v6  ;;  %v3253_v53 = vrot.slane %v3243_v4, 4  ;;  %v7455_v4 = vmul.f32 %v6978_v61, %v6848_v44  ;;  %v3252_v31 = vsel %vm1897_vm9, %v3250_v38, %v10592_v10  ;;  %v10989_v22 = vrot.slane %v7424_v6, 4  ;;  %v7475_v63 = vpop.permute.xlu2 %3051 }
 0x2a4   : > { %10982 = vst [vmem:[#allocation36_spill] sm:$0xff] %v7430_v13  ;;  %4575 = vrot.lane.b32.xlu2 %v10984_v8, %s5547_s15  ;;  %v7463_v37 = vpop.permute.xlu0 %3535  ;;  %v10990_v56 = vrot.slane %v7384_v34, 5  ;;  %v10991_v12 = vrot.slane %v7025_v49, 5  ;;  %v7471_v61 = vadd.f32 %v3252_v31, %v3231_v23  ;;  %v10997_v49 = vrot.slane %v7437_v45, 6 }
 0x2a5   : > { %10983 = vst [vmem:[#allocation112_spill] sm:$0xff] %v7437_v45  ;;  %v3255_v48 = vsel %vm1897_vm9, %v3253_v53, %v10989_v22  ;;  %v7477_v38 = vpop.permute.xlu1 %2891  ;;  %v7481_v53 = vmul.f32 %v6692_v32, %v6839_v11  ;;  %v7485_v22 = vmul.f32 %v6721_v14, %v6839_v11  ;;  %v7498_v32 = vmul.f32 %v7037_v18, %v6848_v44 }
 0x2a6   : > { %10987 = vst [vmem:[#allocation60_spill] sm:$0xff] %v7451_v54  ;;  %v2593_v8 = vsel %vm1922_vm10, %v10991_v12, %v10990_v56  ;;  %v7473_v41 = vadd.f32 %v3255_v48, %v3232_v57  ;;  %v2622_v12 = vsel %vm1947_vm11, %v2620_v55, %v10997_v49  ;;  %v7494_v56 = vmul.f32 %v6988_v2, %v6848_v44  ;;  %v11003_v57 = vld [vmem:[#allocation8_spill] sm:$0xff] }
 0x2a7   : > { %10988 = vst [vmem:[#allocation57_spill] sm:$0xff] %v7455_v4  ;;  %v2601_v10 = vadd.f32 %v2593_v8, %v2572_v39  ;;  %v7502_v14 = vmul.f32 %v6993_v15, %v6848_v44  ;;  %v7506_v31 = vmul.f32 %v7066_v51, %v6848_v44  ;;  %v7510_v55 = vmul.f32 %v7000_v59, %v6848_v44  ;;  %v11001_v39 = vld [vmem:[#allocation86_spill] sm:$0xff]  ;;  %v11007_v59 = vld [vmem:[#allocation97_spill] sm:$0xff]  ;;  %v11018_v51 = vld [vmem:[#allocation80_spill] sm:$0xff] }
 0x2a8   : > { %10992 = vst [vmem:[#allocation113_spill] sm:$0xff] %v7471_v61  ;;  %3783 = vrot.lane.b32.xlu1 %v6598_v33, %s5545_s11  ;;  %v7514_v2 = vmul.f32 %v11001_v39, %v6848_v44  ;;  %v11004_v15 = vld [vmem:[#allocation70_spill] sm:$0xff]  ;;  %v7524_v49 = vmul.f32 %v10974_v36, %v6843_v47  ;;  %v11008_v39 = vrot.slane %v11007_v59, 7  ;;  %v11011_v23 = vrot.slane %v7451_v54, 5 }
 0x2a9   : > { %10993 = vst [vmem:[#allocation114_spill] sm:$0xff] %v7473_v41  ;;  %v2630_v18 = vadd.f32 %v2622_v12, %v2601_v10  ;;  %v11005_v8 = vrot.slane %v11004_v15, 1  ;;  %v11009_v10 = vld [vmem:[#allocation77_spill] sm:$0xff]  ;;  %v11019_v59 = vrot.slane %v11018_v51, 2  ;;  %v11026_v51 = vld [vmem:[#allocation40_spill] sm:$0xff] }
 0x2aa   : > { %10994 = vst [vmem:[#allocation115_spill] sm:$0xff] %v7475_v63  ;;  %4016 = vrot.lane.b32.xlu0 %v11003_v57, %s5546_s14  ;;  %v2651_v33 = vsel %vm1972_vm12, %v11008_v39, %v10595_v19  ;;  %v2093_v12 = vmul.f32 %v11009_v10, %v6848_v44  ;;  %v11012_v15 = vld [vmem:[#allocation89_spill] sm:$0xff]  ;;  %v11020_v39 = vrot.slane %v7455_v4, 4  ;;  %v11021_v19 = vld [vmem:[#allocation90_spill] sm:$0xff] }
 0x2ab   : > { %10995 = vst [vmem:[#allocation116_spill] sm:$0xff] %v7481_v53  ;;  %v2123_v48 = vadd.f32 %v11005_v8, %v2092_v46  ;;  %v7535_v46 = vadd.f32 %v2651_v33, %v2630_v18  ;;  %v11013_v33 = vrot.slane %v11012_v15, 5  ;;  %v11023_v15 = vld [vmem:[#allocation38_spill] sm:$0xff]  ;;  %v7599_v61 = vpop.permute.xlu2 %3395 }
 0x2ac   : > { %10996 = vst [vmem:[#allocation117_spill] sm:$0xff] %v7485_v22  ;;  %4618 = vrot.lane.b32.xlu2 %v10957_v40, %s5547_s15  ;;  %v11015_v40 = vld [vmem:[#allocation73_spill] sm:$0xff]  ;;  %v7554_v45 = vpop.permute.xlu0 %3617  ;;  %v11022_v22 = vrot.slane %v11021_v19, 4  ;;  %v7567_v54 = vmul.f32 %v11023_v15, %v7405_v42 }
 0x2ad   : > { %10998 = vst [vmem:[#allocation118_spill] sm:$0xff] %v7502_v14  ;;  %v7550_v18 = vsel %vm1922_vm10, %v11013_v33, %v11011_v23  ;;  %v11016_v13 = vrot.slane %v11015_v40, 1  ;;  %v2154_v34 = vadd.f32 %v11019_v59, %v2123_v48  ;;  %v11025_v23 = vld [vmem:[#allocation44_spill] sm:$0xff]  ;;  %v7576_v48 = vmul.f32 %v11026_v51, %v7405_v42  ;;  %v11043_v14 = vld [vmem:[#allocation82_spill] sm:$0xff] }
 0x2ae   : > { %10999 = vst [vmem:[#allocation119_spill] sm:$0xff] %v7506_v31  ;;  %v7563_v10 = vsel %vm1897_vm9, %v11022_v22, %v11020_v39  ;;  %v2808_v40 = vsel %vm418_vm1, %v7323_v27, %v11025_v23  ;;  %v11030_v22 = vld [vmem:[#allocation41_spill] sm:$0xff]  ;;  %v11032_v39 = vld [vmem:[#allocation48_spill] sm:$0xff]  ;;  %v2811_v33 = vmul.f32 %v7323_v27, %v6843_v47 }
 0x2af   : > { %11000 = vst [vmem:[#allocation120_spill] sm:$0xff] %v7510_v55  ;;  %v2124_v8 = vadd.f32 %v11016_v13, %v2093_v12  ;;  %v7572_v13 = vpop.permute.xlu1 %2920  ;;  %v11028_v12 = vld [vmem:[#allocation29_spill] sm:$0xff]  ;;  %v7585_v59 = vsel %vm418_vm1, %v7250_v43, %v11030_v22  ;;  %v2812_v23 = vmul.f32 %v2808_v40, %v6860_v29  ;;  %v7597_v41 = vmul.f32 %v2808_v40, %v6848_v44  ;;  %v11036_v22 = vld [vmem:[#allocation43_spill] sm:$0xff] }
 0x2b0   : > { %11002 = vst [vmem:[#allocation86_spill] sm:$0xff] %v7514_v2  ;;  %v7580_v19 = vmul.f32 %v11028_v12, %v7405_v42  ;;  %3842 = vrot.lane.b32.xlu1 %v11032_v39, %s5545_s11  ;;  %v7594_v2 = vmul.f32 %v7323_v27, %v6839_v11  ;;  %v11038_v55 = vld [vmem:[#allocation45_spill] sm:$0xff]  ;;  %v3498_v27 = vsel %vm3121_vm13, %v7380_v24, %v11026_v51  ;;  %v11042_v40 = vld [vmem:[#allocation11_spill] sm:$0xff] }
 0x2b1   : > { %11006 = vst [vmem:[#allocation70_spill] sm:$0xff] %v7524_v49  ;;  %v7607_v53 = vmul.f32 %v11038_v55, %v7405_v42  ;;  %v2822_v4 = vrot.slane %v2812_v23, 1  ;;  %v10621_v31 = vrot.slane %v7597_v41, 1 }
 0x2b2   : > { %11010 = vst [vmem:[#allocation97_spill] sm:$0xff] %v7535_v46  ;;  %v11040_v46 = vld [vmem:[#allocation75_spill] sm:$0xff]  ;;  %4098 = vrot.lane.b32.xlu0 %v11042_v40, %s5546_s14 }
 0x2b3   : > { %11014 = vst [vmem:[#allocation77_spill] sm:$0xff] %v7550_v18  ;;  %v7603_v18 = vmul.f32 %v11036_v22, %v7405_v42  ;;  %v11041_v63 = vrot.slane %v11040_v46, 2  ;;  %v11044_v42 = vrot.slane %v11043_v14, 3  ;;  %v2824_v23 = vsel %vm414_vm0, %v2822_v4, %v10621_v31  ;;  %v11047_v14 = vld [vmem:[#allocation32_spill] sm:$0xff] }
 0x2b4   : > { %11017 = vst [vmem:[#allocation89_spill] sm:$0xff] %v7554_v45  ;;  %4698 = vrot.lane.b32.xlu2 %v6480_v30, %s5547_s15  ;;  %v7643_v46 = vmul.f32 %v11047_v14, %v6848_v44  ;;  %v7651_v30 = vmul.f32 %v3498_v27, %v6848_v44  ;;  %v7653_v4 = vpop.permute.xlu0 %2315  ;;  %v2800_v31 = vmul.f32 %v7250_v43, %v6843_v47 }
 0x2b5   : > { %11024 = vst [vmem:[#allocation73_spill] sm:$0xff] %v7567_v54  ;;  %v7611_v57 = vadd.f32 %v11041_v63, %v2124_v8  ;;  %v2801_v63 = vmul.f32 %v7585_v59, %v6860_v29  ;;  %v3503_v8 = vmul.f32 %v3498_v27, %v6860_v29  ;;  %v2840_v27 = vmul.f32 %v7391_v20, %v6843_v47 }
 0x2b6   : > { %11027 = vst [vmem:[#allocation80_spill] sm:$0xff] %v7576_v48  ;;  %v7671_v43 = vmul.f32 %v7391_v20, %v6839_v11 }
 0x2b7   : > { %11029 = vst [vmem:[#allocation90_spill] sm:$0xff] %v7580_v19  ;;  %v2830_v6 = vadd.f32 %v2824_v23, %v2801_v63  ;;  %v3517_v14 = vrot.slane %v3503_v8, 1  ;;  %v7663_v5 = vpop.permute.xlu1 %3264  ;;  %v2848_v55 = vrot.slane %v2840_v27, 2  ;;  %v2898_v19 = vmul.f32 %v7477_v38, %v6843_v47 }
 0x2b8   : > { %11031 = vst [vmem:[#allocation44_spill] sm:$0xff] %v7585_v59  ;;  %v11051_v59 = vld [vmem:[#allocation22_spill] sm:$0xff] }
 0x2b9   : > { %11033 = vst [vmem:[#allocation40_spill] sm:$0xff] %v7594_v2  ;;  %v2837_v54 = vsel %vm418_vm1, %v7391_v20, %v11051_v59  ;;  %v10633_v20 = vrot.slane %v7671_v43, 2 }
 0x2ba   : > { %11034 = vst [vmem:[#allocation29_spill] sm:$0xff] %v7597_v41  ;;  %v2841_v23 = vmul.f32 %v2837_v54, %v6860_v29  ;;  %v7679_v63 = vmul.f32 %v2837_v54, %v6848_v44  ;;  %4178 = vrot.lane.b32.xlu0 %v11054_v60, %s5546_s14  ;;  %v7690_v54 = vpop.permute.xlu2 %3701  ;;  %v11057_v60 = vld [vmem:[#allocation28_spill] sm:$0xff] }
 0x2bb   : > { %11035 = vst [vmem:[#allocation41_spill] sm:$0xff] %v7599_v61  ;;  %v2819_v61 = vrot.slane %v2811_v33, 1  ;;  %v11045_v33 = vld [vmem:[#allocation63_spill] sm:$0xff]  ;;  %v2850_v27 = vsel %vm480_vm2, %v2848_v55, %v10633_v20  ;;  %v3539_v55 = vsel %vm3121_vm13, %v7463_v37, %v11028_v12 }
 0x2bc   : > { %11037 = vst [vmem:[#allocation43_spill] sm:$0xff] %v7603_v18  ;;  %v7630_v40 = vmul.f32 %v11045_v33, %v6839_v11  ;;  %v7648_v33 = vsel %vm3121_vm13, %v7309_v16, %v11023_v15  ;;  %v2851_v58 = vrot.slane %v2841_v23, 2  ;;  %4761 = vrot.lane.b32.xlu2 %v11057_v60, %s5547_s15  ;;  %v11065_v18 = vld [vmem:[#allocation25_spill] sm:$0xff] }
 0x2bd   : > { %11039 = vst [vmem:[#allocation121_spill] sm:$0xff] %v7607_v53  ;;  %v2185_v53 = vadd.f32 %v11044_v42, %v2154_v34  ;;  %v3502_v42 = vmul.f32 %v7380_v24, %v6843_v47  ;;  %v7639_v34 = vmul.f32 %v7380_v24, %v6839_v11  ;;  %v11050_v24 = vrot.slane %v7594_v2, 1 }
 0x2be   : > { %11048 = vst [vmem:[#allocation82_spill] sm:$0xff] %v7648_v33  ;;  %v3489_v8 = vmul.f32 %v7648_v33, %v6860_v29  ;;  %v11053_v2 = vrot.slane %v7651_v30, 1 }
 0x2bf   : > { %11046 = vst [vmem:[#allocation75_spill] sm:$0xff] %v7639_v34  ;;  %v2821_v41 = vsel %vm414_vm0, %v2819_v61, %v11050_v24  ;;  %v11052_v61 = vld [vmem:[#allocation35_spill] sm:$0xff]  ;;  %v3514_v59 = vrot.slane %v3502_v42, 1  ;;  %v10634_v42 = vrot.slane %v7643_v46, 3  ;;  %v10632_v24 = vrot.slane %v7679_v63, 2 }
 0x2c0   : > { %11049 = vst [vmem:[#allocation63_spill] sm:$0xff] %v7651_v30  ;;  %3885 = vrot.lane.b32.xlu1 %v11052_v61, %s5545_s11  ;;  %v3519_v48 = vsel %vm414_vm0, %v3517_v14, %v11053_v2  ;;  %v2829_v33 = vadd.f32 %v2821_v41, %v2800_v31  ;;  %v11056_v2 = vrot.slane %v7153_v26, 4  ;;  %v11058_v41 = vrot.slane %v7639_v34, 1 }
 0x2c1   : > { %11055 = vst [vmem:[#allocation32_spill] sm:$0xff] %v7690_v54  ;;  %v3530_v23 = vadd.f32 %v3519_v48, %v3489_v8  ;;  %v2853_v30 = vsel %vm480_vm2, %v2851_v58, %v10632_v24  ;;  %v3543_v48 = vmul.f32 %v7463_v37, %v6843_v47  ;;  %v7714_v8 = vpop.permute.xlu0 %2394  ;;  %v11108_v54 = vld [vmem:[#allocation31_spill] sm:$0xff] }
 0x2c2   : > { %v2216_v14 = vadd.f32 %v11056_v2, %v2185_v53  ;;  %v3516_v31 = vsel %vm414_vm0, %v3514_v59, %v11058_v41  ;;  %v2858_v26 = vadd.f32 %v2850_v27, %v2829_v33  ;;  %v3488_v53 = vmul.f32 %v7309_v16, %v6843_v47  ;;  %11059 = vst [vmem:[#allocation22_spill] sm:$0xff] %v7714_v8  ;;  %v7729_v27 = vpop.permute.xlu1 %3576  ;;  %v11063_v41 = vld [vmem:[#allocation52_spill] sm:$0xff] }
 0x2c3   : > { %v2859_v2 = vadd.f32 %v2853_v30, %v2830_v6  ;;  %v11060_v59 = vrot.slane %v7177_v1, 3  ;;  %v3544_v33 = vmul.f32 %v3539_v55, %v6860_v29  ;;  %v7724_v30 = vmul.f32 %v7463_v37, %v6839_v11  ;;  %v11064_v1 = vld [vmem:[#allocation24_spill] sm:$0xff]  ;;  %4221 = vrot.lane.b32.xlu0 %v10943_v50, %s5546_s14 }
 0x2c4   : > { %v7727_v6 = vmul.f32 %v3539_v55, %v6848_v44  ;;  %v1780_v24 = vadd.f32 %v7395_v9, %v11063_v41  ;;  %v3529_v20 = vadd.f32 %v3516_v31, %v3488_v53  ;;  %v3555_v15 = vrot.slane %v3543_v48, 2  ;;  %4800 = vrot.lane.b32.xlu2 %v11032_v39, %s5547_s15 }
 0x2c5   : > { %v2882_v58 = vsel %vm1872_vm7, %v11060_v59, %v10634_v42  ;;  %11061 = vst [vmem:[#allocation122_spill] sm:$0xff] %v7724_v30  ;;  %v10638_v59 = vrot.slane %v7724_v30, 2  ;;  %v3558_v42 = vrot.slane %v3544_v33, 2  ;;  %v2895_v55 = vsel %vm418_vm1, %v7477_v38, %v11065_v18 }
 0x2c6   : > { %11062 = vst [vmem:[#allocation123_spill] sm:$0xff] %v7727_v6  ;;  %v2888_v8 = vadd.f32 %v2882_v58, %v2859_v2  ;;  %v10637_v37 = vrot.slane %v7727_v6, 2  ;;  %v2899_v9 = vmul.f32 %v2895_v55, %v6860_v29  ;;  %v7745_v31 = vmul.f32 %v7477_v38, %v6839_v11  ;;  %v11066_v2 = vld [vmem:[#allocation76_spill] sm:$0xff]  ;;  %v11106_v6 = vld [vmem:[#allocation65_spill] sm:$0xff] }
 0x2c7   : > { %v7748_v53 = vmul.f32 %v2895_v55, %v6848_v44  ;;  %v11067_v48 = vrot.slane %v11066_v2, 3  ;;  %v11068_v18 = vrot.slane %v7630_v40, 3  ;;  %v11069_v33 = vrot.slane %v7157_v28, 3 }
 0x2c8   : > { %3959 = vrot.lane.b32.xlu1 %v11064_v1, %s5546_s14  ;;  %v3557_v38 = vsel %vm480_vm2, %v3555_v15, %v10638_v59  ;;  %v3560_v55 = vsel %vm480_vm2, %v3558_v42, %v10637_v37  ;;  %v10640_v2 = vrot.slane %v7745_v31, 4  ;;  %v7777_v28 = vmul.f32 %v7219_v3, %v6848_v44 }
 0x2c9   : > { %v7755_v58 = vadd.f32 %v11067_v48, %v7611_v57  ;;  %v2879_v41 = vsel %vm1872_vm7, %v11069_v33, %v11068_v18  ;;  %v7768_v1 = vadd.f32 %v3557_v38, %v3529_v20  ;;  %v7770_v60 = vadd.f32 %v3560_v55, %v3530_v23  ;;  %v7780_v33 = vpop.permute.xlu2 %3781  ;;  %v11072_v23 = vld [vmem:[#allocation58_spill] sm:$0xff]  ;;  %v7790_v3 = vpop.permute.xlu0 %2665 }
 0x2ca   : > { %v2906_v57 = vrot.slane %v2898_v19, 4  ;;  %v2887_v48 = vadd.f32 %v2879_v41, %v2858_v26  ;;  %v2909_v15 = vrot.slane %v2899_v9, 4  ;;  %v10639_v18 = vrot.slane %v7748_v53, 4  ;;  %11070 = vst [vmem:[#allocation52_spill] sm:$0xff] %v7780_v33  ;;  %v11074_v9 = vld [vmem:[#allocation98_spill] sm:$0xff] }
 0x2cb   : > { %v11071_v20 = vrot.slane %v7206_v17, 5  ;;  %v1797_v19 = vadd.f32 %v11072_v23, %v1780_v24  ;;  %v3625_v55 = vmul.f32 %v7554_v45, %v6843_v47  ;;  %v7794_v26 = vmul.f32 %v10974_v36, %v6839_v11  ;;  %4280 = vrot.lane.b32.xlu0 %v6846_v7, %s5546_s14  ;;  %v11094_v7 = vld [vmem:[#allocation92_spill] sm:$0xff] }
 0x2cc   : > { %v2908_v38 = vsel %vm1897_vm9, %v2906_v57, %v10640_v2  ;;  %v7797_v41 = vmax.f32 %v11074_v9, 0.0  ;;  %v2911_v17 = vsel %vm1897_vm9, %v2909_v15, %v10639_v18  ;;  %v7808_v57 = vmul.f32 %v7400_v0, %v6860_v29  ;;  %v11080_v9 = vld [vmem:[#allocation23_spill] sm:$0xff]  ;;  %4843 = vrot.lane.b32.xlu2 %v11052_v61, %s5547_s15 }
 0x2cd   : > { %v2247_v42 = vadd.f32 %v11071_v20, %v2216_v14  ;;  %11073 = vst [vmem:[#allocation25_spill] sm:$0xff] %v7794_v26  ;;  %v7802_v24 = vadd.f32 %v2908_v38, %v2887_v48  ;;  %v7804_v14 = vpop.permute.xlu1 %2363  ;;  %v7812_v20 = vmul.f32 %v7400_v0, %v6848_v44  ;;  %v7814_v36 = vadd.f32 %v2911_v17, %v2888_v8  ;;  %v11087_v48 = vld [vmem:[#allocation71_spill] sm:$0xff] }
 0x2ce   : > { %11075 = vst [vmem:[#allocation76_spill] sm:$0xff] %v7797_v41  ;;  %v7818_v23 = vmul.f32 %v7554_v45, %v6839_v11  ;;  %v7824_v15 = vmax.f32 %v7446_v35, 0.0  ;;  %v3637_v38 = vrot.slane %v3625_v55, 4  ;;  %v2924_v0 = vsel %vm418_vm1, %v7572_v13, %v11080_v9 }
 0x2cf   : > { %11076 = vst [vmem:[#allocation58_spill] sm:$0xff] %v7808_v57  ;;  %v11081_v8 = vrot.slane %v7224_v62, 6  ;;  %v2928_v18 = vmul.f32 %v2924_v0, %v6860_v29  ;;  %v7838_v35 = vmax.f32 %v1797_v19, 0.0  ;;  %v3507_v9 = vmul.f32 %v11026_v51, %v7797_v41  ;;  %v11085_v51 = vld [vmem:[#allocation49_spill] sm:$0xff] }
 0x2d0   : > { %11077 = vst [vmem:[#allocation98_spill] sm:$0xff] %v7812_v20  ;;  %3961 = vrot.lane.b32.xlu1 %v10968_v52, %s5546_s14  ;;  %v10642_v59 = vrot.slane %v7818_v23, 4  ;;  %v7844_v62 = vmul.f32 %v2924_v0, %v6848_v44  ;;  %v2458_v19 = vmul.f32 %v6827_v25, %v6839_v11  ;;  %v2459_v0 = vmul.f32 %v11085_v51, %v6848_v44 }
 0x2d1   : > { %11078 = vst [vmem:[#allocation124_spill] sm:$0xff] %v7818_v23  ;;  %v7831_v17 = vadd.f32 %v11081_v8, %v2247_v42  ;;  %v2938_v2 = vrot.slane %v2928_v18, 5  ;;  %v11086_v42 = vld [vmem:[#allocation85_spill] sm:$0xff]  ;;  %v3146_v39 = vmul.f32 %v11087_v48, %v6839_v11  ;;  %v11089_v18 = vld [vmem:[#allocation91_spill] sm:$0xff]  ;;  %v11091_v52 = vrot.slane %v7777_v28, 6 }
 0x2d2   : > { %11079 = vst [vmem:[#allocation125_spill] sm:$0xff] %v7824_v15  ;;  %v7851_v37 = vsel %vm1897_vm9, %v3637_v38, %v10642_v59  ;;  %v2215_v8 = vadd.f32 %v7563_v10, %v11086_v42  ;;  %v11088_v38 = vrot.slane %v7494_v56, 5  ;;  %v11090_v59 = vrot.slane %v11089_v18, 5  ;;  %v7879_v42 = vpop.permute.xlu0 %2738 }
 0x2d3   : > { %11082 = vst [vmem:[#allocation23_spill] sm:$0xff] %v7831_v17  ;;  %v11092_v25 = vrot.slane %v7364_v21, 6  ;;  %v11093_v55 = vrot.slane %v7498_v32, 7  ;;  %v11095_v33 = vrot.slane %v11094_v7, 7  ;;  %v7883_v48 = vmul.f32 %v11028_v12, %v7797_v41  ;;  %v11102_v12 = vld [vmem:[#allocation94_spill] sm:$0xff] }
 0x2d4   : > { %11083 = vst [vmem:[#allocation126_spill] sm:$0xff] %v7838_v35  ;;  %v2240_v61 = vsel %vm1922_vm10, %v11090_v59, %v11088_v38  ;;  %v3521_v18 = vrot.slane %v3507_v9, 1  ;;  %v11098_v59 = vld [vmem:[#allocation30_spill] sm:$0xff]  ;;  %v11099_v21 = vrot.slane %v7844_v62, 5  ;;  %v7903_v9 = vsel %vm2086_vm5, %v11102_v12, %v7653_v4  ;;  %v11110_v4 = vld [vmem:[#allocation21_spill] sm:$0xff] }
 0x2d5   : > { %11084 = vst [vmem:[#allocation127_spill] sm:$0xff] %v7851_v37  ;;  %v2271_v51 = vsel %vm1947_vm11, %v11092_v25, %v11091_v52  ;;  %v2302_v10 = vsel %vm1972_vm12, %v11095_v33, %v11093_v55  ;;  %v3147_v38 = vmul.f32 %v11098_v59, %v6848_v44  ;;  %v7892_v25 = vpop.permute.xlu2 %3803  ;;  %v7894_v7 = vpop.permute.xlu1 %2709  ;;  %v7898_v33 = vmul.f32 %v11036_v22, %v7797_v41  ;;  %v11103_v59 = vld [vmem:[#allocation26_spill] sm:$0xff] }
 0x2d6   : > { %11096 = vst [vmem:[#allocation49_spill] sm:$0xff] %v7879_v42  ;;  %v7890_v52 = vsel %vm1922_vm10, %v2938_v2, %v11099_v21  ;;  %v2246_v55 = vadd.f32 %v2240_v61, %v2215_v8  ;;  %v3268_v42 = vsel %vm2069_vm6, %v7663_v5, %v11103_v59  ;;  %v11104_v2 = vld [vmem:[#allocation13_spill] sm:$0xff]  ;;  %v11105_v21 = vld [vmem:[#allocation38_spill] sm:$0xff]  ;;  %v11107_v17 = vrot.slane %v11106_v6, 1 }
 0x2d7   : > { %11097 = vst [vmem:[#allocation85_spill] sm:$0xff] %v7883_v48  ;;  %v11109_v61 = vrot.slane %v11108_v54, 1  ;;  %v3272_v23 = vmul.f32 %v3268_v42, %v6860_v29  ;;  %v11111_v37 = vld [vmem:[#allocation46_spill] sm:$0xff]  ;;  %v2321_v59 = vmul.f32 %v7903_v9, %v6848_v44  ;;  %v7923_v34 = vmul.f32 %v3268_v42, %v6848_v44  ;;  %v11114_v6 = vld [vmem:[#allocation45_spill] sm:$0xff] }
 0x2d8   : > { %11100 = vst [vmem:[#allocation71_spill] sm:$0xff] %v7892_v25  ;;  %3973 = vrot.lane.b32.xlu1 %v11104_v2, %s5546_s14  ;;  %v3493_v25 = vmul.f32 %v11105_v21, %v7797_v41  ;;  %v2487_v45 = vadd.f32 %v11107_v17, %v2458_v19  ;;  %v2609_v30 = vsel %vm2452_vm8, %v11111_v37, %v11110_v4  ;;  %v11113_v21 = vld [vmem:[#allocation56_spill] sm:$0xff] }
 0x2d9   : > { %11101 = vst [vmem:[#allocation91_spill] sm:$0xff] %v7898_v33  ;;  %v2488_v8 = vadd.f32 %v11109_v61, %v2459_v0  ;;  %v2277_v50 = vadd.f32 %v2271_v51, %v2246_v55  ;;  %4323 = vrot.lane.b32.xlu0 %v11113_v21, %s5546_s14  ;;  %v7929_v54 = vmul.f32 %v11114_v6, %v7797_v41  ;;  %v11116_v17 = vld [vmem:[#allocation80_spill] sm:$0xff]  ;;  %v11118_v61 = vld [vmem:[#allocation105_spill] sm:$0xff]  ;;  %v3282_v55 = vrot.slane %v3272_v23, 5  ;;  %v11120_v21 = vld [vmem:[#allocation106_spill] sm:$0xff] }
 0x2da   : > { %11112 = vst [vmem:[#allocation92_spill] sm:$0xff] %v7923_v34  ;;  %v11117_v19 = vrot.slane %v11116_v17, 1  ;;  %v11119_v37 = vrot.slane %v11118_v61, 2  ;;  %v10664_v20 = vrot.slane %v7923_v34, 5  ;;  %v11121_v49 = vrot.slane %v11120_v21, 2 }
 0x2db   : > { %11115 = vst [vmem:[#allocation30_spill] sm:$0xff] %v7929_v54  ;;  %v2308_v57 = vadd.f32 %v2302_v10, %v2277_v50  ;;  %v2613_v41 = vmul.f32 %v2609_v30, %v6860_v29  ;;  %v7943_v17 = vmul.f32 %v2609_v30, %v6848_v44  ;;  %v7948_v23 = vadd.f32 %v3521_v18, %v3493_v25  ;;  %v3054_v10 = vpop.permute.xlu0 %3053  ;;  %v11158_v54 = vld [vmem:[#allocation118_spill] sm:$0xff] }
 0x2dc   : > { %v3522_v0 = vsel %vm414_vm0, %v11117_v19, %v3521_v18  ;;  %v2516_v51 = vadd.f32 %v11119_v37, %v2487_v45  ;;  %v2517_v26 = vadd.f32 %v11121_v49, %v2488_v8  ;;  %v3580_v45 = vsel %vm3121_vm13, %v7729_v27, %v11036_v22  ;;  %v11123_v19 = vld [vmem:[#allocation73_spill] sm:$0xff]  ;;  %v11128_v37 = vld [vmem:[#allocation99_spill] sm:$0xff] }
 0x2dd   : > { %11122 = vst [vmem:[#allocation26_spill] sm:$0xff] %v7948_v23  ;;  %v7951_v61 = vadd.f32 %v3522_v0, %v11123_v19  ;;  %v7953_v50 = vadd.f32 %v2321_v59, %v2308_v57  ;;  %v7958_v49 = vsel %vm1922_vm10, %v3282_v55, %v10664_v20  ;;  %v11126_v8 = vld [vmem:[#allocation101_spill] sm:$0xff]  ;;  %v11129_v42 = vrot.slane %v11128_v37, 1  ;;  %v11130_v18 = vld [vmem:[#allocation103_spill] sm:$0xff]  ;;  %v7968_v57 = vpop.permute.xlu1 %3024 }
 0x2de   : > { %11125 = vst [vmem:[#allocation65_spill] sm:$0xff] %v7958_v49  ;;  %v11127_v30 = vrot.slane %v11126_v8, 1  ;;  %v2320_v22 = vmul.f32 %v11102_v12, %v6839_v11  ;;  %v11131_v25 = vrot.slane %v11130_v18, 3  ;;  %v3584_v59 = vmul.f32 %v7729_v27, %v6843_v47  ;;  %v7987_v12 = vpop.permute.xlu2 %4055  ;;  %v11144_v20 = vld [vmem:[#allocation83_spill] sm:$0xff] }
 0x2df   : > { %11124 = vst [vmem:[#allocation38_spill] sm:$0xff] %v7951_v61  ;;  %v3176_v4 = vadd.f32 %v11129_v42, %v3147_v38  ;;  %v3585_v55 = vmul.f32 %v3580_v45, %v6860_v29  ;;  %v7975_v19 = vmul.f32 %v7729_v27, %v6839_v11  ;;  %v11133_v38 = vld [vmem:[#allocation6_spill] sm:$0xff]  ;;  %v11134_v42 = vld [vmem:[#allocation51_spill] sm:$0xff] }
 0x2e0   : > { %v3175_v21 = vadd.f32 %v11127_v30, %v3146_v39  ;;  %v2545_v0 = vadd.f32 %v11131_v25, %v2516_v51  ;;  %v7978_v39 = vmul.f32 %v3580_v45, %v6848_v44  ;;  %3975 = vrot.lane.b32.xlu1 %v11133_v38, %s5546_s14  ;;  %v11135_v8 = vrot.slane %v11134_v42, 2  ;;  %v11136_v30 = vld [vmem:[#allocation78_spill] sm:$0xff]  ;;  %11138 = vst [vmem:[#allocation21_spill] sm:$0xff] %v7987_v12  ;;  %v11139_v38 = vld [vmem:[#allocation37_spill] sm:$0xff]  ;;  %v11148_v45 = vld [vmem:[#allocation44_spill] sm:$0xff] }
 0x2e1   : > { %v11137_v37 = vrot.slane %v11136_v30, 3  ;;  %v2623_v25 = vrot.slane %v2613_v41, 6  ;;  %v3596_v33 = vrot.slane %v3584_v59, 3  ;;  %v3599_v61 = vrot.slane %v3585_v55, 3  ;;  %4452 = vrot.lane.b32.xlu0 %v11104_v2, %s5547_s15  ;;  %v11142_v41 = vld [vmem:[#allocation104_spill] sm:$0xff]  ;;  %v11145_v12 = vld [vmem:[#allocation61_spill] sm:$0xff] }
 0x2e2   : > { %11132 = vst [vmem:[#allocation31_spill] sm:$0xff] %v7978_v39  ;;  %v3204_v51 = vadd.f32 %v11135_v8, %v3175_v21  ;;  %v7994_v42 = vadd.f32 %v2320_v22, %v11139_v38  ;;  %v11140_v21 = vld [vmem:[#allocation109_spill] sm:$0xff]  ;;  %v2802_v30 = vmul.f32 %v11142_v41, %v6839_v11  ;;  %v11146_v27 = vrot.slane %v11145_v12, 4 }
 0x2e3   : > { %v2546_v18 = vadd.f32 %v11137_v37, %v2517_v26  ;;  %v11141_v8 = vrot.slane %v11140_v21, 2  ;;  %v11143_v37 = vld [vmem:[#allocation108_spill] sm:$0xff]  ;;  %v2803_v23 = vmul.f32 %v11148_v45, %v6848_v44  ;;  %v11149_v2 = vrot.slane %v7975_v19, 3  ;;  %v11156_v45 = vld [vmem:[#allocation29_spill] sm:$0xff] }
 0x2e4   : > { %v2544_v59 = vadd.f32 %v11144_v20, %v11143_v37  ;;  %v8004_v55 = vadd.f32 %v11146_v27, %v2545_v0  ;;  %v11150_v38 = vrot.slane %v7978_v39, 3  ;;  %v11151_v21 = vld [vmem:[#allocation40_spill] sm:$0xff]  ;;  %v11155_v0 = vld [vmem:[#allocation47_spill] sm:$0xff]  ;;  %v11157_v37 = vrot.slane %v11156_v45, 1 }
 0x2e5   : > { %v3205_v26 = vadd.f32 %v11141_v8, %v3176_v4  ;;  %v3598_v22 = vsel %vm1872_vm7, %v3596_v33, %v11149_v2  ;;  %v11152_v8 = vrot.slane %v11151_v21, 1  ;;  %v11159_v33 = vrot.slane %v11158_v54, 5  ;;  %v11160_v2 = vld [vmem:[#allocation93_spill] sm:$0xff]  ;;  %v11165_v21 = vld [vmem:[#allocation34_spill] sm:$0xff]  ;;  %v11169_v45 = vld [vmem:[#allocation55_spill] sm:$0xff] }
 0x2e6   : > { %11147 = vst [vmem:[#allocation46_spill] sm:$0xff] %v8004_v55  ;;  %v3601_v4 = vsel %vm1872_vm7, %v3599_v61, %v11150_v38  ;;  %v8017_v20 = vadd.f32 %v3598_v22, %v7768_v1  ;;  %v2573_v27 = vadd.f32 %v11155_v0, %v2544_v59  ;;  %v2832_v55 = vadd.f32 %v11157_v37, %v2803_v23  ;;  %v11163_v1 = vld [vmem:[#allocation119_spill] sm:$0xff]  ;;  %v3398_v59 = vpop.permute.xlu0 %3397  ;;  %v11170_v37 = vld [vmem:[#allocation17_spill] sm:$0xff] }
 0x2e7   : > { %v2831_v41 = vadd.f32 %v11152_v8, %v2802_v30  ;;  %v8020_v12 = vadd.f32 %v3601_v4, %v7770_v60  ;;  %v11161_v39 = vrot.slane %v11160_v2, 5  ;;  %v11162_v38 = vrot.slane %v7943_v17, 6  ;;  %v11167_v8 = vld [vmem:[#allocation18_spill] sm:$0xff] }
 0x2e8   : > { %11153 = vst [vmem:[#allocation80_spill] sm:$0xff] %v8017_v20  ;;  %v11164_v22 = vrot.slane %v11163_v1, 7  ;;  %v11166_v60 = vrot.slane %v11165_v21, 7  ;;  %v11168_v0 = vrot.slane %v11167_v8, 3  ;;  %v3297_v2 = vsel %vm2069_vm6, %v11170_v37, %v11169_v45  ;;  %v11181_v20 = vld [vmem:[#allocation66_spill] sm:$0xff] }
 0x2e9   : > { %11154 = vst [vmem:[#allocation105_spill] sm:$0xff] %v8020_v12  ;;  %v2596_v61 = vsel %vm1922_vm10, %v11161_v39, %v11159_v33  ;;  %v2625_v30 = vsel %vm1947_vm11, %v2623_v25, %v11162_v38  ;;  %v11171_v39 = vld [vmem:[#allocation107_spill] sm:$0xff]  ;;  %v8048_v25 = vpop.permute.xlu1 %3368  ;;  %v11172_v38 = vld [vmem:[#allocation81_spill] sm:$0xff]  ;;  %v11182_v34 = vrot.slane %v11181_v20, 4 }
 0x2ea   : > { %v2654_v4 = vsel %vm1972_vm12, %v11166_v60, %v11164_v22  ;;  %v3233_v23 = vadd.f32 %v11168_v0, %v3204_v51  ;;  %v2602_v12 = vadd.f32 %v2596_v61, %v2573_v27  ;;  %v8046_v33 = vsel %vm2452_vm8, %v11171_v39, %v7790_v3  ;;  %v11176_v0 = vld [vmem:[#allocation57_spill] sm:$0xff]  ;;  %v11178_v61 = vld [vmem:[#allocation19_spill] sm:$0xff] }
 0x2eb   : > { %v11173_v21 = vrot.slane %v11172_v38, 3  ;;  %v11174_v22 = vrot.slane %v7671_v43, 2  ;;  %v11175_v51 = vrot.slane %v7679_v63, 2  ;;  %v11177_v45 = vrot.slane %v11176_v0, 4  ;;  %4014 = vrot.lane.b32.xlu1 %v11178_v61, %s5546_s14  ;;  %v11179_v3 = vld [vmem:[#allocation79_spill] sm:$0xff] }
 0x2ec   : > { %v11180_v6 = vrot.slane %v11179_v3, 4  ;;  %v8065_v38 = vadd.f32 %v11182_v34, %v3233_v23  ;;  %v2671_v43 = vmul.f32 %v8046_v33, %v6848_v44  ;;  %v11183_v63 = vld [vmem:[#allocation67_spill] sm:$0xff]  ;;  %v11185_v34 = vld [vmem:[#allocation8_spill] sm:$0xff]  ;;  %v11189_v0 = vrot.slane %v7630_v40, 3 }
 0x2ed   : > { %v3234_v48 = vadd.f32 %v11173_v21, %v3205_v26  ;;  %v2860_v60 = vadd.f32 %v11174_v22, %v2831_v41  ;;  %v2861_v8 = vadd.f32 %v11175_v51, %v2832_v55  ;;  %v2217_v27 = vadd.f32 %v11177_v45, %v7755_v58  ;;  %4495 = vrot.lane.b32.xlu0 %v11185_v34, %s5547_s15  ;;  %v11188_v22 = vld [vmem:[#allocation97_spill] sm:$0xff] }
 0x2ee   : > { %v2575_v49 = vadd.f32 %v11180_v6, %v2546_v18  ;;  %v2631_v26 = vadd.f32 %v2625_v30, %v2602_v12  ;;  %v11184_v55 = vrot.slane %v11183_v63, 4  ;;  %v2670_v58 = vmul.f32 %v11171_v39, %v6839_v11  ;;  %v8091_v12 = vpop.permute.xlu2 %3883  ;;  %v11187_v30 = vld [vmem:[#allocation115_spill] sm:$0xff] }
 0x2ef   : > { %v8077_v21 = vmul.f32 %v11170_v37, %v6843_v47  ;;  %v8080_v6 = vmul.f32 %v3297_v2, %v6860_v29  ;;  %v8086_v18 = vmul.f32 %v11170_v37, %v6839_v11  ;;  %11186 = vst [vmem:[#allocation106_spill] sm:$0xff] %v8091_v12  ;;  %v3055_v23 = vsel %vm418_vm1, %v11187_v30, %v3054_v10 }
 0x2f0   : > { %v8071_v41 = vadd.f32 %v11184_v55, %v3234_v48  ;;  %v8089_v48 = vmul.f32 %v3297_v2, %v6848_v44  ;;  %v2660_v20 = vadd.f32 %v2654_v4, %v2631_v26  ;;  %v8096_v51 = vadd.f32 %v2670_v58, %v11188_v22 }
 0x2f1   : > { %v2889_v45 = vadd.f32 %v11189_v0, %v2860_v60  ;;  %v11190_v3 = vrot.slane %v7643_v46, 3  ;;  %v11191_v37 = vrot.slane %v7494_v56, 5  ;;  %v8106_v4 = vmul.f32 %v7309_v16, %v6839_v11  ;;  %v11194_v16 = vld [vmem:[#allocation41_spill] sm:$0xff] }
 0x2f2   : > { %v8108_v2 = vadd.f32 %v2671_v43, %v2660_v20  ;;  %v3059_v10 = vmul.f32 %v3055_v23, %v6848_v44  ;;  %v8112_v26 = vmul.f32 %v3055_v23, %v7838_v35  ;;  %v11192_v40 = vrot.slane %v7745_v31, 4  ;;  %v2362_v43 = vpop.permute.xlu0 %2361 }
 0x2f3   : > { %v2890_v63 = vadd.f32 %v11190_v3, %v2861_v8  ;;  %v2248_v55 = vadd.f32 %v11191_v37, %v2217_v27  ;;  %v11193_v46 = vrot.slane %v7748_v53, 4  ;;  %v8124_v56 = vmul.f32 %v7572_v13, %v6843_v47  ;;  %v2331_v53 = vpop.permute.xlu1 %2330 }
 0x2f4   : > { %v8116_v60 = vadd.f32 %v11192_v40, %v2889_v45  ;;  %v3399_v27 = vsel %vm2069_vm6, %v11194_v16, %v3398_v59  ;;  %v8130_v58 = vmul.f32 %v7572_v13, %v6839_v11  ;;  %v3069_v20 = vrot.slane %v3059_v10, 2  ;;  %v11196_v13 = vld [vmem:[#allocation10_spill] sm:$0xff] }
 0x2f5   : > { %v8120_v8 = vadd.f32 %v11193_v46, %v2890_v63  ;;  %v10674_v31 = vrot.slane %v8112_v26, 2  ;;  %v3403_v23 = vmul.f32 %v3399_v27, %v6848_v44  ;;  %v11195_v22 = vrot.slane %v7777_v28, 6  ;;  %4057 = vrot.lane.b32.xlu1 %v11196_v13, %s5546_s14  ;;  %v11198_v40 = vld [vmem:[#allocation54_spill] sm:$0xff] }
 0x2f6   : > { %v2323_v45 = vmul.f32 %v7903_v9, %v7838_v35  ;;  %v8139_v3 = vmul.f32 %v3399_v27, %v7838_v35  ;;  %v2365_v59 = vsel %vm2086_vm5, %v2362_v43, %v7804_v14  ;;  %v2368_v28 = vmul.f32 %v2362_v43, %v6839_v11  ;;  %v11199_v27 = vld [vmem:[#allocation14_spill] sm:$0xff] }
 0x2f7   : > { %v2279_v0 = vadd.f32 %v11195_v22, %v2248_v55  ;;  %v8148_v63 = vsel %vm480_vm2, %v3069_v20, %v10674_v31  ;;  %v3413_v37 = vrot.slane %v3403_v23, 2  ;;  %v2369_v55 = vmul.f32 %v2365_v59, %v6848_v44  ;;  %4534 = vrot.lane.b32.xlu0 %v11199_v27, %s5547_s15 }
 0x2f8   : > { %11197 = vst [vmem:[#allocation73_spill] sm:$0xff] %v8148_v63  ;;  %v10679_v9 = vrot.slane %v8139_v3, 2  ;;  %v8154_v10 = vmul.f32 %v2362_v43, %v7824_v15  ;;  %v2371_v14 = vmul.f32 %v2365_v59, %v7838_v35  ;;  %v2334_v46 = vsel %vm2086_vm5, %v2331_v53, %v11198_v40 }
 0x2f9   : > { %v2376_v20 = vrot.slane %v2368_v28, 2  ;;  %v2379_v22 = vrot.slane %v2369_v55, 2  ;;  %v2337_v23 = vmul.f32 %v2331_v53, %v6839_v11  ;;  %v2338_v31 = vmul.f32 %v2334_v46, %v6848_v44  ;;  %v8174_v28 = vpop.permute.xlu2 %4139 }
 0x2fa   : > { %v8166_v34 = vsel %vm480_vm2, %v3413_v37, %v10679_v9  ;;  %v10677_v43 = vrot.slane %v8154_v10, 2  ;;  %v2380_v59 = vrot.slane %v2371_v14, 2  ;;  %v8170_v61 = vmul.f32 %v2331_v53, %v7824_v15  ;;  %11202 = vst [vmem:[#allocation99_spill] sm:$0xff] %v8174_v28 }
 0x2fb   : > { %11200 = vst [vmem:[#allocation101_spill] sm:$0xff] %v8166_v34  ;;  %v11201_v40 = vrot.slane %v7498_v32, 7  ;;  %v2340_v55 = vmul.f32 %v2334_v46, %v7838_v35  ;;  %v2345_v63 = vrot.slane %v2337_v23, 1  ;;  %v2348_v12 = vrot.slane %v2338_v31, 1  ;;  %v11235_v34 = vld [vmem:[#allocation87_spill] sm:$0xff] }
 0x2fc   : > { %v11203_v13 = vrot.slane %v11158_v54, 5  ;;  %v8182_v37 = vsel %vm480_vm2, %v2376_v20, %v10677_v43  ;;  %v8185_v53 = vsel %vm480_vm2, %v2379_v22, %v2380_v59  ;;  %v10678_v32 = vrot.slane %v8170_v61, 1  ;;  %v2679_v54 = vpop.permute.xlu1 %2678  ;;  %v11210_v43 = vld [vmem:[#allocation11_spill] sm:$0xff] }
 0x2fd   : > { %v2310_v27 = vadd.f32 %v11201_v40, %v2279_v0  ;;  %11204 = vst [vmem:[#allocation103_spill] sm:$0xff] %v8182_v37  ;;  %v2708_v0 = vpop.permute.xlu0 %2707  ;;  %v2349_v40 = vrot.slane %v2340_v55, 1  ;;  %v11293_v37 = vld [vmem:[#allocation111_spill] sm:$0xff] }
 0x2fe   : > { %v2604_v39 = vadd.f32 %v11203_v13, %v2575_v49  ;;  %11205 = vst [vmem:[#allocation51_spill] sm:$0xff] %v8185_v53  ;;  %v2711_v46 = vsel %vm2452_vm8, %v2708_v0, %v7894_v7  ;;  %v2714_v31 = vmul.f32 %v2708_v0, %v6839_v11  ;;  %v2935_v49 = vrot.slane %v8124_v56, 5  ;;  %v11227_v53 = vld [vmem:[#allocation98_spill] sm:$0xff] }
 0x2ff   : > { %v2327_v14 = vadd.f32 %v2323_v45, %v2310_v27  ;;  %v11206_v13 = vrot.slane %v7943_v17, 6  ;;  %v2347_v22 = vsel %vm414_vm0, %v2345_v63, %v10678_v32  ;;  %v2715_v23 = vmul.f32 %v2711_v46, %v6848_v44  ;;  %v11207_v45 = vld [vmem:[#allocation15_spill] sm:$0xff]  ;;  %4577 = vrot.lane.b32.xlu0 %v11210_v43, %s5547_s15 }
 0x300   : > { %4096 = vrot.lane.b32.xlu1 %v11207_v45, %s5546_s14  ;;  %v2350_v27 = vsel %vm414_vm0, %v2348_v12, %v2349_v40  ;;  %v8202_v7 = vadd.f32 %v2347_v22, %v7994_v42  ;;  %v8205_v56 = vmul.f32 %v2708_v0, %v7824_v15  ;;  %v2936_v17 = vrot.slane %v8130_v58, 5  ;;  %v11212_v22 = vld [vmem:[#allocation59_spill] sm:$0xff] }
 0x301   : > { %v2633_v20 = vadd.f32 %v11206_v13, %v2604_v39  ;;  %v2358_v55 = vadd.f32 %v2349_v40, %v2327_v14  ;;  %v2673_v39 = vmul.f32 %v8046_v33, %v7838_v35  ;;  %v8211_v63 = vadd.f32 %v2350_v27, %v7953_v50  ;;  %v11239_v45 = vld [vmem:[#allocation95_spill] sm:$0xff] }
 0x302   : > { %11208 = vst [vmem:[#allocation78_spill] sm:$0xff] %v8202_v7  ;;  %v2717_v13 = vmul.f32 %v2711_v46, %v7838_v35  ;;  %v2722_v42 = vrot.slane %v2714_v31, 2  ;;  %v10680_v14 = vrot.slane %v8205_v56, 2  ;;  %v2725_v0 = vrot.slane %v2715_v23, 2 }
 0x303   : > { %11209 = vst [vmem:[#allocation37_spill] sm:$0xff] %v8211_v63  ;;  %v8216_v12 = vadd.f32 %v2380_v59, %v2358_v55  ;;  %v2682_v58 = vsel %vm2452_vm8, %v2679_v54, %v11212_v22  ;;  %v2685_v33 = vmul.f32 %v2679_v54, %v6839_v11  ;;  %v8223_v50 = vmul.f32 %v2679_v54, %v7824_v15 }
 0x304   : > { %v2726_v40 = vrot.slane %v2717_v13, 2  ;;  %v11213_v46 = vrot.slane %v11163_v1, 7  ;;  %v8230_v59 = vsel %vm480_vm2, %v2722_v42, %v10680_v14  ;;  %v2686_v31 = vmul.f32 %v2682_v58, %v6848_v44  ;;  %v3008_v14 = vpop.permute.xlu1 %3007 }
 0x305   : > { %11211 = vst [vmem:[#allocation109_spill] sm:$0xff] %v8216_v12  ;;  %v2688_v23 = vmul.f32 %v2682_v58, %v7838_v35  ;;  %v2937_v55 = vsel %vm1922_vm10, %v2935_v49, %v2936_v17  ;;  %v2693_v22 = vrot.slane %v2685_v33, 1  ;;  %v10681_v54 = vrot.slane %v8223_v50, 1  ;;  %v3023_v32 = vpop.permute.xlu0 %3022 }
 0x306   : > { %v2662_v27 = vadd.f32 %v11213_v46, %v2633_v20  ;;  %11214 = vst [vmem:[#allocation104_spill] sm:$0xff] %v8230_v59  ;;  %v8236_v13 = vsel %vm480_vm2, %v2725_v0, %v2726_v40  ;;  %v8239_v20 = vpop.permute.xlu2 %4219  ;;  %v2696_v46 = vrot.slane %v2686_v31, 1  ;;  %v3026_v42 = vsel %vm418_vm1, %v3023_v32, %v7968_v57  ;;  %v11291_v59 = vld [vmem:[#allocation38_spill] sm:$0xff] }
 0x307   : > { %11215 = vst [vmem:[#allocation108_spill] sm:$0xff] %v8236_v13  ;;  %v2697_v9 = vrot.slane %v2688_v23, 1  ;;  %v2947_v58 = vadd.f32 %v2936_v17, %v8116_v60  ;;  %v11217_v49 = vrot.slane %v7844_v62, 5  ;;  %v2695_v33 = vsel %vm414_vm0, %v2693_v22, %v10681_v54 }
 0x308   : > { %v2677_v1 = vadd.f32 %v2673_v39, %v2662_v27  ;;  %11216 = vst [vmem:[#allocation83_spill] sm:$0xff] %v8239_v20  ;;  %v3029_v39 = vmul.f32 %v3023_v32, %v6839_v11  ;;  %v11218_v27 = vld [vmem:[#allocation16_spill] sm:$0xff]  ;;  %v8255_v57 = vadd.f32 %v2695_v33, %v8096_v51  ;;  %v3030_v60 = vmul.f32 %v3026_v42, %v6848_v44 }
 0x309   : > { %v2948_v0 = vadd.f32 %v11217_v49, %v8120_v8  ;;  %4137 = vrot.lane.b32.xlu1 %v11218_v27, %s5546_s14  ;;  %v2698_v31 = vsel %vm414_vm0, %v2696_v46, %v2697_v9  ;;  %v8260_v62 = vmul.f32 %v7663_v5, %v6843_v47  ;;  %v3031_v17 = vmul.f32 %v3023_v32, %v7824_v15  ;;  %v11221_v49 = vld [vmem:[#allocation27_spill] sm:$0xff] }
 0x30a   : > { %11219 = vst [vmem:[#allocation61_spill] sm:$0xff] %v8255_v57  ;;  %v2706_v23 = vadd.f32 %v2697_v9, %v2677_v1  ;;  %v8263_v8 = vadd.f32 %v2698_v31, %v8108_v2  ;;  %v3032_v22 = vmul.f32 %v3026_v42, %v7838_v35  ;;  %4657 = vrot.lane.b32.xlu0 %v11221_v49, %s5547_s15  ;;  %v3037_v51 = vrot.slane %v3029_v39, 1  ;;  %v11223_v2 = vld [vmem:[#allocation25_spill] sm:$0xff]  ;;  %v11229_v49 = vld [vmem:[#allocation58_spill] sm:$0xff] }
 0x30b   : > { %v3040_v9 = vrot.slane %v3030_v60, 1  ;;  %v2945_v1 = vadd.f32 %v2937_v55, %v7802_v24  ;;  %v3038_v33 = vrot.slane %v3031_v17, 1  ;;  %v2946_v13 = vadd.f32 %v7890_v52, %v7814_v36  ;;  %v11233_v52 = vld [vmem:[#allocation116_spill] sm:$0xff] }
 0x30c   : > { %11220 = vst [vmem:[#allocation44_spill] sm:$0xff] %v8263_v8  ;;  %v8269_v46 = vadd.f32 %v2726_v40, %v2706_v23  ;;  %v3041_v54 = vrot.slane %v3032_v22, 1  ;;  %v11224_v31 = vrot.slane %v11223_v2, 6  ;;  %v11225_v8 = vld [vmem:[#allocation70_spill] sm:$0xff]  ;;  %v11228_v63 = vrot.slane %v11227_v53, 6 }
 0x30d   : > { %v11226_v32 = vrot.slane %v11225_v8, 6  ;;  %v11230_v40 = vrot.slane %v11229_v49, 6  ;;  %v11234_v22 = vrot.slane %v11233_v52, 7  ;;  %v11236_v8 = vrot.slane %v11235_v34, 7  ;;  %v3367_v2 = vpop.permute.xlu0 %3366 }
 0x30e   : > { %11222 = vst [vmem:[#allocation40_spill] sm:$0xff] %v8269_v46  ;;  %v11231_v24 = vmov %v11224_v31  ;;  %v11232_v60 = vmov %v11228_v63  ;;  %v11240_v49 = vrot.slane %v11239_v45, 7  ;;  %v3273_v53 = vmul.f32 %v7663_v5, %v6839_v11  ;;  %v11244_v5 = vld [vmem:[#allocation75_spill] sm:$0xff]  ;;  %v11292_v46 = vld [vmem:[#allocation46_spill] sm:$0xff] }
 0x30f   : > { %v2966_v42 = vsel %vm1947_vm11, %v11226_v32, %v11224_v31  ;;  %v2969_v39 = vsel %vm1947_vm11, %v11230_v40, %v11228_v63  ;;  %v2976_v55 = vadd.f32 %v11231_v24, %v2947_v58  ;;  %v2977_v17 = vadd.f32 %v11232_v60, %v2948_v0  ;;  %v11237_v32 = vld [vmem:[#allocation120_spill] sm:$0xff]  ;;  %v11243_v24 = vld [vmem:[#allocation9_spill] sm:$0xff] }
 0x310   : > { %v2974_v23 = vadd.f32 %v2966_v42, %v2945_v1  ;;  %v2975_v36 = vadd.f32 %v2969_v39, %v2946_v13  ;;  %v2995_v31 = vsel %vm1972_vm12, %v11236_v8, %v11234_v22  ;;  %v11238_v43 = vrot.slane %v11237_v32, 7  ;;  %v8304_v42 = vpop.permute.xlu1 %3080  ;;  %v11242_v39 = vld [vmem:[#allocation64_spill] sm:$0xff] }
 0x311   : > { %v3039_v1 = vsel %vm414_vm0, %v3037_v51, %v3038_v33  ;;  %v11241_v13 = vmov %v11234_v22  ;;  %v3042_v34 = vsel %vm414_vm0, %v3040_v9, %v3041_v54  ;;  %v3011_v45 = vsel %vm418_vm1, %v3008_v14, %v11242_v39  ;;  %4180 = vrot.lane.b32.xlu1 %v11243_v24, %s5546_s14 }
 0x312   : > { %v2998_v63 = vsel %vm1972_vm12, %v11240_v49, %v11238_v43  ;;  %v3003_v58 = vadd.f32 %v2995_v31, %v2974_v23  ;;  %v3005_v0 = vadd.f32 %v11241_v13, %v2976_v55  ;;  %v3014_v43 = vmul.f32 %v3008_v14, %v6839_v11  ;;  %v8315_v55 = vpop.permute.xlu2 %4262  ;;  %v11249_v13 = vld [vmem:[#allocation122_spill] sm:$0xff] }
 0x313   : > { %v3004_v40 = vadd.f32 %v2998_v63, %v2975_v36  ;;  %v3016_v51 = vmul.f32 %v3008_v14, %v7824_v15  ;;  %v11245_v23 = vrot.slane %v11244_v5, 1  ;;  %11246 = vst [vmem:[#allocation47_spill] sm:$0xff] %v8315_v55  ;;  %v11247_v9 = vrot.slane %v11237_v32, 7  ;;  %v11248_v63 = vld [vmem:[#allocation12_spill] sm:$0xff] }
 0x314   : > { %v3015_v36 = vmul.f32 %v3011_v45, %v6848_v44  ;;  %v3017_v22 = vmul.f32 %v3011_v45, %v7838_v35  ;;  %v3308_v8 = vrot.slane %v8077_v21, 6  ;;  %v3309_v14 = vrot.slane %v8086_v18, 6  ;;  %4700 = vrot.lane.b32.xlu0 %v11248_v63, %s5547_s15 }
 0x315   : > { %v3532_v60 = vadd.f32 %v11245_v23, %v8106_v4  ;;  %v3006_v52 = vadd.f32 %v11247_v9, %v2977_v17  ;;  %v3018_v31 = vadd.f32 %v3014_v43, %v3003_v58  ;;  %v3020_v49 = vadd.f32 %v3016_v51, %v3005_v0 }
 0x316   : > { %v8327_v4 = vmul.f32 %v11187_v30, %v7824_v15  ;;  %v11250_v32 = vrot.slane %v11249_v13, 2  ;;  %v3019_v39 = vadd.f32 %v3015_v36, %v3004_v40  ;;  %v3279_v45 = vrot.slane %v8260_v62, 5 }
 0x317   : > { %v3021_v5 = vadd.f32 %v3017_v22, %v3006_v52  ;;  %v3280_v23 = vrot.slane %v3273_v53, 5  ;;  %v8332_v21 = vadd.f32 %v3039_v1, %v3018_v31  ;;  %v3370_v18 = vsel %vm2069_vm6, %v3367_v2, %v8048_v25  ;;  %v3700_v1 = vpop.permute.xlu0 %3699 }
 0x318   : > { %v3573_v17 = vadd.f32 %v11250_v32, %v3532_v60  ;;  %v8336_v58 = vadd.f32 %v3042_v34, %v3019_v39  ;;  %v3049_v0 = vadd.f32 %v3038_v33, %v3020_v49  ;;  %v3373_v51 = vmul.f32 %v3367_v2, %v6839_v11  ;;  %v11260_v39 = vld [vmem:[#allocation127_spill] sm:$0xff] }
 0x319   : > { %11251 = vst [vmem:[#allocation29_spill] sm:$0xff] %v8332_v21  ;;  %v3050_v43 = vadd.f32 %v3041_v54, %v3021_v5  ;;  %v3311_v9 = vrot.slane %v8080_v6, 6  ;;  %v3312_v60 = vrot.slane %v8089_v48, 6  ;;  %v11253_v40 = vrot.slane %v7975_v19, 3  ;;  %v3352_v48 = vpop.permute.xlu1 %3351 }
 0x31a   : > { %11252 = vst [vmem:[#allocation118_spill] sm:$0xff] %v8336_v58  ;;  %v8344_v62 = vmul.f32 %v3367_v2, %v7824_v15  ;;  %v10682_v53 = vrot.slane %v8327_v4, 2  ;;  %v3374_v25 = vmul.f32 %v3370_v18, %v6848_v44  ;;  %v11254_v33 = vrot.slane %v8112_v26, 2  ;;  %v11256_v2 = vld [vmem:[#allocation92_spill] sm:$0xff]  ;;  %v11258_v26 = vld [vmem:[#allocation39_spill] sm:$0xff] }
 0x31b   : > { %v3614_v52 = vadd.f32 %v11253_v40, %v3573_v17  ;;  %v8354_v6 = vmul.f32 %v8304_v42, %v7824_v15  ;;  %v3281_v19 = vsel %vm1922_vm10, %v3279_v45, %v3280_v23  ;;  %v3291_v34 = vadd.f32 %v3280_v23, %v8065_v38  ;;  %4260 = vrot.lane.b32.xlu1 %v11258_v26, %s5546_s14  ;;  %v11259_v17 = vld [vmem:[#allocation80_spill] sm:$0xff] }
 0x31c   : > { %v8350_v54 = vadd.f32 %v11254_v33, %v3050_v43  ;;  %v11257_v36 = vrot.slane %v11256_v2, 5  ;;  %v8362_v31 = vmul.f32 %v3370_v18, %v7838_v35  ;;  %v3381_v49 = vrot.slane %v3373_v51, 1  ;;  %v11261_v45 = vld [vmem:[#allocation124_spill] sm:$0xff]  ;;  %4739 = vrot.lane.b32.xlu0 %v11258_v26, %s5547_s15  ;;  %v8381_v51 = vpop.permute.xlu2 %4321  ;;  %v11268_v26 = vld [vmem:[#allocation65_spill] sm:$0xff] }
 0x31d   : > { %11255 = vst [vmem:[#allocation93_spill] sm:$0xff] %v8354_v6  ;;  %v10683_v13 = vrot.slane %v8354_v6, 3  ;;  %v3078_v32 = vadd.f32 %v10682_v53, %v3049_v0  ;;  %v3652_v5 = vadd.f32 %v11260_v39, %v11259_v17  ;;  %v3382_v38 = vrot.slane %v8344_v62, 1  ;;  %v11263_v18 = vld [vmem:[#allocation32_spill] sm:$0xff]  ;;  %v11266_v53 = vld [vmem:[#allocation113_spill] sm:$0xff] }
 0x31e   : > { %v3292_v22 = vadd.f32 %v11257_v36, %v8071_v41  ;;  %v11262_v23 = vrot.slane %v11261_v45, 4  ;;  %v3703_v43 = vsel %vm3121_vm13, %v3700_v1, %v11263_v18  ;;  %v3707_v40 = vmul.f32 %v3700_v1, %v6843_v47  ;;  %11264 = vst [vmem:[#allocation119_spill] sm:$0xff] %v8381_v51  ;;  %v11265_v36 = vld [vmem:[#allocation77_spill] sm:$0xff]  ;;  %v11283_v58 = vld [vmem:[#allocation56_spill] sm:$0xff] }
 0x31f   : > { %v3384_v0 = vrot.slane %v3374_v25, 1  ;;  %v3107_v33 = vadd.f32 %v10683_v13, %v3078_v32  ;;  %v3708_v62 = vmul.f32 %v3703_v43, %v6860_v29  ;;  %v8387_v2 = vmul.f32 %v3700_v1, %v6839_v11  ;;  %v11267_v13 = vld [vmem:[#allocation114_spill] sm:$0xff]  ;;  %v11270_v6 = vld [vmem:[#allocation89_spill] sm:$0xff] }
 0x320   : > { %v8374_v41 = vadd.f32 %v11262_v23, %v3614_v52  ;;  %v3385_v52 = vrot.slane %v8362_v31, 1  ;;  %v3693_v17 = vadd.f32 %v11265_v36, %v3652_v5  ;;  %v8392_v39 = vmul.f32 %v3703_v43, %v6848_v44  ;;  %v11269_v43 = vld [vmem:[#allocation45_spill] sm:$0xff] }
 0x321   : > { %v3719_v45 = vrot.slane %v3707_v40, 6  ;;  %3117 = vrot.lane.b32.xlu2 %v3107_v33, %s5545_s11  ;;  %v10686_v25 = vrot.slane %v8387_v2, 6  ;;  %v3722_v23 = vrot.slane %v3708_v62, 6  ;;  %v3289_v32 = vadd.f32 %v3281_v19, %v11266_v53  ;;  %v8408_v19 = vpop.permute.xlu0 %3742 }
 0x322   : > { %v3290_v63 = vadd.f32 %v11268_v26, %v11267_v13  ;;  %v10687_v1 = vrot.slane %v8392_v39, 6  ;;  %v3310_v31 = vsel %vm1947_vm11, %v3308_v8, %v3309_v14  ;;  %v3313_v5 = vsel %vm1947_vm11, %v3311_v9, %v3312_v60  ;;  %v8410_v26 = vpop.permute.xlu1 %3424  ;;  %v11273_v13 = vld [vmem:[#allocation88_spill] sm:$0xff] }
 0x323   : > { %v3320_v36 = vadd.f32 %v3309_v14, %v3291_v34  ;;  %v3621_v40 = vsel %vm3121_vm13, %v11270_v6, %v11269_v43  ;;  %v3721_v33 = vsel %vm1947_vm11, %v3719_v45, %v10686_v25  ;;  %v3318_v62 = vadd.f32 %v3310_v31, %v3289_v32  ;;  %v11271_v34 = vld [vmem:[#allocation117_spill] sm:$0xff]  ;;  %v11276_v32 = vld [vmem:[#allocation86_spill] sm:$0xff] }
 0x324   : > { %v3319_v53 = vadd.f32 %v3313_v5, %v3290_v63  ;;  %v8415_v8 = vsel %vm1947_vm11, %v3722_v23, %v10687_v1  ;;  %v8417_v14 = vadd.f32 %v3721_v33, %v3693_v17  ;;  %v3321_v9 = vadd.f32 %v3312_v60, %v3292_v22  ;;  %v11275_v63 = vld [vmem:[#allocation28_spill] sm:$0xff]  ;;  %4802 = vrot.lane.b32.xlu0 %v11283_v58, %s5547_s15 }
 0x325   : > { %v11272_v6 = vrot.slane %v11271_v34, 7  ;;  %v11274_v43 = vrot.slane %v11273_v13, 7  ;;  %4282 = vrot.lane.b32.xlu1 %v11275_v63, %s5546_s14  ;;  %v11277_v31 = vrot.slane %v11276_v32, 7  ;;  %v11278_v5 = vld [vmem:[#allocation96_spill] sm:$0xff]  ;;  %v3383_v60 = vsel %vm414_vm0, %v3381_v49, %v3382_v38  ;;  %v11286_v34 = vld [vmem:[#allocation90_spill] sm:$0xff] }
 0x326   : > { %v11279_v25 = vrot.slane %v11278_v5, 7  ;;  %v3626_v32 = vmul.f32 %v3621_v40, %v6860_v29  ;;  %v8458_v5 = vpop.permute.xlu2 %4364  ;;  %v11294_v7 = vrot.slane %v11293_v37, 5  ;;  %v11299_v37 = vld [vmem:[#allocation121_spill] sm:$0xff] }
 0x327   : > { %v3339_v45 = vsel %vm1972_vm12, %v11274_v43, %v11272_v6  ;;  %v11280_v17 = vmov %v11272_v6  ;;  %v11281_v13 = vmov %v11277_v31  ;;  %v3386_v6 = vsel %vm414_vm0, %v3384_v0, %v3385_v52  ;;  %v11282_v43 = vld [vmem:[#allocation74_spill] sm:$0xff]  ;;  %11288 = vst [vmem:[#allocation34_spill] sm:$0xff] %v8458_v5 }
 0x328   : > { %v3342_v21 = vsel %vm1972_vm12, %v11279_v25, %v11277_v31  ;;  %v3347_v23 = vadd.f32 %v3339_v45, %v3318_v62  ;;  %v3349_v33 = vadd.f32 %v11280_v17, %v3320_v36  ;;  %v3350_v1 = vadd.f32 %v11281_v13, %v3321_v9 }
 0x329   : > { %v3348_v22 = vadd.f32 %v3342_v21, %v3319_v53  ;;  %v3355_v63 = vsel %vm2069_vm6, %v3352_v48, %v11282_v43  ;;  %v3358_v25 = vmul.f32 %v3352_v48, %v6839_v11  ;;  %v3360_v36 = vmul.f32 %v3352_v48, %v7824_v15  ;;  %v11284_v21 = vld [vmem:[#allocation85_spill] sm:$0xff]  ;;  %v11289_v43 = vld [vmem:[#allocation30_spill] sm:$0xff] }
 0x32a   : > { %v3359_v62 = vmul.f32 %v3355_v63, %v6848_v44  ;;  %v3361_v49 = vmul.f32 %v3355_v63, %v7838_v35  ;;  %v11285_v53 = vrot.slane %v11284_v21, 2  ;;  %v11287_v9 = vrot.slane %v11286_v34, 2  ;;  %v11290_v34 = vld [vmem:[#allocation26_spill] sm:$0xff] }
 0x32b   : > { %v8452_v45 = vmul.f32 %v11194_v16, %v7824_v15  ;;  %v8456_v31 = vmul.f32 %v3621_v40, %v6848_v44  ;;  %v3362_v48 = vadd.f32 %v3358_v25, %v3347_v23  ;;  %v3364_v63 = vadd.f32 %v3360_v36, %v3349_v33  ;;  %v3661_v33 = vpop.permute.xlu1 %3660 }
 0x32c   : > { %v3563_v0 = vsel %vm480_vm2, %v11287_v9, %v11285_v53  ;;  %v3363_v17 = vadd.f32 %v3359_v62, %v3348_v22  ;;  %v3365_v13 = vadd.f32 %v3361_v49, %v3350_v1  ;;  %v3644_v58 = vrot.slane %v11289_v43, 4  ;;  %v11304_v49 = vld [vmem:[#allocation112_spill] sm:$0xff] }
 0x32d   : > { %v3575_v9 = vadd.f32 %v11285_v53, %v11290_v34  ;;  %v3572_v57 = vadd.f32 %v3563_v0, %v11291_v59  ;;  %v2603_v12 = vadd.f32 %v11294_v7, %v11292_v46  ;;  %v8468_v40 = vadd.f32 %v3383_v60, %v3362_v48  ;;  %v11298_v59 = vld [vmem:[#allocation42_spill] sm:$0xff]  ;;  %v11300_v46 = vld [vmem:[#allocation91_spill] sm:$0xff]  ;;  %v11308_v43 = vld [vmem:[#allocation100_spill] sm:$0xff] }
 0x32e   : > { %v8470_v55 = vadd.f32 %v3386_v6, %v3363_v17  ;;  %v3393_v23 = vadd.f32 %v3382_v38, %v3364_v63  ;;  %v3394_v22 = vadd.f32 %v3385_v52, %v3365_v13  ;;  %v10689_v1 = vrot.slane %v8452_v45, 2  ;;  %4362 = vrot.lane.b32.xlu1 %v11298_v59, %s5546_s14  ;;  %v11302_v6 = vld [vmem:[#allocation43_spill] sm:$0xff]  ;;  %v3802_v17 = vpop.permute.xlu0 %3801  ;;  %v11307_v63 = vld [vmem:[#allocation94_spill] sm:$0xff] }
 0x32f   : > { %11295 = vst [vmem:[#allocation18_spill] sm:$0xff] %v8468_v40  ;;  %v3640_v25 = vrot.slane %v3626_v32, 4  ;;  %v10691_v62 = vrot.slane %v8456_v31, 4  ;;  %v8476_v36 = vmul.f32 %v8410_v26, %v7824_v15  ;;  %v3643_v7 = vrot.slane %v11299_v37, 4 }
 0x330   : > { %11296 = vst [vmem:[#allocation55_spill] sm:$0xff] %v8470_v55  ;;  %v11301_v60 = vrot.slane %v11300_v46, 3  ;;  %v11303_v38 = vrot.slane %v11302_v6, 3  ;;  %v11305_v21 = vrot.slane %v11304_v49, 6  ;;  %v11306_v32 = vrot.slane %v8139_v3, 2  ;;  %v11310_v6 = vld [vmem:[#allocation23_spill] sm:$0xff]  ;;  %v8531_v55 = vpop.permute.xlu2 %4493 }
 0x331   : > { %11297 = vst [vmem:[#allocation17_spill] sm:$0xff] %v8476_v36  ;;  %v2322_v13 = vmul.f32 %v11307_v63, %v7824_v15  ;;  %v8496_v34 = vmul.f32 %v11308_v43, %v7824_v15  ;;  %v10690_v53 = vrot.slane %v8476_v36, 3  ;;  %v3422_v37 = vadd.f32 %v10689_v1, %v3393_v23  ;;  %v11313_v23 = vld [vmem:[#allocation36_spill] sm:$0xff] }
 0x332   : > { %v3604_v52 = vsel %vm1872_vm7, %v11303_v38, %v11301_v60  ;;  %v2632_v0 = vadd.f32 %v11305_v21, %v2603_v12  ;;  %v8490_v48 = vadd.f32 %v11306_v32, %v3394_v22  ;;  %v3645_v60 = vsel %vm1897_vm9, %v3643_v7, %v3644_v58  ;;  %v11311_v38 = vld [vmem:[#allocation102_spill] sm:$0xff]  ;;  %11322 = vst [vmem:[#allocation81_spill] sm:$0xff] %v8531_v55 }
 0x333   : > { %v11309_v12 = vrot.slane %v11300_v46, 3  ;;  %v3613_v22 = vadd.f32 %v3604_v52, %v3572_v57  ;;  %v11312_v49 = vrot.slane %v11311_v38, 7  ;;  %v3642_v32 = vsel %vm1897_vm9, %v3640_v25, %v10691_v62  ;;  %v11315_v46 = vld [vmem:[#allocation82_spill] sm:$0xff]  ;;  %v11316_v52 = vld [vmem:[#allocation105_spill] sm:$0xff]  ;;  %v11317_v25 = vld [vmem:[#allocation107_spill] sm:$0xff] }
 0x334   : > { %v3451_v63 = vadd.f32 %v10690_v53, %v3422_v37  ;;  %v3809_v40 = vmul.f32 %v3802_v17, %v6839_v11  ;;  %v11314_v1 = vrot.slane %v11313_v23, 7  ;;  %v8518_v57 = vmul.f32 %v3802_v17, %v7824_v15  ;;  %v11318_v53 = vld [vmem:[#allocation63_spill] sm:$0xff]  ;;  %v11321_v62 = vld [vmem:[#allocation76_spill] sm:$0xff] }
 0x335   : > { %v3616_v3 = vadd.f32 %v11309_v12, %v3575_v9  ;;  %v2309_v21 = vadd.f32 %v11312_v49, %v11310_v6  ;;  %v3492_v9 = vmul.f32 %v11315_v46, %v6848_v44  ;;  %v3653_v12 = vadd.f32 %v3642_v32, %v11316_v52 }
 0x336   : > { %v2661_v7 = vadd.f32 %v11314_v1, %v2632_v0  ;;  %v2672_v49 = vmul.f32 %v11317_v25, %v7824_v15  ;;  %3461 = vrot.lane.b32.xlu2 %v3451_v63, %s5544_s29  ;;  %v3821_v37 = vrot.slane %v3809_v40, 1  ;;  %v11319_v23 = vrot.slane %v11318_v53, 1  ;;  %v11320_v0 = vld [vmem:[#allocation62_spill] sm:$0xff] }
 0x337   : > { %v2326_v6 = vadd.f32 %v2322_v13, %v2309_v21  ;;  %v3709_v46 = vmul.f32 %v11263_v18, %v11320_v0  ;;  %v3712_v36 = vmul.f32 %v11263_v18, %v11321_v62  ;;  %v10696_v13 = vrot.slane %v8518_v57, 1  ;;  %v3741_v21 = vpop.permute.xlu1 %3740  ;;  %v11324_v25 = vld [vmem:[#allocation50_spill] sm:$0xff] }
 0x338   : > { %v3533_v1 = vadd.f32 %v11319_v23, %v3492_v9  ;;  %v11323_v32 = vrot.slane %v8170_v61, 1  ;;  %v3662_v40 = vsel %vm3121_vm13, %v11324_v25, %v3661_v33  ;;  %v3668_v53 = vmul.f32 %v3661_v33, %v11320_v0  ;;  %v11325_v9 = vld [vmem:[#allocation6_spill] sm:$0xff] }
 0x339   : > { %v3671_v63 = vmul.f32 %v3661_v33, %v11321_v62  ;;  %4454 = vrot.lane.b32.xlu1 %v11325_v9, %s5547_s15  ;;  %v2676_v23 = vadd.f32 %v2672_v49, %v2661_v7  ;;  %v8545_v18 = vsel %vm414_vm0, %v3821_v37, %v10696_v13  ;;  %v3667_v38 = vmul.f32 %v3662_v40, %v6860_v29  ;;  %v11330_v13 = vld [vmem:[#allocation71_spill] sm:$0xff] }
 0x33a   : > { %v2357_v52 = vadd.f32 %v11323_v32, %v2326_v6  ;;  %11326 = vst [vmem:[#allocation57_spill] sm:$0xff] %v8545_v18  ;;  %v8549_v61 = vmul.f32 %v3662_v40, %v6848_v44  ;;  %v11327_v6 = vld [vmem:[#allocation123_spill] sm:$0xff]  ;;  %v3657_v59 = vadd.f32 %v3644_v58, %v3616_v3  ;;  %v3684_v55 = vrot.slane %v3668_v53, 5 }
 0x33b   : > { %v11328_v32 = vrot.slane %v11327_v6, 2  ;;  %v3685_v33 = vrot.slane %v3671_v63, 5  ;;  %v3725_v5 = vrot.slane %v3709_v46, 6  ;;  %v3726_v20 = vrot.slane %v3712_v36, 6 }
 0x33c   : > { %v3681_v9 = vrot.slane %v3667_v38, 5  ;;  %v3682_v7 = vrot.slane %v8549_v61, 5  ;;  %v11329_v49 = vrot.slane %v8154_v10, 2  ;;  %v3805_v18 = vsel %vm3121_vm13, %v3802_v17, %v11330_v13 }
 0x33d   : > { %v3574_v25 = vadd.f32 %v11328_v32, %v3533_v1  ;;  %v3698_v51 = vadd.f32 %v3685_v33, %v3657_v59  ;;  %v3744_v40 = vsel %vm3121_vm13, %v3741_v21, %v8408_v19  ;;  %v11331_v1 = vrot.slane %v8223_v50, 1 }
 0x33e   : > { %v2388_v37 = vadd.f32 %v11329_v49, %v2357_v52  ;;  %v3750_v3 = vmul.f32 %v8408_v19, %v11320_v0  ;;  %v3683_v36 = vsel %vm1922_vm10, %v3681_v9, %v3682_v7  ;;  %v3686_v38 = vsel %vm1922_vm10, %v3684_v55, %v3685_v33  ;;  %v11335_v49 = vld [vmem:[#allocation53_spill] sm:$0xff] }
 0x33f   : > { %v2705_v58 = vadd.f32 %v11331_v1, %v2676_v23  ;;  %v3753_v10 = vmul.f32 %v8408_v19, %v11321_v62  ;;  %v3654_v46 = vadd.f32 %v3645_v60, %v3613_v22  ;;  %v3694_v52 = vadd.f32 %v3683_v36, %v3653_v12  ;;  %v3784_v23 = vpop.permute.xlu1 %3783  ;;  %v11332_v60 = vld [vmem:[#allocation24_spill] sm:$0xff]  ;;  %v8580_v22 = vpop.permute.xlu2 %4440 }
 0x340   : > { %v3748_v59 = vmul.f32 %v3741_v21, %v6843_v47  ;;  %v3810_v17 = vmul.f32 %v3805_v18, %v6848_v44  ;;  %v3749_v53 = vmul.f32 %v3744_v40, %v6860_v29  ;;  %v8572_v50 = vmul.f32 %v3741_v21, %v6839_v11  ;;  %11333 = vst [vmem:[#allocation79_spill] sm:$0xff] %v8580_v22 }
 0x341   : > { %v3752_v63 = vmul.f32 %v3744_v40, %v6848_v44  ;;  %v8576_v9 = vmul.f32 %v3805_v18, %v7838_v35  ;;  %v3695_v55 = vadd.f32 %v3686_v38, %v3654_v46  ;;  %v3739_v61 = vadd.f32 %v3726_v20, %v3698_v51  ;;  %4438 = vrot.lane.b32.xlu1 %v11332_v60, %s5547_s15  ;;  %v11337_v18 = vld [vmem:[#allocation31_spill] sm:$0xff]  ;;  %v11339_v46 = vld [vmem:[#allocation110_spill] sm:$0xff] }
 0x342   : > { %v3760_v19 = vrot.slane %v3748_v59, 7  ;;  %v3761_v12 = vrot.slane %v8572_v50, 7  ;;  %v3763_v6 = vrot.slane %v3749_v53, 7  ;;  %v11334_v21 = vrot.slane %v8496_v34, 3 }
 0x343   : > { %v3764_v32 = vrot.slane %v3752_v63, 7  ;;  %v8586_v40 = vmax.f32 %v11335_v49, 0.0  ;;  %v11338_v1 = vrot.slane %v11337_v18, 3  ;;  %v3766_v51 = vrot.slane %v3750_v3, 7  ;;  %v11341_v49 = vld [vmem:[#allocation68_spill] sm:$0xff] }
 0x344   : > { %v2419_v33 = vadd.f32 %v11334_v21, %v2388_v37  ;;  %v3767_v38 = vrot.slane %v3753_v10, 7  ;;  %v8592_v59 = vmul.f32 %v11339_v46, %v7824_v15  ;;  %v3727_v29 = vsel %vm1947_vm11, %v3725_v5, %v3726_v20 }
 0x345   : > { %11336 = vst [vmem:[#allocation66_spill] sm:$0xff] %v8586_v40  ;;  %v3615_v36 = vadd.f32 %v11338_v1, %v3574_v25  ;;  %v3762_v53 = vsel %vm1972_vm12, %v3760_v19, %v3761_v12  ;;  %v3765_v37 = vsel %vm1972_vm12, %v3763_v6, %v3764_v32  ;;  %v11340_v63 = vrot.slane %v8205_v56, 2 }
 0x346   : > { %2429 = vrot.lane.b32.xlu0 %v2419_v33, %s5547_s15  ;;  %v3824_v25 = vrot.slane %v3810_v17, 1  ;;  %v3825_v3 = vrot.slane %v8576_v9, 1  ;;  %v8604_v10 = vadd.f32 %v3762_v53, %v8417_v14  ;;  %v8609_v20 = vsel %vm418_vm1, %v8304_v42, %v11341_v49 }
 0x347   : > { %v2734_v21 = vadd.f32 %v11340_v63, %v2705_v58  ;;  %v3735_v5 = vadd.f32 %v8415_v8, %v3694_v52  ;;  %v3736_v19 = vadd.f32 %v3727_v29, %v3695_v55  ;;  %v3780_v33 = vadd.f32 %v3767_v38, %v3739_v61  ;;  %v11343_v58 = vld [vmem:[#allocation52_spill] sm:$0xff]  ;;  %v3843_v49 = vpop.permute.xlu1 %3842  ;;  %v11344_v55 = vld [vmem:[#allocation10_spill] sm:$0xff] }
 0x348   : > { %v11342_v6 = vrot.slane %v8456_v31, 4  ;;  %v3768_v56 = vsel %vm1972_vm12, %v3766_v51, %v3767_v38  ;;  %v3785_v17 = vsel %vm3121_vm13, %v11343_v58, %v3784_v23  ;;  %v3791_v14 = vmul.f32 %v3784_v23, %v11321_v62 }
 0x349   : > { %v10700_v9 = vrot.slane %v8592_v59, 3  ;;  %v3776_v1 = vadd.f32 %v3765_v37, %v3735_v5  ;;  %v3777_v53 = vadd.f32 %v3768_v56, %v3736_v19  ;;  %v3790_v63 = vmul.f32 %v3785_v17, %v6848_v44  ;;  %4536 = vrot.lane.b32.xlu1 %v11344_v55, %s5547_s15  ;;  %v8638_v5 = vpop.permute.xlu2 %4575 }
 0x34a   : > { %v3656_v18 = vadd.f32 %v11342_v6, %v3615_v36  ;;  %v8622_v29 = vmul.f32 %v11330_v13, %v8586_v40  ;;  %v3794_v31 = vmul.f32 %v3784_v23, %v8586_v40  ;;  %v3826_v52 = vsel %vm414_vm0, %v3824_v25, %v3825_v3  ;;  %v8632_v36 = vpop.permute.xlu0 %3844  ;;  %11345 = vst [vmem:[#allocation67_spill] sm:$0xff] %v8638_v5 }
 0x34b   : > { %v8630_v61 = vmul.f32 %v8609_v20, %v7838_v35  ;;  %v3796_v51 = vadd.f32 %v3790_v63, %v3776_v1  ;;  %v8634_v38 = vadd.f32 %v3791_v14, %v3777_v53  ;;  %v8645_v19 = vmul.f32 %v8632_v36, %v8586_v40 }
 0x34c   : > { %v3697_v8 = vadd.f32 %v3682_v7, %v3656_v18  ;;  %v3800_v37 = vadd.f32 %v3794_v31, %v3780_v33  ;;  %v2763_v7 = vadd.f32 %v10700_v9, %v2734_v21  ;;  %v10701_v25 = vrot.slane %v8622_v29, 1 }
 0x34d   : > { %v8640_v23 = vadd.f32 %v3826_v52, %v3796_v51  ;;  %v11347_v6 = vrot.slane %v8392_v39, 6  ;;  %v3793_v56 = vmul.f32 %v3785_v17, %v7838_v35  ;;  %v10705_v33 = vrot.slane %v8630_v61, 3  ;;  %v11348_v17 = vld [vmem:[#allocation60_spill] sm:$0xff] }
 0x34e   : > { %2773 = vrot.lane.b32.xlu0 %v2763_v7, %s5546_s14  ;;  %v3846_v21 = vsel %vm3121_vm13, %v3843_v49, %v8632_v36  ;;  %v3850_v14 = vmul.f32 %v3843_v49, %v6839_v11  ;;  %v3853_v1 = vmul.f32 %v3843_v49, %v7824_v15  ;;  %v3841_v63 = vadd.f32 %v10701_v25, %v3800_v37  ;;  %v11350_v51 = vld [vmem:[#allocation84_spill] sm:$0xff] }
 0x34f   : > { %11346 = vst [vmem:[#allocation115_spill] sm:$0xff] %v8640_v23  ;;  %v3738_v18 = vadd.f32 %v11347_v6, %v3697_v8  ;;  %v3851_v39 = vmul.f32 %v3846_v21, %v6848_v44  ;;  %v3854_v8 = vmul.f32 %v3846_v21, %v7838_v35  ;;  %v11349_v31 = vrot.slane %v11348_v17, 5  ;;  %v8668_v49 = vpop.permute.xlu1 %3885 }
 0x350   : > { %v8666_v7 = vsel %vm2069_vm6, %v8410_v26, %v11350_v51  ;;  %v3862_v6 = vrot.slane %v3850_v14, 2  ;;  %v3863_v9 = vrot.slane %v3853_v1, 2  ;;  %v11352_v14 = vrot.slane %v8387_v2, 6 }
 0x351   : > { %v3779_v53 = vadd.f32 %v3764_v32, %v3738_v18  ;;  %v3696_v52 = vadd.f32 %v11349_v31, %v8374_v41  ;;  %v10706_v32 = vrot.slane %v8645_v19, 2  ;;  %v3865_v18 = vrot.slane %v3851_v39, 2  ;;  %4616 = vrot.lane.b32.xlu1 %v11218_v27, %s5547_s15  ;;  %v11355_v39 = vld [vmem:[#allocation106_spill] sm:$0xff] }
 0x352   : > { %v3866_v25 = vrot.slane %v3854_v8, 2  ;;  %v3108_v41 = vadd.f32 %v10705_v33, %v8350_v54  ;;  %v8677_v21 = vsel %vm480_vm2, %v3862_v6, %v3863_v9  ;;  %v8683_v17 = vmul.f32 %v8666_v7, %v7838_v35 }
 0x353   : > { %v3799_v37 = vadd.f32 %v3793_v56, %v3779_v53  ;;  %11351 = vst [vmem:[#allocation97_spill] sm:$0xff] %v8677_v21  ;;  %v3737_v1 = vadd.f32 %v11352_v14, %v3696_v52  ;;  %v3882_v53 = vadd.f32 %v10706_v32, %v3841_v63  ;;  %v8693_v54 = vsel %vm3121_vm13, %v11355_v39, %v8668_v49  ;;  %v8706_v63 = vpop.permute.xlu2 %4618 }
 0x354   : > { %11353 = vst [vmem:[#allocation41_spill] sm:$0xff] %v8683_v17  ;;  %v8686_v56 = vsel %vm480_vm2, %v3865_v18, %v3866_v25  ;;  %v8697_v8 = vmul.f32 %v8668_v49, %v8586_v40  ;;  %v8704_v52 = vmul.f32 %v8693_v54, %v7838_v35  ;;  %v3792_v6 = vmul.f32 %v11343_v58, %v7824_v15 }
 0x355   : > { %11354 = vst [vmem:[#allocation54_spill] sm:$0xff] %v8686_v56  ;;  %v3778_v2 = vadd.f32 %v3761_v12, %v3737_v1  ;;  %v3840_v31 = vadd.f32 %v3825_v3, %v3799_v37  ;;  %v10704_v18 = vrot.slane %v8683_v17, 3  ;;  %v8713_v12 = vpop.permute.xlu0 %4016  ;;  %v11368_v56 = vrot.slane %v8327_v4, 2 }
 0x356   : > { %11356 = vst [vmem:[#allocation59_spill] sm:$0xff] %v8697_v8  ;;  %3119 = vrot.lane.b32.xlu0 %v3108_v41, %s5545_s11  ;;  %v10703_v51 = vrot.slane %v8697_v8, 3  ;;  %v10702_v50 = vrot.slane %v8704_v52, 3 }
 0x357   : > { %11357 = vst [vmem:[#allocation25_spill] sm:$0xff] %v8704_v52  ;;  %v3881_v14 = vadd.f32 %v3866_v25, %v3840_v31  ;;  %v8719_v37 = vpop.permute.xlu1 %3959  ;;  %v3798_v41 = vadd.f32 %v3792_v6, %v3778_v2  ;;  %v3452_v25 = vadd.f32 %v10704_v18, %v8490_v48  ;;  %v3058_v31 = vmul.f32 %v11187_v30, %v6839_v11 }
 0x358   : > { %11358 = vst [vmem:[#allocation70_spill] sm:$0xff] %v8706_v63  ;;  %v8717_v3 = vadd.f32 %v10703_v51, %v3882_v53  ;;  %v8733_v53 = vmul.f32 %v11355_v39, %v7824_v15  ;;  %v11361_v2 = vrot.slane %v8518_v57, 1  ;;  %v11362_v51 = vld [vmem:[#allocation22_spill] sm:$0xff]  ;;  %v8749_v18 = vmul.f32 %v11308_v43, %v6839_v11 }
 0x359   : > { %v3922_v1 = vadd.f32 %v10702_v50, %v3881_v14  ;;  %4659 = vrot.lane.b32.xlu1 %v11243_v24, %s5547_s15  ;;  %v3402_v14 = vmul.f32 %v11194_v16, %v6839_v11  ;;  %v2396_v48 = vsel %vm2086_vm5, %v11308_v43, %v11362_v51  ;;  %v8753_v57 = vmul.f32 %v11339_v46, %v6839_v11 }
 0x35a   : > { %11359 = vst [vmem:[#allocation98_spill] sm:$0xff] %v8717_v3  ;;  %v3839_v6 = vadd.f32 %v11361_v2, %v3798_v41  ;;  %v3066_v41 = vrot.slane %v3058_v31, 2  ;;  %v10708_v16 = vrot.slane %v8733_v53, 3  ;;  %v2400_v2 = vmul.f32 %v2396_v48, %v6848_v44  ;;  %v11366_v31 = vld [vmem:[#allocation21_spill] sm:$0xff] }
 0x35b   : > { %3938 = vrot.lane.b32.xlu2 %v3922_v1, %s5543_s24  ;;  %11360 = vst [vmem:[#allocation58_spill] sm:$0xff] %v8733_v53  ;;  %v8743_v1 = vpop.permute.xlu2 %4698  ;;  %v3410_v51 = vrot.slane %v3402_v14, 2  ;;  %v8767_v32 = vmul.f32 %v2396_v48, %v7838_v35  ;;  %v4063_v21 = vmul.f32 %v11366_v31, %v6843_v47  ;;  %v11370_v52 = vrot.slane %v8452_v45, 2 }
 0x35c   : > { %v3880_v50 = vadd.f32 %v3863_v9, %v3839_v6  ;;  %11363 = vst [vmem:[#allocation116_spill] sm:$0xff] %v8743_v1  ;;  %v11364_v9 = vld [vmem:[#allocation69_spill] sm:$0xff]  ;;  %v8810_v45 = vmul.f32 %v11355_v39, %v6839_v11 }
 0x35d   : > { %v11365_v6 = vld [vmem:[#allocation49_spill] sm:$0xff]  ;;  %v8796_v4 = vsel %vm480_vm2, %v3410_v51, %v11370_v52  ;;  %v4075_v14 = vrot.slane %v4063_v21, 3  ;;  %v11374_v51 = vld [vmem:[#allocation119_spill] sm:$0xff]  ;;  %v11381_v53 = vrot.slane %v8767_v32, 3 }
 0x35e   : > { %3463 = vrot.lane.b32.xlu0 %v3452_v25, %s5544_s29  ;;  %v8758_v25 = vpop.permute.xlu0 %4098  ;;  %v2740_v43 = vsel %vm2452_vm8, %v11339_v46, %v11365_v6  ;;  %v3921_v33 = vadd.f32 %v10708_v16, %v3880_v50  ;;  %v8780_v46 = vsel %vm480_vm2, %v3066_v41, %v11368_v56  ;;  %v4147_v6 = vmul.f32 %v8174_v28, %v11320_v0 }
 0x35f   : > { %v8745_v30 = vpop.permute.xlu1 %3961  ;;  %11369 = vst [vmem:[#allocation120_spill] sm:$0xff] %v8780_v46  ;;  %v2744_v50 = vmul.f32 %v2740_v43, %v6848_v44  ;;  %v8785_v48 = vmul.f32 %v2740_v43, %v7838_v35  ;;  %v8791_v16 = vmul.f32 %v8174_v28, %v11321_v62  ;;  %v8804_v56 = vmul.f32 %v11330_v13, %v11321_v62  ;;  %v11379_v46 = vld [vmem:[#allocation83_spill] sm:$0xff] }
 0x360   : > { %11371 = vst [vmem:[#allocation95_spill] sm:$0xff] %v8796_v4  ;;  %v2410_v41 = vrot.slane %v2400_v2, 3  ;;  %v8818_v23 = vmul.f32 %v11374_v51, %v7824_v15  ;;  %v11377_v2 = vld [vmem:[#allocation33_spill] sm:$0xff]  ;;  %v4163_v43 = vrot.slane %v4147_v6, 5  ;;  %v8834_v3 = vmul.f32 %v11379_v46, %v6843_v47 }
 0x361   : > { %4759 = vrot.lane.b32.xlu1 %v11364_v9, %s5547_s15  ;;  %v8773_v9 = vmul.f32 %v11366_v31, %v6839_v11  ;;  %11372 = vst [vmem:[#allocation64_spill] sm:$0xff] %v8810_v45  ;;  %v2754_v39 = vrot.slane %v2744_v50, 3  ;;  %v8838_v28 = vmul.f32 %v11379_v46, %v6839_v11  ;;  %v11385_v50 = vld [vmem:[#allocation34_spill] sm:$0xff] }
 0x362   : > { %11375 = vst [vmem:[#allocation122_spill] sm:$0xff] %v8818_v23  ;;  %v8845_v6 = vsel %vm1872_vm7, %v2410_v41, %v11381_v53 }
 0x363   : > { %11367 = vst [vmem:[#allocation87_spill] sm:$0xff] %v8773_v9  ;;  %v8830_v8 = vpop.permute.xlu2 %4761  ;;  %v11383_v4 = vrot.slane %v8773_v9, 3 }
 0x364   : > { %11378 = vst [vmem:[#allocation80_spill] sm:$0xff] %v8830_v8 }
 0x365   : > { %11380 = vst [vmem:[#allocation127_spill] sm:$0xff] %v8834_v3 }
 0x366   : > { %3936 = vrot.lane.b32.xlu0 %v3921_v33, %s5543_s24  ;;  %v8800_v33 = vmul.f32 %v11343_v58, %v6839_v11  ;;  %v4329_v58 = vmul.f32 %v11374_v51, %v6839_v11  ;;  %11382 = vst [vmem:[#allocation124_spill] sm:$0xff] %v8845_v6  ;;  %v8852_v17 = vpop.permute.xlu0 %4178  ;;  %v8859_v51 = vmul.f32 %v11385_v50, %v11321_v62 }
 0x367   : > { %v8812_v52 = vpop.permute.xlu1 %3973 }
 0x368   : > { %11373 = vst [vmem:[#allocation75_spill] sm:$0xff] %v8812_v52  ;;  %v3981_v13 = vmul.f32 %v8812_v52, %v6843_v47  ;;  %v8824_v21 = vmul.f32 %v8812_v52, %v6839_v11  ;;  %v3967_v52 = vmul.f32 %v8719_v37, %v6843_v47 }
 0x369   : > { %4741 = vrot.lane.b32.xlu1 %v11377_v2, %s5547_s15  ;;  %v8850_v2 = vsel %vm1872_vm7, %v4075_v14, %v11383_v4  ;;  %11386 = vst [vmem:[#allocation77_spill] sm:$0xff] %v8859_v51  ;;  %v11388_v14 = vrot.slane %v8785_v48, 3 }
 0x36a   : > { %11376 = vst [vmem:[#allocation92_spill] sm:$0xff] %v8824_v21  ;;  %v3993_v35 = vrot.slane %v3981_v13, 1  ;;  %v4341_v13 = vrot.slane %v4329_v58, 2  ;;  %v11387_v53 = vrot.slane %v8824_v21, 1  ;;  %v11400_v21 = vrot.slane %v8818_v23, 2 }
 0x36b   : > { %11384 = vst [vmem:[#allocation32_spill] sm:$0xff] %v8850_v2  ;;  %v8868_v4 = vsel %vm1872_vm7, %v2754_v39, %v11388_v14  ;;  %v11390_v2 = vrot.slane %v8791_v16, 5  ;;  %v11395_v39 = vld [vmem:[#allocation47_spill] sm:$0xff]  ;;  %v4024_v23 = vmul.f32 %v8713_v12, %v11320_v0 }
 0x36c   : > { %v3995_v41 = vsel %vm414_vm0, %v3993_v35, %v11387_v53  ;;  %11389 = vst [vmem:[#allocation113_spill] sm:$0xff] %v8868_v4  ;;  %v8881_v35 = vmul.f32 %v11385_v50, %v8586_v40  ;;  %v11393_v53 = vld [vmem:[#allocation81_spill] sm:$0xff]  ;;  %v8889_v14 = vmul.f32 %v11395_v39, %v11321_v62  ;;  %v8905_v9 = vmul.f32 %v11395_v39, %v8586_v40 }
 0x36d   : > { %v8873_v58 = vsel %vm1922_vm10, %v4163_v43, %v11390_v2  ;;  %v8875_v31 = vadd.f32 %v3995_v41, %v3967_v52  ;;  %v8885_v6 = vmul.f32 %v11393_v53, %v6843_v47  ;;  %v8893_v43 = vmul.f32 %v11393_v53, %v6839_v11 }
 0x36e   : > { %11391 = vst [vmem:[#allocation114_spill] sm:$0xff] %v8873_v58  ;;  %v4583_v52 = vmul.f32 %v8638_v5, %v6843_v47  ;;  %v8899_v2 = vmul.f32 %v8638_v5, %v6839_v11  ;;  %v8910_v3 = vsel %vm480_vm2, %v4341_v13, %v11400_v21  ;;  %v11403_v5 = vld [vmem:[#allocation42_spill] sm:$0xff]  ;;  %v4626_v4 = vmul.f32 %v8706_v63, %v11320_v0  ;;  %v8945_v58 = vpop.permute.xlu2 %4800 }
 0x36f   : > { %11392 = vst [vmem:[#allocation65_spill] sm:$0xff] %v8881_v35  ;;  %v8901_v41 = vpop.permute.xlu1 %3975  ;;  %v8923_v50 = vmul.f32 %v8706_v63, %v11321_v62  ;;  %v4706_v21 = vmul.f32 %v8743_v1, %v6843_v47  ;;  %v8929_v13 = vmul.f32 %v8743_v1, %v6839_v11  ;;  %v8943_v1 = vmul.f32 %v8410_v26, %v6839_v11 }
 0x370   : > { %11394 = vst [vmem:[#allocation45_spill] sm:$0xff] %v8885_v6  ;;  %v4595_v51 = vrot.slane %v4583_v52, 4  ;;  %v8958_v52 = vmul.f32 %v8666_v7, %v6848_v44  ;;  %v4642_v63 = vrot.slane %v4626_v4, 5  ;;  %v8962_v6 = vpop.permute.xlu0 %4221  ;;  %v11411_v35 = vrot.slane %v8767_v32, 3 }
 0x371   : > { %11396 = vst [vmem:[#allocation89_spill] sm:$0xff] %v8889_v14  ;;  %v8915_v14 = vmul.f32 %v8304_v42, %v6839_v11  ;;  %4841 = vrot.lane.b32.xlu1 %v11403_v5, %s5547_s15  ;;  %v8935_v5 = vmul.f32 %v8609_v20, %v6848_v44  ;;  %v8950_v20 = vmul.f32 %v8580_v22, %v11320_v0  ;;  %v10736_v26 = vrot.slane %v8923_v50, 5 }
 0x372   : > { %11397 = vst [vmem:[#allocation117_spill] sm:$0xff] %v8893_v43  ;;  %v4718_v42 = vrot.slane %v4706_v21, 7  ;;  %v11414_v7 = vrot.slane %v8899_v2, 4  ;;  %v9006_v21 = vmul.f32 %v8945_v58, %v7824_v15 }
 0x373   : > { %11398 = vst [vmem:[#allocation88_spill] sm:$0xff] %v8899_v2 }
 0x374   : > { %11399 = vst [vmem:[#allocation86_spill] sm:$0xff] %v8905_v9  ;;  %v8973_v4 = vsel %vm1897_vm9, %v4595_v51, %v11414_v7  ;;  %v4808_v51 = vmul.f32 %v8945_v58, %v6839_v11 }
 0x375   : > { %11401 = vst [vmem:[#allocation96_spill] sm:$0xff] %v8910_v3  ;;  %v3852_v3 = vmul.f32 %v8632_v36, %v11321_v62  ;;  %v8954_v36 = vmul.f32 %v8580_v22, %v11321_v62 }
 0x376   : > { %11402 = vst [vmem:[#allocation74_spill] sm:$0xff] %v8915_v14  ;;  %v11413_v14 = vld [vmem:[#allocation103_spill] sm:$0xff] }
 0x377   : > { %11404 = vst [vmem:[#allocation85_spill] sm:$0xff] %v8923_v50  ;;  %v3868_v43 = vrot.slane %v3852_v3, 2  ;;  %v8980_v3 = vmul.f32 %v8713_v12, %v11321_v62  ;;  %v8982_v45 = vpop.permute.xlu1 %4014 }
 0x378   : > { %11405 = vst [vmem:[#allocation90_spill] sm:$0xff] %v8929_v13  ;;  %v9010_v32 = vmul.f32 %v8982_v45, %v6839_v11 }
 0x379   : > { %11406 = vst [vmem:[#allocation30_spill] sm:$0xff] %v8943_v1 }
 0x37a   : > { %11407 = vst [vmem:[#allocation26_spill] sm:$0xff] %v8945_v58  ;;  %v9061_v58 = vadd.f32 %v8800_v33, %v8604_v10 }
 0x37b   : > { %11408 = vst [vmem:[#allocation38_spill] sm:$0xff] %v8950_v20  ;;  %v11410_v20 = vld [vmem:[#allocation109_spill] sm:$0xff] }
 0x37c   : > { %11409 = vst [vmem:[#allocation46_spill] sm:$0xff] %v8954_v36  ;;  %v2420_v22 = vadd.f32 %v11411_v35, %v11410_v20  ;;  %v11412_v36 = vld [vmem:[#allocation78_spill] sm:$0xff]  ;;  %v8987_v35 = vmul.f32 %v8830_v8, %v11321_v62  ;;  %v8997_v20 = vsel %vm1922_vm10, %v4642_v63, %v10736_v26  ;;  %v9019_v63 = vmul.f32 %v8830_v8, %v8586_v40 }
 0x37d   : > { %v2386_v9 = vadd.f32 %v11413_v14, %v11412_v36  ;;  %11415 = vst [vmem:[#allocation111_spill] sm:$0xff] %v8973_v4  ;;  %v4022_v14 = vmul.f32 %v8982_v45, %v6843_v47  ;;  %v11418_v36 = vrot.slane %v8929_v13, 7  ;;  %v4040_v13 = vrot.slane %v4024_v23, 2  ;;  %v11430_v4 = vld [vmem:[#allocation40_spill] sm:$0xff] }
 0x37e   : > { %11416 = vst [vmem:[#allocation121_spill] sm:$0xff] %v8987_v35  ;;  %2431 = vrot.lane.b32.xlu1 %v2420_v22, %s5547_s15  ;;  %v11421_v22 = vrot.slane %v8645_v19, 2  ;;  %v4106_v8 = vmul.f32 %v8758_v25, %v11320_v0  ;;  %v4186_v23 = vmul.f32 %v8852_v17, %v6843_v47  ;;  %v11431_v35 = vrot.slane %v8785_v48, 3 }
 0x37f   : > { %11417 = vst [vmem:[#allocation91_spill] sm:$0xff] %v8997_v20  ;;  %v9002_v7 = vsel %vm1972_vm12, %v4718_v42, %v11418_v36  ;;  %v4034_v26 = vrot.slane %v4022_v14, 2  ;;  %v11424_v42 = vrot.slane %v8496_v34, 3  ;;  %v11425_v36 = vrot.slane %v8749_v18, 3  ;;  %v9036_v18 = vpop.permute.xlu2 %4843 }
 0x380   : > { %11419 = vst [vmem:[#allocation43_spill] sm:$0xff] %v9002_v7  ;;  %v9015_v50 = vsel %vm480_vm2, %v3868_v43, %v11421_v22  ;;  %v10742_v20 = vrot.slane %v9010_v32, 2  ;;  %v4820_v22 = vrot.slane %v4808_v51, 2  ;;  %v9033_v14 = vmul.f32 %v8758_v25, %v11321_v62 }
 0x381   : > { %11420 = vst [vmem:[#allocation112_spill] sm:$0xff] %v9006_v21  ;;  %v2409_v7 = vsel %vm1872_vm7, %v11425_v36, %v11424_v42  ;;  %v11427_v42 = vrot.slane %v8622_v29, 1  ;;  %v11428_v36 = vrot.slane %v8804_v56, 1  ;;  %v2764_v2 = vadd.f32 %v11431_v35, %v11430_v4  ;;  %v9071_v56 = vpop.permute.xlu0 %4280 }
 0x382   : > { %11422 = vst [vmem:[#allocation94_spill] sm:$0xff] %v9015_v50  ;;  %v2417_v19 = vadd.f32 %v2409_v7, %v2386_v9  ;;  %v9042_v9 = vmul.f32 %v8852_v17, %v6839_v11  ;;  %v4036_v51 = vsel %vm480_vm2, %v4034_v26, %v10742_v20  ;;  %v11433_v26 = vrot.slane %v8980_v3, 2  ;;  %v11512_v50 = vld [vmem:[#allocation51_spill] sm:$0xff] }
 0x383   : > { %11423 = vst [vmem:[#allocation100_spill] sm:$0xff] %v9019_v63  ;;  %v3829_v43 = vsel %vm414_vm0, %v11428_v36, %v11427_v42  ;;  %v9054_v34 = vadd.f32 %v4036_v51, %v8875_v31  ;;  %v9073_v31 = vpop.permute.xlu1 %4057  ;;  %v11435_v51 = vld [vmem:[#allocation13_spill] sm:$0xff]  ;;  %v4122_v4 = vrot.slane %v4106_v8, 4  ;;  %v9082_v33 = vmul.f32 %v9036_v18, %v11321_v62  ;;  %v11447_v8 = vld [vmem:[#allocation6_spill] sm:$0xff]  ;;  %v11452_v63 = vld [vmem:[#allocation19_spill] sm:$0xff] }
 0x384   : > { %11426 = vst [vmem:[#allocation23_spill] sm:$0xff] %v9036_v18  ;;  %v9066_v7 = vsel %vm480_vm2, %v4040_v13, %v11433_v26  ;;  %v9069_v29 = vadd.f32 %v3829_v43, %v8634_v38  ;;  %v9077_v48 = vmul.f32 %v11435_v51, %v6839_v11  ;;  %v11438_v38 = vrot.slane %v9006_v21, 2  ;;  %v11444_v26 = vld [vmem:[#allocation104_spill] sm:$0xff]  ;;  %v11451_v21 = vld [vmem:[#allocation73_spill] sm:$0xff] }
 0x385   : > { %11429 = vst [vmem:[#allocation102_spill] sm:$0xff] %v9054_v34  ;;  %v9092_v35 = vmul.f32 %v9036_v18, %v8586_v40  ;;  %v4198_v43 = vrot.slane %v4186_v23, 6  ;;  %v9097_v42 = vmul.f32 %v8693_v54, %v6848_v44  ;;  %v9101_v36 = vmul.f32 %v8668_v49, %v11321_v62 }
 0x386   : > { %11432 = vst [vmem:[#allocation36_spill] sm:$0xff] %v9061_v58  ;;  %2775 = vrot.lane.b32.xlu1 %v2764_v2, %s5546_s14  ;;  %v9088_v13 = vsel %vm480_vm2, %v4820_v22, %v11438_v38  ;;  %v11443_v2 = vld [vmem:[#allocation61_spill] sm:$0xff]  ;;  %v11445_v22 = vrot.slane %v8592_v59, 3  ;;  %v11446_v38 = vrot.slane %v8753_v57, 3  ;;  %v4223_v23 = vsel %vm2777_vm14, %v11379_v46, %v8962_v6 }
 0x387   : > { %11434 = vst [vmem:[#allocation82_spill] sm:$0xff] %v9069_v29  ;;  %v2732_v20 = vadd.f32 %v11444_v26, %v11443_v2  ;;  %v4229_v54 = vmul.f32 %v8962_v6, %v11320_v0  ;;  %v9117_v49 = vmul.f32 %v11447_v8, %v6848_v44  ;;  %v11449_v2 = vrot.slane %v9033_v14, 4 }
 0x388   : > { %11436 = vst [vmem:[#allocation105_spill] sm:$0xff] %v9077_v48  ;;  %v2753_v10 = vsel %vm1872_vm7, %v11446_v38, %v11445_v22  ;;  %v9128_v26 = vmul.f32 %v8962_v6, %v11321_v62  ;;  %v11450_v38 = vld [vmem:[#allocation118_spill] sm:$0xff]  ;;  %v9137_v8 = vmul.f32 %v11452_v63, %v6839_v11  ;;  %v11458_v63 = vrot.slane %v9077_v48, 1  ;;  %v11467_v48 = vld [vmem:[#allocation15_spill] sm:$0xff] }
 0x389   : > { %11437 = vst [vmem:[#allocation107_spill] sm:$0xff] %v9082_v33  ;;  %v9123_v59 = vsel %vm1897_vm9, %v4122_v4, %v11449_v2  ;;  %v2761_v46 = vadd.f32 %v2753_v10, %v2732_v20  ;;  %v3077_v18 = vadd.f32 %v11451_v21, %v11450_v38  ;;  %v11454_v4 = vrot.slane %v9042_v9, 6  ;;  %v11456_v10 = vld [vmem:[#allocation72_spill] sm:$0xff] }
 0x38a   : > { %11439 = vst [vmem:[#allocation63_spill] sm:$0xff] %v9088_v13  ;;  %v1812_v13 = vmul.f32 %v11332_v60, %v6839_v11  ;;  %v9147_v57 = vmul.f32 %v4223_v23, %v11456_v10  ;;  %v9150_v21 = vmul.f32 %v4223_v23, %v6848_v44  ;;  %v4245_v38 = vrot.slane %v4229_v54, 7  ;;  %v11460_v20 = vld [vmem:[#allocation8_spill] sm:$0xff]  ;;  %v11462_v23 = vld [vmem:[#allocation14_spill] sm:$0xff] }
 0x38b   : > { %11440 = vst [vmem:[#allocation62_spill] sm:$0xff] %v9092_v35  ;;  %v9142_v2 = vsel %vm1947_vm11, %v4198_v43, %v11454_v4  ;;  %v9152_v22 = vpop.permute.xlu1 %4096  ;;  %v11459_v4 = vld [vmem:[#allocation5_spill] sm:$0xff]  ;;  %v9163_v35 = vmul.f32 %v11460_v20, %v6848_v44  ;;  %v9167_v54 = vmul.f32 %v11462_v23, %v6839_v11  ;;  %v11464_v60 = vrot.slane %v8630_v61, 3 }
 0x38c   : > { %11441 = vst [vmem:[#allocation76_spill] sm:$0xff] %v9097_v42  ;;  %v1836_v33 = vadd.f32 %v11458_v63, %v1812_v13  ;;  %v1813_v6 = vmul.f32 %v11459_v4, %v6848_v44  ;;  %v11465_v63 = vrot.slane %v8935_v5, 3  ;;  %v9177_v43 = vmul.f32 %v11344_v55, %v6848_v44  ;;  %v11482_v42 = vld [vmem:[#allocation7_spill] sm:$0xff] }
 0x38d   : > { %11442 = vst [vmem:[#allocation50_spill] sm:$0xff] %v9101_v36  ;;  %v9181_v4 = vmul.f32 %v11467_v48, %v6839_v11  ;;  %v3970_v20 = vmul.f32 %v8719_v37, %v6839_v11  ;;  %v9188_v61 = vmul.f32 %v9071_v56, %v6839_v11  ;;  %v11473_v48 = vrot.slane %v9117_v49, 1  ;;  %v11511_v36 = vld [vmem:[#allocation37_spill] sm:$0xff] }
 0x38e   : > { %11448 = vst [vmem:[#allocation123_spill] sm:$0xff] %v9117_v49  ;;  %2425 = vrot.lane.b32.xlu1 %v2417_v19, %s5547_s15  ;;  %v3100_v13 = vsel %vm1872_vm7, %v11465_v63, %v11464_v60  ;;  %v11470_v60 = vld [vmem:[#allocation11_spill] sm:$0xff]  ;;  %v9197_v19 = vmul.f32 %v9071_v56, %v7824_v15  ;;  %v11474_v55 = vrot.slane %v9137_v8, 2  ;;  %v11475_v51 = vrot.slane %v9128_v26, 7 }
 0x38f   : > { %11453 = vst [vmem:[#allocation71_spill] sm:$0xff] %v9137_v8  ;;  %v9192_v5 = vmul.f32 %v11470_v60, %v6848_v44  ;;  %v1837_v23 = vadd.f32 %v11473_v48, %v1813_v6  ;;  %v3963_v60 = vsel %vm2777_vm14, %v8719_v37, %v8745_v30  ;;  %v9213_v63 = vmul.f32 %v8901_v41, %v11321_v62 }
 0x390   : > { %11455 = vst [vmem:[#allocation53_spill] sm:$0xff] %v9142_v2  ;;  %v4324_v2 = vpop.permute.xlu0 %4323  ;;  %v9206_v34 = vsel %vm1972_vm12, %v4245_v38, %v11475_v51  ;;  %v3106_v58 = vadd.f32 %v3100_v13, %v3077_v18  ;;  %v10758_v49 = vrot.slane %v9163_v35, 2  ;;  %v9222_v6 = vmul.f32 %v8745_v30, %v11320_v0 }
 0x391   : > { %11457 = vst [vmem:[#allocation31_spill] sm:$0xff] %v9147_v57  ;;  %v1860_v57 = vadd.f32 %v11474_v55, %v1836_v33  ;;  %v3972_v37 = vmul.f32 %v8745_v30, %v11321_v62  ;;  %v9229_v13 = vmul.f32 %v3963_v60, %v11456_v10  ;;  %v11478_v51 = vrot.slane %v9167_v54, 3  ;;  %v11479_v30 = vld [vmem:[#allocation55_spill] sm:$0xff] }
 0x392   : > { %11461 = vst [vmem:[#allocation110_spill] sm:$0xff] %v9163_v35  ;;  %v1861_v33 = vadd.f32 %v10758_v49, %v1837_v23  ;;  %v4000_v8 = vrot.slane %v9213_v63, 1  ;;  %v9243_v18 = vmul.f32 %v11218_v27, %v6839_v11  ;;  %v3971_v23 = vmul.f32 %v3963_v60, %v6848_v44  ;;  %v11484_v49 = vld [vmem:[#allocation27_spill] sm:$0xff] }
 0x393   : > { %11463 = vst [vmem:[#allocation68_spill] sm:$0xff] %v9167_v54  ;;  %v9231_v48 = vpop.permute.xlu1 %4137  ;;  %v1885_v55 = vadd.f32 %v11478_v51, %v1860_v57  ;;  %v9252_v57 = vmul.f32 %v11484_v49, %v6839_v11  ;;  %v11489_v51 = vld [vmem:[#allocation119_spill] sm:$0xff]  ;;  %v9269_v60 = vmul.f32 %v9073_v31, %v11321_v62  ;;  %v11491_v49 = vld [vmem:[#allocation41_spill] sm:$0xff]  ;;  %v2387_v29 = vadd.f32 %v11512_v50, %v11511_v36 }
 0x394   : > { %11466 = vst [vmem:[#allocation52_spill] sm:$0xff] %v9177_v43  ;;  %v11490_v27 = vld [vmem:[#allocation75_spill] sm:$0xff]  ;;  %v11492_v54 = vrot.slane %v11491_v49, 3  ;;  %v9288_v49 = vsel %vm2777_vm14, %v8982_v45, %v8713_v12  ;;  %v11498_v45 = vld [vmem:[#allocation21_spill] sm:$0xff] }
 0x395   : > { %11468 = vst [vmem:[#allocation60_spill] sm:$0xff] %v9181_v4 }
 0x396   : > { %11469 = vst [vmem:[#allocation84_spill] sm:$0xff] %v9188_v61  ;;  %2769 = vrot.lane.b32.xlu1 %v2761_v46, %s5546_s14  ;;  %v11480_v61 = vld [vmem:[#allocation101_spill] sm:$0xff]  ;;  %v9256_v46 = vmul.f32 %v11243_v24, %v6848_v44  ;;  %v11493_v24 = vrot.slane %v8958_v52, 3  ;;  %v11499_v52 = vld [vmem:[#allocation126_spill] sm:$0xff] }
 0x397   : > { %11471 = vst [vmem:[#allocation106_spill] sm:$0xff] %v9192_v5  ;;  %v3421_v38 = vadd.f32 %v11480_v61, %v11479_v30  ;;  %v11487_v61 = vld [vmem:[#allocation20_spill] sm:$0xff]  ;;  %v4325_v30 = vsel %vm2777_vm14, %v11489_v51, %v4324_v2 }
 0x398   : > { %11472 = vst [vmem:[#allocation22_spill] sm:$0xff] %v9197_v19  ;;  %v9260_v63 = vmul.f32 %v11487_v61, %v6839_v11  ;;  %v9277_v61 = vmul.f32 %v4324_v2, %v11321_v62  ;;  %v4013_v19 = vadd.f32 %v4000_v8, %v3972_v37  ;;  %v11496_v37 = vld [vmem:[#allocation92_spill] sm:$0xff] }
 0x399   : > { %11476 = vst [vmem:[#allocation49_spill] sm:$0xff] %v9206_v34  ;;  %v9247_v34 = vmul.f32 %v11482_v42, %v6848_v44  ;;  %v3977_v42 = vsel %vm2777_vm14, %v11490_v27, %v8901_v41  ;;  %v11495_v27 = vrot.slane %v9181_v4, 4 }
 0x39a   : > { %11477 = vst [vmem:[#allocation83_spill] sm:$0xff] %v9231_v48 }
 0x39b   : > { %11481 = vst [vmem:[#allocation81_spill] sm:$0xff] %v9243_v18  ;;  %v1910_v1 = vadd.f32 %v11495_v27, %v1885_v55  ;;  %v9301_v55 = vmul.f32 %v3977_v42, %v6848_v44  ;;  %v4082_v27 = vrot.slane %v9269_v60, 3  ;;  %v11502_v60 = vrot.slane %v9010_v32, 2 }
 0x39c   : > { %11483 = vst [vmem:[#allocation47_spill] sm:$0xff] %v9247_v34 }
 0x39d   : > { %11485 = vst [vmem:[#allocation109_spill] sm:$0xff] %v9252_v57  ;;  %v11494_v57 = vrot.slane %v9177_v43, 3  ;;  %v11503_v43 = vrot.slane %v8980_v3, 2 }
 0x39e   : > { %11486 = vst [vmem:[#allocation78_spill] sm:$0xff] %v9256_v46  ;;  %v3444_v46 = vsel %vm1872_vm7, %v11493_v24, %v11492_v54  ;;  %v9293_v54 = vmul.f32 %v4325_v30, %v6848_v44  ;;  %v9316_v24 = vmul.f32 %v4325_v30, %v11499_v52  ;;  %v9334_v30 = vsel %vm2777_vm14, %v9152_v22, %v8758_v25 }
 0x39f   : > { %11488 = vst [vmem:[#allocation103_spill] sm:$0xff] %v9260_v63  ;;  %v9279_v63 = vpop.permute.xlu0 %4452  ;;  %v3450_v51 = vadd.f32 %v3444_v46, %v3421_v38  ;;  %v1886_v35 = vadd.f32 %v11494_v57, %v1861_v33  ;;  %v9296_v38 = vmul.f32 %v4324_v2, %v8586_v40  ;;  %v3983_v33 = vmul.f32 %v8901_v41, %v11320_v0 }
 0x3a0   : > { %v11497_v57 = vrot.slane %v11496_v37, 1  ;;  %v9308_v46 = vsel %vm2777_vm14, %v11498_v45, %v9073_v31  ;;  %v9313_v2 = vmul.f32 %v9152_v22, %v6839_v11  ;;  %v4347_v41 = vrot.slane %v9277_v61, 2  ;;  %11504 = vst [vmem:[#allocation61_spill] sm:$0xff] %v9334_v30  ;;  %3115 = vrot.lane.b32.xlu1 %v3106_v58, %s5545_s11 }
 0x3a1   : > { %v9321_v37 = vmul.f32 %v9288_v49, %v6848_v44  ;;  %v4054_v34 = vadd.f32 %v11503_v43, %v4013_v19  ;;  %v9338_v61 = vmul.f32 %v9231_v48, %v6839_v11  ;;  %v3999_v32 = vrot.slane %v3983_v33, 1 }
 0x3a2   : > { %v4011_v12 = vadd.f32 %v11497_v57, %v3970_v20  ;;  %v4181_v20 = vpop.permute.xlu1 %4180  ;;  %v11500_v57 = vrot.slane %v9192_v5, 4  ;;  %v9345_v3 = vmul.f32 %v9308_v46, %v6848_v44  ;;  %v4344_v43 = vrot.slane %v9293_v54, 2  ;;  %v11507_v54 = vld [vmem:[#allocation87_spill] sm:$0xff] }
 0x3a3   : > { %v4095_v19 = vadd.f32 %v4082_v27, %v4054_v34  ;;  %v3982_v58 = vmul.f32 %v3977_v42, %v11456_v10  ;;  %v4065_v33 = vmul.f32 %v9073_v31, %v11320_v0  ;;  %v11508_v34 = vrot.slane %v11507_v54, 3 }
 0x3a4   : > { %v9325_v45 = vadd.f32 %v11500_v57, %v1886_v35  ;;  %v4052_v4 = vadd.f32 %v11502_v60, %v4011_v12  ;;  %v3997_v57 = vrot.slane %v9301_v55, 1  ;;  %v11505_v12 = vld [vmem:[#allocation99_spill] sm:$0xff]  ;;  %v9360_v55 = vmul.f32 %v9334_v30, %v6848_v44 }
 0x3a5   : > { %v9352_v60 = vsel %vm2777_vm14, %v9231_v48, %v11505_v12  ;;  %v9367_v12 = vsel %vm2777_vm14, %v8852_v17, %v4181_v20  ;;  %v9370_v42 = vmul.f32 %v4181_v20, %v11321_v62  ;;  %v4001_v35 = vsel %vm414_vm0, %v3999_v32, %v4000_v8 }
 0x3a6   : > { %11501 = vst [vmem:[#allocation40_spill] sm:$0xff] %v9325_v45  ;;  %v4093_v5 = vadd.f32 %v11508_v34, %v4052_v4  ;;  %v4012_v45 = vadd.f32 %v3997_v57, %v3971_v23  ;;  %v9376_v30 = vmul.f32 %v9352_v60, %v6848_v44  ;;  %v11509_v54 = vrot.slane %v9033_v14, 4 }
 0x3a7   : > { %11506 = vst [vmem:[#allocation104_spill] sm:$0xff] %v9352_v60  ;;  %v4496_v31 = vpop.permute.xlu0 %4495  ;;  %v11510_v17 = vrot.slane %v9313_v2, 4  ;;  %v11513_v8 = vrot.slane %v9321_v37, 2  ;;  %v4081_v32 = vrot.slane %v4065_v33, 3  ;;  %v10778_v48 = vrot.slane %v9360_v55, 4 }
 0x3a8   : > { %v4136_v34 = vadd.f32 %v11509_v54, %v4095_v19  ;;  %v9390_v60 = vmul.f32 %v9367_v12, %v6848_v44  ;;  %v3996_v14 = vrot.slane %v3982_v58, 1  ;;  %v4010_v19 = vadd.f32 %v4001_v35, %v9222_v6  ;;  %3459 = vrot.lane.b32.xlu1 %v3450_v51, %s5544_s29 }
 0x3a9   : > { %v4134_v25 = vadd.f32 %v11510_v17, %v4093_v5  ;;  %v4053_v23 = vadd.f32 %v11513_v8, %v4012_v45  ;;  %v11514_v5 = vrot.slane %v9338_v61, 5  ;;  %v4205_v50 = vrot.slane %v9370_v42, 6 }
 0x3aa   : > { %v9392_v4 = vpop.permute.xlu1 %4260  ;;  %v9401_v36 = vmul.f32 %v9279_v63, %v6843_v47  ;;  %v11516_v45 = vrot.slane %v9345_v3, 3  ;;  %v11517_v58 = vrot.slane %v9243_v18, 5  ;;  %v11519_v6 = vrot.slane %v9296_v38, 2  ;;  %v11535_v18 = vld [vmem:[#allocation93_spill] sm:$0xff] }
 0x3ab   : > { %v4175_v54 = vadd.f32 %v11514_v5, %v4134_v25  ;;  %v9417_v51 = vmul.f32 %v9279_v63, %v6839_v11  ;;  %v11521_v25 = vrot.slane %v8791_v16, 5  ;;  %v11522_v5 = vld [vmem:[#allocation124_spill] sm:$0xff]  ;;  %v3998_v17 = vsel %vm414_vm0, %v3996_v14, %v3997_v57 }
 0x3ac   : > { %11515 = vst [vmem:[#allocation118_spill] sm:$0xff] %v9401_v36  ;;  %v4094_v33 = vadd.f32 %v11516_v45, %v4053_v23  ;;  %v9408_v8 = vadd.f32 %v11517_v58, %v1910_v1  ;;  %v9413_v35 = vsel %vm480_vm2, %v4347_v41, %v11519_v6  ;;  %v9422_v23 = vadd.f32 %v11522_v5, %v2387_v29  ;;  %v11533_v5 = vld [vmem:[#allocation120_spill] sm:$0xff] }
 0x3ad   : > { %11520 = vst [vmem:[#allocation72_spill] sm:$0xff] %v9417_v51  ;;  %v4177_v42 = vadd.f32 %v11521_v25, %v4136_v34  ;;  %v11523_v45 = vrot.slane %v9316_v24, 2  ;;  %v4083_v58 = vsel %vm1872_vm7, %v4081_v32, %v4082_v27  ;;  %v10777_v6 = vrot.slane %v9390_v60, 6 }
 0x3ae   : > { %11518 = vst [vmem:[#allocation73_spill] sm:$0xff] %v9408_v8  ;;  %v4135_v41 = vadd.f32 %v10778_v48, %v4094_v33  ;;  %v4051_v16 = vadd.f32 %v9066_v7, %v4010_v19  ;;  %v11525_v34 = vrot.slane %v9042_v9, 6  ;;  %v11526_v27 = vrot.slane %v9376_v30, 5  ;;  %v11539_v8 = vld [vmem:[#allocation82_spill] sm:$0xff] }
 0x3af   : > { %v9427_v1 = vsel %vm480_vm2, %v4344_v43, %v11523_v45  ;;  %v4218_v25 = vadd.f32 %v4205_v50, %v4177_v42  ;;  %v9440_v43 = vmul.f32 %v9288_v49, %v11456_v10  ;;  %v4188_v33 = vmul.f32 %v4181_v20, %v11320_v0  ;;  %v9463_v19 = vpop.permute.xlu0 %4534 }
 0x3b0   : > { %11524 = vst [vmem:[#allocation55_spill] sm:$0xff] %v9427_v1  ;;  %v4216_v29 = vadd.f32 %v11525_v34, %v4175_v54  ;;  %v4176_v32 = vadd.f32 %v11526_v27, %v4135_v41  ;;  %v4092_v57 = vadd.f32 %v4083_v58, %v4051_v16  ;;  %v9449_v9 = vsel %vm2777_vm14, %v9392_v4, %v11395_v39  ;;  %v11529_v16 = vld [vmem:[#allocation98_spill] sm:$0xff] }
 0x3b1   : > { %v4271_v7 = vmul.f32 %v9392_v4, %v7824_v15  ;;  %v9454_v14 = vadd.f32 %v3998_v17, %v9229_v13  ;;  %v9458_v49 = vsel %vm583_vm3, %v11393_v53, %v4496_v31  ;;  %v9461_v20 = vmul.f32 %v4496_v31, %v11320_v0  ;;  %3940 = vrot.lane.b32.xlu1 %v11529_v16, %s5543_s24  ;;  %v11532_v16 = vld [vmem:[#allocation29_spill] sm:$0xff] }
 0x3b2   : > { %v4217_v54 = vadd.f32 %v10777_v6, %v4176_v32  ;;  %v4283_v39 = vpop.permute.xlu1 %4282  ;;  %v9468_v42 = vmul.f32 %v4496_v31, %v11321_v62  ;;  %v11527_v58 = vrot.slane %v9128_v26, 7  ;;  %v11528_v17 = vrot.slane %v8838_v28, 7  ;;  %v11534_v6 = vld [vmem:[#allocation86_spill] sm:$0xff] }
 0x3b3   : > { %v9476_v53 = vsel %vm2777_vm14, %v9071_v56, %v4283_v39  ;;  %v4037_v34 = vrot.slane %v9440_v43, 2  ;;  %v4204_v27 = vrot.slane %v4188_v33, 6  ;;  %v4272_v31 = vmul.f32 %v9449_v9, %v11499_v52 }
 0x3b4   : > { %v4259_v13 = vadd.f32 %v11527_v58, %v4218_v25  ;;  %v4257_v41 = vadd.f32 %v11528_v17, %v4216_v29  ;;  %v9485_v26 = vmul.f32 %v9476_v53, %v11499_v52  ;;  %v9489_v29 = vmul.f32 %v9308_v46, %v11456_v10  ;;  %v11541_v17 = vld [vmem:[#allocation59_spill] sm:$0xff] }
 0x3b5   : > { %v4133_v56 = vadd.f32 %v9123_v59, %v4092_v57  ;;  %v4293_v32 = vmul.f32 %v4283_v39, %v8586_v40  ;;  %v9495_v43 = vmul.f32 %v9152_v22, %v6843_v47  ;;  %v11531_v33 = vrot.slane %v9150_v21, 7  ;;  %v11537_v57 = vld [vmem:[#allocation74_spill] sm:$0xff] }
 0x3b6   : > { %11530 = vst [vmem:[#allocation101_spill] sm:$0xff] %v9485_v26  ;;  %v4277_v25 = vadd.f32 %v4271_v7, %v4257_v41  ;;  %v3076_v45 = vadd.f32 %v11533_v5, %v11532_v16  ;;  %v4279_v46 = vadd.f32 %v11534_v6, %v4259_v13  ;;  %v11536_v59 = vrot.slane %v11535_v18, 3  ;;  %v11540_v22 = vld [vmem:[#allocation94_spill] sm:$0xff] }
 0x3b7   : > { %v4258_v58 = vadd.f32 %v11531_v33, %v4217_v54  ;;  %v4307_v48 = vrot.slane %v4293_v32, 1  ;;  %v11538_v7 = vrot.slane %v11537_v57, 3  ;;  %v3879_v40 = vadd.f32 %v11540_v22, %v11539_v8  ;;  %v11543_v5 = vld [vmem:[#allocation50_spill] sm:$0xff]  ;;  %v11548_v8 = vld [vmem:[#allocation61_spill] sm:$0xff] }
 0x3b8   : > { %v4206_v36 = vsel %vm1947_vm11, %v4204_v27, %v4205_v50  ;;  %v11542_v1 = vrot.slane %v11541_v17, 3  ;;  %v11544_v16 = vrot.slane %v11543_v5, 3  ;;  %v11545_v13 = vld [vmem:[#allocation114_spill] sm:$0xff]  ;;  %v4105_v22 = vmul.f32 %v11548_v8, %v11456_v10  ;;  %v11552_v17 = vld [vmem:[#allocation108_spill] sm:$0xff] }
 0x3b9   : > { %v3097_v41 = vsel %vm1872_vm7, %v11538_v7, %v11536_v59  ;;  %v4278_v54 = vadd.f32 %v4272_v31, %v4258_v58  ;;  %v4174_v18 = vadd.f32 %v11545_v13, %v4133_v56  ;;  %v11546_v32 = vld [vmem:[#allocation22_spill] sm:$0xff]  ;;  %v4320_v59 = vadd.f32 %v4307_v48, %v4279_v46  ;;  %v11551_v58 = vld [vmem:[#allocation44_spill] sm:$0xff]  ;;  %v9541_v46 = vpop.permute.xlu0 %4577 }
 0x3ba   : > { %v9511_v33 = vadd.f32 %v3097_v41, %v3076_v45  ;;  %v3911_v6 = vsel %vm1872_vm7, %v11544_v16, %v11542_v1  ;;  %v11547_v57 = vrot.slane %v11546_v32, 1  ;;  %v4290_v50 = vmul.f32 %v4283_v39, %v11321_v62  ;;  %v9526_v31 = vpop.permute.xlu1 %4362  ;;  %v11558_v13 = vld [vmem:[#allocation18_spill] sm:$0xff] }
 0x3bb   : > { %v3920_v7 = vadd.f32 %v3911_v6, %v3879_v40  ;;  %v11549_v45 = vrot.slane %v9485_v26, 1  ;;  %11550 = vst [vmem:[#allocation119_spill] sm:$0xff] %v9526_v31  ;;  %v2733_v1 = vadd.f32 %v11552_v17, %v11551_v58  ;;  %v4215_v41 = vadd.f32 %v4206_v36, %v4174_v18  ;;  %v11559_v18 = vld [vmem:[#allocation95_spill] sm:$0xff]  ;;  %v11562_v17 = vld [vmem:[#allocation65_spill] sm:$0xff]  ;;  %v11566_v26 = vld [vmem:[#allocation30_spill] sm:$0xff] }
 0x3bc   : > { %v4318_v51 = vadd.f32 %v11547_v57, %v4277_v25  ;;  %v11553_v56 = vrot.slane %v9296_v38, 2  ;;  %v11554_v25 = vld [vmem:[#allocation34_spill] sm:$0xff]  ;;  %v9539_v39 = vmul.f32 %v9526_v31, %v7824_v15  ;;  %v11557_v38 = vld [vmem:[#allocation113_spill] sm:$0xff]  ;;  %v3420_v57 = vadd.f32 %v11559_v18, %v11558_v13 }
 0x3bd   : > { %v4319_v27 = vadd.f32 %v11549_v45, %v4278_v54  ;;  %v9535_v40 = vsel %vm2777_vm14, %v9526_v31, %v11554_v25  ;;  %v11556_v54 = vld [vmem:[#allocation83_spill] sm:$0xff]  ;;  %v9550_v6 = vadd.f32 %v11557_v38, %v2733_v1  ;;  %v11564_v15 = vld [vmem:[#allocation17_spill] sm:$0xff]  ;;  %v11567_v31 = vrot.slane %v11566_v26, 3 }
 0x3be   : > { %v4361_v5 = vadd.f32 %v11553_v56, %v4320_v59  ;;  %11555 = vst [vmem:[#allocation75_spill] sm:$0xff] %v9535_v40  ;;  %v4145_v16 = vmul.f32 %v11556_v54, %v6843_v47  ;;  %v9547_v36 = vmul.f32 %v9535_v40, %v11499_v52  ;;  %v11560_v59 = vld [vmem:[#allocation122_spill] sm:$0xff]  ;;  %v4383_v58 = vrot.slane %v9539_v39, 3 }
 0x3bf   : > { %v11561_v8 = vrot.slane %v11560_v59, 2  ;;  %v11563_v56 = vrot.slane %v11562_v17, 3  ;;  %v11565_v54 = vrot.slane %v11564_v15, 3  ;;  %v4306_v40 = vrot.slane %v4290_v50, 1  ;;  %v11570_v15 = vld [vmem:[#allocation115_spill] sm:$0xff]  ;;  %v11574_v50 = vld [vmem:[#allocation76_spill] sm:$0xff] }
 0x3c0   : > { %v11568_v1 = vrot.slane %v9316_v24, 2  ;;  %v4386_v13 = vrot.slane %v9547_v36, 3 }
 0x3c1   : > { %v4359_v45 = vadd.f32 %v11561_v8, %v4318_v51  ;;  %v4402_v25 = vadd.f32 %v11563_v56, %v4361_v5  ;;  %v3441_v52 = vsel %vm1872_vm7, %v11567_v31, %v11565_v54  ;;  %v11569_v51 = vld [vmem:[#allocation49_spill] sm:$0xff]  ;;  %v11571_v5 = vld [vmem:[#allocation54_spill] sm:$0xff]  ;;  %v11575_v54 = vrot.slane %v11574_v50, 3  ;;  %v11579_v50 = vld [vmem:[#allocation36_spill] sm:$0xff] }
 0x3c2   : > { %v4360_v38 = vadd.f32 %v11568_v1, %v4319_v27  ;;  %v9567_v18 = vadd.f32 %v3441_v52, %v3420_v57  ;;  %v4256_v59 = vadd.f32 %v11569_v51, %v4215_v41  ;;  %v3878_v26 = vadd.f32 %v11571_v5, %v11570_v15  ;;  %v11572_v56 = vld [vmem:[#allocation25_spill] sm:$0xff]  ;;  %v11576_v1 = vld [vmem:[#allocation104_spill] sm:$0xff] }
 0x3c3   : > { %v4400_v8 = vadd.f32 %v4383_v58, %v4359_v45  ;;  %4419 = vrot.lane.b32.xlu1 %v4402_v25, %s5542_s28  ;;  %v11573_v31 = vrot.slane %v11572_v56, 3  ;;  %v9582_v52 = vmul.f32 %v9458_v49, %v11456_v10  ;;  %v4078_v27 = vrot.slane %v9489_v29, 3 }
 0x3c4   : > { %v4116_v41 = vrot.slane %v9495_v43, 4  ;;  %v4401_v57 = vadd.f32 %v4386_v13, %v4360_v38  ;;  %v9590_v45 = vmul.f32 %v9458_v49, %v6848_v44  ;;  %v4519_v25 = vrot.slane %v9461_v20, 2  ;;  %v9603_v49 = vpop.permute.xlu1 %4454 }
 0x3c5   : > { %v3908_v24 = vsel %vm1872_vm7, %v11575_v54, %v11573_v31  ;;  %v4146_v51 = vmul.f32 %v11576_v1, %v11456_v10  ;;  %4415 = vrot.lane.b32.xlu2 %v4400_v8, %s5542_s28  ;;  %v10795_v29 = vrot.slane %v9468_v42, 2  ;;  %v11577_v43 = vrot.slane %v9321_v37, 2  ;;  %v11578_v8 = vld [vmem:[#allocation89_spill] sm:$0xff] }
 0x3c6   : > { %v9596_v15 = vadd.f32 %v3908_v24, %v3878_v26  ;;  %v4157_v38 = vrot.slane %v4145_v16, 5  ;;  %v4308_v56 = vsel %vm414_vm0, %v4306_v40, %v4307_v48  ;;  %4417 = vrot.lane.b32.xlu0 %v4401_v57, %s5542_s28  ;;  %v4119_v20 = vrot.slane %v4105_v22, 4  ;;  %v11580_v54 = vld [vmem:[#allocation57_spill] sm:$0xff]  ;;  %v11582_v48 = vld [vmem:[#allocation102_spill] sm:$0xff]  ;;  %v11583_v40 = vld [vmem:[#allocation32_spill] sm:$0xff] }
 0x3c7   : > { %v4039_v5 = vsel %vm480_vm2, %v4037_v34, %v11577_v43  ;;  %v4187_v31 = vmul.f32 %v9367_v12, %v11456_v10  ;;  %v4276_v26 = vadd.f32 %v11578_v8, %v4256_v59  ;;  %v3836_v24 = vadd.f32 %v11580_v54, %v11579_v50  ;;  %v11585_v8 = vld [vmem:[#allocation97_spill] sm:$0xff]  ;;  %v9628_v54 = vpop.permute.xlu0 %4657 }
 0x3c8   : > { %v11581_v34 = vrot.slane %v9345_v3, 3  ;;  %v4090_v1 = vadd.f32 %v11583_v40, %v11582_v48  ;;  %v11584_v57 = vrot.slane %v9313_v2, 4  ;;  %v4160_v43 = vrot.slane %v4146_v51, 5 }
 0x3c9   : > { %v4317_v12 = vadd.f32 %v4308_v56, %v4276_v26  ;;  %v9623_v59 = vsel %vm583_vm3, %v9279_v63, %v9603_v49  ;;  %v3877_v50 = vadd.f32 %v11585_v8, %v3836_v24  ;;  %v10796_v3 = vrot.slane %v9590_v45, 2  ;;  %v11589_v56 = vld [vmem:[#allocation64_spill] sm:$0xff] }
 0x3ca   : > { %v4080_v16 = vsel %vm1872_vm7, %v4078_v27, %v11581_v34  ;;  %v4118_v22 = vsel %vm1897_vm9, %v4116_v41, %v11584_v57  ;;  %v4050_v27 = vadd.f32 %v4039_v5, %v9454_v14  ;;  %v11586_v34 = vrot.slane %v9338_v61, 5  ;;  %v11587_v41 = vld [vmem:[#allocation58_spill] sm:$0xff] }
 0x3cb   : > { %v11588_v51 = vrot.slane %v11587_v41, 3  ;;  %v11590_v26 = vrot.slane %v11589_v56, 3  ;;  %v11591_v63 = vrot.slane %v9360_v55, 4  ;;  %v4131_v40 = vadd.f32 %v4118_v22, %v4090_v1  ;;  %3934 = vrot.lane.b32.xlu1 %v3920_v7, %s5543_s24 }
 0x3cc   : > { %v4159_v2 = vsel %vm1922_vm10, %v4157_v38, %v11586_v34  ;;  %v4201_v57 = vrot.slane %v4187_v31, 6  ;;  %v9647_v61 = vsel %vm480_vm2, %v4519_v25, %v10795_v29  ;;  %v4091_v5 = vadd.f32 %v4080_v16, %v4050_v27  ;;  %v11592_v38 = vld [vmem:[#allocation67_spill] sm:$0xff]  ;;  %v11594_v16 = vld [vmem:[#allocation13_spill] sm:$0xff]  ;;  %v9674_v27 = vpop.permute.xlu1 %4438 }
 0x3cd   : > { %v3905_v48 = vsel %vm1872_vm7, %v11590_v26, %v11588_v51  ;;  %v4121_v24 = vsel %vm1897_vm9, %v4119_v20, %v11591_v63  ;;  %v4579_v8 = vsel %vm583_vm3, %v11592_v38, %v9541_v46  ;;  %v9654_v55 = vmul.f32 %v9623_v59, %v6848_v44  ;;  %2427 = vrot.lane.b32.xlu2 %v9422_v23, %s5547_s15 }
 0x3ce   : > { %v9642_v14 = vadd.f32 %v3905_v48, %v3877_v50  ;;  %v11593_v20 = vrot.slane %v9376_v30, 5  ;;  %v4172_v31 = vadd.f32 %v4159_v2, %v4131_v40  ;;  %v4358_v25 = vadd.f32 %v9413_v35, %v4317_v12  ;;  %3113 = vrot.lane.b32.xlu0 %v9511_v33, %s5545_s11  ;;  %v11596_v2 = vld [vmem:[#allocation79_spill] sm:$0xff]  ;;  %v11598_v48 = vld [vmem:[#allocation77_spill] sm:$0xff] }
 0x3cf   : > { %v9664_v1 = vmul.f32 %v11594_v16, %v6843_v47  ;;  %v4542_v22 = vmul.f32 %v9463_v19, %v6843_v47  ;;  %v9670_v50 = vmul.f32 %v9463_v19, %v6839_v11  ;;  %v4585_v30 = vmul.f32 %v9541_v46, %v11320_v0  ;;  %v11600_v40 = vld [vmem:[#allocation53_spill] sm:$0xff] }
 0x3d0   : > { %v4162_v7 = vsel %vm1922_vm10, %v4160_v43, %v11593_v20  ;;  %v4132_v43 = vadd.f32 %v4121_v24, %v4091_v5  ;;  %v4584_v35 = vmul.f32 %v4579_v8, %v11456_v10  ;;  %v9681_v23 = vmul.f32 %v9541_v46, %v11321_v62 }
 0x3d1   : > { %v11595_v12 = vrot.slane %v9390_v60, 6  ;;  %v9689_v41 = vsel %vm583_vm3, %v9674_v27, %v11596_v2  ;;  %v10797_v56 = vrot.slane %v9654_v55, 1  ;;  %v11597_v26 = vrot.slane %v11562_v17, 3  ;;  %v11602_v2 = vld [vmem:[#allocation84_spill] sm:$0xff] }
 0x3d2   : > { %v4173_v51 = vadd.f32 %v4162_v7, %v4132_v43  ;;  %v4450_v33 = vmul.f32 %v9689_v41, %v6848_v44  ;;  %v11599_v46 = vrot.slane %v11598_v48, 3  ;;  %v9700_v60 = vmul.f32 %v4579_v8, %v6848_v44  ;;  %v11605_v48 = vld [vmem:[#allocation127_spill] sm:$0xff] }
 0x3d3   : > { %v4203_v34 = vsel %vm1947_vm11, %v4201_v57, %v11595_v12  ;;  %v4665_v24 = vmul.f32 %v9628_v54, %v6843_v47  ;;  %v4213_v57 = vadd.f32 %v11600_v40, %v4172_v31  ;;  %v9707_v38 = vmul.f32 %v9628_v54, %v6839_v11 }
 0x3d4   : > { %v4390_v63 = vsel %vm1872_vm7, %v11599_v46, %v11597_v26  ;;  %v4214_v20 = vadd.f32 %v4203_v34, %v4173_v51  ;;  %v4289_v17 = vmul.f32 %v9476_v53, %v6848_v44  ;;  %v4491_v7 = vadd.f32 %v10797_v56, %v4450_v33  ;;  %v4701_v51 = vpop.permute.xlu0 %4700 }
 0x3d5   : > { %v4399_v5 = vadd.f32 %v4390_v63, %v4358_v25  ;;  %v4554_v43 = vrot.slane %v4542_v22, 3  ;;  %v10792_v8 = vrot.slane %v9670_v50, 3  ;;  %v11601_v12 = vrot.slane %v11546_v32, 1  ;;  %v11608_v32 = vld [vmem:[#allocation31_spill] sm:$0xff]  ;;  %2771 = vrot.lane.b32.xlu2 %v9550_v6, %s5546_s14 }
 0x3d6   : > { %v11603_v26 = vrot.slane %v11602_v2, 1  ;;  %v4268_v25 = vmul.f32 %v9392_v4, %v6839_v11  ;;  %v4601_v34 = vrot.slane %v4585_v30, 4  ;;  %v11604_v53 = vrot.slane %v8838_v28, 7  ;;  %3457 = vrot.lane.b32.xlu0 %v9567_v18, %s5544_s29 }
 0x3d7   : > { %4413 = vrot.lane.b32.xlu1 %v4399_v5, %s5542_s28  ;;  %v11606_v33 = vrot.slane %v11605_v48, 7  ;;  %v11607_v46 = vrot.slane %v9150_v21, 7  ;;  %v11609_v63 = vrot.slane %v11608_v32, 7  ;;  %v4598_v4 = vrot.slane %v4584_v35, 4  ;;  %v4537_v48 = vpop.permute.xlu1 %4536 }
 0x3d8   : > { %v4302_v31 = vsel %vm414_vm0, %v11603_v26, %v11601_v12  ;;  %v4532_v12 = vadd.f32 %v10796_v3, %v4491_v7  ;;  %v4599_v5 = vrot.slane %v9700_v60, 4  ;;  %v10791_v30 = vrot.slane %v9681_v23, 4  ;;  %v11610_v60 = vld [vmem:[#allocation119_spill] sm:$0xff] }
 0x3d9   : > { %v4241_v22 = vsel %vm1972_vm12, %v11606_v33, %v11604_v53  ;;  %v4244_v40 = vsel %vm1972_vm12, %v11609_v63, %v11607_v46  ;;  %v4677_v28 = vrot.slane %v4665_v24, 6  ;;  %v10793_v26 = vrot.slane %v9707_v38, 6  ;;  %v11613_v46 = vld [vmem:[#allocation116_spill] sm:$0xff]  ;;  %v11614_v63 = vld [vmem:[#allocation101_spill] sm:$0xff] }
 0x3da   : > { %v4254_v2 = vadd.f32 %v4241_v22, %v4213_v57  ;;  %v4255_v21 = vadd.f32 %v4244_v40, %v4214_v20  ;;  %v4303_v53 = vrot.slane %v4289_v17, 1  ;;  %v4269_v35 = vmul.f32 %v9449_v9, %v6848_v44  ;;  %v11611_v17 = vld [vmem:[#allocation75_spill] sm:$0xff] }
 0x3db   : > { %v4370_v33 = vmul.f32 %v11610_v60, %v6839_v11  ;;  %v4538_v57 = vsel %vm583_vm3, %v9463_v19, %v4537_v48  ;;  %v9750_v6 = vsel %vm1872_vm7, %v4554_v43, %v10792_v8  ;;  %v4462_v24 = vmul.f32 %v9603_v49, %v11320_v0 }
 0x3dc   : > { %v4274_v7 = vadd.f32 %v4268_v25, %v4254_v2  ;;  %v4465_v18 = vmul.f32 %v9603_v49, %v11321_v62  ;;  %v9757_v9 = vmul.f32 %v4538_v57, %v6848_v44  ;;  %v9760_v20 = vsel %vm1897_vm9, %v4598_v4, %v4599_v5  ;;  %v11612_v25 = vld [vmem:[#allocation6_spill] sm:$0xff] }
 0x3dd   : > { %v9765_v19 = vsel %vm1897_vm9, %v4601_v34, %v10791_v30  ;;  %v4371_v43 = vmul.f32 %v11611_v17, %v6848_v44  ;;  %v9771_v22 = vmul.f32 %v11612_v25, %v11456_v10  ;;  %v9776_v49 = vsel %vm1947_vm11, %v4677_v28, %v10793_v26  ;;  %3932 = vrot.lane.b32.xlu2 %v9596_v15, %s5543_s24 }
 0x3de   : > { %v4702_v32 = vsel %vm583_vm3, %v11613_v46, %v4701_v51  ;;  %v11615_v40 = vrot.slane %v11614_v63, 1  ;;  %v10794_v4 = vrot.slane %v9757_v9, 3  ;;  %v4275_v2 = vadd.f32 %v4269_v35, %v4255_v21  ;;  %v9802_v35 = vpop.permute.xlu0 %4739  ;;  %3930 = vrot.lane.b32.xlu0 %v9642_v14, %s5543_s24 }
 0x3df   : > { %v4315_v60 = vadd.f32 %v4302_v31, %v4274_v7  ;;  %v4382_v17 = vrot.slane %v4370_v33, 3  ;;  %v4449_v30 = vmul.f32 %v9674_v27, %v6839_v11  ;;  %v4461_v8 = vmul.f32 %v9623_v59, %v11456_v10  ;;  %v4617_v33 = vpop.permute.xlu1 %4616 }
 0x3e0   : > { %v4305_v34 = vsel %vm414_vm0, %v4303_v53, %v11615_v40  ;;  %v4478_v28 = vrot.slane %v4462_v24, 1  ;;  %v4479_v26 = vrot.slane %v4465_v18, 1  ;;  %v4573_v46 = vadd.f32 %v10794_v4, %v4532_v12  ;;  %v11616_v24 = vld [vmem:[#allocation72_spill] sm:$0xff] }
 0x3e1   : > { %v9791_v63 = vmul.f32 %v4701_v51, %v11320_v0  ;;  %v4316_v53 = vadd.f32 %v4305_v34, %v4275_v2  ;;  %v4385_v40 = vrot.slane %v4371_v43, 3  ;;  %v9797_v21 = vmul.f32 %v4702_v32, %v11456_v10  ;;  %v11618_v43 = vld [vmem:[#allocation70_spill] sm:$0xff]  ;;  %v11619_v2 = vld [vmem:[#allocation96_spill] sm:$0xff] }
 0x3e2   : > { %v9800_v59 = vmul.f32 %v4701_v51, %v11321_v62  ;;  %v4544_v12 = vmul.f32 %v4537_v48, %v11320_v0  ;;  %v4547_v7 = vmul.f32 %v4537_v48, %v11321_v62  ;;  %v11617_v15 = vrot.slane %v11616_v24, 1  ;;  %v11620_v48 = vld [vmem:[#allocation46_spill] sm:$0xff] }
 0x3e3   : > { %v4620_v34 = vsel %vm583_vm3, %v4617_v33, %v11618_v43  ;;  %v4356_v31 = vadd.f32 %v11619_v2, %v4315_v60  ;;  %v4384_v51 = vsel %vm1872_vm7, %v4382_v17, %v4383_v58  ;;  %v4475_v4 = vrot.slane %v4461_v8, 1 }
 0x3e4   : > { %v4490_v18 = vadd.f32 %v11617_v15, %v4449_v30  ;;  %v4480_v29 = vsel %vm414_vm0, %v4478_v28, %v4479_v26  ;;  %v4492_v37 = vadd.f32 %v4479_v26, %v11620_v48  ;;  %v9819_v3 = vmul.f32 %v4620_v34, %v6848_v44  ;;  %v11621_v15 = vld [vmem:[#allocation55_spill] sm:$0xff]  ;;  %v11622_v26 = vld [vmem:[#allocation38_spill] sm:$0xff]  ;;  %v11623_v48 = vld [vmem:[#allocation117_spill] sm:$0xff] }
 0x3e5   : > { %v4446_v14 = vmul.f32 %v9674_v27, %v6843_v47  ;;  %v4543_v30 = vmul.f32 %v4538_v57, %v11456_v10  ;;  %v4357_v43 = vadd.f32 %v11621_v15, %v4316_v53  ;;  %v4387_v39 = vsel %vm1872_vm7, %v4385_v40, %v4386_v13  ;;  %v11626_v13 = vld [vmem:[#allocation118_spill] sm:$0xff] }
 0x3e6   : > { %v4560_v58 = vrot.slane %v4544_v12, 3  ;;  %v4561_v8 = vrot.slane %v4547_v7, 3  ;;  %v4614_v60 = vadd.f32 %v4599_v5, %v4573_v46  ;;  %v4640_v17 = vrot.slane %v9819_v3, 5 }
 0x3e7   : > { %v4489_v28 = vadd.f32 %v4480_v29, %v11622_v26  ;;  %v4447_v2 = vmul.f32 %v9689_v41, %v11456_v10  ;;  %v11624_v27 = vrot.slane %v11623_v48, 2  ;;  %v4397_v57 = vadd.f32 %v4384_v51, %v4356_v31 }
 0x3e8   : > { %v9835_v53 = vmul.f32 %v4702_v32, %v6848_v44  ;;  %v11625_v36 = vrot.slane %v11616_v24, 1  ;;  %v11627_v40 = vrot.slane %v11626_v13, 1  ;;  %v4655_v46 = vadd.f32 %v4640_v17, %v4614_v60  ;;  %v4660_v60 = vpop.permute.xlu1 %4659 }
 0x3e9   : > { %v4531_v56 = vadd.f32 %v11624_v27, %v4490_v18  ;;  %v4398_v3 = vadd.f32 %v4387_v39, %v4357_v43  ;;  %v11628_v29 = vrot.slane %v9654_v55, 1  ;;  %v11629_v7 = vmov %v11624_v27  ;;  %v11630_v18 = vld [vmem:[#allocation45_spill] sm:$0xff]  ;;  %4409 = vrot.lane.b32.xlu2 %v4397_v57, %s5542_s28  ;;  %v4803_v57 = vpop.permute.xlu0 %4802 }
 0x3ea   : > { %v4474_v5 = vsel %vm414_vm0, %v11627_v40, %v11625_v36  ;;  %v11631_v31 = vrot.slane %v11630_v18, 2  ;;  %v11632_v51 = vrot.slane %v9590_v45, 2  ;;  %v11633_v24 = vrot.slane %v9582_v52, 2 }
 0x3eb   : > { %v4477_v12 = vsel %vm414_vm0, %v4475_v4, %v11628_v29  ;;  %v4487_v41 = vadd.f32 %v4474_v5, %v4446_v14  ;;  %v11634_v43 = vrot.slane %v9468_v42, 2  ;;  %v4557_v39 = vrot.slane %v4543_v30, 3  ;;  %4411 = vrot.lane.b32.xlu0 %v4398_v3, %s5542_s28  ;;  %v11637_v5 = vld [vmem:[#allocation26_spill] sm:$0xff] }
 0x3ec   : > { %v4515_v32 = vsel %vm480_vm2, %v11631_v31, %v11629_v7  ;;  %v4518_v15 = vsel %vm480_vm2, %v11633_v24, %v11632_v51  ;;  %v4562_v4 = vsel %vm1872_vm7, %v4560_v58, %v4561_v8  ;;  %v4627_v14 = vmul.f32 %v4617_v33, %v6839_v11 }
 0x3ed   : > { %v4533_v55 = vadd.f32 %v11634_v43, %v4492_v37  ;;  %v4488_v26 = vadd.f32 %v4477_v12, %v4447_v2  ;;  %v11635_v45 = vrot.slane %v9670_v50, 3  ;;  %v4530_v52 = vadd.f32 %v9647_v61, %v4489_v28  ;;  %v11638_v12 = vld [vmem:[#allocation88_spill] sm:$0xff] }
 0x3ee   : > { %v4661_v27 = vsel %vm583_vm3, %v9628_v54, %v4660_v60  ;;  %v4625_v42 = vmul.f32 %v4620_v34, %v11456_v10  ;;  %v4667_v37 = vmul.f32 %v4660_v60, %v11320_v0  ;;  %v4670_v58 = vmul.f32 %v4660_v60, %v11321_v62 }
 0x3ef   : > { %v4572_v48 = vadd.f32 %v11635_v45, %v4531_v56  ;;  %v4669_v30 = vmul.f32 %v4661_v27, %v6848_v44  ;;  %v4528_v36 = vadd.f32 %v4515_v32, %v4487_v41  ;;  %v4571_v13 = vadd.f32 %v4562_v4, %v4530_v52 }
 0x3f0   : > { %v4574_v2 = vadd.f32 %v4561_v8, %v4533_v55  ;;  %v4624_v50 = vmul.f32 %v4617_v33, %v6843_v47  ;;  %v11636_v56 = vrot.slane %v9757_v9, 3  ;;  %v4637_v28 = vrot.slane %v4627_v14, 5  ;;  %v4760_v4 = vpop.permute.xlu1 %4759 }
 0x3f1   : > { %v4666_v54 = vmul.f32 %v4661_v27, %v11456_v10  ;;  %v4681_v40 = vrot.slane %v4669_v30, 6  ;;  %v4722_v34 = vrot.slane %v9835_v53, 7  ;;  %v4804_v3 = vsel %vm583_vm3, %v11637_v5, %v4803_v57 }
 0x3f2   : > { %v4559_v61 = vsel %vm1872_vm7, %v4557_v39, %v11636_v56  ;;  %v4529_v29 = vadd.f32 %v4518_v15, %v4488_v26  ;;  %v11639_v41 = vrot.slane %v11638_v12, 4  ;;  %v4639_v8 = vrot.slane %v4625_v42, 5 }
 0x3f3   : > { %v4683_v18 = vrot.slane %v4667_v37, 6  ;;  %v4684_v33 = vrot.slane %v4670_v58, 6  ;;  %v4696_v31 = vadd.f32 %v4681_v40, %v4655_v46  ;;  %v4569_v9 = vadd.f32 %v9750_v6, %v4528_v36  ;;  %v11641_v46 = vld [vmem:[#allocation125_spill] sm:$0xff]  ;;  %v11644_v37 = vld [vmem:[#allocation111_spill] sm:$0xff] }
 0x3f4   : > { %v4613_v7 = vadd.f32 %v11639_v41, %v4572_v48  ;;  %v4570_v32 = vadd.f32 %v4559_v61, %v4529_v29  ;;  %v4612_v51 = vadd.f32 %v9765_v19, %v4571_v13  ;;  %v4636_v24 = vrot.slane %v4624_v50, 5  ;;  %v11642_v19 = vld [vmem:[#allocation66_spill] sm:$0xff] }
 0x3f5   : > { %v11640_v43 = vrot.slane %v9681_v23, 4  ;;  %v4680_v39 = vrot.slane %v4666_v54, 6  ;;  %v4737_v15 = vadd.f32 %v4722_v34, %v4696_v31  ;;  %v4721_v14 = vrot.slane %v9797_v21, 7  ;;  %v11648_v50 = vld [vmem:[#allocation126_spill] sm:$0xff]  ;;  %v11649_v54 = vld [vmem:[#allocation80_spill] sm:$0xff] }
 0x3f6   : > { %v4654_v55 = vadd.f32 %v4637_v28, %v4613_v7  ;;  %v4724_v60 = vrot.slane %v9791_v63, 7  ;;  %v4725_v26 = vrot.slane %v9800_v59, 7  ;;  %v4750_v6 = vmul.f32 %v9802_v35, %v11641_v46  ;;  %v11643_v59 = vld [vmem:[#allocation91_spill] sm:$0xff] }
 0x3f7   : > { %v4615_v53 = vadd.f32 %v11640_v43, %v4574_v2  ;;  %v4810_v45 = vmul.f32 %v4803_v57, %v11321_v62  ;;  %v9891_v48 = vmul.f32 %v4803_v57, %v11642_v19  ;;  %v4641_v23 = vsel %vm1922_vm10, %v4639_v8, %v4640_v17  ;;  %v11646_v57 = vld [vmem:[#allocation85_spill] sm:$0xff] }
 0x3f8   : > { %v4685_v52 = vsel %vm1947_vm11, %v4683_v18, %v4684_v33  ;;  %v9896_v27 = vmul.f32 %v4804_v3, %v6848_v44  ;;  %v4611_v21 = vadd.f32 %v9760_v20, %v4570_v32  ;;  %v4638_v63 = vsel %vm1922_vm10, %v4636_v24, %v4637_v28  ;;  %v11650_v18 = vld [vmem:[#allocation90_spill] sm:$0xff]  ;;  %v11652_v24 = vld [vmem:[#allocation100_spill] sm:$0xff] }
 0x3f9   : > { %v4653_v42 = vadd.f32 %v11643_v59, %v4612_v51  ;;  %v4610_v30 = vadd.f32 %v11644_v37, %v4569_v9  ;;  %v11645_v58 = vrot.slane %v9707_v38, 6  ;;  %v11647_v13 = vrot.slane %v11646_v57, 5  ;;  %v4742_v51 = vpop.permute.xlu1 %4741 }
 0x3fa   : > { %v4682_v17 = vsel %vm1947_vm11, %v4680_v39, %v4681_v40  ;;  %v9908_v56 = vmul.f32 %v4804_v3, %v11648_v50  ;;  %v4652_v61 = vadd.f32 %v4641_v23, %v4611_v21  ;;  %v4763_v20 = vsel %vm583_vm3, %v4760_v4, %v11649_v54 }
 0x3fb   : > { %v4695_v36 = vadd.f32 %v11645_v58, %v4654_v55  ;;  %v4656_v2 = vadd.f32 %v11647_v13, %v4615_v53  ;;  %v4694_v28 = vadd.f32 %v4685_v52, %v4653_v42  ;;  %v4826_v5 = vrot.slane %v4810_v45, 2  ;;  %v11654_v53 = vld [vmem:[#allocation121_spill] sm:$0xff] }
 0x3fc   : > { %v4827_v29 = vrot.slane %v9891_v48, 2  ;;  %v4651_v12 = vadd.f32 %v4638_v63, %v4610_v30  ;;  %v4770_v38 = vmul.f32 %v4760_v4, %v11641_v46  ;;  %v4726_v7 = vsel %vm1972_vm12, %v4724_v60, %v4725_v26  ;;  %v11673_v48 = vld [vmem:[#allocation19_spill] sm:$0xff] }
 0x3fd   : > { %v4697_v41 = vadd.f32 %v4684_v33, %v4656_v2  ;;  %v4693_v8 = vadd.f32 %v4682_v17, %v4652_v61  ;;  %v4723_v40 = vsel %vm1972_vm12, %v4721_v14, %v4722_v34  ;;  %v11651_v3 = vrot.slane %v11650_v18, 7 }
 0x3fe   : > { %v4768_v9 = vmul.f32 %v4763_v20, %v6848_v44  ;;  %v4771_v32 = vmul.f32 %v4763_v20, %v11648_v50  ;;  %v11653_v43 = vrot.slane %v11652_v24, 1  ;;  %v11655_v55 = vrot.slane %v11654_v53, 1 }
 0x3ff   : > { %v4736_v31 = vadd.f32 %v11651_v3, %v4695_v36  ;;  %v4735_v39 = vadd.f32 %v4726_v7, %v4694_v28  ;;  %v4743_v60 = vsel %vm583_vm3, %v9802_v35, %v4742_v51  ;;  %v4749_v34 = vmul.f32 %v4742_v51, %v11321_v62 }
 0x400   : > { %v4787_v33 = vsel %vm414_vm0, %v11655_v55, %v11653_v43  ;;  %v4752_v14 = vmul.f32 %v4742_v51, %v11642_v19  ;;  %v4692_v45 = vadd.f32 %v9776_v49, %v4651_v12  ;;  %v4738_v23 = vadd.f32 %v4725_v26, %v4697_v41 }
 0x401   : > { %v4748_v52 = vmul.f32 %v4743_v60, %v6848_v44  ;;  %v4751_v21 = vmul.f32 %v4743_v60, %v11648_v50  ;;  %v4767_v63 = vmul.f32 %v4760_v4, %v6839_v11  ;;  %v4780_v59 = vrot.slane %v4770_v38, 1  ;;  %v11656_v4 = vld [vmem:[#allocation123_spill] sm:$0xff]  ;;  %v11659_v38 = vld [vmem:[#allocation62_spill] sm:$0xff]  ;;  %v11666_v60 = vld [vmem:[#allocation8_spill] sm:$0xff] }
 0x402   : > { %v4734_v42 = vadd.f32 %v4723_v40, %v4693_v8  ;;  %v4755_v37 = vadd.f32 %v4749_v34, %v4735_v39  ;;  %v4782_v30 = vrot.slane %v4768_v9, 1  ;;  %v4783_v58 = vrot.slane %v4771_v32, 1  ;;  %v11663_v40 = vld [vmem:[#allocation43_spill] sm:$0xff]  ;;  %v4842_v9 = vpop.permute.xlu1 %4841 }
 0x403   : > { %v4757_v36 = vadd.f32 %v4751_v21, %v4737_v15  ;;  %v4758_v57 = vadd.f32 %v4752_v14, %v4738_v23  ;;  %v4756_v13 = vadd.f32 %v4750_v6, %v4736_v31  ;;  %v1824_v61 = vrot.slane %v9664_v1, 1  ;;  %v11661_v1 = vld [vmem:[#allocation107_spill] sm:$0xff] }
 0x404   : > { %v4754_v2 = vadd.f32 %v4748_v52, %v4734_v42  ;;  %v4796_v17 = vadd.f32 %v4787_v33, %v4755_v37  ;;  %v4823_v49 = vrot.slane %v9896_v27, 2  ;;  %v4828_v26 = vsel %vm480_vm2, %v4826_v5, %v4827_v29 }
 0x405   : > { %v4798_v54 = vadd.f32 %v4783_v58, %v4757_v36  ;;  %v11657_v20 = vrot.slane %v11656_v4, 1  ;;  %v11658_v28 = vrot.slane %v9771_v22, 1  ;;  %v4824_v15 = vrot.slane %v9908_v56, 2  ;;  %v11665_v56 = vld [vmem:[#allocation23_spill] sm:$0xff] }
 0x406   : > { %v4797_v6 = vadd.f32 %v4780_v59, %v4756_v13  ;;  %v4837_v41 = vadd.f32 %v4828_v26, %v4796_v17  ;;  %v11660_v7 = vrot.slane %v11659_v38, 3  ;;  %v11662_v8 = vrot.slane %v11661_v1, 3  ;;  %v11670_v26 = vld [vmem:[#allocation5_spill] sm:$0xff] }
 0x407   : > { %v1829_v12 = vsel %vm414_vm0, %v11658_v28, %v11657_v20  ;;  %v4733_v5 = vadd.f32 %v11663_v40, %v4692_v45  ;;  %v4779_v18 = vrot.slane %v4767_v63, 1  ;;  %v4784_v3 = vsel %vm414_vm0, %v4782_v30, %v4783_v58  ;;  %v11667_v45 = vld [vmem:[#allocation112_spill] sm:$0xff] }
 0x408   : > { %v4869_v27 = vsel %vm1872_vm7, %v11662_v8, %v11660_v7  ;;  %v11664_v22 = vmov %v11653_v43  ;;  %v4795_v32 = vadd.f32 %v4784_v3, %v4754_v2  ;;  %v4845_v51 = vsel %vm583_vm3, %v4842_v9, %v11665_v56  ;;  %v11675_v7 = vld [vmem:[#allocation47_spill] sm:$0xff] }
 0x409   : > { %v4799_v31 = vadd.f32 %v11664_v22, %v4758_v57  ;;  %v4852_v43 = vmul.f32 %v4842_v9, %v11641_v46  ;;  %v4878_v53 = vadd.f32 %v4869_v27, %v4837_v41  ;;  %v4849_v55 = vmul.f32 %v4842_v9, %v6839_v11  ;;  %v11674_v41 = vld [vmem:[#allocation40_spill] sm:$0xff]  ;;  %v11679_v9 = vld [vmem:[#allocation10_spill] sm:$0xff] }
 0x40a   : > { %v4850_v33 = vmul.f32 %v4845_v51, %v6848_v44  ;;  %v4853_v39 = vmul.f32 %v4845_v51, %v11648_v50  ;;  %v1841_v34 = vmul.f32 %v11666_v60, %v11456_v10  ;;  %v4747_v24 = vmul.f32 %v9802_v35, %v6839_v11  ;;  %v2430_v35 = vpop.permute.xlu0 %2429  ;;  %v11677_v27 = vld [vmem:[#allocation24_spill] sm:$0xff] }
 0x40b   : > { %v4825_v14 = vsel %vm480_vm2, %v4823_v49, %v4824_v15  ;;  %v11668_v23 = vrot.slane %v11667_v45, 2  ;;  %v4862_v21 = vrot.slane %v4852_v43, 3  ;;  %4892 = vrot.lane.b32.xlu1 %v4878_v53, %s5541_s25  ;;  %v4781_v63 = vsel %vm414_vm0, %v4779_v18, %v4780_v59  ;;  %v10004_v45 = vpop.permute.xlu2 %3117 }
 0x40c   : > { %v4839_v42 = vadd.f32 %v4824_v15, %v4798_v54  ;;  %v4864_v37 = vrot.slane %v4850_v33, 3  ;;  %v4865_v30 = vrot.slane %v4853_v39, 3  ;;  %v4753_v58 = vadd.f32 %v4747_v24, %v4733_v5  ;;  %v11671_v54 = vld [vmem:[#allocation105_spill] sm:$0xff]  ;;  %v11682_v33 = vld [vmem:[#allocation63_spill] sm:$0xff] }
 0x40d   : > { %v4838_v52 = vadd.f32 %v11668_v23, %v4797_v6  ;;  %v4836_v57 = vadd.f32 %v4825_v14, %v4795_v32  ;;  %v4840_v13 = vadd.f32 %v4827_v29, %v4799_v31  ;;  %v4861_v2 = vrot.slane %v4849_v55, 3  ;;  %v2432_v6 = vpop.permute.xlu1 %2431  ;;  %v11685_v23 = vld [vmem:[#allocation109_spill] sm:$0xff] }
 0x40e   : > { %v9970_v17 = vadd.f32 %v4865_v30, %v4839_v42  ;;  %v4866_v49 = vsel %vm1872_vm7, %v4864_v37, %v4865_v30  ;;  %v1811_v4 = vmul.f32 %v11670_v26, %v11456_v10  ;;  %v4794_v20 = vadd.f32 %v4781_v63, %v4753_v58  ;;  %v11687_v42 = vld [vmem:[#allocation12_spill] sm:$0xff] }
 0x40f   : > { %v4879_v36 = vadd.f32 %v4862_v21, %v4838_v52  ;;  %v4877_v59 = vadd.f32 %v4866_v49, %v4836_v57  ;;  %v11672_v28 = vrot.slane %v11671_v54, 1  ;;  %v1840_v29 = vmul.f32 %v11673_v48, %v6843_v47 }
 0x410   : > { %11669 = vst [vmem:[#allocation41_spill] sm:$0xff] %v9970_v17  ;;  %v11676_v1 = vrot.slane %v11675_v7, 5  ;;  %v1810_v40 = vmul.f32 %v11677_v27, %v6843_v47  ;;  %v1835_v5 = vadd.f32 %v1829_v12, %v1811_v4  ;;  %v1851_v18 = vrot.slane %v1841_v34, 2  ;;  %v11680_v12 = vld [vmem:[#allocation14_spill] sm:$0xff]  ;;  %v11691_v4 = vld [vmem:[#allocation73_spill] sm:$0xff] }
 0x411   : > { %4894 = vrot.lane.b32.xlu2 %v4879_v36, %s5541_s25  ;;  %v1826_v15 = vsel %vm414_vm0, %v1824_v61, %v11672_v28  ;;  %v2434_v3 = vsel %vm583_vm3, %v2430_v35, %v2432_v6  ;;  %v2444_v22 = vsel %vm2075_vm15, %v2432_v6, 0.0  ;;  %4890 = vrot.lane.b32.xlu0 %v4877_v59, %s5541_s25  ;;  %v11678_v61 = vrot.slane %v11659_v38, 3  ;;  %v11683_v38 = vld [vmem:[#allocation110_spill] sm:$0xff]  ;;  %v11688_v36 = vld [vmem:[#allocation71_spill] sm:$0xff] }
 0x412   : > { %v1936_v8 = vadd.f32 %v11676_v1, %v11674_v41  ;;  %v1865_v32 = vmul.f32 %v11679_v9, %v11456_v10  ;;  %v2443_v56 = vsel %vm1972_vm12, %v2434_v3, 0.0  ;;  %v4863_v51 = vsel %vm1872_vm7, %v4861_v2, %v4862_v21  ;;  %v11686_v21 = vld [vmem:[#allocation78_spill] sm:$0xff]  ;;  %v11690_v2 = vld [vmem:[#allocation11_spill] sm:$0xff] }
 0x413   : > { %v4881_v31 = vadd.f32 %v11678_v61, %v4840_v13  ;;  %v1834_v43 = vadd.f32 %v1826_v15, %v1810_v40  ;;  %v1864_v53 = vmul.f32 %v11680_v12, %v6843_v47  ;;  %v9997_v55 = vadd.f32 %v2444_v22, %v2443_v56  ;;  %v11692_v15 = vld [vmem:[#allocation52_spill] sm:$0xff]  ;;  %v11694_v41 = vld [vmem:[#allocation15_spill] sm:$0xff]  ;;  %v2774_v40 = vpop.permute.xlu0 %2773 }
 0x414   : > { %v4835_v39 = vadd.f32 %v11682_v33, %v4794_v20  ;;  %v1848_v34 = vrot.slane %v1840_v29, 2  ;;  %v11684_v24 = vrot.slane %v11683_v38, 2  ;;  %v10799_v52 = vrot.slane %v11685_v23, 6  ;;  %v11696_v61 = vld [vmem:[#allocation68_spill] sm:$0xff] }
 0x415   : > { %11681 = vst [vmem:[#allocation92_spill] sm:$0xff] %v9997_v55  ;;  %4898 = vrot.lane.b32.xlu1 %v4881_v31, %s5541_s25  ;;  %v1952_v63 = vrot.slane %v11686_v21, 6  ;;  %v10010_v37 = vmul.f32 %v11687_v42, %v6848_v44  ;;  %v11689_v57 = vrot.slane %v11688_v36, 2  ;;  %v1876_v35 = vrot.slane %v1865_v32, 3  ;;  %v11702_v36 = vld [vmem:[#allocation16_spill] sm:$0xff] }
 0x416   : > { %v1853_v14 = vsel %vm480_vm2, %v1851_v18, %v11684_v24  ;;  %v4876_v58 = vadd.f32 %v4863_v51, %v4835_v39  ;;  %v1890_v49 = vmul.f32 %v11690_v2, %v11456_v10  ;;  %v1960_v20 = vadd.f32 %v10799_v52, %v11691_v4  ;;  %v11695_v18 = vld [vmem:[#allocation103_spill] sm:$0xff]  ;;  %v11704_v4 = vld [vmem:[#allocation69_spill] sm:$0xff] }
 0x417   : > { %v1859_v30 = vadd.f32 %v1853_v14, %v1835_v5  ;;  %v1850_v13 = vsel %vm480_vm2, %v1848_v34, %v11689_v57  ;;  %v1961_v59 = vadd.f32 %v1952_v63, %v1936_v8  ;;  %v1873_v28 = vrot.slane %v1864_v53, 3  ;;  %v2776_v5 = vpop.permute.xlu1 %2775  ;;  %v11698_v53 = vld [vmem:[#allocation7_spill] sm:$0xff] }
 0x418   : > { %v1858_v54 = vadd.f32 %v1850_v13, %v1834_v43  ;;  %v11693_v29 = vrot.slane %v11692_v15, 3  ;;  %v1889_v1 = vmul.f32 %v11694_v41, %v6843_v47  ;;  %v10798_v3 = vrot.slane %v11695_v18, 7  ;;  %v10045_v13 = vpop.permute.xlu2 %3461  ;;  %v11706_v15 = vld [vmem:[#allocation33_spill] sm:$0xff] }
 0x419   : > { %4888 = vrot.lane.b32.xlu2 %v4876_v58, %s5541_s25  ;;  %v1977_v22 = vrot.slane %v10010_v37, 7  ;;  %v11697_v31 = vrot.slane %v11696_v61, 3  ;;  %v2779_v56 = vsel %vm2777_vm14, %v2774_v40, %v2776_v5  ;;  %v2789_v51 = vsel %vm2075_vm15, %v2776_v5, 0.0  ;;  %v11700_v37 = vld [vmem:[#allocation106_spill] sm:$0xff]  ;;  %v11709_v61 = vld [vmem:[#allocation9_spill] sm:$0xff] }
 0x41a   : > { %v1878_v6 = vsel %vm1872_vm7, %v1876_v35, %v11693_v29  ;;  %v1901_v43 = vrot.slane %v1890_v49, 4  ;;  %v1915_v33 = vmul.f32 %v11698_v53, %v11456_v10  ;;  %v2788_v39 = vsel %vm1972_vm12, %v2779_v56, 0.0  ;;  %v11703_v35 = vld [vmem:[#allocation39_spill] sm:$0xff] }
 0x41b   : > { %v1875_v8 = vsel %vm1872_vm7, %v1873_v28, %v11697_v31  ;;  %v1884_v32 = vadd.f32 %v1878_v6, %v1859_v30  ;;  %v1985_v34 = vadd.f32 %v10798_v3, %v1960_v20  ;;  %v1986_v38 = vadd.f32 %v1977_v22, %v1961_v59  ;;  %v11705_v59 = vld [vmem:[#allocation28_spill] sm:$0xff] }
 0x41c   : > { %v1883_v24 = vadd.f32 %v1875_v8, %v1858_v54  ;;  %v10038_v14 = vadd.f32 %v2789_v51, %v2788_v39  ;;  %v1898_v21 = vrot.slane %v1889_v1, 4  ;;  %v11701_v30 = vrot.slane %v11700_v37, 4  ;;  %v11707_v6 = vld [vmem:[#allocation60_spill] sm:$0xff] }
 0x41d   : > { %v1914_v57 = vmul.f32 %v11702_v36, %v6843_v47  ;;  %v1991_v49 = vmul.f32 %v11703_v35, %v11641_v46  ;;  %v10051_v20 = vmul.f32 %v11704_v4, %v11641_v46  ;;  %v10055_v54 = vmul.f32 %v11705_v59, %v11648_v50 }
 0x41e   : > { %11699 = vst [vmem:[#allocation21_spill] sm:$0xff] %v10038_v14  ;;  %v1903_v58 = vsel %vm1897_vm9, %v1901_v43, %v11701_v30  ;;  %v1992_v29 = vmul.f32 %v11706_v15, %v11648_v50  ;;  %v11708_v1 = vrot.slane %v11707_v6, 4  ;;  %v1926_v5 = vrot.slane %v1915_v33, 5  ;;  %v11712_v33 = vld [vmem:[#allocation48_spill] sm:$0xff] }
 0x41f   : > { %v1909_v28 = vadd.f32 %v1903_v58, %v1884_v32  ;;  %v1940_v31 = vmul.f32 %v11709_v61, %v11456_v10  ;;  %v1995_v8 = vadd.f32 %v1991_v49, %v1985_v34  ;;  %v1923_v43 = vrot.slane %v1914_v57, 5  ;;  %v11711_v32 = vld [vmem:[#allocation27_spill] sm:$0xff]  ;;  %v10075_v34 = vpop.permute.xlu1 %2425 }
 0x420   : > { %v1900_v40 = vsel %vm1897_vm9, %v1898_v21, %v11708_v1  ;;  %v1996_v51 = vadd.f32 %v1992_v29, %v1986_v38  ;;  %v11710_v39 = vrot.slane %v11675_v7, 5  ;;  %v1939_v30 = vmul.f32 %v11711_v32, %v6843_v47  ;;  %v11713_v38 = vld [vmem:[#allocation56_spill] sm:$0xff]  ;;  %v11714_v7 = vld [vmem:[#allocation81_spill] sm:$0xff]  ;;  %v10089_v52 = vpop.permute.xlu2 %3938 }
 0x421   : > { %v1908_v56 = vadd.f32 %v1900_v40, %v1883_v24  ;;  %v2008_v58 = vrot.slane %v10051_v20, 1  ;;  %v2011_v6 = vrot.slane %v10055_v54, 1  ;;  %v10073_v21 = vmul.f32 %v11712_v33, %v11641_v46 }
 0x422   : > { %v1928_v37 = vsel %vm1922_vm10, %v1926_v5, %v11710_v39  ;;  %v10079_v24 = vmul.f32 %v11713_v38, %v11648_v50  ;;  %v11715_v57 = vrot.slane %v11714_v7, 5  ;;  %v1951_v29 = vrot.slane %v1940_v31, 6  ;;  %v11717_v7 = vld [vmem:[#allocation42_spill] sm:$0xff] }
 0x423   : > { %v1934_v1 = vadd.f32 %v1928_v37, %v1909_v28  ;;  %v1965_v20 = vmul.f32 %v11687_v42, %v11456_v10  ;;  %v2019_v54 = vadd.f32 %v2008_v58, %v1995_v8  ;;  %v2020_v5 = vadd.f32 %v2011_v6, %v1996_v51  ;;  %v11716_v37 = vld [vmem:[#allocation20_spill] sm:$0xff]  ;;  %v11718_v8 = vld [vmem:[#allocation35_spill] sm:$0xff] }
 0x424   : > { %v1925_v49 = vsel %vm1922_vm10, %v1923_v43, %v11715_v57  ;;  %v1948_v39 = vrot.slane %v1939_v30, 6  ;;  %v1953_v28 = vsel %vm1947_vm11, %v1951_v29, %v1952_v63  ;;  %v1964_v3 = vmul.f32 %v11716_v37, %v6843_v47  ;;  %v10104_v30 = vpop.permute.xlu0 %3119 }
 0x425   : > { %v1933_v40 = vadd.f32 %v1925_v49, %v1908_v56  ;;  %v2032_v14 = vrot.slane %v10073_v21, 2  ;;  %v10094_v43 = vmul.f32 %v11717_v7, %v11641_v46  ;;  %v1959_v31 = vadd.f32 %v1953_v28, %v1934_v1 }
 0x426   : > { %v2035_v57 = vrot.slane %v10079_v24, 2  ;;  %v10099_v56 = vmul.f32 %v11718_v8, %v11648_v50  ;;  %v11719_v63 = vrot.slane %v11685_v23, 6  ;;  %v1976_v47 = vrot.slane %v1965_v20, 7 }
 0x427   : > { %v2043_v49 = vadd.f32 %v2032_v14, %v2019_v54  ;;  %v1973_v55 = vrot.slane %v1964_v3, 7  ;;  %v10800_v1 = vrot.slane %v10094_v43, 3  ;;  %v11720_v17 = vrot.slane %v11695_v18, 7 }
 0x428   : > { %v1950_v51 = vsel %vm1947_vm11, %v1948_v39, %v11719_v63  ;;  %v2044_v29 = vadd.f32 %v2035_v57, %v2020_v5  ;;  %v1978_v46 = vsel %vm1972_vm12, %v1976_v47, %v1977_v22  ;;  %v2059_v28 = vrot.slane %v10099_v56, 3  ;;  %v10122_v5 = vpop.permute.xlu1 %2769 }
 0x429   : > { %v1958_v21 = vadd.f32 %v1950_v51, %v1933_v40  ;;  %v1984_v24 = vadd.f32 %v1978_v46, %v1959_v31  ;;  %v1975_v23 = vsel %vm1972_vm12, %v1973_v55, %v11720_v17  ;;  %v2000_v20 = vmul.f32 %v11705_v59, %v6848_v44  ;;  %v10126_v55 = vpop.permute.xlu2 %4415 }
 0x42a   : > { %v2067_v54 = vadd.f32 %v10800_v1, %v2043_v49  ;;  %v1990_v3 = vmul.f32 %v11706_v15, %v6848_v44  ;;  %v10120_v22 = vmul.f32 %v11612_v25, %v11321_v62  ;;  %v2068_v39 = vadd.f32 %v2059_v28, %v2044_v29 }
 0x42b   : > { %v1983_v40 = vadd.f32 %v1975_v23, %v1958_v21  ;;  %v1999_v17 = vmul.f32 %v11704_v4, %v6839_v11  ;;  %v1989_v18 = vmul.f32 %v11703_v35, %v6839_v11  ;;  %v4922_v56 = vmul.f32 %v11612_v25, %v11320_v0 }
 0x42c   : > { %v1994_v31 = vadd.f32 %v1990_v3, %v1984_v24  ;;  %v2010_v63 = vrot.slane %v2000_v20, 1  ;;  %v2024_v51 = vmul.f32 %v11713_v38, %v6848_v44  ;;  %v2074_v47 = vsel %vm1972_vm12, %v2067_v54, 0.0  ;;  %v10144_v20 = vpop.permute.xlu0 %3463 }
 0x42d   : > { %v1993_v49 = vadd.f32 %v1989_v18, %v1983_v40  ;;  %v2023_v21 = vmul.f32 %v11712_v33, %v6839_v11  ;;  %v2076_v46 = vsel %vm2075_vm15, %v2068_v39, 0.0  ;;  %v2007_v23 = vrot.slane %v1999_v17, 1 }
 0x42e   : > { %v2012_v24 = vsel %vm414_vm0, %v2010_v63, %v2011_v6  ;;  %v10142_v25 = vmul.f32 %v11594_v16, %v6848_v44  ;;  %v2047_v54 = vmul.f32 %v11717_v7, %v6839_v11  ;;  %v4932_v40 = vrot.slane %v4922_v56, 1 }
 0x42f   : > { %v2018_v3 = vadd.f32 %v2012_v24, %v1994_v31  ;;  %v10150_v18 = vmul.f32 %v11666_v60, %v11321_v62  ;;  %v2009_v39 = vsel %vm414_vm0, %v2007_v23, %v2008_v58  ;;  %v2034_v17 = vrot.slane %v2024_v51, 2 }
 0x430   : > { %v2048_v6 = vmul.f32 %v11718_v8, %v6848_v44  ;;  %v4921_v63 = vmul.f32 %v11594_v16, %v11456_v10  ;;  %v2017_v1 = vadd.f32 %v2009_v39, %v1993_v49  ;;  %v2031_v29 = vrot.slane %v2023_v21, 2 }
 0x431   : > { %v11721_v31 = vrot.slane %v10120_v22, 1  ;;  %v4944_v56 = vmul.f32 %v11666_v60, %v11320_v0  ;;  %v2077_v24 = vadd.f32 %v2076_v46, %v2074_v47  ;;  %v2036_v7 = vsel %vm480_vm2, %v2034_v17, %v2035_v57  ;;  %v2428_v39 = vpop.permute.xlu2 %2427 }
 0x432   : > { %v4918_v58 = vmul.f32 %v11670_v26, %v11320_v0  ;;  %v4930_v51 = vrot.slane %v10142_v25, 1  ;;  %v2033_v23 = vsel %vm480_vm2, %v2031_v29, %v2032_v14  ;;  %v2042_v16 = vadd.f32 %v2036_v7, %v2018_v3 }
 0x433   : > { %v4934_v11 = vsel %vm414_vm0, %v4932_v40, %v11721_v31  ;;  %v4955_v49 = vrot.slane %v10150_v18, 2  ;;  %v10170_v21 = vmul.f32 %v11679_v9, %v11321_v62  ;;  %v10172_v40 = vpop.permute.xlu1 %3115  ;;  %v2058_v60 = vrot.slane %v2048_v6, 3 }
 0x434   : > { %v4929_v47 = vrot.slane %v4921_v63, 1  ;;  %v4940_v46 = vadd.f32 %v4934_v11, %v4918_v58  ;;  %v10176_v57 = vmul.f32 %v11673_v48, %v6848_v44  ;;  %v2041_v17 = vadd.f32 %v2033_v23, %v2017_v1 }
 0x435   : > { %v2055_v31 = vrot.slane %v2047_v54, 3  ;;  %v4954_v14 = vrot.slane %v4944_v56, 2  ;;  %v4966_v7 = vmul.f32 %v11679_v9, %v11320_v0  ;;  %v2060_v29 = vsel %vm1872_vm7, %v2058_v60, %v2059_v28 }
 0x436   : > { %v4917_v3 = vmul.f32 %v11677_v27, %v11456_v10  ;;  %v4931_v6 = vsel %vm414_vm0, %v4929_v47, %v4930_v51  ;;  %v4943_v63 = vmul.f32 %v11673_v48, %v11456_v10  ;;  %v2066_v11 = vadd.f32 %v2060_v29, %v2042_v16  ;;  %v10204_v16 = vpop.permute.xlu0 %3936 }
 0x437   : > { %v4956_v1 = vsel %vm480_vm2, %v4954_v14, %v4955_v49  ;;  %v10802_v54 = vrot.slane %v10170_v21, 3  ;;  %v10194_v9 = vmul.f32 %v11690_v2, %v11321_v62  ;;  %v11722_v28 = vrot.slane %v10094_v43, 3 }
 0x438   : > { %v10803_v58 = vrot.slane %v10176_v57, 2  ;;  %v4962_v23 = vadd.f32 %v4956_v1, %v4940_v46  ;;  %v10202_v48 = vmul.f32 %v11680_v12, %v6848_v44  ;;  %v4939_v47 = vadd.f32 %v4931_v6, %v4917_v3 }
 0x439   : > { %v2057_v56 = vsel %vm1872_vm7, %v2055_v31, %v11722_v28  ;;  %v4976_v14 = vrot.slane %v4966_v7, 3  ;;  %v4988_v29 = vmul.f32 %v11690_v2, %v11320_v0  ;;  %v2433_v43 = vsel %vm583_vm3, %v10075_v34, %v2428_v39 }
 0x43a   : > { %v2065_v60 = vadd.f32 %v2057_v56, %v2041_v17  ;;  %v2439_v31 = vsel %vm2069_vm6, %v2428_v39, 0.0  ;;  %v4951_v28 = vrot.slane %v4943_v63, 2  ;;  %v4965_v46 = vmul.f32 %v11680_v12, %v11456_v10 }
 0x43b   : > { %2078 = vadd.xlane.f32.xlu0 %v2077_v24  ;;  %v2070_v1 = vsel %vm2069_vm6, %v2066_v11, 0.0  ;;  %v4978_v17 = vsel %vm1872_vm7, %v4976_v14, %v10802_v54  ;;  %v4999_v7 = vrot.slane %v10194_v9, 4  ;;  %v10220_v2 = vmul.f32 %v11698_v53, %v11321_v62  ;;  %v10232_v56 = vpop.permute.xlu1 %3459 }
 0x43c   : > { %v4953_v34 = vsel %vm480_vm2, %v4951_v28, %v10803_v58  ;;  %v4974_v24 = vrot.slane %v10202_v48, 3  ;;  %v4984_v39 = vadd.f32 %v4978_v17, %v4962_v23  ;;  %v10228_v12 = vmul.f32 %v11694_v41, %v6848_v44  ;;  %v2772_v28 = vpop.permute.xlu2 %2771 }
 0x43d   : > { %v2440_v3 = vadd.f32 %v2439_v31, %v2433_v43  ;;  %v4961_v6 = vadd.f32 %v4953_v34, %v4939_v47  ;;  %v4998_v63 = vrot.slane %v4988_v29, 4  ;;  %v5010_v11 = vmul.f32 %v11698_v53, %v11320_v0 }
 0x43e   : > { %v4973_v14 = vrot.slane %v4965_v46, 3  ;;  %v4987_v54 = vmul.f32 %v11694_v41, %v11456_v10  ;;  %v2071_v58 = vadd.f32 %v2070_v1, %v2065_v60  ;;  %v10804_v43 = vrot.slane %v10220_v2, 5  ;;  %v10252_v31 = vpop.permute.xlu0 %4417 }
 0x43f   : > { %v5000_v23 = vsel %vm1897_vm9, %v4998_v63, %v4999_v7  ;;  %v10242_v47 = vmul.f32 %v11709_v61, %v11321_v62  ;;  %v4996_v29 = vrot.slane %v10228_v12, 4  ;;  %v10250_v60 = vmul.f32 %v11702_v36, %v6848_v44 }
 0x440   : > { %v4975_v53 = vsel %vm1872_vm7, %v4973_v14, %v4974_v24  ;;  %v5006_v41 = vadd.f32 %v5000_v23, %v4984_v39  ;;  %v5020_v1 = vrot.slane %v5010_v11, 5  ;;  %v5032_v17 = vmul.f32 %v11709_v61, %v11320_v0 }
 0x441   : > { %v4983_v46 = vadd.f32 %v4975_v53, %v4961_v6  ;;  %v2778_v34 = vsel %vm2777_vm14, %v10122_v5, %v2772_v28  ;;  %v4995_v63 = vrot.slane %v4987_v54, 4  ;;  %v5009_v39 = vmul.f32 %v11702_v36, %v11456_v10 }
 0x442   : > { %2441 = vadd.xlane.f32.xlu2 %v2440_v3  ;;  %v2784_v3 = vsel %vm2069_vm6, %v2772_v28, 0.0  ;;  %v5022_v14 = vsel %vm1922_vm10, %v5020_v1, %v10804_v43  ;;  %v5043_v6 = vrot.slane %v10242_v47, 6  ;;  %v10267_v11 = vmul.f32 %v11687_v42, %v11321_v62 }
 0x443   : > { %2072 = vadd.xlane.f32.xlu0 %v2071_v58  ;;  %v4997_v61 = vsel %vm1897_vm9, %v4995_v63, %v4996_v29  ;;  %v5018_v5 = vrot.slane %v10250_v60, 5  ;;  %v5028_v54 = vadd.f32 %v5022_v14, %v5006_v41  ;;  %v10275_v36 = vmul.f32 %v11711_v32, %v6848_v44 }
 0x444   : > { %v2785_v58 = vadd.f32 %v2784_v3, %v2778_v34  ;;  %v5005_v28 = vadd.f32 %v4997_v61, %v4983_v46  ;;  %v5042_v23 = vrot.slane %v5032_v17, 6  ;;  %v5054_v53 = vmul.f32 %v11687_v42, %v11320_v0  ;;  %v10288_v46 = vpop.permute.xlu1 %3940 }
 0x445   : > { %v3123_v1 = vsel %vm3121_vm13, %v10004_v45, %v10104_v30  ;;  %v5017_v43 = vrot.slane %v5009_v39, 5  ;;  %v5031_v63 = vmul.f32 %v11711_v32, %v11456_v10  ;;  %v5065_v34 = vrot.slane %v10267_v11, 7 }
 0x446   : > { %v5044_v41 = vsel %vm1947_vm11, %v5042_v23, %v5043_v6  ;;  %v5040_v42 = vrot.slane %v10275_v36, 6  ;;  %v10296_v17 = vmul.f32 %v11716_v37, %v6848_v44  ;;  %v3132_v32 = vsel %vm1972_vm12, %v3123_v1, 0.0  ;;  %v3114_v39 = vpop.permute.xlu0 %3113 }
 0x447   : > { %v5019_v0 = vsel %vm1922_vm10, %v5017_v43, %v5018_v5  ;;  %v5050_v45 = vadd.f32 %v5044_v41, %v5028_v54  ;;  %v3133_v3 = vsel %vm2075_vm15, %v10104_v30, 0.0  ;;  %v5064_v61 = vrot.slane %v5054_v53, 7 }
 0x448   : > { %v5027_v14 = vadd.f32 %v5019_v0, %v5005_v28  ;;  %v3122_v43 = vsel %vm3121_vm13, %v3114_v39, %v10172_v40  ;;  %v5039_v23 = vrot.slane %v5031_v63, 6  ;;  %v5053_v54 = vmul.f32 %v11716_v37, %v11456_v10 }
 0x449   : > { %v5066_v1 = vsel %vm1972_vm12, %v5064_v61, %v5065_v34  ;;  %v10312_v30 = vmul.f32 %v11705_v59, %v11642_v19  ;;  %v5062_v53 = vrot.slane %v10296_v17, 7  ;;  %v3134_v63 = vadd.f32 %v3133_v3, %v3132_v32 }
 0x44a   : > { %2786 = vadd.xlane.f32.xlu2 %v2785_v58  ;;  %v3128_v58 = vsel %vm2069_vm6, %v10172_v40, 0.0  ;;  %v5041_v28 = vsel %vm1947_vm11, %v5039_v23, %v5040_v42  ;;  %v5072_v40 = vadd.f32 %v5066_v1, %v5050_v45  ;;  %v5084_v10 = vmul.f32 %v11705_v59, %v11321_v62 }
 0x44b   : > { %v3129_v41 = vadd.f32 %v3128_v58, %v3122_v43  ;;  %v5049_v0 = vadd.f32 %v5041_v28, %v5027_v14  ;;  %v3466_v37 = vsel %vm2069_vm6, %v10045_v13, %v10144_v20  ;;  %v5061_v39 = vrot.slane %v5053_v54, 7 }
 0x44c   : > { %v5076_v61 = vmul.f32 %v11706_v15, %v11321_v62  ;;  %v10327_v58 = vmul.f32 %v11704_v4, %v11648_v50  ;;  %v10805_v45 = vrot.slane %v10312_v30, 1  ;;  %v10332_v32 = vmul.f32 %v11713_v38, %v11642_v19 }
 0x44d   : > { %3130 = vadd.xlane.f32.xlu1 %v3129_v41  ;;  %v3476_v59 = vsel %vm2075_vm15, %v10144_v20, 0.0  ;;  %v5063_v13 = vsel %vm1972_vm12, %v5061_v39, %v5062_v53  ;;  %v5083_v14 = vmul.f32 %v11704_v4, %v6848_v44  ;;  %v3475_v43 = vsel %vm1972_vm12, %v3466_v37, 0.0  ;;  %v4420_v20 = vpop.permute.xlu1 %4419 }
 0x44e   : > { %v5080_v3 = vadd.f32 %v5076_v61, %v5072_v40  ;;  %v3458_v23 = vpop.permute.xlu0 %3457  ;;  %v5071_v54 = vadd.f32 %v5063_v13, %v5049_v0  ;;  %v5094_v41 = vrot.slane %v5084_v10, 1  ;;  %v5106_v1 = vmul.f32 %v11713_v38, %v11321_v62 }
 0x44f   : > { %v3471_v28 = vsel %vm2069_vm6, %v10232_v56, 0.0  ;;  %v5075_v40 = vmul.f32 %v11703_v35, %v6848_v44  ;;  %v5092_v4 = vrot.slane %v10327_v58, 1  ;;  %v5117_v10 = vrot.slane %v10332_v32, 2  ;;  %v11731_v58 = vld [vmem:[#allocation21_spill] sm:$0xff] }
 0x450   : > { %v5096_v0 = vsel %vm414_vm0, %v5094_v41, %v10805_v45  ;;  %v10357_v38 = vmul.f32 %v11718_v8, %v11642_v19  ;;  %v3477_v37 = vadd.f32 %v3476_v59, %v3475_v43  ;;  %v5091_v61 = vrot.slane %v5083_v14, 1  ;;  %v11723_v59 = vld [vmem:[#allocation41_spill] sm:$0xff] }
 0x451   : > { %v5102_v13 = vadd.f32 %v5096_v0, %v5080_v3  ;;  %v5128_v41 = vmul.f32 %v11718_v8, %v11321_v62  ;;  %v3944_v45 = vsel %vm418_vm1, %v10204_v16, %v10089_v52  ;;  %v5105_v14 = vmul.f32 %v11712_v33, %v6848_v44 }
 0x452   : > { %3135 = vadd.xlane.f32.xlu2 %v3134_v63  ;;  %v3465_v63 = vsel %vm2069_vm6, %v3458_v23, %v10232_v56  ;;  %v10361_v56 = vmul.f32 %v11712_v33, %v11648_v50  ;;  %v4424_v23 = vsel %vm2452_vm8, %v10252_v31, %v4420_v20  ;;  %v5093_v3 = vsel %vm414_vm0, %v5091_v61, %v5092_v4 }
 0x453   : > { %v3472_v39 = vadd.f32 %v3471_v28, %v3465_v63  ;;  %v5079_v28 = vadd.f32 %v5075_v40, %v5071_v54  ;;  %v5116_v63 = vrot.slane %v5106_v1, 2  ;;  %v3945_v43 = vsel %vm418_vm1, %v10089_v52, %v10288_v46  ;;  %v11724_v40 = vld [vmem:[#allocation42_spill] sm:$0xff] }
 0x454   : > { %v4423_v8 = vsel %vm2452_vm8, %v10126_v55, %v10252_v31  ;;  %v5139_v54 = vrot.slane %v10357_v38, 3  ;;  %v4434_v1 = vsel %vm2075_vm15, %v4424_v23, 0.0  ;;  %v5114_v20 = vrot.slane %v10361_v56, 2 }
 0x455   : > { %3473 = vadd.xlane.f32.xlu1 %v3472_v39  ;;  %v5118_v16 = vsel %vm480_vm2, %v5116_v63, %v5117_v10  ;;  %v10391_v39 = vmul.f32 %v11724_v40, %v11648_v50  ;;  %v5101_v52 = vadd.f32 %v5093_v3, %v5079_v28  ;;  %v5138_v46 = vrot.slane %v5128_v41, 3 }
 0x456   : > { %v5124_v33 = vadd.f32 %v5118_v16, %v5102_v13  ;;  %v3955_v55 = vsel %vm2075_vm15, %v3945_v43, 0.0  ;;  %v4433_v31 = vsel %vm1972_vm12, %v4423_v8, 0.0  ;;  %v5113_v0 = vrot.slane %v5105_v14, 2 }
 0x457   : > { %4896 = vrot.lane.b32.xlu0 %v11723_v59, %s5541_s25  ;;  %v3954_v61 = vsel %vm1972_vm12, %v3944_v45, 0.0  ;;  %v4435_v23 = vadd.f32 %v4434_v1, %v4433_v31  ;;  %v5140_v13 = vsel %vm1872_vm7, %v5138_v46, %v5139_v54  ;;  %v5136_v28 = vrot.slane %v10391_v39, 3  ;;  %v3931_v31 = vpop.permute.xlu0 %3930 }
 0x458   : > { %v5115_v56 = vsel %vm480_vm2, %v5113_v0, %v5114_v20  ;;  %v5146_v63 = vadd.f32 %v5140_v13, %v5124_v33  ;;  %v4920_v41 = vmul.f32 %v11670_v26, %v11321_v62  ;;  %v3956_v59 = vadd.f32 %v3955_v55, %v3954_v61 }
 0x459   : > { %v5123_v3 = vadd.f32 %v5115_v56, %v5101_v52  ;;  %v4919_v45 = vmul.f32 %v11677_v27, %v6848_v44  ;;  %v11725_v43 = vrot.slane %v10120_v22, 1  ;;  %v11726_v39 = vrot.slane %v10176_v57, 2  ;;  %v3935_v57 = vpop.permute.xlu1 %3934 }
 0x45a   : > { %3478 = vadd.xlane.f32.xlu2 %v3477_v37  ;;  %v5127_v37 = vmul.f32 %v11724_v40, %v6848_v44  ;;  %v5149_v1 = vsel %vm2069_vm6, %v5146_v63, 0.0  ;;  %v3933_v44 = vpop.permute.xlu2 %3932  ;;  %v11727_v27 = vrot.slane %v10170_v21, 3  ;;  %v11728_v18 = vrot.slane %v10220_v2, 5 }
 0x45b   : > { %v4942_v8 = vadd.f32 %v11725_v43, %v4920_v41  ;;  %v4941_v33 = vadd.f32 %v4930_v51, %v4919_v45  ;;  %v5077_v60 = vmul.f32 %v11703_v35, %v11648_v50  ;;  %vm5158_vm0 = vcmask 7168  }
 0x45c   : > { %v5135_v14 = vrot.slane %v5127_v37, 3  ;;  %vm5164_vm2 = vcmask 23552   ;;  %vm5167_vm3 = vcmask 31744   ;;  %vm5186_vm9 = vcmask 65536  }
 0x45d   : > { %4436 = vadd.xlane.f32.xlu1 %v4435_v23  ;;  %v4964_v62 = vadd.f32 %v4955_v49, %v4942_v8  ;;  %v4963_v52 = vadd.f32 %v11726_v39, %v4941_v33  ;;  %v3943_v23 = vsel %vm418_vm1, %v3933_v44, %v3935_v57 }
 0x45e   : > { %v5137_v16 = vsel %vm1872_vm7, %v5135_v14, %v5136_v28  ;;  %v3950_v56 = vsel %vm2069_vm6, %v3943_v23, 0.0  ;;  %vm5179_vm7 = vcmask 64512  }
 0x45f   : > { %v5145_v40 = vadd.f32 %v5137_v16, %v5123_v3  ;;  %v4986_v22 = vadd.f32 %v11727_v27, %v4964_v62  ;;  %v4985_v46 = vadd.f32 %v4974_v24, %v4963_v52  ;;  %v5078_v24 = vmul.f32 %v11706_v15, %v11642_v19 }
 0x461   : > { %v5150_v26 = vadd.f32 %v5149_v1, %v5145_v40  ;;  %v5008_v25 = vadd.f32 %v4999_v7, %v4986_v22  ;;  %v5007_v51 = vadd.f32 %v4996_v29, %v4985_v46  ;;  %v4414_v12 = vpop.permute.xlu1 %4413  ;;  %v4412_v29 = vpop.permute.xlu0 %4411 }
 0x462   : > { %3957 = vadd.xlane.f32.xlu2 %v3956_v59  ;;  %v4410_v55 = vpop.permute.xlu2 %4409  ;;  %v4422_v38 = vsel %vm2452_vm8, %v4412_v29, %v4414_v12 }
 0x463   : > { %v5030_v49 = vadd.f32 %v11728_v18, %v5008_v25  ;;  %v5029_v0 = vadd.f32 %v5018_v5, %v5007_v51  ;;  %v11729_v5 = vrot.slane %v10312_v30, 1 }
 0x465   : > { %5151 = vadd.xlane.f32.xlu1 %v5150_v26  ;;  %v5052_v21 = vadd.f32 %v5043_v6, %v5030_v49  ;;  %v5051_v48 = vadd.f32 %v5040_v42, %v5029_v0  ;;  %v11730_v42 = vld [vmem:[#allocation92_spill] sm:$0xff] }
 0x467   : > { %v5074_v9 = vadd.f32 %v5065_v34, %v5052_v21  ;;  %v5073_v2 = vadd.f32 %v5062_v53, %v5051_v48 }
 0x469   : > { %v5082_v47 = vadd.f32 %v5078_v24, %v5074_v9  ;;  %v5081_v6 = vadd.f32 %v5077_v60, %v5073_v2 }
 0x46b   : > { %v4895_v7 = vpop.permute.xlu2 %4894  ;;  %v5104_v36 = vadd.f32 %v11729_v5, %v5082_v47  ;;  %v5103_v11 = vadd.f32 %v5092_v4, %v5081_v6 }
 0x46d   : > { %v5126_v19 = vadd.f32 %v5117_v10, %v5104_v36  ;;  %v5125_v37 = vadd.f32 %v5114_v20, %v5103_v11  ;;  %v3942_v10 = vsel %vm418_vm1, %v3931_v31, %v3933_v44  ;;  %vm5161_vm1 = vcmask 15360  }
 0x46e   : > { %v3951_v20 = vadd.f32 %v3950_v56, %v3942_v10 }
 0x46f   : > { %v5148_v61 = vadd.f32 %v5139_v54, %v5126_v19  ;;  %v5147_v4 = vadd.f32 %v5136_v28, %v5125_v37  ;;  %v4421_v54 = vsel %vm2452_vm8, %v4410_v55, %v4412_v29  ;;  %v4429_v28 = vsel %vm2069_vm6, %v4422_v38, 0.0 }
 0x470   : > { %v4430_v41 = vadd.f32 %v4429_v28, %v4421_v54  ;;  %vm5184_vm8 = vcmask 72704  }
 0x471   : > { %v5154_v32 = vsel %vm2075_vm15, %v5148_v61, 0.0  ;;  %v5153_v13 = vsel %vm1972_vm12, %v5147_v4, 0.0 }
 0x472   : > { %v5155_v63 = vadd.f32 %v5154_v32, %v5153_v13 }
 0x473   : > { %v4889_v34 = vpop.permute.xlu2 %4888 }
 0x47d   : > { %v4893_v17 = vpop.permute.xlu1 %4892 }
 0x481   : > { %2446 = vadd.xlane.f32.xlu0 %v11730_v42 }
 0x483   : > { %v4891_v53 = vpop.permute.xlu0 %4890 }
 0x484   : > { %v4900_v15 = vsel %vm2086_vm5, %v4889_v34, %v4891_v53  ;;  %v4901_v50 = vsel %vm2086_vm5, %v4891_v53, %v4893_v17 }
 0x485   : > { %v4908_v35 = vsel %vm2069_vm6, %v4901_v50, 0.0  ;;  %vm5173_vm6 = vcmask 48128  }
 0x486   : > { %v4909_v30 = vadd.f32 %v4908_v35, %v4900_v15 }
 0x487   : > { %v4899_v14 = vpop.permute.xlu1 %4898 }
 0x488   : > { %4910 = vadd.xlane.f32.xlu2 %v4909_v30 }
 0x489   : > { %2791 = vadd.xlane.f32.xlu0 %v11731_v58 }
 0x490   : > { %5156 = vadd.xlane.f32.xlu2 %v5155_v63 }
 0x491   : > { %3952 = vadd.xlane.f32.xlu0 %v3951_v20 }
 0x499   : > { %4431 = vadd.xlane.f32.xlu0 %v4430_v41 }
 0x4ae   : > { %v2079_v59 = vpop.xlane.xlu0 %2078 }
 0x4b5   : > { %v2442_v40 = vpop.xlane.xlu2 %2441 }
 0x4b6   : > { %v2073_v3 = vpop.xlane.xlu0 %2072 }
 0x4b7   : > { %v5159_v31 = vsel %vm5158_vm0, %v2073_v3, %v2442_v40 }
 0x4bd   : > { %v2787_v62 = vpop.xlane.xlu2 %2786 }
 0x4be   : > { %v5162_v0 = vsel %vm5161_vm1, %v5159_v31, %v2787_v62 }
 0x4c0   : > { %v3131_v26 = vpop.xlane.xlu1 %3130 }
 0x4c1   : > { %v5165_v21 = vsel %vm5164_vm2, %v5162_v0, %v3131_v26 }
 0x4c5   : > { %v3136_v39 = vpop.xlane.xlu2 %3135 }
 0x4c8   : > { %v3474_v27 = vpop.xlane.xlu1 %3473 }
 0x4c9   : > { %v4897_v45 = vpop.permute.xlu0 %4896  ;;  %v5168_v48 = vsel %vm5167_vm3, %v5165_v21, %v3474_v27 }
 0x4ca   : > { %v4902_v43 = vsel %vm2086_vm5, %v4895_v7, %v4897_v45  ;;  %v4903_v8 = vsel %vm2086_vm5, %v4897_v45, %v4899_v14  ;;  %vm5176_vm5 = vcmask 56320  }
 0x4cb   : > { %v4912_v16 = vsel %vm1972_vm12, %v4902_v43, 0.0  ;;  %v4913_v1 = vsel %vm2075_vm15, %v4903_v8, 0.0 }
 0x4cc   : > { %v4914_v33 = vadd.f32 %v4913_v1, %v4912_v16 }
 0x4cd   : > { %v3479_v22 = vpop.xlane.xlu2 %3478 }
 0x4ce   : > { %4915 = vadd.xlane.f32.xlu0 %v4914_v33 }
 0x4d0   : > { %v4437_v49 = vpop.xlane.xlu1 %4436 }
 0x4d5   : > { %v3958_v57 = vpop.xlane.xlu2 %3957 }
 0x4d8   : > { %v5152_v12 = vpop.xlane.xlu1 %5151 }
 0x4f4   : > { %v2447_v52 = vpop.xlane.xlu0 %2446 }
 0x4f5   : > { %v5160_v44 = vsel %vm5158_vm0, %v2079_v59, %v2447_v52 }
 0x4fb   : > { %v4911_v2 = vpop.xlane.xlu2 %4910 }
 0x4fc   : > { %v2792_v46 = vpop.xlane.xlu0 %2791 }
 0x4fd   : > { %v5163_v25 = vsel %vm5161_vm1, %v5160_v44, %v2792_v46 }
 0x4fe   : > { %v5166_v51 = vsel %vm5164_vm2, %v5163_v25, %v3136_v39 }
 0x4ff   : > { %v5169_v18 = vsel %vm5167_vm3, %v5166_v51, %v3479_v22 }
 0x500   : > { %v5172_v6 = vsel %vm5170_vm4, %v5169_v18, %v3958_v57 }
 0x501   : > { %v5175_v5 = vsel %vm5173_vm6, %v5172_v6, %v4437_v49 }
 0x503   : > { %v5157_v42 = vpop.xlane.xlu2 %5156 }
 0x504   : > { %v3953_v55 = vpop.xlane.xlu0 %3952 }
 0x505   : > { %v5171_v9 = vsel %vm5170_vm4, %v5168_v48, %v3953_v55 }
 0x50c   : > { %v4432_v7 = vpop.xlane.xlu0 %4431 }
 0x50d   : > { %v5174_v24 = vsel %vm5173_vm6, %v5171_v9, %v4432_v7 }
 0x50e   : > { %v5177_v29 = vsel %vm5176_vm5, %v5174_v24, %v4911_v2 }
 0x50f   : > { %v5180_v60 = vsel %vm5179_vm7, %v5177_v29, %v5152_v12 }
 0x510   : > { %v5182_v47 = vmul.f32 0.001, %v5180_v60 }
 0x512   : > { %5185 = vst.msk [vmem:[%s396_s19] sm:$0xff] %vm5184_vm8, %v5182_v47 }
 0x541   : > { %v4916_v36 = vpop.xlane.xlu0 %4915 }
 0x542   : > { %v5178_v11 = vsel %vm5176_vm5, %v5175_v5, %v4916_v36 }
 0x543   : > { %v5181_v34 = vsel %vm5179_vm7, %v5178_v11, %v5157_v42 }
 0x544   : > { %v5183_v17 = vmul.f32 0.001, %v5181_v34 }
 0x546   : > { %5187 = vst.msk [vmem:[%s396_s19 + $0x8] sm:$0x1] %vm5186_vm9, %v5183_v17 }
 0x547 PF: > { %s21_s13 = sadd.s32 1, %s5536_s13  }
 0x548   : > { %p18_p7 = scmp.ge.s32.totalorder %s21_s13, 4  }
 0x54a   :  { %20 = sbr.rel (!%p18_p7) target bundleno = 1 (0x1), region = 106 }
 0x54f   :  { %5209 = vsyncpa [#allocation3], 1 }
 0x550   :  { %5211 = vsyncpa [#allocation3 + $0x1], 1 }

</bundles_post_ra>
